<compile_context>
chip_gen: v6e
topology: v6e:2x2x1
jax: 0.10.0
libtpu: 0.0.40
codegen_flags: <defaults>
</compile_context>

<pallas_src>
import jax
import jax.numpy as jnp
from jax.experimental import pallas as pl
from jax.experimental.pallas import tpu as pltpu

# ---- small, lane-dense, BERT-consistent shapes ------------------------------
B = 2            # batch (number of sentences)
S = 128          # sequence length (tokenizer max_length=128)
H = 128          # hidden size (lane-dense stand-in for 768 / 312)
NH = 4           # attention heads
HD = H // NH     # head dim (32)
FF = 256         # FFN intermediate size (multiple of 128)
E = 128          # embed_dim (lane-dense so the head store is unmasked)
VOCAB = 512
NLAYERS = 2
LN_EPS = 1e-12


def _layer_norm(x, gamma, beta, eps=LN_EPS):
    # Single-pass statistics: mean and E[x^2] (var = E[x^2] - mean^2).
    mu = jnp.mean(x, axis=-1, keepdims=True)
    ex2 = jnp.mean(x * x, axis=-1, keepdims=True)
    var = jnp.maximum(ex2 - mu * mu, 0.0)
    return (x - mu) * jax.lax.rsqrt(var + eps) * gamma + beta


def _erf(x):
    # Abramowitz & Stegun 7.1.26 — exact-GELU fidelity in f32 using only
    # exp / mul / add / where / approx-recip (guaranteed Mosaic lowering).
    p = 0.3275911
    a1, a2, a3, a4, a5 = 0.254829592, -0.284496736, 1.421413741, -1.453152027, 1.061405429
    ax = jnp.abs(x)
    t = pl.reciprocal(1.0 + p * ax, approx=True)       # EUP, approx divide
    poly = ((((a5 * t + a4) * t + a3) * t + a2) * t + a1) * t
    y = 1.0 - poly * jnp.exp(-ax * ax)
    return jnp.where(x >= 0, y, -y)


def _gelu_exact(x):
    # HuggingFace BERT uses exact (erf) GELU, not the tanh approximation.
    return 0.5 * x * (1.0 + _erf(x * 0.7071067811865476))


# -----------------------------------------------------------------------------
# Fused kernel over grid (B, NLAYERS):
#   l==0 : embedding-LayerNorm into the carried activation scratch
#   every l: one encoder layer (fused QKV, per-head softmax, dense W_O, FFN)
#   l==last: CLS row -> Linear(H, E) -> l2_normalize -> output
# -----------------------------------------------------------------------------
def encoder_bert_kernel(x_ref, eg_ref, eb_ref,
                        wqkv_ref, bqkv_ref, wo_ref, bo_ref, g1_ref, b1_ref,
                        w1_ref, bf1_ref, w2_ref, bf2_ref, g2_ref, b2_ref,
                        wh_ref, bh_ref,
                        emb_ref, xs_ref, ctx_ref):
    l = pl.program_id(1)
    n_layers = pl.num_programs(1)

    @pl.when(l == 0)
    def _():
        # Embedding LayerNorm (gather happens outside the kernel).
        xs_ref[...] = _layer_norm(x_ref[0].astype(jnp.float32),
                                  eg_ref[...], eb_ref[...])

    x = xs_ref[...]                                        # (S, H) f32 carried activation
    xb = x.astype(jnp.bfloat16)

    # ---- fused Q/K/V projection: one lane-dense MXU matmul (scale folded into Wq/bq)
    qkv = jnp.dot(xb, wqkv_ref[0],
                  preferred_element_type=jnp.float32) + bqkv_ref[0]   # (S, 3H) f32
    qkvb = qkv.astype(jnp.bfloat16)                                    # single f32->bf16 cast

    # ---- per-head attention (NH=4, fully unrolled); ctx assembled lane-dense in scratch
    for h in range(NH):
        qh = qkvb[:, h * HD:(h + 1) * HD]                  # (S, HD) bf16 (pre-scaled)
        kh = qkvb[:, H + h * HD:H + (h + 1) * HD]          # (S, HD) bf16
        vh = qkvb[:, 2 * H + h * HD:2 * H + (h + 1) * HD]  # (S, HD) bf16
        # scores: 'qd,kd->qk' (MXU handles the transposed contraction natively)
        s = jax.lax.dot_general(qh, kh, (((1,), (1,)), ((), ())),
                                preferred_element_type=jnp.float32)    # (S, S) f32
        s = s - jnp.max(s, axis=-1, keepdims=True)
        p = jnp.exp(s)
        denom = jnp.sum(p, axis=-1, keepdims=True)
        c = jnp.dot(p.astype(jnp.bfloat16), vh,
                    preferred_element_type=jnp.float32)                # (S, HD) f32
        # normalize AFTER the AV matmul: (S,HD) mults instead of (S,S)
        ctx_ref[:, h * HD:(h + 1) * HD] = c * pl.reciprocal(denom, approx=True)

    # ---- dense output projection: one (S,128)@(128,128) matmul
    ctx = ctx_ref[...].astype(jnp.bfloat16)                            # (S, H) bf16
    attn = jnp.dot(ctx, wo_ref[0],
                   preferred_element_type=jnp.float32) + bo_ref[0]     # (S, H) f32

    x1 = _layer_norm(x + attn, g1_ref[0], b1_ref[0])

    # ---- FFN (bf16 MXU operands, f32 accumulate, exact GELU)
    hdn = jnp.dot(x1.astype(jnp.bfloat16), w1_ref[0],
                  preferred_element_type=jnp.float32) + bf1_ref[0]     # (S, FF)
    hdn = _gelu_exact(hdn)
    y = jnp.dot(hdn.astype(jnp.bfloat16), w2_ref[0],
                preferred_element_type=jnp.float32) + bf2_ref[0]       # (S, H)
    x_new = _layer_norm(x1 + y, g2_ref[0], b2_ref[0])

    xs_ref[...] = x_new                                                # carry to next layer

    @pl.when(l == n_layers - 1)
    def _():
        # CLS head: last_hidden_state[:, 0, :] -> Linear(H, E) -> l2_normalize.
        cls = x_new[0:1, :].astype(jnp.bfloat16)                       # (1, H)
        e = jnp.dot(cls, wh_ref[...],
                    preferred_element_type=jnp.float32) + bh_ref[...]  # (1, E)
        ss = jnp.sum(e * e, axis=-1, keepdims=True)
        # == F.normalize(p=2, dim=-1, eps=1e-12): x / max(||x||, 1e-12)
        e = e * jax.lax.rsqrt(jnp.maximum(ss, 1e-24))
        emb_ref[0] = e.astype(emb_ref.dtype)


def encoder_bert_forward(token_ids, params):
    """token_ids: (B, S) int32 -> {'embedding': (B, E) L2-normalized}."""
    # Embedding lookup is cheap glue in plain JAX (data-dependent gather).
    # TODO(synk): real BERT also adds token_type embeddings and a padding mask;
    # synthetic all-ones attention mask / no token types here.
    x = params["word_emb"][token_ids] + params["pos_emb"][None, :, :]  # (B, S, H) f32

    in_specs = [
        pl.BlockSpec((1, S, H), lambda b, l: (b, 0, 0)),        # x (constant across l)
        pl.BlockSpec((1, H), lambda b, l: (0, 0)),              # emb LN gamma
        pl.BlockSpec((1, H), lambda b, l: (0, 0)),              # emb LN beta
        pl.BlockSpec((1, H, 3 * H), lambda b, l: (l, 0, 0)),    # Wqkv (streamed per layer)
        pl.BlockSpec((1, 1, 3 * H), lambda b, l: (l, 0, 0)),    # bqkv (lane-dense packed)
        pl.BlockSpec((1, H, H), lambda b, l: (l, 0, 0)),        # Wo
        pl.BlockSpec((1, 1, H), lambda b, l: (l, 0, 0)),        # bo
        pl.BlockSpec((1, 1, H), lambda b, l: (l, 0, 0)),        # LN1 gamma
        pl.BlockSpec((1, 1, H), lambda b, l: (l, 0, 0)),        # LN1 beta
        pl.BlockSpec((1, H, FF), lambda b, l: (l, 0, 0)),       # W1
        pl.BlockSpec((1, 1, FF), lambda b, l: (l, 0, 0)),       # b1
        pl.BlockSpec((1, FF, H), lambda b, l: (l, 0, 0)),       # W2
        pl.BlockSpec((1, 1, H), lambda b, l: (l, 0, 0)),        # b2
        pl.BlockSpec((1, 1, H), lambda b, l: (l, 0, 0)),        # LN2 gamma
        pl.BlockSpec((1, 1, H), lambda b, l: (l, 0, 0)),        # LN2 beta
        pl.BlockSpec((H, E), lambda b, l: (0, 0)),              # head Linear W
        pl.BlockSpec((1, E), lambda b, l: (0, 0)),              # head Linear b
    ]
    # Note: per-layer weight specs keep default double-buffering on purpose
    # (layer l+1 weights stream while layer l computes). Only the tiny constant
    # tensors (~34 KiB) are needlessly double-buffered — negligible.
    emb = pl.pallas_call(
        encoder_bert_kernel,
        out_shape=jax.ShapeDtypeStruct((B, 1, E), jnp.float32),
        grid_spec=pltpu.PrefetchScalarGridSpec(
            num_scalar_prefetch=0,
            grid=(B, NLAYERS),                # B parallel (v7x: one seq per TC); layers streamed
            in_specs=in_specs,
            out_specs=pl.BlockSpec((1, 1, E), lambda b, l: (b, 0, 0)),
            scratch_shapes=[
                pltpu.VMEM((S, H), jnp.float32),   # carried activation
                pltpu.VMEM((S, H), jnp.float32),   # per-layer attention context assembly
            ],
        ),
        compiler_params=pltpu.CompilerParams(
            dimension_semantics=("parallel", "arbitrary"),
        ),
    )(x, params["emb_gamma"], params["emb_beta"],
      params["wqkv"], params["bqkv"], params["wo"], params["bo"],
      params["g1"], params["b1"],
      params["w1"], params["bf1"], params["w2"], params["bf2"],
      params["g2"], params["b2"],
      params["lin_w"], params["lin_b"])
    return {"embedding": emb[:, 0, :]}


# -----------------------------------------------------------------------------
# Parameter init (deterministic, synthetic — stands in for pretrained weights).
# MXU-side weights are bf16; biases / LN params stay f32. 1/sqrt(HD) is folded
# into Wq and bq at init (no per-score scaling in the kernel).
# -----------------------------------------------------------------------------
def init_params(key):
    def nrm(k, shape, scale=0.02, dtype=jnp.bfloat16):
        return (scale * jax.random.normal(k, shape, dtype=jnp.float32)).astype(dtype)

    keys = jax.random.split(key, 4 + 10 * NLAYERS)
    p = {
        "word_emb": nrm(keys[0], (VOCAB, H), dtype=jnp.float32),
        "pos_emb": nrm(keys[1], (S, H), dtype=jnp.float32),
        "emb_gamma": jnp.ones((1, H), jnp.float32),
        "emb_beta": jnp.zeros((1, H), jnp.float32),
        # stored (in, out): x @ W + b  (transpose of torch nn.Linear's (out, in))
        "lin_w": nrm(keys[2], (H, E)),
        "lin_b": nrm(keys[3], (1, E), dtype=jnp.float32),
    }
    attn_scale = 1.0 / (HD ** 0.5)
    acc = {n: [] for n in ("wqkv", "bqkv", "wo", "bo", "g1", "b1",
                           "w1", "bf1", "w2", "bf2", "g2", "b2")}
    for l in range(NLAYERS):
        k = keys[4 + 10 * l: 4 + 10 * (l + 1)]
        wq = nrm(k[0], (H, H), dtype=jnp.float32) * attn_scale   # scale folded into Wq
        wk = nrm(k[1], (H, H), dtype=jnp.float32)
        wv = nrm(k[2], (H, H), dtype=jnp.float32)
        acc["wqkv"].append(jnp.concatenate([wq, wk, wv], axis=-1).astype(jnp.bfloat16))
        bq = nrm(k[3], (1, H), dtype=jnp.float32) * attn_scale   # scale folded into bq
        bk = nrm(k[4], (1, H), dtype=jnp.float32)
        bv = nrm(k[5], (1, H), dtype=jnp.float32)
        acc["bqkv"].append(jnp.concatenate([bq, bk, bv], axis=-1))         # (1, 3H) f32
        acc["wo"].append(nrm(k[6], (H, H)))                                # dense W_O
        acc["bo"].append(jnp.zeros((1, H), jnp.float32))
        acc["g1"].append(jnp.ones((1, H), jnp.float32))
        acc["b1"].append(jnp.zeros((1, H), jnp.float32))
        acc["w1"].append(nrm(k[7], (H, FF)))
        acc["bf1"].append(nrm(k[8], (1, FF), dtype=jnp.float32))
        acc["w2"].append(nrm(k[9], (FF, H)))
        acc["bf2"].append(jnp.zeros((1, H), jnp.float32))
        acc["g2"].append(jnp.ones((1, H), jnp.float32))
        acc["b2"].append(jnp.zeros((1, H), jnp.float32))
    for n, xs in acc.items():
        p[n] = jnp.stack(xs, axis=0)
    return p


if __name__ == "__main__":
    key = jax.random.PRNGKey(0)
    pkey, tkey = jax.random.split(key)
    params = init_params(pkey)

    # TODO(synk): HuggingFace tokenizer + pretrained BertModel weights have no
    # Pallas equivalent; synthetic deterministic token ids (attention_mask of
    # all ones, i.e. no padding mask) stand in for tokenizer output.
    token_ids = jax.random.randint(tkey, (B, S), 0, VOCAB, dtype=jnp.int32)

    out = encoder_bert_forward(token_ids, params)
    emb = jax.block_until_ready(out["embedding"])
    assert emb.shape == (B, E)
    norms = jnp.linalg.norm(emb, axis=-1)
    assert bool(jnp.all(jnp.abs(norms - 1.0) < 1e-3))
    print("KERNEL_OK")
</pallas_src>

<mosaic_0001>
module attributes {stable_mosaic.version = 11 : i64} {
  func.func @encoder_bert_kernel(%arg0: i32, %arg1: i32, %arg2: memref<1x128x128xf32, #tpu.memory_space<vmem>>, %arg3: memref<1x128xf32, #tpu.memory_space<vmem>>, %arg4: memref<1x128xf32, #tpu.memory_space<vmem>>, %arg5: memref<1x128x384xbf16, #tpu.memory_space<vmem>>, %arg6: memref<1x1x384xf32, #tpu.memory_space<vmem>>, %arg7: memref<1x128x128xbf16, #tpu.memory_space<vmem>>, %arg8: memref<1x1x128xf32, #tpu.memory_space<vmem>>, %arg9: memref<1x1x128xf32, #tpu.memory_space<vmem>>, %arg10: memref<1x1x128xf32, #tpu.memory_space<vmem>>, %arg11: memref<1x128x256xbf16, #tpu.memory_space<vmem>>, %arg12: memref<1x1x256xf32, #tpu.memory_space<vmem>>, %arg13: memref<1x256x128xbf16, #tpu.memory_space<vmem>>, %arg14: memref<1x1x128xf32, #tpu.memory_space<vmem>>, %arg15: memref<1x1x128xf32, #tpu.memory_space<vmem>>, %arg16: memref<1x1x128xf32, #tpu.memory_space<vmem>>, %arg17: memref<128x128xbf16, #tpu.memory_space<vmem>>, %arg18: memref<1x128xf32, #tpu.memory_space<vmem>>, %arg19: memref<1x1x128xf32, #tpu.memory_space<vmem>>, %arg20: memref<128x128xf32, #tpu.memory_space<vmem>>, %arg21: memref<128x128xf32, #tpu.memory_space<vmem>>) attributes {dimension_semantics = [#tpu.dimension_semantics<parallel>, #tpu.dimension_semantics<arbitrary>], iteration_bounds = array<i64: 2, 2>, scalar_prefetch = 0 : i64, scratch_operands = 2 : i64, tpu.core_type = #tpu.core_type<tc>, window_params = [{transform_indices = @transform_0, window_bounds = array<i64: 1, 128, 128>}, {pipeline_mode = #tpu.pipeline_mode<synchronous>, transform_indices = @transform_1, window_bounds = array<i64: 1, 128>}, {pipeline_mode = #tpu.pipeline_mode<synchronous>, transform_indices = @transform_2, window_bounds = array<i64: 1, 128>}, {transform_indices = @transform_3, window_bounds = array<i64: 1, 128, 384>}, {transform_indices = @transform_4, window_bounds = array<i64: 1, 1, 384>}, {transform_indices = @transform_5, window_bounds = array<i64: 1, 128, 128>}, {transform_indices = @transform_6, window_bounds = array<i64: 1, 1, 128>}, {transform_indices = @transform_7, window_bounds = array<i64: 1, 1, 128>}, {transform_indices = @transform_8, window_bounds = array<i64: 1, 1, 128>}, {transform_indices = @transform_9, window_bounds = array<i64: 1, 128, 256>}, {transform_indices = @transform_10, window_bounds = array<i64: 1, 1, 256>}, {transform_indices = @transform_11, window_bounds = array<i64: 1, 256, 128>}, {transform_indices = @transform_12, window_bounds = array<i64: 1, 1, 128>}, {transform_indices = @transform_13, window_bounds = array<i64: 1, 1, 128>}, {transform_indices = @transform_14, window_bounds = array<i64: 1, 1, 128>}, {pipeline_mode = #tpu.pipeline_mode<synchronous>, transform_indices = @transform_15, window_bounds = array<i64: 128, 128>}, {pipeline_mode = #tpu.pipeline_mode<synchronous>, transform_indices = @transform_16, window_bounds = array<i64: 1, 128>}, {transform_indices = @transform_17, window_bounds = array<i64: 1, 1, 128>}]} {
    %c0_i32 = arith.constant 0 : i32
    %0 = arith.cmpi eq, %arg1, %c0_i32 : i32
    %1 = arith.extui %0 : i1 to i32
    %c0_i32_0 = arith.constant 0 : i32
    %2 = arith.cmpi ne, %1, %c0_i32_0 : i32
    scf.if %2 {
      %c0_93 = arith.constant 0 : index
      %c0_94 = arith.constant 0 : index
      %c0_95 = arith.constant 0 : index
      %207 = vector.load %arg2[%c0_93, %c0_94, %c0_95] : memref<1x128x128xf32, #tpu.memory_space<vmem>>, vector<1x128x128xf32>
      %208 = vector.shape_cast %207 : vector<1x128x128xf32> to vector<128x128xf32>
      %c0_96 = arith.constant 0 : index
      %c0_97 = arith.constant 0 : index
      %209 = vector.load %arg3[%c0_96, %c0_97] : memref<1x128xf32, #tpu.memory_space<vmem>>, vector<1x128xf32>
      %c0_98 = arith.constant 0 : index
      %c0_99 = arith.constant 0 : index
      %210 = vector.load %arg4[%c0_98, %c0_99] : memref<1x128xf32, #tpu.memory_space<vmem>>, vector<1x128xf32>
      %cst_100 = arith.constant dense<0.000000e+00> : vector<128xf32>
      %211 = vector.multi_reduction <add>, %208, %cst_100 [1] : vector<128x128xf32> to vector<128xf32>
      %212 = vector.shape_cast %211 : vector<128xf32> to vector<128x1xf32>
      %cst_101 = arith.constant 1.280000e+02 : f32
      %213 = vector.broadcast %cst_101 : f32 to vector<128x1xf32>
      %214 = arith.divf %212, %213 : vector<128x1xf32>
      %215 = arith.mulf %208, %208 : vector<128x128xf32>
      %cst_102 = arith.constant dense<0.000000e+00> : vector<128xf32>
      %216 = vector.multi_reduction <add>, %215, %cst_102 [1] : vector<128x128xf32> to vector<128xf32>
      %217 = vector.shape_cast %216 : vector<128xf32> to vector<128x1xf32>
      %cst_103 = arith.constant 1.280000e+02 : f32
      %218 = vector.broadcast %cst_103 : f32 to vector<128x1xf32>
      %219 = arith.divf %217, %218 : vector<128x1xf32>
      %220 = arith.mulf %214, %214 : vector<128x1xf32>
      %221 = arith.subf %219, %220 : vector<128x1xf32>
      %cst_104 = arith.constant 0.000000e+00 : f32
      %222 = vector.broadcast %cst_104 : f32 to vector<128x1xf32>
      %223 = arith.maximumf %221, %222 : vector<128x1xf32>
      %224 = vector.broadcast %214 : vector<128x1xf32> to vector<128x128xf32>
      %225 = arith.subf %208, %224 : vector<128x128xf32>
      %cst_105 = arith.constant 9.99999996E-13 : f32
      %226 = vector.broadcast %cst_105 : f32 to vector<128x1xf32>
      %227 = arith.addf %223, %226 : vector<128x1xf32>
      %228 = math.rsqrt %227 : vector<128x1xf32>
      %229 = vector.broadcast %228 : vector<128x1xf32> to vector<128x128xf32>
      %230 = arith.mulf %225, %229 : vector<128x128xf32>
      %231 = vector.broadcast %209 : vector<1x128xf32> to vector<128x128xf32>
      %232 = arith.mulf %230, %231 : vector<128x128xf32>
      %233 = vector.broadcast %210 : vector<1x128xf32> to vector<128x128xf32>
      %234 = arith.addf %232, %233 : vector<128x128xf32>
      %c0_106 = arith.constant 0 : index
      %c0_107 = arith.constant 0 : index
      %235 = vector.load %arg20[%c0_106, %c0_107] : memref<128x128xf32, #tpu.memory_space<vmem>>, vector<128x128xf32>
      tpu.vector_store %arg20[%c0_106, %c0_107], %234 {strides = array<i32>} : memref<128x128xf32, #tpu.memory_space<vmem>>, vector<128x128xf32>,
    } else {
    }
    %c0 = arith.constant 0 : index
    %c0_1 = arith.constant 0 : index
    %3 = vector.load %arg20[%c0, %c0_1] : memref<128x128xf32, #tpu.memory_space<vmem>>, vector<128x128xf32>
    %4 = arith.truncf %3 : vector<128x128xf32> to vector<128x128xbf16>
    %c0_2 = arith.constant 0 : index
    %c0_3 = arith.constant 0 : index
    %c0_4 = arith.constant 0 : index
    %5 = vector.load %arg5[%c0_2, %c0_3, %c0_4] : memref<1x128x384xbf16, #tpu.memory_space<vmem>>, vector<1x128x384xbf16>
    %6 = vector.shape_cast %5 : vector<1x128x384xbf16> to vector<128x384xbf16>
    %cst = arith.constant dense<0.000000e+00> : vector<128x384xf32>
    %7 = tpu.matmul %4, %6, %cst {dimension_numbers = #tpu.dot_dimension_numbers<[1], [0], [0], [1], [0, 0, 1, 1], [], []>} : vector<128x128xbf16>, vector<128x384xbf16>, vector<128x384xf32> -> vector<128x384xf32>
    %c0_5 = arith.constant 0 : index
    %c0_6 = arith.constant 0 : index
    %c0_7 = arith.constant 0 : index
    %8 = vector.load %arg6[%c0_5, %c0_6, %c0_7] : memref<1x1x384xf32, #tpu.memory_space<vmem>>, vector<1x1x384xf32>
    %9 = vector.shape_cast %8 : vector<1x1x384xf32> to vector<1x384xf32>
    %10 = vector.broadcast %9 : vector<1x384xf32> to vector<128x384xf32>
    %11 = arith.addf %7, %10 : vector<128x384xf32>
    %12 = arith.truncf %11 : vector<128x384xf32> to vector<128x384xbf16>
    %13 = vector.extract_strided_slice %12 {offsets = [0, 0], sizes = [128, 32], strides = [1, 1]} : vector<128x384xbf16> to vector<128x32xbf16>
    %14 = vector.extract_strided_slice %12 {offsets = [0, 128], sizes = [128, 32], strides = [1, 1]} : vector<128x384xbf16> to vector<128x32xbf16>
    %15 = vector.extract_strided_slice %12 {offsets = [0, 256], sizes = [128, 32], strides = [1, 1]} : vector<128x384xbf16> to vector<128x32xbf16>
    %cst_8 = arith.constant dense<0.000000e+00> : vector<128x128xf32>
    %16 = tpu.matmul %13, %14, %cst_8 {dimension_numbers = #tpu.dot_dimension_numbers<[1], [1], [0], [0], [0, 0, 1, 0], [], []>} : vector<128x32xbf16>, vector<128x32xbf16>, vector<128x128xf32> -> vector<128x128xf32>
    %cst_9 = arith.constant dense<0xFF800000> : vector<128xf32>
    %17 = vector.multi_reduction <maximumf>, %16, %cst_9 [1] : vector<128x128xf32> to vector<128xf32>
    %18 = vector.shape_cast %17 : vector<128xf32> to vector<128x1xf32>
    %19 = vector.broadcast %18 : vector<128x1xf32> to vector<128x128xf32>
    %20 = arith.subf %16, %19 : vector<128x128xf32>
    %21 = math.exp %20 : vector<128x128xf32>
    %cst_10 = arith.constant dense<0.000000e+00> : vector<128xf32>
    %22 = vector.multi_reduction <add>, %21, %cst_10 [1] : vector<128x128xf32> to vector<128xf32>
    %23 = vector.shape_cast %22 : vector<128xf32> to vector<128x1xf32>
    %24 = arith.truncf %21 : vector<128x128xf32> to vector<128x128xbf16>
    %cst_11 = arith.constant dense<0.000000e+00> : vector<128x32xf32>
    %25 = tpu.matmul %24, %15, %cst_11 {dimension_numbers = #tpu.dot_dimension_numbers<[1], [0], [0], [1], [0, 0, 1, 1], [], []>} : vector<128x128xbf16>, vector<128x32xbf16>, vector<128x32xf32> -> vector<128x32xf32>
    %26 = tpu.reciprocal %23 {approx = true} : vector<128x1xf32> -> vector<128x1xf32>
    %27 = vector.broadcast %26 : vector<128x1xf32> to vector<128x32xf32>
    %28 = arith.mulf %25, %27 : vector<128x32xf32>
    %c0_12 = arith.constant 0 : index
    %c0_13 = arith.constant 0 : index
    %29 = vector.load %arg21[%c0_12, %c0_13] : memref<128x128xf32, #tpu.memory_space<vmem>>, vector<128x32xf32>
    tpu.vector_store %arg21[%c0_12, %c0_13], %28 {strides = array<i32>} : memref<128x128xf32, #tpu.memory_space<vmem>>, vector<128x32xf32>,
    %30 = vector.extract_strided_slice %12 {offsets = [0, 32], sizes = [128, 32], strides = [1, 1]} : vector<128x384xbf16> to vector<128x32xbf16>
    %31 = vector.extract_strided_slice %12 {offsets = [0, 160], sizes = [128, 32], strides = [1, 1]} : vector<128x384xbf16> to vector<128x32xbf16>
    %32 = vector.extract_strided_slice %12 {offsets = [0, 288], sizes = [128, 32], strides = [1, 1]} : vector<128x384xbf16> to vector<128x32xbf16>
    %cst_14 = arith.constant dense<0.000000e+00> : vector<128x128xf32>
    %33 = tpu.matmul %30, %31, %cst_14 {dimension_numbers = #tpu.dot_dimension_numbers<[1], [1], [0], [0], [0, 0, 1, 0], [], []>} : vector<128x32xbf16>, vector<128x32xbf16>, vector<128x128xf32> -> vector<128x128xf32>
    %cst_15 = arith.constant dense<0xFF800000> : vector<128xf32>
    %34 = vector.multi_reduction <maximumf>, %33, %cst_15 [1] : vector<128x128xf32> to vector<128xf32>
    %35 = vector.shape_cast %34 : vector<128xf32> to vector<128x1xf32>
    %36 = vector.broadcast %35 : vector<128x1xf32> to vector<128x128xf32>
    %37 = arith.subf %33, %36 : vector<128x128xf32>
    %38 = math.exp %37 : vector<128x128xf32>
    %cst_16 = arith.constant dense<0.000000e+00> : vector<128xf32>
    %39 = vector.multi_reduction <add>, %38, %cst_16 [1] : vector<128x128xf32> to vector<128xf32>
    %40 = vector.shape_cast %39 : vector<128xf32> to vector<128x1xf32>
    %41 = arith.truncf %38 : vector<128x128xf32> to vector<128x128xbf16>
    %cst_17 = arith.constant dense<0.000000e+00> : vector<128x32xf32>
    %42 = tpu.matmul %41, %32, %cst_17 {dimension_numbers = #tpu.dot_dimension_numbers<[1], [0], [0], [1], [0, 0, 1, 1], [], []>} : vector<128x128xbf16>, vector<128x32xbf16>, vector<128x32xf32> -> vector<128x32xf32>
    %43 = tpu.reciprocal %40 {approx = true} : vector<128x1xf32> -> vector<128x1xf32>
    %44 = vector.broadcast %43 : vector<128x1xf32> to vector<128x32xf32>
    %45 = arith.mulf %42, %44 : vector<128x32xf32>
    %c0_18 = arith.constant 0 : index
    %c32 = arith.constant 32 : index
    %46 = vector.load %arg21[%c0_18, %c32] : memref<128x128xf32, #tpu.memory_space<vmem>>, vector<128x32xf32>
    tpu.vector_store %arg21[%c0_18, %c32], %45 {strides = array<i32>} : memref<128x128xf32, #tpu.memory_space<vmem>>, vector<128x32xf32>,
    %47 = vector.extract_strided_slice %12 {offsets = [0, 64], sizes = [128, 32], strides = [1, 1]} : vector<128x384xbf16> to vector<128x32xbf16>
    %48 = vector.extract_strided_slice %12 {offsets = [0, 192], sizes = [128, 32], strides = [1, 1]} : vector<128x384xbf16> to vector<128x32xbf16>
    %49 = vector.extract_strided_slice %12 {offsets = [0, 320], sizes = [128, 32], strides = [1, 1]} : vector<128x384xbf16> to vector<128x32xbf16>
    %cst_19 = arith.constant dense<0.000000e+00> : vector<128x128xf32>
    %50 = tpu.matmul %47, %48, %cst_19 {dimension_numbers = #tpu.dot_dimension_numbers<[1], [1], [0], [0], [0, 0, 1, 0], [], []>} : vector<128x32xbf16>, vector<128x32xbf16>, vector<128x128xf32> -> vector<128x128xf32>
    %cst_20 = arith.constant dense<0xFF800000> : vector<128xf32>
    %51 = vector.multi_reduction <maximumf>, %50, %cst_20 [1] : vector<128x128xf32> to vector<128xf32>
    %52 = vector.shape_cast %51 : vector<128xf32> to vector<128x1xf32>
    %53 = vector.broadcast %52 : vector<128x1xf32> to vector<128x128xf32>
    %54 = arith.subf %50, %53 : vector<128x128xf32>
    %55 = math.exp %54 : vector<128x128xf32>
    %cst_21 = arith.constant dense<0.000000e+00> : vector<128xf32>
    %56 = vector.multi_reduction <add>, %55, %cst_21 [1] : vector<128x128xf32> to vector<128xf32>
    %57 = vector.shape_cast %56 : vector<128xf32> to vector<128x1xf32>
    %58 = arith.truncf %55 : vector<128x128xf32> to vector<128x128xbf16>
    %cst_22 = arith.constant dense<0.000000e+00> : vector<128x32xf32>
    %59 = tpu.matmul %58, %49, %cst_22 {dimension_numbers = #tpu.dot_dimension_numbers<[1], [0], [0], [1], [0, 0, 1, 1], [], []>} : vector<128x128xbf16>, vector<128x32xbf16>, vector<128x32xf32> -> vector<128x32xf32>
    %60 = tpu.reciprocal %57 {approx = true} : vector<128x1xf32> -> vector<128x1xf32>
    %61 = vector.broadcast %60 : vector<128x1xf32> to vector<128x32xf32>
    %62 = arith.mulf %59, %61 : vector<128x32xf32>
    %c0_23 = arith.constant 0 : index
    %c64 = arith.constant 64 : index
    %63 = vector.load %arg21[%c0_23, %c64] : memref<128x128xf32, #tpu.memory_space<vmem>>, vector<128x32xf32>
    tpu.vector_store %arg21[%c0_23, %c64], %62 {strides = array<i32>} : memref<128x128xf32, #tpu.memory_space<vmem>>, vector<128x32xf32>,
    %64 = vector.extract_strided_slice %12 {offsets = [0, 96], sizes = [128, 32], strides = [1, 1]} : vector<128x384xbf16> to vector<128x32xbf16>
    %65 = vector.extract_strided_slice %12 {offsets = [0, 224], sizes = [128, 32], strides = [1, 1]} : vector<128x384xbf16> to vector<128x32xbf16>
    %66 = vector.extract_strided_slice %12 {offsets = [0, 352], sizes = [128, 32], strides = [1, 1]} : vector<128x384xbf16> to vector<128x32xbf16>
    %cst_24 = arith.constant dense<0.000000e+00> : vector<128x128xf32>
    %67 = tpu.matmul %64, %65, %cst_24 {dimension_numbers = #tpu.dot_dimension_numbers<[1], [1], [0], [0], [0, 0, 1, 0], [], []>} : vector<128x32xbf16>, vector<128x32xbf16>, vector<128x128xf32> -> vector<128x128xf32>
    %cst_25 = arith.constant dense<0xFF800000> : vector<128xf32>
    %68 = vector.multi_reduction <maximumf>, %67, %cst_25 [1] : vector<128x128xf32> to vector<128xf32>
    %69 = vector.shape_cast %68 : vector<128xf32> to vector<128x1xf32>
    %70 = vector.broadcast %69 : vector<128x1xf32> to vector<128x128xf32>
    %71 = arith.subf %67, %70 : vector<128x128xf32>
    %72 = math.exp %71 : vector<128x128xf32>
    %cst_26 = arith.constant dense<0.000000e+00> : vector<128xf32>
    %73 = vector.multi_reduction <add>, %72, %cst_26 [1] : vector<128x128xf32> to vector<128xf32>
    %74 = vector.shape_cast %73 : vector<128xf32> to vector<128x1xf32>
    %75 = arith.truncf %72 : vector<128x128xf32> to vector<128x128xbf16>
    %cst_27 = arith.constant dense<0.000000e+00> : vector<128x32xf32>
    %76 = tpu.matmul %75, %66, %cst_27 {dimension_numbers = #tpu.dot_dimension_numbers<[1], [0], [0], [1], [0, 0, 1, 1], [], []>} : vector<128x128xbf16>, vector<128x32xbf16>, vector<128x32xf32> -> vector<128x32xf32>
    %77 = tpu.reciprocal %74 {approx = true} : vector<128x1xf32> -> vector<128x1xf32>
    %78 = vector.broadcast %77 : vector<128x1xf32> to vector<128x32xf32>
    %79 = arith.mulf %76, %78 : vector<128x32xf32>
    %c0_28 = arith.constant 0 : index
    %c96 = arith.constant 96 : index
    %80 = vector.load %arg21[%c0_28, %c96] : memref<128x128xf32, #tpu.memory_space<vmem>>, vector<128x32xf32>
    tpu.vector_store %arg21[%c0_28, %c96], %79 {strides = array<i32>} : memref<128x128xf32, #tpu.memory_space<vmem>>, vector<128x32xf32>,
    %c0_29 = arith.constant 0 : index
    %c0_30 = arith.constant 0 : index
    %81 = vector.load %arg21[%c0_29, %c0_30] : memref<128x128xf32, #tpu.memory_space<vmem>>, vector<128x128xf32>
    %82 = arith.truncf %81 : vector<128x128xf32> to vector<128x128xbf16>
    %c0_31 = arith.constant 0 : index
    %c0_32 = arith.constant 0 : index
    %c0_33 = arith.constant 0 : index
    %83 = vector.load %arg7[%c0_31, %c0_32, %c0_33] : memref<1x128x128xbf16, #tpu.memory_space<vmem>>, vector<1x128x128xbf16>
    %84 = vector.shape_cast %83 : vector<1x128x128xbf16> to vector<128x128xbf16>
    %cst_34 = arith.constant dense<0.000000e+00> : vector<128x128xf32>
    %85 = tpu.matmul %82, %84, %cst_34 {dimension_numbers = #tpu.dot_dimension_numbers<[1], [0], [0], [1], [0, 0, 1, 1], [], []>} : vector<128x128xbf16>, vector<128x128xbf16>, vector<128x128xf32> -> vector<128x128xf32>
    %c0_35 = arith.constant 0 : index
    %c0_36 = arith.constant 0 : index
    %c0_37 = arith.constant 0 : index
    %86 = vector.load %arg8[%c0_35, %c0_36, %c0_37] : memref<1x1x128xf32, #tpu.memory_space<vmem>>, vector<1x1x128xf32>
    %87 = vector.shape_cast %86 : vector<1x1x128xf32> to vector<1x128xf32>
    %88 = vector.broadcast %87 : vector<1x128xf32> to vector<128x128xf32>
    %89 = arith.addf %85, %88 : vector<128x128xf32>
    %90 = arith.addf %3, %89 : vector<128x128xf32>
    %c0_38 = arith.constant 0 : index
    %c0_39 = arith.constant 0 : index
    %c0_40 = arith.constant 0 : index
    %91 = vector.load %arg9[%c0_38, %c0_39, %c0_40] : memref<1x1x128xf32, #tpu.memory_space<vmem>>, vector<1x1x128xf32>
    %92 = vector.shape_cast %91 : vector<1x1x128xf32> to vector<1x128xf32>
    %c0_41 = arith.constant 0 : index
    %c0_42 = arith.constant 0 : index
    %c0_43 = arith.constant 0 : index
    %93 = vector.load %arg10[%c0_41, %c0_42, %c0_43] : memref<1x1x128xf32, #tpu.memory_space<vmem>>, vector<1x1x128xf32>
    %94 = vector.shape_cast %93 : vector<1x1x128xf32> to vector<1x128xf32>
    %cst_44 = arith.constant dense<0.000000e+00> : vector<128xf32>
    %95 = vector.multi_reduction <add>, %90, %cst_44 [1] : vector<128x128xf32> to vector<128xf32>
    %96 = vector.shape_cast %95 : vector<128xf32> to vector<128x1xf32>
    %cst_45 = arith.constant 1.280000e+02 : f32
    %97 = vector.broadcast %cst_45 : f32 to vector<128x1xf32>
    %98 = arith.divf %96, %97 : vector<128x1xf32>
    %99 = arith.mulf %90, %90 : vector<128x128xf32>
    %cst_46 = arith.constant dense<0.000000e+00> : vector<128xf32>
    %100 = vector.multi_reduction <add>, %99, %cst_46 [1] : vector<128x128xf32> to vector<128xf32>
    %101 = vector.shape_cast %100 : vector<128xf32> to vector<128x1xf32>
    %cst_47 = arith.constant 1.280000e+02 : f32
    %102 = vector.broadcast %cst_47 : f32 to vector<128x1xf32>
    %103 = arith.divf %101, %102 : vector<128x1xf32>
    %104 = arith.mulf %98, %98 : vector<128x1xf32>
    %105 = arith.subf %103, %104 : vector<128x1xf32>
    %cst_48 = arith.constant 0.000000e+00 : f32
    %106 = vector.broadcast %cst_48 : f32 to vector<128x1xf32>
    %107 = arith.maximumf %105, %106 : vector<128x1xf32>
    %108 = vector.broadcast %98 : vector<128x1xf32> to vector<128x128xf32>
    %109 = arith.subf %90, %108 : vector<128x128xf32>
    %cst_49 = arith.constant 9.99999996E-13 : f32
    %110 = vector.broadcast %cst_49 : f32 to vector<128x1xf32>
    %111 = arith.addf %107, %110 : vector<128x1xf32>
    %112 = math.rsqrt %111 : vector<128x1xf32>
    %113 = vector.broadcast %112 : vector<128x1xf32> to vector<128x128xf32>
    %114 = arith.mulf %109, %113 : vector<128x128xf32>
    %115 = vector.broadcast %92 : vector<1x128xf32> to vector<128x128xf32>
    %116 = arith.mulf %114, %115 : vector<128x128xf32>
    %117 = vector.broadcast %94 : vector<1x128xf32> to vector<128x128xf32>
    %118 = arith.addf %116, %117 : vector<128x128xf32>
    %119 = arith.truncf %118 : vector<128x128xf32> to vector<128x128xbf16>
    %c0_50 = arith.constant 0 : index
    %c0_51 = arith.constant 0 : index
    %c0_52 = arith.constant 0 : index
    %120 = vector.load %arg11[%c0_50, %c0_51, %c0_52] : memref<1x128x256xbf16, #tpu.memory_space<vmem>>, vector<1x128x256xbf16>
    %121 = vector.shape_cast %120 : vector<1x128x256xbf16> to vector<128x256xbf16>
    %cst_53 = arith.constant dense<0.000000e+00> : vector<128x256xf32>
    %122 = tpu.matmul %119, %121, %cst_53 {dimension_numbers = #tpu.dot_dimension_numbers<[1], [0], [0], [1], [0, 0, 1, 1], [], []>} : vector<128x128xbf16>, vector<128x256xbf16>, vector<128x256xf32> -> vector<128x256xf32>
    %c0_54 = arith.constant 0 : index
    %c0_55 = arith.constant 0 : index
    %c0_56 = arith.constant 0 : index
    %123 = vector.load %arg12[%c0_54, %c0_55, %c0_56] : memref<1x1x256xf32, #tpu.memory_space<vmem>>, vector<1x1x256xf32>
    %124 = vector.shape_cast %123 : vector<1x1x256xf32> to vector<1x256xf32>
    %125 = vector.broadcast %124 : vector<1x256xf32> to vector<128x256xf32>
    %126 = arith.addf %122, %125 : vector<128x256xf32>
    %cst_57 = arith.constant 5.000000e-01 : f32
    %127 = vector.broadcast %cst_57 : f32 to vector<128x256xf32>
    %128 = arith.mulf %127, %126 : vector<128x256xf32>
    %cst_58 = arith.constant 0.707106769 : f32
    %129 = vector.broadcast %cst_58 : f32 to vector<128x256xf32>
    %130 = arith.mulf %126, %129 : vector<128x256xf32>
    %131 = math.absf %130 : vector<128x256xf32>
    %cst_59 = arith.constant 0.327591091 : f32
    %132 = vector.broadcast %cst_59 : f32 to vector<128x256xf32>
    %133 = arith.mulf %132, %131 : vector<128x256xf32>
    %cst_60 = arith.constant 1.000000e+00 : f32
    %134 = vector.broadcast %cst_60 : f32 to vector<128x256xf32>
    %135 = arith.addf %134, %133 : vector<128x256xf32>
    %136 = tpu.reciprocal %135 {approx = true} : vector<128x256xf32> -> vector<128x256xf32>
    %cst_61 = arith.constant 1.06140542 : f32
    %137 = vector.broadcast %cst_61 : f32 to vector<128x256xf32>
    %138 = arith.mulf %137, %136 : vector<128x256xf32>
    %cst_62 = arith.constant -1.45315206 : f32
    %139 = vector.broadcast %cst_62 : f32 to vector<128x256xf32>
    %140 = arith.addf %138, %139 : vector<128x256xf32>
    %141 = arith.mulf %140, %136 : vector<128x256xf32>
    %cst_63 = arith.constant 1.42141378 : f32
    %142 = vector.broadcast %cst_63 : f32 to vector<128x256xf32>
    %143 = arith.addf %141, %142 : vector<128x256xf32>
    %144 = arith.mulf %143, %136 : vector<128x256xf32>
    %cst_64 = arith.constant -0.284496725 : f32
    %145 = vector.broadcast %cst_64 : f32 to vector<128x256xf32>
    %146 = arith.addf %144, %145 : vector<128x256xf32>
    %147 = arith.mulf %146, %136 : vector<128x256xf32>
    %cst_65 = arith.constant 0.254829586 : f32
    %148 = vector.broadcast %cst_65 : f32 to vector<128x256xf32>
    %149 = arith.addf %147, %148 : vector<128x256xf32>
    %150 = arith.mulf %149, %136 : vector<128x256xf32>
    %cst_66 = arith.constant 0.000000e+00 : f32
    %151 = vector.broadcast %cst_66 : f32 to vector<128x256xf32>
    %152 = arith.subf %151, %131 : vector<128x256xf32>
    %153 = arith.mulf %152, %131 : vector<128x256xf32>
    %154 = math.exp %153 : vector<128x256xf32>
    %155 = arith.mulf %150, %154 : vector<128x256xf32>
    %cst_67 = arith.constant 1.000000e+00 : f32
    %156 = vector.broadcast %cst_67 : f32 to vector<128x256xf32>
    %157 = arith.subf %156, %155 : vector<128x256xf32>
    %cst_68 = arith.constant 0.000000e+00 : f32
    %158 = vector.broadcast %cst_68 : f32 to vector<128x256xf32>
    %159 = arith.cmpf oge, %130, %158 : vector<128x256xf32>
    %cst_69 = arith.constant 0.000000e+00 : f32
    %160 = vector.broadcast %cst_69 : f32 to vector<128x256xf32>
    %161 = arith.subf %160, %157 : vector<128x256xf32>
    %162 = arith.select %159, %157, %161 : vector<128x256xi1>, vector<128x256xf32>
    %cst_70 = arith.constant 1.000000e+00 : f32
    %163 = vector.broadcast %cst_70 : f32 to vector<128x256xf32>
    %164 = arith.addf %163, %162 : vector<128x256xf32>
    %165 = arith.mulf %128, %164 : vector<128x256xf32>
    %166 = arith.truncf %165 : vector<128x256xf32> to vector<128x256xbf16>
    %c0_71 = arith.constant 0 : index
    %c0_72 = arith.constant 0 : index
    %c0_73 = arith.constant 0 : index
    %167 = vector.load %arg13[%c0_71, %c0_72, %c0_73] : memref<1x256x128xbf16, #tpu.memory_space<vmem>>, vector<1x256x128xbf16>
    %168 = vector.shape_cast %167 : vector<1x256x128xbf16> to vector<256x128xbf16>
    %cst_74 = arith.constant dense<0.000000e+00> : vector<128x128xf32>
    %169 = tpu.matmul %166, %168, %cst_74 {dimension_numbers = #tpu.dot_dimension_numbers<[1], [0], [0], [1], [0, 0, 1, 1], [], []>} : vector<128x256xbf16>, vector<256x128xbf16>, vector<128x128xf32> -> vector<128x128xf32>
    %c0_75 = arith.constant 0 : index
    %c0_76 = arith.constant 0 : index
    %c0_77 = arith.constant 0 : index
    %170 = vector.load %arg14[%c0_75, %c0_76, %c0_77] : memref<1x1x128xf32, #tpu.memory_space<vmem>>, vector<1x1x128xf32>
    %171 = vector.shape_cast %170 : vector<1x1x128xf32> to vector<1x128xf32>
    %172 = vector.broadcast %171 : vector<1x128xf32> to vector<128x128xf32>
    %173 = arith.addf %169, %172 : vector<128x128xf32>
    %174 = arith.addf %118, %173 : vector<128x128xf32>
    %c0_78 = arith.constant 0 : index
    %c0_79 = arith.constant 0 : index
    %c0_80 = arith.constant 0 : index
    %175 = vector.load %arg15[%c0_78, %c0_79, %c0_80] : memref<1x1x128xf32, #tpu.memory_space<vmem>>, vector<1x1x128xf32>
    %176 = vector.shape_cast %175 : vector<1x1x128xf32> to vector<1x128xf32>
    %c0_81 = arith.constant 0 : index
    %c0_82 = arith.constant 0 : index
    %c0_83 = arith.constant 0 : index
    %177 = vector.load %arg16[%c0_81, %c0_82, %c0_83] : memref<1x1x128xf32, #tpu.memory_space<vmem>>, vector<1x1x128xf32>
    %178 = vector.shape_cast %177 : vector<1x1x128xf32> to vector<1x128xf32>
    %cst_84 = arith.constant dense<0.000000e+00> : vector<128xf32>
    %179 = vector.multi_reduction <add>, %174, %cst_84 [1] : vector<128x128xf32> to vector<128xf32>
    %180 = vector.shape_cast %179 : vector<128xf32> to vector<128x1xf32>
    %cst_85 = arith.constant 1.280000e+02 : f32
    %181 = vector.broadcast %cst_85 : f32 to vector<128x1xf32>
    %182 = arith.divf %180, %181 : vector<128x1xf32>
    %183 = arith.mulf %174, %174 : vector<128x128xf32>
    %cst_86 = arith.constant dense<0.000000e+00> : vector<128xf32>
    %184 = vector.multi_reduction <add>, %183, %cst_86 [1] : vector<128x128xf32> to vector<128xf32>
    %185 = vector.shape_cast %184 : vector<128xf32> to vector<128x1xf32>
    %cst_87 = arith.constant 1.280000e+02 : f32
    %186 = vector.broadcast %cst_87 : f32 to vector<128x1xf32>
    %187 = arith.divf %185, %186 : vector<128x1xf32>
    %188 = arith.mulf %182, %182 : vector<128x1xf32>
    %189 = arith.subf %187, %188 : vector<128x1xf32>
    %cst_88 = arith.constant 0.000000e+00 : f32
    %190 = vector.broadcast %cst_88 : f32 to vector<128x1xf32>
    %191 = arith.maximumf %189, %190 : vector<128x1xf32>
    %192 = vector.broadcast %182 : vector<128x1xf32> to vector<128x128xf32>
    %193 = arith.subf %174, %192 : vector<128x128xf32>
    %cst_89 = arith.constant 9.99999996E-13 : f32
    %194 = vector.broadcast %cst_89 : f32 to vector<128x1xf32>
    %195 = arith.addf %191, %194 : vector<128x1xf32>
    %196 = math.rsqrt %195 : vector<128x1xf32>
    %197 = vector.broadcast %196 : vector<128x1xf32> to vector<128x128xf32>
    %198 = arith.mulf %193, %197 : vector<128x128xf32>
    %199 = vector.broadcast %176 : vector<1x128xf32> to vector<128x128xf32>
    %200 = arith.mulf %198, %199 : vector<128x128xf32>
    %201 = vector.broadcast %178 : vector<1x128xf32> to vector<128x128xf32>
    %202 = arith.addf %200, %201 : vector<128x128xf32>
    %c0_90 = arith.constant 0 : index
    %c0_91 = arith.constant 0 : index
    %203 = vector.load %arg20[%c0_90, %c0_91] : memref<128x128xf32, #tpu.memory_space<vmem>>, vector<128x128xf32>
    tpu.vector_store %arg20[%c0_90, %c0_91], %202 {strides = array<i32>} : memref<128x128xf32, #tpu.memory_space<vmem>>, vector<128x128xf32>,
    %c1_i32 = arith.constant 1 : i32
    %204 = arith.cmpi eq, %arg1, %c1_i32 : i32
    %205 = arith.extui %204 : i1 to i32
    %c0_i32_92 = arith.constant 0 : i32
    %206 = arith.cmpi ne, %205, %c0_i32_92 : i32
    scf.if %206 {
      %207 = vector.extract_strided_slice %202 {offsets = [0, 0], sizes = [1, 128], strides = [1, 1]} : vector<128x128xf32> to vector<1x128xf32>
      %208 = arith.truncf %207 : vector<1x128xf32> to vector<1x128xbf16>
      %c0_93 = arith.constant 0 : index
      %c0_94 = arith.constant 0 : index
      %209 = vector.load %arg17[%c0_93, %c0_94] : memref<128x128xbf16, #tpu.memory_space<vmem>>, vector<128x128xbf16>
      %cst_95 = arith.constant dense<0.000000e+00> : vector<1x128xf32>
      %210 = tpu.matmul %208, %209, %cst_95 {dimension_numbers = #tpu.dot_dimension_numbers<[1], [0], [0], [1], [0, 0, 1, 1], [], []>} : vector<1x128xbf16>, vector<128x128xbf16>, vector<1x128xf32> -> vector<1x128xf32>
      %c0_96 = arith.constant 0 : index
      %c0_97 = arith.constant 0 : index
      %211 = vector.load %arg18[%c0_96, %c0_97] : memref<1x128xf32, #tpu.memory_space<vmem>>, vector<1x128xf32>
      %212 = arith.addf %210, %211 : vector<1x128xf32>
      %213 = arith.mulf %212, %212 : vector<1x128xf32>
      %cst_98 = arith.constant dense<0.000000e+00> : vector<1xf32>
      %214 = vector.multi_reduction <add>, %213, %cst_98 [1] : vector<1x128xf32> to vector<1xf32>
      %215 = vector.shape_cast %214 : vector<1xf32> to vector<1x1xf32>
      %cst_99 = arith.constant 1.000000e-24 : f32
      %216 = vector.broadcast %cst_99 : f32 to vector<1x1xf32>
      %217 = arith.maximumf %215, %216 : vector<1x1xf32>
      %218 = math.rsqrt %217 : vector<1x1xf32>
      %219 = vector.broadcast %218 : vector<1x1xf32> to vector<1x128xf32>
      %220 = arith.mulf %212, %219 : vector<1x128xf32>
      %c0_100 = arith.constant 0 : index
      %c0_101 = arith.constant 0 : index
      %c0_102 = arith.constant 0 : index
      %221 = vector.load %arg19[%c0_100, %c0_101, %c0_102] : memref<1x1x128xf32, #tpu.memory_space<vmem>>, vector<1x1x128xf32>
      %222 = vector.shape_cast %221 : vector<1x1x128xf32> to vector<1x128xf32>
      %223 = vector.shape_cast %220 : vector<1x128xf32> to vector<1x1x128xf32>
      tpu.vector_store %arg19[%c0_100, %c0_101, %c0_102], %223 {strides = array<i32>} : memref<1x1x128xf32, #tpu.memory_space<vmem>>, vector<1x1x128xf32>,
    } else {
    }
    return
  }
  func.func @transform_0(%arg0: i32, %arg1: i32) -> (i32, i32, i32) {
    %c0_i32 = arith.constant 0 : i32
    %c0_i32_0 = arith.constant 0 : i32
    %c0_i32_1 = arith.constant 0 : i32
    return %arg0, %c0_i32, %c0_i32_0 : i32, i32, i32
  }
  func.func @transform_1(%arg0: i32, %arg1: i32) -> (i32, i32) {
    %c0_i32 = arith.constant 0 : i32
    %c0_i32_0 = arith.constant 0 : i32
    %c0_i32_1 = arith.constant 0 : i32
    return %c0_i32, %c0_i32_0 : i32, i32
  }
  func.func @transform_2(%arg0: i32, %arg1: i32) -> (i32, i32) {
    %c0_i32 = arith.constant 0 : i32
    %c0_i32_0 = arith.constant 0 : i32
    %c0_i32_1 = arith.constant 0 : i32
    return %c0_i32, %c0_i32_0 : i32, i32
  }
  func.func @transform_3(%arg0: i32, %arg1: i32) -> (i32, i32, i32) {
    %c0_i32 = arith.constant 0 : i32
    %c0_i32_0 = arith.constant 0 : i32
    %c0_i32_1 = arith.constant 0 : i32
    return %arg1, %c0_i32, %c0_i32_0 : i32, i32, i32
  }
  func.func @transform_4(%arg0: i32, %arg1: i32) -> (i32, i32, i32) {
    %c0_i32 = arith.constant 0 : i32
    %c0_i32_0 = arith.constant 0 : i32
    %c0_i32_1 = arith.constant 0 : i32
    return %arg1, %c0_i32, %c0_i32_0 : i32, i32, i32
  }
  func.func @transform_5(%arg0: i32, %arg1: i32) -> (i32, i32, i32) {
    %c0_i32 = arith.constant 0 : i32
    %c0_i32_0 = arith.constant 0 : i32
    %c0_i32_1 = arith.constant 0 : i32
    return %arg1, %c0_i32, %c0_i32_0 : i32, i32, i32
  }
  func.func @transform_6(%arg0: i32, %arg1: i32) -> (i32, i32, i32) {
    %c0_i32 = arith.constant 0 : i32
    %c0_i32_0 = arith.constant 0 : i32
    %c0_i32_1 = arith.constant 0 : i32
    return %arg1, %c0_i32, %c0_i32_0 : i32, i32, i32
  }
  func.func @transform_7(%arg0: i32, %arg1: i32) -> (i32, i32, i32) {
    %c0_i32 = arith.constant 0 : i32
    %c0_i32_0 = arith.constant 0 : i32
    %c0_i32_1 = arith.constant 0 : i32
    return %arg1, %c0_i32, %c0_i32_0 : i32, i32, i32
  }
  func.func @transform_8(%arg0: i32, %arg1: i32) -> (i32, i32, i32) {
    %c0_i32 = arith.constant 0 : i32
    %c0_i32_0 = arith.constant 0 : i32
    %c0_i32_1 = arith.constant 0 : i32
    return %arg1, %c0_i32, %c0_i32_0 : i32, i32, i32
  }
  func.func @transform_9(%arg0: i32, %arg1: i32) -> (i32, i32, i32) {
    %c0_i32 = arith.constant 0 : i32
    %c0_i32_0 = arith.constant 0 : i32
    %c0_i32_1 = arith.constant 0 : i32
    return %arg1, %c0_i32, %c0_i32_0 : i32, i32, i32
  }
  func.func @transform_10(%arg0: i32, %arg1: i32) -> (i32, i32, i32) {
    %c0_i32 = arith.constant 0 : i32
    %c0_i32_0 = arith.constant 0 : i32
    %c0_i32_1 = arith.constant 0 : i32
    return %arg1, %c0_i32, %c0_i32_0 : i32, i32, i32
  }
  func.func @transform_11(%arg0: i32, %arg1: i32) -> (i32, i32, i32) {
    %c0_i32 = arith.constant 0 : i32
    %c0_i32_0 = arith.constant 0 : i32
    %c0_i32_1 = arith.constant 0 : i32
    return %arg1, %c0_i32, %c0_i32_0 : i32, i32, i32
  }
  func.func @transform_12(%arg0: i32, %arg1: i32) -> (i32, i32, i32) {
    %c0_i32 = arith.constant 0 : i32
    %c0_i32_0 = arith.constant 0 : i32
    %c0_i32_1 = arith.constant 0 : i32
    return %arg1, %c0_i32, %c0_i32_0 : i32, i32, i32
  }
  func.func @transform_13(%arg0: i32, %arg1: i32) -> (i32, i32, i32) {
    %c0_i32 = arith.constant 0 : i32
    %c0_i32_0 = arith.constant 0 : i32
    %c0_i32_1 = arith.constant 0 : i32
    return %arg1, %c0_i32, %c0_i32_0 : i32, i32, i32
  }
  func.func @transform_14(%arg0: i32, %arg1: i32) -> (i32, i32, i32) {
    %c0_i32 = arith.constant 0 : i32
    %c0_i32_0 = arith.constant 0 : i32
    %c0_i32_1 = arith.constant 0 : i32
    return %arg1, %c0_i32, %c0_i32_0 : i32, i32, i32
  }
  func.func @transform_15(%arg0: i32, %arg1: i32) -> (i32, i32) {
    %c0_i32 = arith.constant 0 : i32
    %c0_i32_0 = arith.constant 0 : i32
    %c0_i32_1 = arith.constant 0 : i32
    return %c0_i32, %c0_i32_0 : i32, i32
  }
  func.func @transform_16(%arg0: i32, %arg1: i32) -> (i32, i32) {
    %c0_i32 = arith.constant 0 : i32
    %c0_i32_0 = arith.constant 0 : i32
    %c0_i32_1 = arith.constant 0 : i32
    return %c0_i32, %c0_i32_0 : i32, i32
  }
  func.func @transform_17(%arg0: i32, %arg1: i32) -> (i32, i32, i32) {
    %c0_i32 = arith.constant 0 : i32
    %c0_i32_0 = arith.constant 0 : i32
    %c0_i32_1 = arith.constant 0 : i32
    return %arg0, %c0_i32, %c0_i32_0 : i32, i32, i32
  }
}

</mosaic_0001>

<bundles_post_ra>
// kernel: tpu_custom_call.1
= control target key start
LH: loop header
LB: loop body
LE: loop exit
PB: predicated region body
PF: predicated region fallthrough
CT: control target
= control target key end

     0   :  { %s11540_s0 = inlined_call_operand.hbm [shape: f32[2,128,128], index: 0, kind: input, shape index: {}]   ;;  %s11541_s1 = inlined_call_operand.hbm [shape: f32[1,128], index: 1, kind: input, shape index: {}]   ;;  %s11542_s2 = inlined_call_operand.hbm [shape: f32[1,128], index: 2, kind: input, shape index: {}]   ;;  %s11543_s3 = inlined_call_operand.hbm [shape: bf16[2,128,384], index: 3, kind: input, shape index: {}]   ;;  %s11544_s4 = inlined_call_operand.vmem [shape: f32[2,1,384], index: 4, kind: input, shape index: {}]   ;;  %s11545_s5 = inlined_call_operand.hbm [shape: bf16[2,128,128], index: 5, kind: input, shape index: {}]   ;;  %s11546_s6 = inlined_call_operand.hbm [shape: f32[2,1,128], index: 6, kind: input, shape index: {}]   ;;  %s11547_s7 = inlined_call_operand.vmem [shape: f32[2,1,128], index: 7, kind: input, shape index: {}]   ;;  %s11548_s8 = inlined_call_operand.vmem [shape: f32[2,1,128], index: 8, kind: input, shape index: {}]   ;;  %s11549_s9 = inlined_call_operand.hbm [shape: bf16[2,128,256], index: 9, kind: input, shape index: {}]   ;;  %s11550_s10 = inlined_call_operand.vmem [shape: f32[2,1,256], index: 10, kind: input, shape index: {}]   ;;  %s11551_s11 = inlined_call_operand.hbm [shape: bf16[2,256,128], index: 11, kind: input, shape index: {}]   ;;  %s11552_s12 = inlined_call_operand.vmem [shape: f32[2,1,128], index: 12, kind: input, shape index: {}]   ;;  %s11553_s13 = inlined_call_operand.vmem [shape: f32[2,1,128], index: 13, kind: input, shape index: {}]   ;;  %s11554_s14 = inlined_call_operand.vmem [shape: f32[2,1,128], index: 14, kind: input, shape index: {}]   ;;  %s11555_s15 = inlined_call_operand.hbm [shape: bf16[128,128], index: 15, kind: input, shape index: {}]   ;;  %s11556_s16 = inlined_call_operand.vmem [shape: f32[1,128], index: 16, kind: input, shape index: {}]   ;;  %s11557_s17 = inlined_call_operand.hbm [shape: f32[2,1,128], index: 17, kind: output, shape index: {}]  }
   0x1   :  { %11627 = sst [smem:[#allocation84_spill]] %s11540_s0 }
   0x2   :  { %11628 = sst [smem:[#allocation85_spill]] %s11541_s1 }
   0x3   :  { %11629 = sst [smem:[#allocation86_spill]] %s11542_s2 }
   0x4   :  { %11630 = sst [smem:[#allocation87_spill]] %s11543_s3 }
   0x5   :  { %11631 = sst [smem:[#allocation88_spill]] %s11544_s4 }
   0x6   :  { %11632 = sst [smem:[#allocation89_spill]] %s11545_s5 }
   0x7   :  { %11633 = sst [smem:[#allocation90_spill]] %s11546_s6 }
   0x8   :  { %11634 = sst [smem:[#allocation91_spill]] %s11547_s7 }
   0x9   :  { %11635 = sst [smem:[#allocation92_spill]] %s11548_s8 }
   0xa   :  { %11636 = sst [smem:[#allocation93_spill]] %s11549_s9 }
   0xb   :  { %11637 = sst [smem:[#allocation94_spill]] %s11550_s10 }
   0xc   :  { %11638 = sst [smem:[#allocation95_spill]] %s11551_s11 }
   0xd   :  { %11639 = sst [smem:[#allocation96_spill]] %s11552_s12 }
   0xe   :  { %11640 = sst [smem:[#allocation97_spill]] %s11553_s13 }
   0xf   :  { %11641 = sst [smem:[#allocation98_spill]] %s11554_s14 }
  0x10   :  { %11642 = sst [smem:[#allocation99_spill]] %s11555_s15 }
  0x11   :  { %11643 = sst [smem:[#allocation100_spill]] %s11556_s16 }
  0x12   :  { %11644 = sst [smem:[#allocation101_spill]] %s11557_s17 }
  0x13   :  { %22 = vsyncpa [#allocation5], 0 }
  0x14   :  { %24 = vsyncpa [#allocation5 + $0x1], 0 }
  0x15   :  { %25 = vsyncpa [#allocation8], 0 }
  0x16   :  { %26 = vsyncpa [#allocation11], 0 }
  0x17   :  { %28 = vsyncpa [#allocation11 + $0x1], 0 }
  0x18   :  { %29 = vsyncpa [#allocation14], 0 }
  0x19   :  { %31 = vsyncpa [#allocation14 + $0x1], 0 }
  0x1a   :  { %32 = vsyncpa [#allocation17], 0 }
  0x1b   :  { %34 = vsyncpa [#allocation17 + $0x1], 0 }
  0x1c   :  { %35 = vsyncpa [#allocation6], 0 }
  0x1d   :  { %37 = vsyncpa [#allocation6 + $0x1], 0  ;;  %s8214_s24 = smov 0   ;;  %s8216_s25 = smov 0  }
  0x1e   :  { %s8218_s26 = smov 0   ;;  %s8220_s27 = smov 0  }
  0x1f   :  { %s8222_s28 = smov 0   ;;  %s8224_s29 = smov 0  }
  0x20   :  { %s8226_s0 = smov 0   ;;  %s8228_s30 = smov 0  }
  0x21   :  { %s8230_s18 = smov 0   ;;  %s8232_s19 = smov 0  }
  0x22   :  { %s8234_s1 = smov 0  }
  0x23 LB: > { %11645 = sst [smem:[#allocation27_spill]] %s8064_s25  ;;  %s8268_s20 = sadd.s32 4294967295, %s8100_s1   ;;  %s8100_s1 = sphi %s8234_s1, %s43_s1   ;;  %s8096_s19 = sphi %s8232_s19, %s11864_s19   ;;  %s8092_s18 = sphi %s8230_s18, %s11863_s18   ;;  %s8088_s30 = sphi %s8228_s30, %s11862_s30   ;;  %s8084_s0 = sphi %s8226_s0, %s11861_s0   ;;  %s8080_s29 = sphi %s8224_s29, %s11860_s29   ;;  %s8076_s28 = sphi %s8222_s28, %s11859_s28   ;;  %s8072_s27 = sphi %s8220_s27, %s11858_s27   ;;  %s8068_s26 = sphi %s8218_s26, %s11857_s26   ;;  %s8064_s25 = sphi %s8216_s25, %s11856_s25   ;;  %s8060_s24 = sphi %s8214_s24, %s11855_s24  }
  0x24   : > { %11646 = sst [smem:[#allocation28_spill]] %s8068_s26  ;;  %s6183_s21 = sadd.s32 4294967294, %s8100_s1  }
  0x25   : > { %11647 = sst [smem:[#allocation29_spill]] %s8072_s27  ;;  %p75_p0 = scmp.ne.s32.totalorder %s8076_s28, %s8072_s27 }
  0x26   : > { %11648 = sst [smem:[#allocation30_spill]] %s8076_s28  ;;  %p11561_p1 = scmp.eq.s32.totalorder %s8268_s20, 0 }
  0x27   : > { %11649 = sst [smem:[#allocation31_spill]] %s8080_s29  ;;  %p143_p2 = scmp.ne.s32.totalorder %s8064_s25, %s8060_s24 }
  0x28   : > { %11650 = sst [smem:[#allocation32_spill]] %s8084_s0  ;;  %p8278_p4 = por %p11561_p1, %p75_p0 }
  0x29   : > { %11651 = sst [smem:[#allocation33_spill]] %s8088_s30  ;;  %p501_p5 = scmp.eq.s32.totalorder %s6183_s21, 3 }
  0x2a   : > { %11652 = sst [smem:[#allocation34_spill]] %s8092_s18  ;;  %p8284_p6 = por %p143_p2, %p11561_p1 }
  0x2b   : > { %11653 = sst [smem:[#allocation35_spill]] %s8096_s19  ;;  %p6184_p7 = scmp.ge.s32.totalorder %s8100_s1, 1 }
  0x2c   : > { %11654 = sst [smem:[#allocation36_spill]] %s8100_s1  ;;  %p8289_p8 = por %p501_p5, %p75_p0 }
  0x2d   : > { %s11655_s22 = scalar_select %p8278_p4, 1, 0 }
  0x2e   : > { %s11657_s23 = scalar_select %p8284_p6, 1, 0 }
  0x2f   : > { %11656 = sst [smem:[#allocation37_spill]] %s11655_s22  ;;  %p508_p9 = scmp.lt.s32.totalorder %s8100_s1, 5 }
  0x30   : > { %11658 = sst [smem:[#allocation38_spill]] %s11657_s23  ;;  %s8102_s27 = smov [#allocation7]  }
  0x31   : > { %s11659_s17 = scalar_select %p8289_p8, 1, 0 }
  0x32   : > { %p8294_p10 = pnand %p6184_p7, %p508_p9  ;;  %s521_s30 = sshll.u32 %s8102_s27, 4  ;;  %s522_s30 = int_to_ptr.vmem [resolvable:$true] %s521_s30 }
  0x33   : > { %11660 = sst [smem:[#allocation39_spill]] %s11659_s17  ;;  %s8103_s21 = smov [#allocation18]  }
  0x34   : > { %s11661_s24 = scalar_select %p8294_p10, 1, 0 }
  0x35   : > { %p6984_p11 = pneg %p8294_p10  ;;  %s542_s16 = sshll.u32 %s8103_s21, 4  ;;  %s543_s16 = int_to_ptr.vmem [resolvable:$true] %s542_s16 }
  0x36   : > { %11662 = sst [smem:[#allocation40_spill]] %s11661_s24  ;;  %s7725_s17 = scalar_lea.vmem %s522_s30, 16 }
  0x37   : > { %p8302_p12 = pnand %p6984_p11, %p11561_p1  ;;  %p7726_p0 = scmp.ne.s32.totalorder %s522_s30, %s7725_s17 }
  0x38   : > { %s7732_s27 = scalar_lea.vmem %s522_s30, 32  ;;  %p7733_p7 = scmp.lt.s32.totalorder %s522_s30, %s522_s30 }
  0x39   : > { %p7716_p13 = pneg %p8302_p12  ;;  %p7734_p9 = scmp.lt.s32.totalorder %s7732_s27, %s7725_s17 }
  0x3b   : > { %p7728_p2 = pnand %p7726_p0, %p7716_p13  ;;  %p7735_p3 = por %p7734_p9, %p7733_p7 }
  0x3d   : > { %p7729_p5 = pneg %p7728_p2 }
  0x3f   : > { %p7736_p8 = pnand %p7735_p3, %p7729_p5 }
  0x41   : > { %7739 = shalt.err (!%p7736_p8)
}
  0x42   : > { %s11664_s12 = sld [smem:[#allocation85_spill]]  ;;  %s7751_s10 = scalar_lea.vmem %s543_s16, 1024 }
  0x43   : > { %p7752_p11 = scmp.ne.s32.totalorder %s543_s16, %s7751_s10  ;;  %p7759_p2 = scmp.lt.s32.totalorder %s543_s16, %s543_s16 }
  0x44   : > { %p7760_p6 = scmp.lt.s32.totalorder %s7751_s10, %s7751_s10 }
  0x45   : > { %p7754_p1 = pnand %p7752_p11, %p7716_p13 }
  0x46   : > { %p7761_p4 = por %p7760_p6, %p7759_p2 }
  0x47   : > { %p7755_p0 = pneg %p7754_p1 }
  0x48   : > { %6987 = dma.hbm_to_vmem [thread:$0]  (!%p8302_p12), %s11664_s12, 16, %s522_s30, [#allocation8]  }
  0x49   : > { %p7762_p10 = pnand %p7761_p4, %p7755_p0 }
  0x4b   : > { %7765 = shalt.err (!%p7762_p10)
}
  0x4c   : > { %s11565_s17 = smov 64   ;;  %s11567_s12 = smov 4  }
  0x4d   : > { %s11665_s15 = sld [smem:[#allocation99_spill]]  ;;  %p70_p1 = scmp.eq.s32.totalorder %s8100_s1, 0 }
  0x4e   : > { %p137_p3 = scmp.ne.s32.totalorder %s8068_s26, %s8064_s25  ;;  %p11576_p4 = scmp.lt.s32.totalorder %s8100_s1, 4 }
  0x4f   : > { %s8333_s27 = sand.u32 1, %s8100_s1   ;;  %s8336_s21 = sand.u32 1, %s8068_s26  }
  0x50   : > { %p139_p6 = por %p137_p3, %p70_p1  ;;  %s6954_s4 = smul.u32 192, %s8336_s21 }
  0x51   : > { %s6955_s8 = smul.u32 3072, %s8092_s18  ;;  %s11667_s3 = sld [smem:[#allocation87_spill]] }
  0x52   : > { %p8344_p8 = pnand %p11576_p4, %p139_p6  ;;  %s11578_s30 = scalar_lea.sflag [#allocation11], %s8333_s27 }
  0x53   : > { %6993 = dma.hbm_to_vmem [thread:$0]  (!%p8302_p12), %s11665_s15, 1024, %s543_s16, [#allocation17], %s11565_s17, %s11565_s17, %s11567_s12  }
  0x54   : > { %s584_s17 = scalar_lea.vmem [#allocation10], %s6954_s4  ;;  %p8354_p10 = pneg %p8344_p8 }
  0x55   : > { %s591_s12 = sshll.u32 %s584_s17, 4  ;;  %s8106_s23 = smov [#allocation10]   ;;  %s592_s12 = int_to_ptr.vmem [resolvable:$true] %s591_s12 }
  0x56   : > { %s7779_s0 = scalar_lea.vmem %s592_s12, 3072  ;;  %s7784_s25 = sshll.u32 %s8106_s23, 4  ;;  %s7785_s25 = int_to_ptr.vmem [resolvable:$false] %s7784_s25 }
  0x57   : > { %s590_s13 = scalar_lea.hbm %s11667_s3, %s6955_s8  ;;  %p7780_p5 = scmp.ne.s32.totalorder %s592_s12, %s7779_s0 }
  0x58   : > { %s7786_s16 = scalar_lea.vmem %s7785_s25, 6144  ;;  %p7787_p11 = scmp.lt.s32.totalorder %s592_s12, %s7785_s25 }
  0x59   : > { %p7782_p7 = pnand %p7780_p5, %p8354_p10  ;;  %p7788_p0 = scmp.lt.s32.totalorder %s7786_s16, %s7779_s0 }
  0x5b   : > { %p7783_p9 = pneg %p7782_p7  ;;  %p7789_p2 = por %p7788_p0, %p7787_p11 }
  0x5d   : > { %p7790_p3 = pnand %p7789_p2, %p7783_p9 }
  0x5f   : > { %7793 = shalt.err (!%p7790_p3)
}
  0x60   : > { %s8107_s4 = smov 192   ;;  %s8108_s8 = smov 12  }
  0x61   : > { %7000 = dma.hbm_to_vmem [thread:$0]  (!%p8344_p8), %s590_s13, 3072, %s592_s12, %s11578_s30, %s8107_s4, %s8107_s4, %s8108_s8  }
  0x62   : > { %s6196_s17 = sshll.u32 %s8092_s18, 4  ;;  %s632_s23 = scalar_lea.vmem [#allocation13], %s8336_s21 }
  0x63   : > { %s639_s10 = sshll.u32 %s632_s23, 4  ;;  %s11669_s6 = sld [smem:[#allocation90_spill]]  ;;  %s640_s10 = int_to_ptr.vmem [resolvable:$true] %s639_s10 }
  0x64   : > { %s11577_s16 = scalar_lea.sflag [#allocation14], %s8333_s27  ;;  %s7807_s22 = scalar_lea.vmem %s640_s10, 16 }
  0x65   : > { %p7808_p6 = scmp.ne.s32.totalorder %s640_s10, %s7807_s22  ;;  %s8109_s24 = smov [#allocation13]  }
  0x66   : > { %s7812_s11 = sshll.u32 %s8109_s24, 4  ;;  %s7813_s11 = int_to_ptr.vmem [resolvable:$false] %s7812_s11 }
  0x67   : > { %p7810_p5 = pnand %p7808_p6, %p8354_p10  ;;  %s7814_s9 = scalar_lea.vmem %s7813_s11, 32 }
  0x68   : > { %p7815_p9 = scmp.lt.s32.totalorder %s640_s10, %s7813_s11  ;;  %p7816_p11 = scmp.lt.s32.totalorder %s7814_s9, %s7807_s22 }
  0x69   : > { %s637_s0 = scalar_lea.hbm %s11669_s6, %s6196_s17  ;;  %p7811_p7 = pneg %p7810_p5 }
  0x6a   : > { %p7817_p0 = por %p7816_p11, %p7815_p9 }
  0x6c   : > { %p7818_p2 = pnand %p7817_p0, %p7811_p7 }
  0x6e   : > { %7821 = shalt.err (!%p7818_p2)
}
  0x6f   : > { %7006 = dma.hbm_to_vmem [thread:$0]  (!%p8344_p8), %s637_s0, 16, %s640_s10, %s11577_s16  }
  0x70   : > { %s8110_s3 = smov [#allocation9]  }
  0x71   : > { %s532_s12 = sshll.u32 %s8110_s3, 4  ;;  %s533_s12 = int_to_ptr.vmem [resolvable:$true] %s532_s12 }
  0x72   : > { %s7833_s13 = scalar_lea.vmem %s533_s12, 16  ;;  %s7840_s11 = scalar_lea.vmem %s533_s12, 32 }
  0x73   : > { %p7834_p3 = scmp.ne.s32.totalorder %s533_s12, %s7833_s13  ;;  %p7841_p4 = scmp.lt.s32.totalorder %s533_s12, %s533_s12 }
  0x74   : > { %p7842_p9 = scmp.lt.s32.totalorder %s7840_s11, %s7833_s13 }
  0x75   : > { %p7836_p6 = pnand %p7834_p3, %p7716_p13 }
  0x76   : > { %p7843_p7 = por %p7842_p9, %p7841_p4 }
  0x77   : > { %p7837_p5 = pneg %p7836_p6 }
  0x79   : > { %p7844_p11 = pnand %p7843_p7, %p7837_p5 }
  0x7b   : > { %7847 = shalt.err (!%p7844_p11)
}
  0x7c   : > { %s11670_s2 = sld [smem:[#allocation86_spill]]  ;;  %s52_s24 = sadd.s32 1, %s8092_s18 }
  0x7d   : > { %p53_p13 = scmp.ge.s32.totalorder %s52_s24, 2  ;;  %s55_s14 = sadd.s32 1, %s8096_s19 }
  0x7e   : > { %s62_s4 = sadd.s32 1, %s8080_s29  ;;  %p69_p4 = scmp.ne.s32.totalorder %s8080_s29, %s8076_s28 }
  0x7f   : > { %s11866_s24 = smov (%p53_p13, %s52_s24), 0  ;;  %s11868_s14 = smov (!%p53_p13, %s55_s14), %s8096_s19 }
  0x80   : > { %11671 = sst [smem:[#allocation41_spill]] %s11866_s24  ;;  %p8394_p0 = por %p70_p1, %p69_p4 }
  0x81   : > { %s127_s17 = ssub.s32 %s8092_s18, %s11866_s24  ;;  %p11673_p3 = scmp.eq.s32.totalorder %s8268_s20, 3 }
  0x82   : > { %6990 = dma.hbm_to_vmem [thread:$0]  (!%p8302_p12), %s11670_s2, 16, %s533_s12, [#allocation8]  }
  0x83   : > { %p57_p12 = scmp.ge.s32.totalorder %s11868_s14, 2  ;;  %p128_p2 = scmp.eq.s32.totalorder %s127_s17, 0 }
  0x84   : > { %p8402_p6 = por %p11673_p3, %p69_p4  ;;  %s559_s10 = sand.u32 1, %s8080_s29  }
  0x85   : > { %s11870_s14 = smov (%p57_p12, %s11868_s14), 0  ;;  %s11677_s25 = sadd.s32 1, %s8068_s26 }
  0x86   : > { %s11674_s23 = scalar_select %p8402_p6, 1, 0 }
  0x87   : > { %11676 = sst [smem:[#allocation43_spill]] %s11870_s14  ;;  %s59_s3 = ssub.s32 %s8096_s19, %s11870_s14 }
  0x88   : > { %11675 = sst [smem:[#allocation42_spill]] %s11674_s23  ;;  %p60_p1 = scmp.eq.s32.totalorder %s59_s3, 0 }
  0x89   : > { %s8412_s0 = scalar_select %p128_p2, %s8068_s26, %s11677_s25  }
  0x8a   : > { %s6189_s12 = sshll.u32 %s559_s10, 7  ;;  %s6329_s13 = sshll.u32 %s8096_s19, 11 }
  0x8b   : > { %11678 = sst [smem:[#allocation44_spill]] %s8412_s0  ;;  %s563_s30 = scalar_lea.vmem [#allocation4], %s6189_s12 }
  0x8c   : > { %s8418_s11 = scalar_select %p60_p1, %s8080_s29, %s62_s4  }
  0x8d   : > { %s11680_s17 = sld [smem:[#allocation84_spill]]  ;;  %s570_s2 = sshll.u32 %s563_s30, 4  ;;  %s571_s2 = int_to_ptr.vmem [resolvable:$true] %s570_s2 }
  0x8e   : > { %11679 = sst [smem:[#allocation45_spill]] %s8418_s11  ;;  %p11681_p5 = scmp.lt.s32.totalorder %s8100_s1, 4 }
  0x8f   : > { %s6193_s25 = sshll.u32 %s8336_s21, 6  ;;  %s560_s3 = scalar_lea.sflag [#allocation5], %s559_s10 }
  0x90   : > { %p8427_p9 = pnand %p11681_p5, %p8394_p0  ;;  %s7861_s4 = scalar_lea.vmem %s571_s2, 2048 }
  0x91   : > { %p7862_p11 = scmp.ne.s32.totalorder %s571_s2, %s7861_s4  ;;  %s8111_s9 = smov [#allocation4]  }
  0x92   : > { %p7850_p7 = pneg %p8427_p9 }
  0x93   : > { %s569_s16 = scalar_lea.hbm %s11680_s17, %s6329_s13  ;;  %s7866_s13 = sshll.u32 %s8111_s9, 4  ;;  %s7867_s13 = int_to_ptr.vmem [resolvable:$false] %s7866_s13 }
  0x94   : > { %p7864_p13 = pnand %p7862_p11, %p7850_p7  ;;  %s7868_s30 = scalar_lea.vmem %s7867_s13, 4096 }
  0x95   : > { %p7869_p12 = scmp.lt.s32.totalorder %s571_s2, %s7867_s13  ;;  %p7870_p2 = scmp.lt.s32.totalorder %s7868_s30, %s7861_s4 }
  0x96   : > { %p7865_p4 = pneg %p7864_p13 }
  0x97   : > { %p7871_p3 = por %p7870_p2, %p7869_p12 }
  0x99   : > { %p7872_p0 = pnand %p7871_p3, %p7865_p4 }
  0x9b   : > { %7875 = shalt.err (!%p7872_p0)
}
  0x9c   : > { %s11582_s8 = smov 128   ;;  %s11583_s10 = smov 8  }
  0x9d   : > { %6997 = dma.hbm_to_vmem [thread:$0]  (!%p8427_p9), %s569_s16, 2048, %s571_s2, %s560_s3, %s11582_s8, %s11582_s8, %s11583_s10  }
  0x9e   : > { %s6330_s12 = sshll.u32 %s8092_s18, 10  ;;  %s11683_s5 = sld [smem:[#allocation89_spill]] }
  0x9f   : > { %s612_s4 = scalar_lea.vmem [#allocation12], %s6193_s25  ;;  %s6197_s30 = sshll.u32 %s8336_s21, 7 }
  0xa0   : > { %s619_s13 = sshll.u32 %s612_s4, 4  ;;  %s8114_s24 = smov [#allocation12]   ;;  %s620_s13 = int_to_ptr.vmem [resolvable:$true] %s619_s13 }
  0xa1   : > { %s7889_s14 = scalar_lea.vmem %s620_s13, 1024  ;;  %s7894_s6 = sshll.u32 %s8114_s24, 4  ;;  %s7895_s6 = int_to_ptr.vmem [resolvable:$false] %s7894_s6 }
  0xa2   : > { %p7890_p1 = scmp.ne.s32.totalorder %s620_s13, %s7889_s14  ;;  %s7896_s19 = scalar_lea.vmem %s7895_s6, 2048 }
  0xa3   : > { %p7897_p11 = scmp.lt.s32.totalorder %s620_s13, %s7895_s6  ;;  %p7898_p9 = scmp.lt.s32.totalorder %s7896_s19, %s7889_s14 }
  0xa4   : > { %s618_s9 = scalar_lea.hbm %s11683_s5, %s6330_s12  ;;  %p7892_p5 = pnand %p7890_p1, %p8354_p10 }
  0xa5   : > { %p7899_p13 = por %p7898_p9, %p7897_p11 }
  0xa6   : > { %p7893_p7 = pneg %p7892_p5 }
  0xa8   : > { %p7900_p4 = pnand %p7899_p13, %p7893_p7 }
  0xaa   : > { %7903 = shalt.err (!%p7900_p4)
}
  0xab   : > { %s11684_s2 = smov 4   ;;  %s11685_s16 = smov 64  }
  0xac   : > { %s11686_s25 = scalar_lea.sflag [#allocation11], %s8333_s27  ;;  %s6331_s3 = sshll.u32 %s8092_s18, 11 }
  0xad   : > { %7003 = dma.hbm_to_vmem [thread:$0]  (!%p8344_p8), %s618_s9, 1024, %s620_s13, %s11686_s25, %s11685_s16, %s11685_s16, %s11684_s2  }
  0xae   : > { %s11687_s22 = sld [smem:[#allocation93_spill]]  ;;  %s662_s19 = scalar_lea.vmem [#allocation15], %s6197_s30 }
  0xaf   : > { %s669_s14 = sshll.u32 %s662_s19, 4  ;;  %s8115_s6 = smov [#allocation15]   ;;  %s670_s14 = int_to_ptr.vmem [resolvable:$true] %s669_s14 }
  0xb0   : > { %s7917_s4 = scalar_lea.vmem %s670_s14, 2048  ;;  %s7922_s8 = sshll.u32 %s8115_s6, 4  ;;  %s7923_s8 = int_to_ptr.vmem [resolvable:$false] %s7922_s8 }
  0xb1   : > { %p7918_p12 = scmp.ne.s32.totalorder %s670_s14, %s7917_s4  ;;  %s7924_s10 = scalar_lea.vmem %s7923_s8, 4096 }
  0xb2   : > { %p7925_p0 = scmp.lt.s32.totalorder %s670_s14, %s7923_s8  ;;  %p7926_p1 = scmp.lt.s32.totalorder %s7924_s10, %s7917_s4 }
  0xb3   : > { %p7920_p2 = pnand %p7918_p12, %p8354_p10 }
  0xb4   : > { %s668_s17 = scalar_lea.hbm %s11687_s22, %s6331_s3  ;;  %p7927_p5 = por %p7926_p1, %p7925_p0 }
  0xb5   : > { %p7921_p3 = pneg %p7920_p2 }
  0xb7   : > { %p7928_p7 = pnand %p7927_p5, %p7921_p3 }
  0xb9   : > { %7931 = shalt.err (!%p7928_p7)
}
  0xba   : > { %s11688_s9 = smov 8   ;;  %s11689_s13 = smov 128  }
  0xbb   : > { %s11690_s25 = scalar_lea.sflag [#allocation14], %s8333_s27  ;;  %s11691_s22 = sld [smem:[#allocation95_spill]] }
  0xbc   : > { %7009 = dma.hbm_to_vmem [thread:$0]  (!%p8344_p8), %s668_s17, 2048, %s670_s14, %s11690_s25, %s11689_s13, %s11689_s13, %s11688_s9  }
  0xbd   : > { %s690_s8 = scalar_lea.vmem [#allocation16], %s6197_s30  ;;  %s687_s4 = scalar_lea.sflag [#allocation17], %s8333_s27 }
  0xbe   : > { %s697_s10 = sshll.u32 %s690_s8, 4  ;;  %s8116_s5 = smov [#allocation16]   ;;  %s698_s10 = int_to_ptr.vmem [resolvable:$true] %s697_s10 }
  0xbf   : > { %s7945_s6 = scalar_lea.vmem %s698_s10, 2048  ;;  %s7950_s18 = sshll.u32 %s8116_s5, 4  ;;  %s7951_s18 = int_to_ptr.vmem [resolvable:$false] %s7950_s18 }
  0xc0   : > { %p7946_p11 = scmp.ne.s32.totalorder %s698_s10, %s7945_s6  ;;  %s7952_s11 = scalar_lea.vmem %s7951_s18, 4096 }
  0xc1   : > { %s696_s19 = scalar_lea.hbm %s11691_s22, %s6331_s3  ;;  %p7953_p4 = scmp.lt.s32.totalorder %s698_s10, %s7951_s18 }
  0xc2   : > { %p7948_p9 = pnand %p7946_p11, %p8354_p10  ;;  %p7954_p12 = scmp.lt.s32.totalorder %s7952_s11, %s7945_s6 }
  0xc4   : > { %p7949_p13 = pneg %p7948_p9  ;;  %p7955_p2 = por %p7954_p12, %p7953_p4 }
  0xc6   : > { %p7956_p3 = pnand %p7955_p2, %p7949_p13 }
  0xc8   : > { %7959 = shalt.err (!%p7956_p3)
}
  0xc9   : > { %7012 = dma.hbm_to_vmem [thread:$0]  (!%p8344_p8), %s696_s19, 2048, %s698_s10, %s687_s4, %s11685_s16, %s11685_s16, %s11684_s2  }
  0xca   : > { %s11692_s27 = sld [smem:[#allocation40_spill]] }
  0xd0   : > { %p11693_p0 = scmp.ne.s32.totalorder %s11692_s27, 0 }
  0xd2   : > { %727 = sbr.rel (%p11693_p0) target bundleno = 4521 (0x11a9), region = 88 }
  0xd7   : > { %s11694_s15 = sld [smem:[#allocation37_spill]]  ;;  %s8484_s21 = sand.u32 1, %s8076_s28  }
  0xd8   : > { %s6204_s5 = sshll.u32 %s8484_s21, 7  ;;  %s730_s18 = scalar_lea.sflag [#allocation5], %s8484_s21 }
  0xd9   : > { %s8488_s11 = scalar_lea.vmem [#allocation4], %s6204_s5 }
  0xdd   : > { %p11695_p10 = scmp.ne.s32.totalorder %s11694_s15, 0 }
  0xdf   : > { %8031 = dma.done.wait (%p11695_p10), %s730_s18, 2048  }
  0xe0   : > { %8033 = vsyncadd (%p11695_p10), %s730_s18, 4294965248  ;;  %p11696_p8 = scmp.eq.s32.totalorder %s8268_s20, 0 }
  0xe2   : > { %8035 = dma.done.wait (%p11696_p8), [#allocation8], 32   ;;  %p11697_p1 = pmov %p11696_p8 }
  0xe3   : > { %s11698_s7 = sld [smem:[#allocation27_spill]]  ;;  %s746_s2 = sand.u32 1, %s8268_s20  }
  0xe4   : > { %8037 = vsyncadd (%p11697_p1), [#allocation8], 4294967264  ;;  %s11699_s30 = sld [smem:[#allocation38_spill]]  ;;  %s747_s17 = scalar_lea.sflag [#allocation11], %s746_s2 }
  0xe9   : > { %s8500_s16 = sand.u32 1, %s11698_s7  }
  0xea   : > { %s6956_s3 = smul.u32 192, %s8500_s16  ;;  %p11700_p5 = scmp.ne.s32.totalorder %s11699_s30, 0 }
  0xec   : > { %s8503_s14 = scalar_lea.vmem [#allocation10], %s6956_s3 }
  0xed   : > { %8039 = dma.done.wait (%p11700_p5), %s747_s17, 4096  }
  0xee   : > { %8041 = vsyncadd (%p11700_p5), %s747_s17, 4294963200  ;;  %s6207_s9 = sshll.u32 %s8500_s16, 6  ;;  %s765_s25 = scalar_lea.sflag [#allocation14], %s746_s2 }
  0xef   : > { %s8510_s13 = scalar_lea.vmem [#allocation12], %s6207_s9 }
  0xf0   : > { %8043 = dma.done.wait (%p11700_p5), %s765_s25, 2064  }
  0xf1   : > { %8045 = vsyncadd (%p11700_p5), %s765_s25, 4294965232  ;;  %s6208_s12 = sshll.u32 %s8500_s16, 7  ;;  %s782_s19 = scalar_lea.sflag [#allocation17], %s746_s2 }
  0xf2   : > { %s8518_s22 = scalar_lea.vmem [#allocation15], %s6208_s12  ;;  %s8520_s8 = scalar_lea.vmem [#allocation16], %s6208_s12 }
  0xf3   : > { %8047 = dma.done.wait (%p11700_p5), %s782_s19, 2048  }
  0xf4   : > { %8049 = vsyncadd (%p11700_p5), %s782_s19, 4294965248  ;;  %p11701_p7 = pmov %p11697_p1 }
  0xf5   : > { %p11702_p11 = pmov %p11697_p1 }
  0xf6   : > { %8051 = dma.done.wait (%p11701_p7), [#allocation17], 1024  }
  0xf7   : > { %8053 = vsyncadd (%p11702_p11), [#allocation17], 4294966272  ;;  %s11703_s10 = sld [smem:[#allocation32_spill]]  ;;  %s885_s17 = scalar_lea.vmem [#allocation19], %s8484_s21 }
  0xf8   : > { %s11706_s25 = sld [smem:[#allocation88_spill]] }
  0xf9   : > { %s11707_s29 = sld [smem:[#allocation94_spill]] }
  0xfa   : > { %s11708_s1 = sld [smem:[#allocation96_spill]] }
  0xfb   : > { %s11709_s18 = sld [smem:[#allocation97_spill]] }
  0xfc   : > { %s11710_s2 = sld [smem:[#allocation98_spill]] }
  0xfd   : > { %p886_p9 = scmp.lt.s32.totalorder %s11703_s10, 1  ;;  %p6212_p13 = scmp.ne.s32.totalorder %s11703_s10, 0 }
  0xff   : > { %s8532_s4 = scalar_select %p886_p9, %s11703_s10, 1 }
 0x100   : > { %913 = sbr.rel (%p6212_p13) target bundleno = 490 (0x1ea), region = 128 }
 0x101   : > { %s6957_s6 = smul.u32 3, %s8532_s4  ;;  %s6211_s3 = sshll.u32 %s8532_s4, 1 }
 0x102   : > { %s8552_s28 = scalar_lea.vmem %s11707_s29, %s6211_s3  ;;  %s902_s27 = scalar_lea.vmem %s11708_s1, %s8532_s4 }
 0x103   : > { %s8547_s12 = scalar_lea.vmem %s11706_s25, %s6957_s6  ;;  %s905_s20 = scalar_lea.vmem %s11709_s18, %s8532_s4 }
 0x104   : > { %s908_s23 = scalar_lea.vmem %s11710_s2, %s8532_s4 }
 0x105   : > { %v8569_v0 = vld [vmem:[%s8488_s11 + $0x10] sm:$0xff]  ;;  %v8572_v1 = vld [vmem:[%s8488_s11] sm:$0xff]  ;;  %v8577_v2 = vld [vmem:[%s8488_s11 + $0x18] sm:$0xff] }
 0x106   : > { %936 = vadd.xlane.f32.xlu1 %v8569_v0  ;;  %932 = vadd.xlane.f32.xlu0 %v8572_v1  ;;  %v8580_v3 = vld [vmem:[%s8488_s11 + $0x8] sm:$0xff]  ;;  %v8588_v5 = vld [vmem:[%s8488_s11 + $0x20] sm:$0xff]  ;;  %v8593_v6 = vld [vmem:[%s8488_s11 + $0x38] sm:$0xff]  ;;  %v981_v17 = vmul.f32 %v8572_v1, %v8572_v1  ;;  %v984_v18 = vmul.f32 %v8577_v2, %v8577_v2  ;;  %v983_v19 = vmul.f32 %v8569_v0, %v8569_v0 }
 0x107   : > { %v8585_v4 = vld [vmem:[%s8488_s11 + $0x28] sm:$0xff]  ;;  %v8596_v7 = vld [vmem:[%s8488_s11 + $0x30] sm:$0xff]  ;;  %v8604_v9 = vld [vmem:[%s8488_s11 + $0x40] sm:$0xff]  ;;  %v982_v16 = vmul.f32 %v8580_v3, %v8580_v3  ;;  %v985_v21 = vmul.f32 %v8588_v5, %v8588_v5  ;;  %v988_v22 = vmul.f32 %v8593_v6, %v8593_v6 }
 0x108   : > { %v8601_v8 = vld [vmem:[%s8488_s11 + $0x48] sm:$0xff]  ;;  %v8609_v10 = vld [vmem:[%s8488_s11 + $0x58] sm:$0xff]  ;;  %v8612_v11 = vld [vmem:[%s8488_s11 + $0x50] sm:$0xff]  ;;  %v986_v20 = vmul.f32 %v8585_v4, %v8585_v4  ;;  %v987_v23 = vmul.f32 %v8596_v7, %v8596_v7  ;;  %v989_v25 = vmul.f32 %v8604_v9, %v8604_v9 }
 0x109   : > { %v8617_v12 = vld [vmem:[%s8488_s11 + $0x68] sm:$0xff]  ;;  %v8620_v13 = vld [vmem:[%s8488_s11 + $0x60] sm:$0xff]  ;;  %v8625_v14 = vld [vmem:[%s8488_s11 + $0x78] sm:$0xff]  ;;  %v990_v24 = vmul.f32 %v8601_v8, %v8601_v8  ;;  %v992_v26 = vmul.f32 %v8609_v10, %v8609_v10  ;;  %v991_v27 = vmul.f32 %v8612_v11, %v8612_v11 }
 0x10a   : > { %938 = vadd.xlane.f32.xlu1 %v8577_v2  ;;  %934 = vadd.xlane.f32.xlu0 %v8580_v3  ;;  %v8628_v15 = vld [vmem:[%s8488_s11 + $0x70] sm:$0xff]  ;;  %v994_v28 = vmul.f32 %v8617_v12, %v8617_v12  ;;  %v993_v29 = vmul.f32 %v8620_v13, %v8620_v13  ;;  %v996_v30 = vmul.f32 %v8625_v14, %v8625_v14 }
 0x10b   : > { %v995_v31 = vmul.f32 %v8628_v15, %v8628_v15 }
 0x10e   : > { %942 = vadd.xlane.f32.xlu1 %v8585_v4  ;;  %940 = vadd.xlane.f32.xlu0 %v8588_v5 }
 0x112   : > { %946 = vadd.xlane.f32.xlu1 %v8593_v6  ;;  %944 = vadd.xlane.f32.xlu0 %v8596_v7 }
 0x116   : > { %950 = vadd.xlane.f32.xlu1 %v8601_v8  ;;  %948 = vadd.xlane.f32.xlu0 %v8604_v9 }
 0x11a   : > { %954 = vadd.xlane.f32.xlu1 %v8609_v10  ;;  %952 = vadd.xlane.f32.xlu0 %v8612_v11 }
 0x11e   : > { %958 = vadd.xlane.f32.xlu1 %v8617_v12  ;;  %956 = vadd.xlane.f32.xlu0 %v8620_v13 }
 0x122   : > { %962 = vadd.xlane.f32.xlu1 %v8625_v14  ;;  %960 = vadd.xlane.f32.xlu0 %v8628_v15 }
 0x126   : > { %999 = vadd.xlane.f32.xlu1 %v982_v16  ;;  %997 = vadd.xlane.f32.xlu0 %v981_v17 }
 0x12a   : > { %1003 = vadd.xlane.f32.xlu1 %v984_v18  ;;  %1001 = vadd.xlane.f32.xlu0 %v983_v19 }
 0x12e   : > { %1007 = vadd.xlane.f32.xlu1 %v986_v20  ;;  %1005 = vadd.xlane.f32.xlu0 %v985_v21 }
 0x132   : > { %1011 = vadd.xlane.f32.xlu1 %v988_v22  ;;  %1009 = vadd.xlane.f32.xlu0 %v987_v23 }
 0x136   : > { %1015 = vadd.xlane.f32.xlu1 %v990_v24  ;;  %1013 = vadd.xlane.f32.xlu0 %v989_v25 }
 0x13a   : > { %1019 = vadd.xlane.f32.xlu1 %v992_v26  ;;  %1017 = vadd.xlane.f32.xlu0 %v991_v27 }
 0x13e   : > { %1023 = vadd.xlane.f32.xlu1 %v994_v28  ;;  %1021 = vadd.xlane.f32.xlu0 %v993_v29 }
 0x142   : > { %1027 = vadd.xlane.f32.xlu1 %v996_v30  ;;  %1025 = vadd.xlane.f32.xlu0 %v995_v31 }
 0x18f   : > { %v937_v32 = vpop.xlane.xlu1 %936  ;;  %v933_v33 = vpop.xlane.xlu0 %932 }
 0x190   : > { %v8676_v48 = vmul.f32 0.0078125, %v933_v33  ;;  %v8680_v50 = vmul.f32 0.0078125, %v937_v32 }
 0x192   : > { %v1045_v54 = vmul.f32 %v8676_v48, %v8676_v48  ;;  %v1047_v60 = vmul.f32 %v8680_v50, %v8680_v50  ;;  %v1095_v21 = vsub.f32 %v8569_v0, %v8680_v50  ;;  %v1093_v28 = vsub.f32 %v8572_v1, %v8676_v48 }
 0x193   : > { %v939_v34 = vpop.xlane.xlu1 %938  ;;  %v935_v35 = vpop.xlane.xlu0 %934 }
 0x194   : > { %v8678_v49 = vmul.f32 0.0078125, %v935_v35  ;;  %v8682_v51 = vmul.f32 0.0078125, %v939_v34 }
 0x196   : > { %v1046_v55 = vmul.f32 %v8678_v49, %v8678_v49  ;;  %v1048_v61 = vmul.f32 %v8682_v51, %v8682_v51  ;;  %v1096_v29 = vsub.f32 %v8577_v2, %v8682_v51 }
 0x197   : > { %v943_v36 = vpop.xlane.xlu1 %942  ;;  %v941_v37 = vpop.xlane.xlu0 %940 }
 0x198   : > { %v8692_v62 = vmul.f32 0.0078125, %v943_v36  ;;  %v8696_v22 = vmul.f32 0.0078125, %v941_v37  ;;  %v1094_v37 = vsub.f32 %v8580_v3, %v8678_v49 }
 0x19a   : > { %v1050_v30 = vmul.f32 %v8692_v62, %v8692_v62 }
 0x19b   : > { %v947_v38 = vpop.xlane.xlu1 %946  ;;  %v945_v39 = vpop.xlane.xlu0 %944 }
 0x19c   : > { %v8698_v23 = vmul.f32 0.0078125, %v947_v38  ;;  %v8706_v31 = vmul.f32 0.0078125, %v945_v39  ;;  %v1049_v38 = vmul.f32 %v8696_v22, %v8696_v22 }
 0x19f   : > { %v951_v40 = vpop.xlane.xlu1 %950  ;;  %v949_v41 = vpop.xlane.xlu0 %948 }
 0x1a3   : > { %v8664_v42 = vpop.xlane.xlu1 %954  ;;  %v8666_v43 = vpop.xlane.xlu0 %952 }
 0x1a7   : > { %v8668_v44 = vpop.xlane.xlu1 %958  ;;  %v8670_v45 = vpop.xlane.xlu0 %956 }
 0x1ab   : > { %v8672_v46 = vpop.xlane.xlu1 %962  ;;  %v8674_v47 = vpop.xlane.xlu0 %960 }
 0x1af   : > { %v1000_v52 = vpop.xlane.xlu1 %999  ;;  %v998_v53 = vpop.xlane.xlu0 %997 }
 0x1b0   : > { %v1030_v56 = vmul.f32 0.0078125, %v1000_v52  ;;  %v1029_v57 = vmul.f32 0.0078125, %v998_v53  ;;  %v1052_v53 = vmul.f32 %v8698_v23, %v8698_v23 }
 0x1b2   : > { %v1062_v58 = vsub.f32 %v1030_v56, %v1046_v55  ;;  %v1061_v59 = vsub.f32 %v1029_v57, %v1045_v54  ;;  %v1051_v56 = vmul.f32 %v8706_v31, %v8706_v31  ;;  %v8716_v57 = vmul.f32 0.0078125, %v951_v40 }
 0x1b3   : > { %v1004_v63 = vpop.xlane.xlu1 %1003  ;;  %v1002_v16 = vpop.xlane.xlu0 %1001  ;;  %v8725_v40 = vmul.f32 0.0078125, %v8664_v42 }
 0x1b4   : > { %v1078_v17 = vmax.f32 %v1062_v58, 0.0  ;;  %v1077_v18 = vmax.f32 %v1061_v59, 0.0  ;;  %v1032_v19 = vmul.f32 0.0078125, %v1004_v63  ;;  %v1031_v20 = vmul.f32 0.0078125, %v1002_v16 }
 0x1b5   : > { %v8718_v58 = vmul.f32 0.0078125, %v949_v41  ;;  %v1098_v16 = vsub.f32 %v8585_v4, %v8692_v62  ;;  %v1099_v62 = vsub.f32 %v8596_v7, %v8706_v31 }
 0x1b6   : > { %v1110_v24 = vadd.f32 1e-12, %v1078_v17  ;;  %v1109_v25 = vadd.f32 1e-12, %v1077_v18  ;;  %v1064_v26 = vsub.f32 %v1032_v19, %v1048_v61  ;;  %v1063_v27 = vsub.f32 %v1031_v20, %v1047_v60 }
 0x1b7   : > { %v1008_v32 = vpop.xlane.xlu1 %1007  ;;  %v1006_v33 = vpop.xlane.xlu0 %1005  ;;  %v1097_v17 = vsub.f32 %v8588_v5, %v8696_v22 }
 0x1b8   : > { %7128 = vrsqrt.f32 %v1110_v24  ;;  %v1080_v34 = vmax.f32 %v1064_v26, 0.0  ;;  %v1079_v35 = vmax.f32 %v1063_v27, 0.0  ;;  %v1034_v36 = vmul.f32 0.0078125, %v1008_v32 }
 0x1b9   : > { %7130 = vrsqrt.f32 %v1109_v25  ;;  %v1033_v52 = vmul.f32 0.0078125, %v1006_v33  ;;  %v1054_v24 = vmul.f32 %v8716_v57, %v8716_v57  ;;  %v1053_v25 = vmul.f32 %v8718_v58, %v8718_v58 }
 0x1ba   : > { %v1112_v54 = vadd.f32 1e-12, %v1080_v34  ;;  %v1111_v39 = vadd.f32 1e-12, %v1079_v35  ;;  %v1066_v55 = vsub.f32 %v1034_v36, %v1050_v30  ;;  %v8732_v26 = vmul.f32 0.0078125, %v8666_v43 }
 0x1bb   : > { %v1065_v59 = vsub.f32 %v1033_v52, %v1049_v38  ;;  %v1012_v3 = vpop.xlane.xlu1 %1011  ;;  %v1010_v49 = vpop.xlane.xlu0 %1009  ;;  %v8735_v35 = vmul.f32 0.0078125, %v8668_v44  ;;  %v8738_v36 = vmul.f32 0.0078125, %v8670_v45  ;;  %v1056_v52 = vmul.f32 %v8725_v40, %v8725_v40 }
 0x1bc   : > { %7132 = vrsqrt.f32 %v1112_v54  ;;  %v1082_v60 = vmax.f32 %v1066_v55, 0.0  ;;  %v1036_v61 = vmul.f32 0.0078125, %v1012_v3  ;;  %v1035_v63 = vmul.f32 0.0078125, %v1010_v49 }
 0x1bd   : > { %7134 = vrsqrt.f32 %v1111_v39  ;;  %v1081_v18 = vmax.f32 %v1065_v59, 0.0  ;;  %v1055_v39 = vmul.f32 %v8732_v26, %v8732_v26  ;;  %v8745_v55 = vmul.f32 0.0078125, %v8672_v46 }
 0x1be   : > { %v1114_v41 = vadd.f32 1e-12, %v1082_v60  ;;  %v1068_v19 = vsub.f32 %v1036_v61, %v1052_v53  ;;  %v1067_v20 = vsub.f32 %v1035_v63, %v1051_v56  ;;  %v8748_v44 = vmul.f32 0.0078125, %v8674_v47 }
 0x1bf   : > { %v1113_v27 = vadd.f32 1e-12, %v1081_v18  ;;  %v1016_v30 = vpop.xlane.xlu1 %1015  ;;  %v1014_v32 = vpop.xlane.xlu0 %1013  ;;  %v1058_v63 = vmul.f32 %v8735_v35, %v8735_v35  ;;  %v1057_v18 = vmul.f32 %v8738_v36, %v8738_v36 }
 0x1c0   : > { %7136 = vrsqrt.f32 %v1114_v41  ;;  %v1084_v33 = vmax.f32 %v1068_v19, 0.0  ;;  %v1083_v34 = vmax.f32 %v1067_v20, 0.0  ;;  %v1038_v42 = vmul.f32 0.0078125, %v1016_v30  ;;  %v8754_v41 = vld [vmem:[#allocation7] ss:$0 sm:$0xff] }
 0x1c1   : > { %7138 = vrsqrt.f32 %v1113_v27  ;;  %v1037_v38 = vmul.f32 0.0078125, %v1014_v32  ;;  %v1060_v27 = vmul.f32 %v8745_v55, %v8745_v55  ;;  %v1059_v30 = vmul.f32 %v8748_v44, %v8748_v44  ;;  %v8760_v32 = vld [vmem:[#allocation9] ss:$0 sm:$0xff] }
 0x1c2   : > { %v1116_v43 = vadd.f32 1e-12, %v1084_v33  ;;  %v1115_v53 = vadd.f32 1e-12, %v1083_v34  ;;  %v1070_v54 = vsub.f32 %v1038_v42, %v1054_v24 }
 0x1c3   : > { %v1069_v56 = vsub.f32 %v1037_v38, %v1053_v25  ;;  %v1020_v45 = vpop.xlane.xlu1 %1019  ;;  %v1018_v59 = vpop.xlane.xlu0 %1017 }
 0x1c4   : > { %7140 = vrsqrt.f32 %v1116_v43  ;;  %v1086_v3 = vmax.f32 %v1070_v54, 0.0  ;;  %v1040_v49 = vmul.f32 0.0078125, %v1020_v45  ;;  %v1039_v60 = vmul.f32 0.0078125, %v1018_v59 }
 0x1c5   : > { %v7129_v61 = vpop.eup %7128  ;;  %7142 = vrsqrt.f32 %v1115_v53  ;;  %v1085_v46 = vmax.f32 %v1069_v56, 0.0 }
 0x1c6   : > { %v7131_v47 = vpop.eup %7130  ;;  %v1142_v19 = vmul.f32 %v7129_v61, %v1094_v37  ;;  %v1118_v20 = vadd.f32 1e-12, %v1086_v3  ;;  %v1072_v24 = vsub.f32 %v1040_v49, %v1056_v52  ;;  %v1071_v25 = vsub.f32 %v1039_v60, %v1055_v39 }
 0x1c7   : > { %v1141_v33 = vmul.f32 %v7131_v47, %v1093_v28  ;;  %v1117_v34 = vadd.f32 1e-12, %v1085_v46  ;;  %v1024_v42 = vpop.xlane.xlu1 %1023  ;;  %v1022_v38 = vpop.xlane.xlu0 %1021 }
 0x1c8   : > { %v1164_v37 = vmul.f32 %v8754_v41, %v1142_v19  ;;  %7144 = vrsqrt.f32 %v1118_v20  ;;  %v1088_v52 = vmax.f32 %v1072_v24, 0.0  ;;  %v1087_v43 = vmax.f32 %v1071_v25, 0.0 }
 0x1c9   : > { %v7133_v53 = vpop.eup %7132  ;;  %v1163_v54 = vmul.f32 %v8754_v41, %v1141_v33  ;;  %7146 = vrsqrt.f32 %v1117_v34  ;;  %v1042_v39 = vmul.f32 0.0078125, %v1024_v42  ;;  %v1041_v56 = vmul.f32 0.0078125, %v1022_v38 }
 0x1ca   : > { %v7135_v45 = vpop.eup %7134  ;;  %v1186_v59 = vadd.f32 %v8760_v32, %v1164_v37  ;;  %v1144_v1 = vmul.f32 %v7133_v53, %v1096_v29  ;;  %v1120_v48 = vadd.f32 1e-12, %v1088_v52  ;;  %v1119_v28 = vadd.f32 1e-12, %v1087_v43 }
 0x1cb   : > { %v1185_v3 = vadd.f32 %v8760_v32, %v1163_v54  ;;  %v1143_v49 = vmul.f32 %v7135_v45, %v1095_v21  ;;  %v1074_v60 = vsub.f32 %v1042_v39, %v1058_v63  ;;  %v1073_v61 = vsub.f32 %v1041_v56, %v1057_v18  ;;  %v1028_v46 = vpop.xlane.xlu1 %1027  ;;  %v1026_v47 = vpop.xlane.xlu0 %1025 }
 0x1cc   : > { %1202 = vst [vmem:[#allocation2] sm:$0xff] %v1186_v59  ;;  %v1166_v19 = vmul.f32 %v8754_v41, %v1144_v1  ;;  %7148 = vrsqrt.f32 %v1120_v48  ;;  %v1044_v20 = vmul.f32 0.0078125, %v1028_v46  ;;  %v1043_v24 = vmul.f32 0.0078125, %v1026_v47 }
 0x1cd   : > { %v7137_v2 = vpop.eup %7136  ;;  %1201 = vst [vmem:[#allocation2 + $0x30] sm:$0xff] %v1185_v3  ;;  %v1165_v51 = vmul.f32 %v8754_v41, %v1143_v49  ;;  %7150 = vrsqrt.f32 %v1119_v28  ;;  %v1090_v29 = vmax.f32 %v1074_v60, 0.0  ;;  %v1089_v25 = vmax.f32 %v1073_v61, 0.0 }
 0x1ce   : > { %v7139_v33 = vpop.eup %7138  ;;  %v1188_v0 = vadd.f32 %v8760_v32, %v1166_v19  ;;  %v1146_v50 = vmul.f32 %v7137_v2, %v1098_v16  ;;  %v1076_v21 = vsub.f32 %v1044_v20, %v1060_v27  ;;  %v1075_v63 = vsub.f32 %v1043_v24, %v1059_v30 }
 0x1cf   : > { %v1187_v18 = vadd.f32 %v8760_v32, %v1165_v51  ;;  %v1145_v34 = vmul.f32 %v7139_v33, %v1097_v17  ;;  %v1122_v42 = vadd.f32 1e-12, %v1090_v29  ;;  %v1121_v38 = vadd.f32 1e-12, %v1089_v25 }
 0x1d0   : > { %v1100_v37 = vsub.f32 %v8593_v6, %v8698_v23  ;;  %1204 = vst [vmem:[#allocation2 + $0x18] sm:$0xff] %v1188_v0  ;;  %v1168_v52 = vmul.f32 %v8754_v41, %v1146_v50  ;;  %v1092_v43 = vmax.f32 %v1076_v21, 0.0  ;;  %v1091_v53 = vmax.f32 %v1075_v63, 0.0 }
 0x1d1   : > { %v7141_v4 = vpop.eup %7140  ;;  %1203 = vst [vmem:[#allocation2 + $0x58] sm:$0xff] %v1187_v18  ;;  %v1167_v16 = vmul.f32 %v8754_v41, %v1145_v34  ;;  %7152 = vrsqrt.f32 %v1122_v42  ;;  %v1102_v54 = vsub.f32 %v8601_v8, %v8716_v57  ;;  %v1101_v39 = vsub.f32 %v8604_v9, %v8718_v58 }
 0x1d2   : > { %v7143_v5 = vpop.eup %7142  ;;  %v1190_v22 = vadd.f32 %v8760_v32, %v1168_v52  ;;  %v1148_v17 = vmul.f32 %v7141_v4, %v1100_v37  ;;  %7154 = vrsqrt.f32 %v1121_v38  ;;  %v1124_v27 = vadd.f32 1e-12, %v1092_v43 }
 0x1d3   : > { %v1189_v6 = vadd.f32 %v8760_v32, %v1167_v16  ;;  %v1147_v23 = vmul.f32 %v7143_v5, %v1099_v62  ;;  %v1123_v30 = vadd.f32 1e-12, %v1091_v53  ;;  %v1104_v8 = vsub.f32 %v8609_v10, %v8725_v40 }
 0x1d4   : > { %1206 = vst [vmem:[#allocation2 + $0x68] sm:$0xff] %v1190_v22  ;;  %v1170_v7 = vmul.f32 %v8754_v41, %v1148_v17  ;;  %7156 = vrsqrt.f32 %v1124_v27  ;;  %v1103_v9 = vsub.f32 %v8612_v11, %v8732_v26  ;;  %v1106_v40 = vsub.f32 %v8617_v12, %v8735_v35 }
 0x1d5   : > { %v7145_v31 = vpop.eup %7144  ;;  %1205 = vst [vmem:[#allocation2 + $0x50] sm:$0xff] %v1189_v6  ;;  %v1169_v56 = vmul.f32 %v8754_v41, %v1147_v23  ;;  %7158 = vrsqrt.f32 %v1123_v30  ;;  %v1105_v26 = vsub.f32 %v8620_v13, %v8738_v36  ;;  %v1108_v29 = vsub.f32 %v8625_v14, %v8745_v55 }
 0x1d6   : > { %v7147_v45 = vpop.eup %7146  ;;  %v1192_v59 = vadd.f32 %v8760_v32, %v1170_v7  ;;  %v1150_v1 = vmul.f32 %v7145_v31, %v1102_v54  ;;  %v1107_v12 = vsub.f32 %v8628_v15, %v8748_v44 }
 0x1d7   : > { %v1191_v48 = vadd.f32 %v8760_v32, %v1169_v56  ;;  %v1149_v28 = vmul.f32 %v7147_v45, %v1101_v39 }
 0x1d8   : > { %1208 = vst [vmem:[#allocation2 + $0x48] sm:$0xff] %v1192_v59  ;;  %v1172_v57 = vmul.f32 %v8754_v41, %v1150_v1 }
 0x1d9   : > { %v7149_v3 = vpop.eup %7148  ;;  %1207 = vst [vmem:[#allocation2 + $0x8] sm:$0xff] %v1191_v48  ;;  %v1171_v58 = vmul.f32 %v8754_v41, %v1149_v28 }
 0x1da   : > { %v7151_v49 = vpop.eup %7150  ;;  %v1194_v60 = vadd.f32 %v8760_v32, %v1172_v57  ;;  %v1152_v61 = vmul.f32 %v7149_v3, %v1104_v8 }
 0x1db   : > { %v1193_v46 = vadd.f32 %v8760_v32, %v1171_v58  ;;  %v1151_v47 = vmul.f32 %v7151_v49, %v1103_v9 }
 0x1dc   : > { %1210 = vst [vmem:[#allocation2 + $0x20] sm:$0xff] %v1194_v60  ;;  %v1174_v10 = vmul.f32 %v8754_v41, %v1152_v61 }
 0x1dd   : > { %1209 = vst [vmem:[#allocation2 + $0x40] sm:$0xff] %v1193_v46  ;;  %v1173_v19 = vmul.f32 %v8754_v41, %v1151_v47 }
 0x1de   : > { %v7153_v11 = vpop.eup %7152  ;;  %v1196_v20 = vadd.f32 %v8760_v32, %v1174_v10 }
 0x1df   : > { %v7155_v24 = vpop.eup %7154  ;;  %v1195_v2 = vadd.f32 %v8760_v32, %v1173_v19  ;;  %v1154_v51 = vmul.f32 %v7153_v11, %v1106_v40 }
 0x1e0   : > { %1212 = vst [vmem:[#allocation2 + $0x38] sm:$0xff] %v1196_v20  ;;  %v1153_v25 = vmul.f32 %v7155_v24, %v1105_v26 }
 0x1e1   : > { %v7157_v33 = vpop.eup %7156  ;;  %1211 = vst [vmem:[#allocation2 + $0x10] sm:$0xff] %v1195_v2  ;;  %v1176_v35 = vmul.f32 %v8754_v41, %v1154_v51 }
 0x1e2   : > { %v7159_v0 = vpop.eup %7158  ;;  %v1175_v13 = vmul.f32 %v8754_v41, %v1153_v25  ;;  %v1156_v36 = vmul.f32 %v7157_v33, %v1108_v29 }
 0x1e3   : > { %v1198_v50 = vadd.f32 %v8760_v32, %v1176_v35  ;;  %v1155_v21 = vmul.f32 %v7159_v0, %v1107_v12 }
 0x1e4   : > { %v1197_v63 = vadd.f32 %v8760_v32, %v1175_v13  ;;  %v1178_v14 = vmul.f32 %v8754_v41, %v1156_v36 }
 0x1e5   : > { %1214 = vst [vmem:[#allocation2 + $0x70] sm:$0xff] %v1198_v50  ;;  %v1177_v55 = vmul.f32 %v8754_v41, %v1155_v21 }
 0x1e6   : > { %1213 = vst [vmem:[#allocation2 + $0x60] sm:$0xff] %v1197_v63  ;;  %v1200_v15 = vadd.f32 %v8760_v32, %v1178_v14 }
 0x1e7   : > { %v1199_v44 = vadd.f32 %v8760_v32, %v1177_v55 }
 0x1e8   : > { %1216 = vst [vmem:[#allocation2 + $0x28] sm:$0xff] %v1200_v15 }
 0x1e9   : > { %1215 = vst [vmem:[#allocation2 + $0x78] sm:$0xff] %v1199_v44 }
 0x1ea PF: > { %v7160_v18 = vld [vmem:[%s8503_s14 + $0xac] ss:$12 sps:$4 sm:$0xff]   ;;  %v7162_v34 = vld [vmem:[%s8503_s14 + $0xa8] ss:$12 sps:$4 sm:$0xff]   ;;  %v11594_v42 = vmov 0   ;;  %v1218_v4 = vld [vmem:[#allocation2] sm:$0xff]  ;;  %v1275_v29 = vlaneseq }
 0x1eb   : > { %1450 = vmatprep.mubr.bf16.mxu0 %v11594_v42  ;;  %1418 = vmatprep.subr.bf16.mxu0 %v7160_v18  ;;  %v7163_v41 = vld [vmem:[%s8503_s14 + $0x94] ss:$12 sps:$4 sm:$0xff]   ;;  %v7165_v32 = vld [vmem:[%s8503_s14 + $0x90] ss:$12 sps:$4 sm:$0xff]   ;;  %v7168_v37 = vld [vmem:[%s8503_s14 + $0x78] ss:$12 sps:$4 sm:$0xff]  }
 0x1ec   : > { %1419 = vmatpush1.bf16.msra.mxu0 %v7162_v34  ;;  %v7166_v38 = vld [vmem:[%s8503_s14 + $0x7c] ss:$12 sps:$4 sm:$0xff]   ;;  %v7169_v52 = vld [vmem:[%s8503_s14 + $0x64] ss:$12 sps:$4 sm:$0xff]   ;;  %v7171_v53 = vld [vmem:[%s8503_s14 + $0x60] ss:$12 sps:$4 sm:$0xff]  }
 0x1ed   : > { %1420 = vmatprep.subr.bf16.mxu0 %v7163_v41  ;;  %v1217_v43 = vld [vmem:[#allocation2 + $0x30] sm:$0xff]  ;;  %v7174_v5 = vld [vmem:[%s8503_s14 + $0x48] ss:$12 sps:$4 sm:$0xff]   ;;  %v7185_v27 = vld [vmem:[%s8503_s14 + $0x98] ss:$12 sps:$4 sm:$0xff]   ;;  %v8861_v25 = vshrl.u32 %v1275_v29, 7 }
 0x1ee   : > { %v7172_v62 = vld [vmem:[%s8503_s14 + $0x4c] ss:$12 sps:$4 sm:$0xff]   ;;  %v1233_v16 = vpack.c.bf16 %v1218_v4, %v1217_v43  ;;  %v7175_v22 = vld [vmem:[%s8503_s14 + $0x34] ss:$12 sps:$4 sm:$0xff]   ;;  %v7184_v17 = vld [vmem:[%s8503_s14 + $0xb0] ss:$12 sps:$4 sm:$0xff]  }
 0x1ef   : > { %v7177_v6 = vld [vmem:[%s8503_s14 + $0x30] ss:$12 sps:$4 sm:$0xff]   ;;  %6566 = vmatprep.subr.bf16.mxu1 %v7184_v17  ;;  %v7186_v30 = vld [vmem:[%s8503_s14 + $0x80] ss:$12 sps:$4 sm:$0xff]   ;;  %v7180_v54 = vld [vmem:[%s8503_s14 + $0x18] ss:$12 sps:$4 sm:$0xff]  }
 0x1f0   : > { %1421 = vmatpush1.bf16.msra.mxu0 %v7165_v32  ;;  %6582 = vmatprep.mubr.bf16.mxu1 %v1233_v16  ;;  %v7178_v23 = vld [vmem:[%s8503_s14 + $0x1c] ss:$12 sps:$4 sm:$0xff]   ;;  %v7181_v7 = vld [vmem:[%s8503_s14 + $0x4] ss:$12 sps:$4 sm:$0xff]   ;;  %v7183_v39 = vld [vmem:[%s8503_s14] ss:$12 sps:$4 sm:$0xff]  }
 0x1f1   : > { %1422 = vmatprep.subr.bf16.mxu0 %v7166_v38  ;;  %6567 = vmatpush3.bf16.msra.mxu1 %v7184_v17  ;;  %v7187_v31 = vld [vmem:[%s8503_s14 + $0x68] ss:$12 sps:$4 sm:$0xff]   ;;  %v7188_v56 = vld [vmem:[%s8503_s14 + $0x50] ss:$12 sps:$4 sm:$0xff]   ;;  %v7189_v45 = vld [vmem:[%s8503_s14 + $0x38] ss:$12 sps:$4 sm:$0xff]  }
 0x1f2   : > { %6568 = vmatprep.subr.bf16.mxu1 %v7185_v27  ;;  %v1219_v59 = vld [vmem:[#allocation2 + $0x58] sm:$0xff]  ;;  %v7190_v48 = vld [vmem:[%s8503_s14 + $0x20] ss:$12 sps:$4 sm:$0xff]   ;;  %v1222_v3 = vld [vmem:[#allocation2 + $0x68] sm:$0xff]  ;;  %11711 = vst [vmem:[#allocation46_spill] sm:$0xff] %v8861_v25  ;;  %v11592_v33 = vsub.s32 1, %v8861_v25 }
 0x1f3   : > { %v1220_v1 = vld [vmem:[#allocation2 + $0x18] sm:$0xff]  ;;  %v1221_v57 = vld [vmem:[#allocation2 + $0x50] sm:$0xff]  ;;  %v1223_v58 = vld [vmem:[#allocation2 + $0x8] sm:$0xff]  ;;  %v11593_v12 = vsub.s32 0, %v8861_v25  ;;  %vm1652_vm0 = vcmask 261120   ;;  %s8118_s26 = smov 96  }
 0x1f4   : > { %1423 = vmatpush1.bf16.msra.mxu0 %v7168_v37  ;;  %v1234_v28 = vpack.c.bf16 %v1220_v1, %v1219_v59  ;;  %v7191_v8 = vld [vmem:[%s8503_s14 + $0x8] ss:$12 sps:$4 sm:$0xff]   ;;  %v1235_v9 = vpack.c.bf16 %v1222_v3, %v1221_v57  ;;  %v1225_v61 = vld [vmem:[#allocation2 + $0x40] sm:$0xff]  ;;  %v1227_v10 = vld [vmem:[#allocation2 + $0x10] sm:$0xff]  ;;  %s8119_s29 = smov 64   ;;  %s8120_s1 = smov 32  }
 0x1f5   : > { %1424 = vmatprep.subr.bf16.mxu0 %v7169_v52  ;;  %6569 = vmatpush3.bf16.msra.mxu1 %v7185_v27  ;;  %v1224_v49 = vld [vmem:[#allocation2 + $0x48] sm:$0xff]  ;;  %v1226_v46 = vld [vmem:[#allocation2 + $0x20] sm:$0xff]  ;;  %v1228_v40 = vld [vmem:[#allocation2 + $0x38] sm:$0xff]  ;;  %vm2601_vm1 = vcmask 523520   ;;  %vm3132_vm2 = vcmask 785920   ;;  %vm3663_vm3 = vcmask 1048320  }
 0x1f6   : > { %6570 = vmatprep.subr.bf16.mxu1 %v7186_v30  ;;  %v1236_v60 = vpack.c.bf16 %v1224_v49, %v1223_v58  ;;  %v1237_v47 = vpack.c.bf16 %v1226_v46, %v1225_v61  ;;  %v1229_v19 = vld [vmem:[#allocation2 + $0x60] sm:$0xff]  ;;  %v1230_v11 = vld [vmem:[#allocation2 + $0x70] sm:$0xff]  ;;  %v1238_v26 = vpack.c.bf16 %v1228_v40, %v1227_v10  ;;  %v1231_v24 = vld [vmem:[#allocation2 + $0x78] sm:$0xff]  ;;  %v1285_v61 = vsub.s32 2, %v8861_v25  ;;  %s11791_s0 = scalar_lea.vmem [#allocation13], %s8500_s16  ;;  %s11792_s14 = sld [smem:[#allocation91_spill]] }
 0x1f7   : > { %v1239_v20 = vpack.c.bf16 %v1230_v11, %v1229_v19  ;;  %v1232_v2 = vld [vmem:[#allocation2 + $0x28] sm:$0xff]  ;;  %v1273_v35 = vld [vmem:[%s8547_s12] sm:$0x7]  ;;  %s11794_s10 = sld [smem:[#allocation92_spill]] }
 0x1f8   : > { %1425 = vmatpush1.bf16.msra.mxu0 %v7171_v53  ;;  %v1240_v51 = vpack.c.bf16 %v1232_v2, %v1231_v24  ;;  %v8868_v0 = vrot.slane %v1273_v35, %v11592_v33  ;;  %v8872_v36 = vrot.slane %v1273_v35, %v11593_v12 }
 0x1f9   : > { %1426 = vmatprep.subr.bf16.mxu0 %v7172_v62  ;;  %6571 = vmatpush3.bf16.msra.mxu1 %v7186_v30 }
 0x1fa   : > { %6572 = vmatprep.subr.bf16.mxu1 %v7187_v31 }
 0x1fc   : > { %1427 = vmatpush1.bf16.msra.mxu0 %v7174_v5 }
 0x1fd   : > { %1428 = vmatprep.subr.bf16.mxu0 %v7175_v22  ;;  %6573 = vmatpush3.bf16.msra.mxu1 %v7187_v31  ;;  %s11795_s6 = scalar_lea.vmem %s11794_s10, %s8532_s4 }
 0x1fe   : > { %6574 = vmatprep.subr.bf16.mxu1 %v7188_v56 }
 0x200   : > { %1429 = vmatpush1.bf16.msra.mxu0 %v7177_v6 }
 0x201   : > { %1430 = vmatprep.subr.bf16.mxu0 %v7178_v23  ;;  %6575 = vmatpush3.bf16.msra.mxu1 %v7188_v56 }
 0x202   : > { %6576 = vmatprep.subr.bf16.mxu1 %v7189_v45 }
 0x204   : > { %1431 = vmatpush1.bf16.msra.mxu0 %v7180_v54 }
 0x205   : > { %1432 = vmatprep.subr.bf16.mxu0 %v7181_v7  ;;  %6577 = vmatpush3.bf16.msra.mxu1 %v7189_v45 }
 0x206   : > { %6578 = vmatprep.subr.bf16.mxu1 %v7190_v48 }
 0x208   : > { %1433 = vmatpush1.bf16.msra.mxu0 %v7183_v39 }
 0x209   : > { %6579 = vmatpush3.bf16.msra.mxu1 %v7190_v48 }
 0x20a   : > { %6580 = vmatprep.subr.bf16.mxu1 %v7191_v8 }
 0x20b   : > { %1451 = vmatmul.mubr.bf16.vlgmr.msra.gmra.mxu0 %v1233_v16 }
 0x20c   : > { %1460 = vmatprep.mubr.bf16.mxu0 %v11594_v42 }
 0x20d   : > { %6581 = vmatpush3.bf16.msra.mxu1 %v7191_v8 }
 0x210   : > { %6583 = vmatmul.mubr.bf16.vlgmr.msra.gmra.mxu1 %v1234_v28 }
 0x211   : > { %6586 = vmatprep.mubr.bf16.mxu1 %v1235_v9 }
 0x213   : > { %1461 = vmatmul.mubr.bf16.gmra.mxu0 %v1234_v28 }
 0x214   : > { %1470 = vmatprep.mubr.bf16.mxu0 %v11594_v42 }
 0x218   : > { %6587 = vmatmul.mubr.bf16.gmra.mxu1 %v1236_v60 }
 0x219   : > { %6590 = vmatprep.mubr.bf16.mxu1 %v1237_v47 }
 0x21b   : > { %1471 = vmatmul.mubr.bf16.gmra.mxu0 %v1235_v9 }
 0x21c   : > { %1480 = vmatprep.mubr.bf16.mxu0 %v11594_v42 }
 0x220   : > { %6591 = vmatmul.mubr.bf16.gmra.mxu1 %v1238_v26 }
 0x221   : > { %6594 = vmatprep.mubr.bf16.mxu1 %v1239_v20 }
 0x223   : > { %1481 = vmatmul.mubr.bf16.gmra.mxu0 %v1236_v60 }
 0x224   : > { %1490 = vmatprep.mubr.bf16.mxu0 %v11594_v42 }
 0x228   : > { %6595 = vmatmul.mubr.bf16.gmra.mxu1 %v1240_v51 }
 0x22b   : > { %1491 = vmatmul.mubr.bf16.gmra.mxu0 %v1237_v47 }
 0x22c   : > { %1500 = vmatprep.mubr.bf16.mxu0 %v11594_v42 }
 0x233   : > { %1501 = vmatmul.mubr.bf16.gmra.mxu0 %v1238_v26  ;;  %v8929_v26 = vrot.slane %v1273_v35, %v1285_v61 }
 0x234   : > { %1510 = vmatprep.mubr.bf16.mxu0 %v11594_v42 }
 0x23b   : > { %1511 = vmatmul.mubr.bf16.gmra.mxu0 %v1239_v20 }
 0x23c   : > { %1520 = vmatprep.mubr.bf16.mxu0 %v11594_v42 }
 0x243   : > { %1521 = vmatmul.mubr.bf16.gmra.mxu0 %v1240_v51 }
 0x2cb   : > { %v1452_v13 = vpop.f32.mrf.mxu0 }
 0x2cc   : > { %v1453_v14 = vadd.f32 %v1452_v13, %v8872_v36 }
 0x2cd   : > { %v1454_v50 = vpop.f32.mrf.mxu0 }
 0x2ce   : > { %v1455_v21 = vadd.f32 %v1454_v50, %v8868_v0 }
 0x2cf   : > { %v1456_v63 = vpop.f32.mrf.mxu0 }
 0x2d0   : > { %v1457_v55 = vadd.f32 %v1456_v63, %v8872_v36  ;;  %v8892_v62 = vpop.f32.mrf.mxu1 }
 0x2d1   : > { %v1458_v15 = vpop.f32.mrf.mxu0 }
 0x2d2   : > { %v8877_v44 = vpack.c.bf16 %v1457_v55, %v1453_v14  ;;  %v1459_v18 = vadd.f32 %v1458_v15, %v8868_v0  ;;  %v8897_v22 = vpop.f32.mrf.mxu1 }
 0x2d3   : > { %v1462_v34 = vpop.f32.mrf.mxu0 }
 0x2d4   : > { %v8880_v41 = vpack.c.bf16 %v1459_v18, %v1455_v21  ;;  %v1463_v32 = vadd.f32 %v1462_v34, %v8872_v36  ;;  %6614 = vmatprep.mubr.msk.bf16.mxu0 %vm1652_vm0, %v8877_v44  ;;  %v8899_v27 = vpop.f32.mrf.mxu1 }
 0x2d5   : > { %v8885_v38 = vpop.f32.mrf.mxu0 }
 0x2d6   : > { %v8904_v30 = vpop.f32.mrf.mxu1 }
 0x2d7   : > { %v1466_v37 = vpop.f32.mrf.mxu0 }
 0x2d8   : > { %v1467_v52 = vadd.f32 %v1466_v37, %v8872_v36  ;;  %v6588_v31 = vpop.f32.mrf.mxu1 }
 0x2d9   : > { %v8888_v43 = vpop.f32.mrf.mxu0 }
 0x2da   : > { %v8890_v53 = vpack.c.bf16 %v1467_v52, %v1463_v32  ;;  %v8911_v45 = vpop.f32.mrf.mxu1 }
 0x2db   : > { %v1472_v4 = vpop.f32.mrf.mxu0 }
 0x2dc   : > { %v1473_v16 = vadd.f32 %v1472_v4, %v8872_v36  ;;  %v6589_v1 = vpop.f32.mrf.mxu1 }
 0x2dd   : > { %v8895_v5 = vpop.f32.mrf.mxu0 }
 0x2de   : > { %v8916_v8 = vpop.f32.mrf.mxu1 }
 0x2df   : > { %v1476_v17 = vpop.f32.mrf.mxu0 }
 0x2e0   : > { %v1477_v6 = vadd.f32 %v1476_v17, %v8872_v36  ;;  %v6592_v9 = vpop.f32.mrf.mxu1 }
 0x2e1   : > { %v8902_v23 = vpop.f32.mrf.mxu0  ;;  %v1606_v18 = vadd.f32 %v6592_v9, %v8929_v26 }
 0x2e2   : > { %v8906_v54 = vpack.c.bf16 %v1477_v6, %v1473_v16  ;;  %v1597_v60 = vpop.f32.mrf.mxu1 }
 0x2e3   : > { %v1482_v7 = vpop.f32.mrf.mxu0 }
 0x2e4   : > { %v1483_v39 = vadd.f32 %v1482_v7, %v8872_v36  ;;  %v6593_v47 = vpop.f32.mrf.mxu1 }
 0x2e5   : > { %v8909_v56 = vpop.f32.mrf.mxu0  ;;  %v1609_v34 = vadd.f32 %v6593_v47, %v8929_v26  ;;  %v1590_v47 = vadd.f32 %v6588_v31, %v8929_v26 }
 0x2e6   : > { %v1600_v19 = vpop.f32.mrf.mxu1 }
 0x2e7   : > { %v1486_v59 = vpop.f32.mrf.mxu0  ;;  %v1601_v9 = vadd.f32 %v1600_v19, %v8929_v26 }
 0x2e8   : > { %v1487_v48 = vadd.f32 %v1486_v59, %v8872_v36  ;;  %v6596_v24 = vpop.f32.mrf.mxu1 }
 0x2e9   : > { %v8914_v28 = vpop.f32.mrf.mxu0  ;;  %v1622_v13 = vadd.f32 %v6596_v24, %v8929_v26 }
 0x2ea   : > { %v8918_v57 = vpack.c.bf16 %v1487_v48, %v1483_v39  ;;  %v1613_v29 = vpop.f32.mrf.mxu1  ;;  %v1598_v48 = vadd.f32 %v1597_v60, %v8929_v26 }
 0x2eb   : > { %v1492_v3 = vpop.f32.mrf.mxu0  ;;  %v1614_v14 = vadd.f32 %v1613_v29, %v8929_v26 }
 0x2ec   : > { %v1493_v58 = vadd.f32 %v1492_v3, %v8872_v36  ;;  %v6597_v21 = vpop.f32.mrf.mxu1  ;;  %v8955_v3 = vpack.c.bf16 %v1609_v34, %v1606_v18 }
 0x2ed   : > { %v8921_v49 = vpop.f32.mrf.mxu0  ;;  %v1625_v55 = vadd.f32 %v6597_v21, %v8929_v26  ;;  %v1585_v21 = vadd.f32 %v8916_v8, %v8929_v26 }
 0x2ee   : > { %v1616_v32 = vpop.f32.mrf.mxu1 }
 0x2ef   : > { %v1496_v46 = vpop.f32.mrf.mxu0  ;;  %v8942_v4 = vpack.c.bf16 %v1625_v55, %v1622_v13  ;;  %v1617_v16 = vadd.f32 %v1616_v32, %v8929_v26  ;;  %v1574_v55 = vadd.f32 %v8892_v62, %v8929_v26  ;;  %v1569_v32 = vadd.f32 %v8904_v30, %v8929_v26 }
 0x2f0   : > { %v1497_v10 = vadd.f32 %v1496_v46, %v8872_v36 }
 0x2f1   : > { %v8925_v40 = vpop.f32.mrf.mxu0  ;;  %v8948_v39 = vpack.c.bf16 %v1617_v16, %v1614_v14  ;;  %6630 = vmatprep.subr.bf16.mxu1 %v8942_v4 }
 0x2f2   : > { %v8927_v11 = vpack.c.bf16 %v1497_v10, %v1493_v58  ;;  %6631 = vmatpush3.bf16.msra.mxu1 %v8942_v4  ;;  %v1593_v10 = vadd.f32 %v6589_v1, %v8929_v26  ;;  %v1499_v30 = vadd.f32 %v8925_v40, %v8868_v0  ;;  %v1479_v40 = vadd.f32 %v8902_v23, %v8868_v0 }
 0x2f3   : > { %v1502_v20 = vpop.f32.mrf.mxu0  ;;  %6632 = vmatprep.subr.bf16.mxu1 %v8948_v39 }
 0x2f4   : > { %v1503_v2 = vadd.f32 %v1502_v20, %v8872_v36  ;;  %v8976_v1 = vpack.c.bf16 %v1593_v10, %v1590_v47 }
 0x2f5   : > { %v1504_v51 = vpop.f32.mrf.mxu0 }
 0x2f6   : > { %v1505_v15 = vadd.f32 %v1504_v51, %v8868_v0  ;;  %6633 = vmatpush3.bf16.msra.mxu1 %v8948_v39 }
 0x2f7   : > { %v1506_v50 = vpop.f32.mrf.mxu0  ;;  %6634 = vmatprep.subr.bf16.mxu1 %v8955_v3 }
 0x2f8   : > { %v1507_v63 = vadd.f32 %v1506_v50, %v8872_v36  ;;  %v1582_v50 = vadd.f32 %v8911_v45, %v8929_v26  ;;  %v1577_v45 = vadd.f32 %v8899_v27, %v8929_v26  ;;  %v1566_v27 = vadd.f32 %v8897_v22, %v8929_v26 }
 0x2f9   : > { %v1508_v35 = vpop.f32.mrf.mxu0  ;;  %v1495_v26 = vadd.f32 %v8921_v49, %v8868_v0 }
 0x2fa   : > { %v8939_v37 = vpack.c.bf16 %v1507_v63, %v1503_v2  ;;  %v1509_v52 = vadd.f32 %v1508_v35, %v8868_v0  ;;  %v8967_v2 = vpack.c.bf16 %v1601_v9, %v1598_v48  ;;  %6635 = vmatpush3.bf16.msra.mxu1 %v8955_v3  ;;  %v8994_v8 = vpack.c.bf16 %v1585_v21, %v1582_v50 }
 0x2fb   : > { %v1512_v17 = vpop.f32.mrf.mxu0  ;;  %v9007_v34 = vpack.c.bf16 %v1577_v45, %v1574_v55  ;;  %v9029_v16 = vpack.c.bf16 %v1499_v30, %v1495_v26  ;;  %v1475_v9 = vadd.f32 %v8895_v5, %v8868_v0 }
 0x2fc   : > { %v8945_v6 = vpack.c.bf16 %v1509_v52, %v1505_v15  ;;  %v1513_v7 = vadd.f32 %v1512_v17, %v8872_v36  ;;  %6636 = vmatprep.subr.bf16.mxu1 %v8967_v2  ;;  %v9015_v52 = vpack.c.bf16 %v1569_v32, %v1566_v27 }
 0x2fd   : > { %v1514_v59 = vpop.f32.mrf.mxu0  ;;  %v1690_v49 = vsel %vm1652_vm0, %v9029_v16, 0 }
 0x2fe   : > { %2105 = vrot.lane.b32.xlu0 %v8945_v6, %s8118_s26  ;;  %v1515_v20 = vadd.f32 %v1514_v59, %v8868_v0  ;;  %6637 = vmatpush3.bf16.msra.mxu1 %v8967_v2  ;;  %v1693_v17 = vsel %vm1652_vm0, %v8945_v6, 0  ;;  %v1485_v59 = vadd.f32 %v8909_v56, %v8868_v0 }
 0x2ff   : > { %v1516_v58 = vpop.f32.mrf.mxu0  ;;  %6638 = vmatprep.subr.bf16.mxu1 %v8976_v1 }
 0x300   : > { %v1517_v61 = vadd.f32 %v1516_v58, %v8872_v36  ;;  %v9049_v58 = vpack.c.bf16 %v1479_v40, %v1475_v9 }
 0x301   : > { %v1518_v46 = vpop.f32.mrf.mxu0 }
 0x302   : > { %v8964_v24 = vpack.c.bf16 %v1517_v61, %v1513_v7  ;;  %v1519_v60 = vadd.f32 %v1518_v46, %v8868_v0  ;;  %6639 = vmatpush3.bf16.msra.mxu1 %v8976_v1  ;;  %v1489_v7 = vadd.f32 %v8914_v28, %v8868_v0  ;;  %v1469_v28 = vadd.f32 %v8888_v43, %v8868_v0 }
 0x303   : > { %v1522_v19 = vpop.f32.mrf.mxu0  ;;  %6640 = vmatprep.subr.bf16.mxu1 %v8994_v8  ;;  %v1465_v61 = vadd.f32 %v8885_v38, %v8868_v0  ;;  %v1684_v5 = vsel %vm1652_vm0, %v9049_v58, 0  ;;  %v1678_v43 = vsel %vm1652_vm0, %v8880_v41, 0 }
 0x304   : > { %v8970_v51 = vpack.c.bf16 %v1519_v60, %v1515_v20  ;;  %v1523_v29 = vadd.f32 %v1522_v19, %v8872_v36  ;;  %v9039_v48 = vpack.c.bf16 %v1489_v7, %v1485_v59 }
 0x305   : > { %v1524_v31 = vpop.f32.mrf.mxu0  ;;  %v9059_v46 = vpack.c.bf16 %v1469_v28, %v1465_v61 }
 0x306   : > { %2107 = vrot.lane.b32.xlu1 %v8970_v51, %s8118_s26  ;;  %v1525_v15 = vadd.f32 %v1524_v31, %v8868_v0  ;;  %6641 = vmatpush3.bf16.msra.mxu1 %v8994_v8  ;;  %v1696_v22 = vsel %vm1652_vm0, %v8970_v51, 0  ;;  %v1687_v56 = vsel %vm1652_vm0, %v9039_v48, 0 }
 0x307   : > { %v1526_v13 = vpop.f32.mrf.mxu0  ;;  %6642 = vmatprep.subr.bf16.mxu1 %v9007_v34  ;;  %v1681_v23 = vsel %vm1652_vm0, %v9059_v46, 0 }
 0x308   : > { %v1527_v63 = vadd.f32 %v1526_v13, %v8872_v36 }
 0x309   : > { %v1528_v14 = vpop.f32.mrf.mxu0 }
 0x30a   : > { %v8988_v35 = vpack.c.bf16 %v1527_v63, %v1523_v29  ;;  %v1529_v18 = vadd.f32 %v1528_v14, %v8868_v0  ;;  %6643 = vmatpush3.bf16.msra.mxu1 %v9007_v34 }
 0x30b   : > { %6644 = vmatprep.subr.bf16.mxu1 %v9015_v52 }
 0x30c   : > { %v8996_v36 = vpack.c.bf16 %v1529_v18, %v1525_v15 }
 0x30e   : > { %6922 = vmatprep.subr.msk.bf16.mxu0 %vm1652_vm0, %v8996_v36  ;;  %2109 = vrot.lane.b32.xlu0 %v8996_v36, %s8118_s26  ;;  %v1699_v62 = vsel %vm1652_vm0, %v8996_v36, 0 }
 0x30f   : > { %6599 = vmatpush3.bf16.xpose.msra.mxu0 %v1699_v62  ;;  %6645 = vmatpush3.bf16.msra.mxu1 %v9015_v52 }
 0x310   : > { %6923 = vmatprep.subr.msk.bf16.mxu0 %vm1652_vm0, %v8970_v51 }
 0x317   : > { %6601 = vmatpush3.bf16.xpose.msra.mxu0 %v1696_v22 }
 0x318   : > { %6924 = vmatprep.subr.msk.bf16.mxu0 %vm1652_vm0, %v8945_v6 }
 0x31f   : > { %6603 = vmatpush3.bf16.xpose.msra.mxu0 %v1693_v17 }
 0x320   : > { %6925 = vmatprep.subr.msk.bf16.mxu0 %vm1652_vm0, %v9029_v16 }
 0x327   : > { %6605 = vmatpush3.bf16.xpose.msra.mxu0 %v1690_v49 }
 0x328   : > { %6926 = vmatprep.subr.msk.bf16.mxu0 %vm1652_vm0, %v9039_v48 }
 0x32f   : > { %6607 = vmatpush3.bf16.xpose.msra.mxu0 %v1687_v56 }
 0x330   : > { %6927 = vmatprep.subr.msk.bf16.mxu0 %vm1652_vm0, %v9049_v58 }
 0x337   : > { %6609 = vmatpush3.bf16.xpose.msra.mxu0 %v1684_v5 }
 0x338   : > { %6928 = vmatprep.subr.msk.bf16.mxu0 %vm1652_vm0, %v9059_v46 }
 0x33f   : > { %6611 = vmatpush3.bf16.xpose.msra.mxu0 %v1681_v23 }
 0x340   : > { %6929 = vmatprep.subr.msk.bf16.mxu0 %vm1652_vm0, %v8880_v41 }
 0x347   : > { %6613 = vmatpush3.bf16.xpose.msra.mxu0 %v1678_v43 }
 0x34e   : > { %6615 = vmatmul.mubr.msk.bf16.vlgmr.msra.gmra.mxu0 %vm1652_vm0, %v8890_v53 }
 0x34f   : > { %6618 = vmatprep.mubr.msk.bf16.mxu0 %vm1652_vm0, %v8906_v54 }
 0x356   : > { %6619 = vmatmul.mubr.msk.bf16.gmra.mxu0 %vm1652_vm0, %v8918_v57 }
 0x357   : > { %6622 = vmatprep.mubr.msk.bf16.mxu0 %vm1652_vm0, %v8927_v11 }
 0x35e   : > { %6623 = vmatmul.mubr.msk.bf16.gmra.mxu0 %vm1652_vm0, %v8939_v37 }
 0x35f   : > { %6626 = vmatprep.mubr.msk.bf16.mxu0 %vm1652_vm0, %v8964_v24 }
 0x366   : > { %6627 = vmatmul.mubr.msk.bf16.gmra.mxu0 %vm1652_vm0, %v8988_v35 }
 0x370   : > { %v9085_v0 = vpop.permute.xlu0 %2105 }
 0x378   : > { %v2108_v62 = vpop.permute.xlu1 %2107 }
 0x380   : > { %v9087_v38 = vpop.permute.xlu0 %2109 }
 0x381   : > { %6930 = vmatprep.subr.msk.bf16.mxu1 %vm1652_vm0, %v9087_v38 }
 0x40e   : > { %v9091_v47 = vpop.f32.mrf.mxu0 }
 0x40f   : > { %1802 = vmax.xlane.f32.xlu1 %v9091_v47 }
 0x410   : > { %v1735_v10 = vpop.f32.mrf.mxu0 }
 0x411   : > { %1798 = vmax.xlane.f32.xlu0 %v1735_v10 }
 0x412   : > { %v6617_v20 = vpop.f32.mrf.mxu0 }
 0x413   : > { %1804 = vmax.xlane.f32.xlu1 %v6617_v20 }
 0x414   : > { %v9094_v60 = vpop.f32.mrf.mxu0 }
 0x415   : > { %1800 = vmax.xlane.f32.xlu0 %v9094_v60 }
 0x416   : > { %v9097_v19 = vpop.f32.mrf.mxu0 }
 0x417   : > { %1810 = vmax.xlane.f32.xlu1 %v9097_v19 }
 0x418   : > { %v9100_v29 = vpop.f32.mrf.mxu0 }
 0x41a   : > { %v9102_v31 = vpop.f32.mrf.mxu0 }
 0x41b   : > { %1806 = vmax.xlane.f32.xlu1 %v9100_v29 }
 0x41c   : > { %v9105_v13 = vpop.f32.mrf.mxu0 }
 0x41e   : > { %v9107_v50 = vpop.f32.mrf.mxu0 }
 0x41f   : > { %1812 = vmax.xlane.f32.xlu1 %v9102_v31 }
 0x420   : > { %v9110_v21 = vpop.f32.mrf.mxu0 }
 0x422   : > { %v9112_v63 = vpop.f32.mrf.mxu0 }
 0x423   : > { %1808 = vmax.xlane.f32.xlu1 %v9105_v13 }
 0x424   : > { %v9115_v14 = vpop.f32.mrf.mxu0 }
 0x426   : > { %v9118_v55 = vpop.f32.mrf.mxu0 }
 0x427   : > { %1816 = vmax.xlane.f32.xlu1 %v9115_v14 }
 0x428   : > { %v9123_v15 = vpop.f32.mrf.mxu0 }
 0x42a   : > { %v9126_v18 = vpop.f32.mrf.mxu0 }
 0x42b   : > { %2103 = vrot.lane.b32.xlu0 %v9029_v16, %s8118_s26  ;;  %1826 = vmax.xlane.f32.xlu1 %v9118_v55 }
 0x42c   : > { %v9129_v45 = vpop.f32.mrf.mxu0 }
 0x42f   : > { %1822 = vmax.xlane.f32.xlu1 %v9123_v15 }
 0x433   : > { %1828 = vmax.xlane.f32.xlu1 %v9126_v18 }
 0x437   : > { %1824 = vmax.xlane.f32.xlu1 %v9129_v45 }
 0x448   : > { %2101 = vrot.lane.b32.xlu1 %v9039_v48, %s8118_s26 }
 0x44a   : > { %1818 = vmax.xlane.f32.xlu0 %v9107_v50 }
 0x44c   : > { %2073 = vrot.lane.b32.xlu1 %v8890_v53, %s8118_s26 }
 0x44e   : > { %1814 = vmax.xlane.f32.xlu0 %v9110_v21 }
 0x450   : > { %2077 = vrot.lane.b32.xlu1 %v8918_v57, %s8118_s26 }
 0x452   : > { %1820 = vmax.xlane.f32.xlu0 %v9112_v63 }
 0x454   : > { %2081 = vrot.lane.b32.xlu1 %v8939_v37, %s8118_s26 }
 0x458   : > { %2085 = vrot.lane.b32.xlu1 %v8988_v35, %s8118_s26 }
 0x45c   : > { %2396 = vrot.lane.b32.xlu1 %v8948_v39, %s8118_s26 }
 0x460   : > { %2388 = vrot.lane.b32.xlu1 %v8994_v8, %s8118_s26 }
 0x464   : > { %2384 = vrot.lane.b32.xlu1 %v9015_v52, %s8118_s26 }
 0x468   : > { %2099 = vrot.lane.b32.xlu0 %v9049_v58, %s8118_s26  ;;  %2646 = vrot.lane.b32.xlu1 %v8970_v51, %s8119_s29 }
 0x46c   : > { %2097 = vrot.lane.b32.xlu0 %v9059_v46, %s8118_s26 }
 0x470   : > { %2095 = vrot.lane.b32.xlu0 %v8880_v41, %s8118_s26 }
 0x474   : > { %2071 = vrot.lane.b32.xlu0 %v8877_v44, %s8118_s26 }
 0x478   : > { %2075 = vrot.lane.b32.xlu0 %v8906_v54, %s8118_s26 }
 0x47c   : > { %2079 = vrot.lane.b32.xlu0 %v8927_v11, %s8118_s26 }
 0x480   : > { %2083 = vrot.lane.b32.xlu0 %v8964_v24, %s8118_s26 }
 0x484   : > { %2398 = vrot.lane.b32.xlu0 %v8942_v4, %s8118_s26 }
 0x488   : > { %2394 = vrot.lane.b32.xlu0 %v8955_v3, %s8118_s26 }
 0x48c   : > { %2392 = vrot.lane.b32.xlu0 %v8967_v2, %s8118_s26 }
 0x490   : > { %2390 = vrot.lane.b32.xlu0 %v8976_v1, %s8118_s26 }
 0x494   : > { %2386 = vrot.lane.b32.xlu0 %v9007_v34, %s8118_s26 }
 0x498   : > { %v1803_v27 = vpop.xlane.xlu1 %1802  ;;  %2648 = vrot.lane.b32.xlu0 %v8996_v36, %s8119_s29 }
 0x499   : > { %v1832_v30 = vsub.f32 %v9091_v47, %v1803_v27 }
 0x49a   : > { %v1799_v32 = vpop.xlane.xlu0 %1798 }
 0x49b   : > { %v1830_v22 = vsub.f32 %v1735_v10, %v1799_v32  ;;  %v1850_v9 = vmul.f32 1.442695, %v1832_v30 }
 0x49c   : > { %v1805_v26 = vpop.xlane.xlu1 %1804 }
 0x49d   : > { %v1846_v17 = vmul.f32 1.442695, %v1830_v22  ;;  %v1833_v7 = vsub.f32 %v6617_v20, %v1805_v26 }
 0x49e   : > { %v1801_v59 = vpop.xlane.xlu0 %1800 }
 0x49f   : > { %v1852_v49 = vmul.f32 1.442695, %v1833_v7  ;;  %v1831_v40 = vsub.f32 %v9094_v60, %v1801_v59  ;;  %7240 = vpow2.f32 %v1846_v17 }
 0x4a0   : > { %v1811_v56 = vpop.xlane.xlu1 %1810 }
 0x4a1   : > { %v1848_v28 = vmul.f32 1.442695, %v1831_v40  ;;  %7242 = vpow2.f32 %v1852_v49  ;;  %v1836_v47 = vsub.f32 %v9097_v19, %v1811_v56 }
 0x4a3   : > { %7244 = vpow2.f32 %v1848_v28  ;;  %v1858_v22 = vmul.f32 1.442695, %v1836_v47 }
 0x4a4   : > { %7246 = vpow2.f32 %v1850_v9  ;;  %v1807_v61 = vpop.xlane.xlu1 %1806  ;;  %v2154_v9 = vsel %vm1652_vm0, %v2108_v62, 0 }
 0x4a5   : > { %v1834_v5 = vsub.f32 %v9100_v29, %v1807_v61 }
 0x4a7   : > { %v1854_v10 = vmul.f32 1.442695, %v1834_v5 }
 0x4a8   : > { %v1813_v23 = vpop.xlane.xlu1 %1812 }
 0x4a9   : > { %v1837_v43 = vsub.f32 %v9102_v31, %v1813_v23  ;;  %7248 = vpow2.f32 %v1854_v10 }
 0x4ab   : > { %v1860_v20 = vmul.f32 1.442695, %v1837_v43  ;;  %v2104_v43 = vpop.permute.xlu0 %2103 }
 0x4ac   : > { %v1809_v27 = vpop.xlane.xlu1 %1808  ;;  %v9185_v32 = vpop.eup %7240  ;;  %v2148_v10 = vsel %vm1652_vm0, %v2104_v43, 0 }
 0x4ad   : > { %v1835_v60 = vsub.f32 %v9105_v13, %v1809_v27  ;;  %7250 = vpow2.f32 %v1860_v20  ;;  %v2157_v13 = vsel %vm1652_vm0, %v9087_v38, 0 }
 0x4ae   : > { %v9187_v30 = vpop.eup %7242 }
 0x4af   : > { %v1856_v26 = vmul.f32 1.442695, %v1835_v60 }
 0x4b0   : > { %v9189_v17 = vpop.eup %7244  ;;  %v1817_v29 = vpop.xlane.xlu1 %1816 }
 0x4b1   : > { %v9191_v7 = vpop.eup %7246  ;;  %7252 = vpow2.f32 %v1856_v26  ;;  %v1910_v19 = vpack.c.bf16 %v9189_v17, %v9185_v32  ;;  %v1839_v27 = vsub.f32 %v9115_v14, %v1817_v29 }
 0x4b2   : > { %7254 = vpow2.f32 %v1858_v22  ;;  %v1911_v31 = vpack.c.bf16 %v9187_v30, %v9191_v7 }
 0x4b3   : > { %6646 = vmatprep.mubr.bf16.mxu1 %v1910_v19 }
 0x4b4   : > { %6647 = vmatmul.mubr.bf16.vlgmr.msra.gmra.mxu1 %v1911_v31  ;;  %v1827_v59 = vpop.xlane.xlu1 %1826 }
 0x4b5   : > { %6663 = vmatpush3.bf16.xpose.msra.mxu1 %v2157_v13 }
 0x4b6   : > { %6931 = vmatprep.subr.msk.bf16.mxu1 %vm1652_vm0, %v2108_v62  ;;  %v9200_v40 = vpop.eup %7248  ;;  %v2151_v62 = vsel %vm1652_vm0, %v9085_v0, 0 }
 0x4b8   : > { %v1823_v49 = vpop.xlane.xlu1 %1822 }
 0x4ba   : > { %v9203_v56 = vpop.eup %7250 }
 0x4bc   : > { %v1829_v23 = vpop.xlane.xlu1 %1828 }
 0x4bd   : > { %6665 = vmatpush3.bf16.xpose.msra.mxu1 %v2154_v9  ;;  %v1842_v9 = vsub.f32 %v9123_v15, %v1823_v49 }
 0x4be   : > { %v9205_v28 = vpop.eup %7252  ;;  %6932 = vmatprep.subr.msk.bf16.mxu1 %vm1652_vm0, %v9085_v0  ;;  %v1864_v0 = vmul.f32 1.442695, %v1839_v27 }
 0x4bf   : > { %v9209_v61 = vpop.eup %7254  ;;  %v1912_v38 = vpack.c.bf16 %v9205_v28, %v9200_v40  ;;  %v1870_v29 = vmul.f32 1.442695, %v1842_v9 }
 0x4c0   : > { %v1913_v5 = vpack.c.bf16 %v9203_v56, %v9209_v61  ;;  %v1825_v47 = vpop.xlane.xlu1 %1824  ;;  %7256 = vpow2.f32 %v1864_v0 }
 0x4c1   : > { %6650 = vmatprep.mubr.bf16.mxu1 %v1912_v38  ;;  %v1843_v26 = vsub.f32 %v9129_v45, %v1825_v47  ;;  %v1844_v47 = vsub.f32 %v9118_v55, %v1827_v59 }
 0x4c2   : > { %6651 = vmatmul.mubr.bf16.gmra.mxu1 %v1913_v5 }
 0x4c3   : > { %v1872_v38 = vmul.f32 1.442695, %v1843_v26 }
 0x4c4   : > { %v2102_v20 = vpop.permute.xlu1 %2101 }
 0x4c5   : > { %6667 = vmatpush3.bf16.xpose.msra.mxu1 %v2151_v62  ;;  %v2145_v22 = vsel %vm1652_vm0, %v2102_v20, 0 }
 0x4c6   : > { %6933 = vmatprep.subr.msk.bf16.mxu1 %vm1652_vm0, %v2104_v43 }
 0x4cd   : > { %6669 = vmatpush3.bf16.xpose.msra.mxu1 %v2148_v10  ;;  %v1845_v10 = vsub.f32 %v9126_v18, %v1829_v23  ;;  %v9232_v23 = vpop.eup %7256 }
 0x4ce   : > { %6934 = vmatprep.subr.msk.bf16.mxu1 %vm1652_vm0, %v2102_v20  ;;  %v1874_v20 = vmul.f32 1.442695, %v1844_v47  ;;  %11712 = vst [vmem:[#allocation47_spill] sm:$0xff] %v9232_v23 }
 0x4cf   : > { %v1876_v15 = vmul.f32 1.442695, %v1845_v10 }
 0x4d3   : > { %v1819_v60 = vpop.xlane.xlu0 %1818 }
 0x4d4   : > { %v1840_v19 = vsub.f32 %v9107_v50, %v1819_v60 }
 0x4d5   : > { %6671 = vmatpush3.bf16.xpose.msra.mxu1 %v2145_v22 }
 0x4d6   : > { %v1866_v62 = vmul.f32 1.442695, %v1840_v19 }
 0x4d7   : > { %v1815_v31 = vpop.xlane.xlu0 %1814 }
 0x4d8   : > { %v1838_v13 = vsub.f32 %v9110_v21, %v1815_v31 }
 0x4da   : > { %v1862_v5 = vmul.f32 1.442695, %v1838_v13 }
 0x4db   : > { %v1821_v43 = vpop.xlane.xlu0 %1820 }
 0x4dc   : > { %7258 = vpow2.f32 %v1862_v5  ;;  %v1841_v14 = vsub.f32 %v9112_v63, %v1821_v43  ;;  %v2074_v63 = vpop.permute.xlu1 %2073 }
 0x4dd   : > { %7260 = vpow2.f32 %v1872_v38 }
 0x4de   : > { %v1868_v45 = vmul.f32 1.442695, %v1841_v14  ;;  %7262 = vpow2.f32 %v1866_v62 }
 0x4df   : > { %v2100_v50 = vpop.permute.xlu0 %2099 }
 0x4e0   : > { %7264 = vpow2.f32 %v1868_v45  ;;  %6935 = vmatprep.subr.msk.bf16.mxu1 %vm1652_vm0, %v2100_v50  ;;  %v2142_v21 = vsel %vm1652_vm0, %v2100_v50, 0  ;;  %v2078_v22 = vpop.permute.xlu1 %2077 }
 0x4e1   : > { %7266 = vpow2.f32 %v1870_v29  ;;  %6673 = vmatpush3.bf16.xpose.msra.mxu1 %v2142_v21 }
 0x4e2   : > { %7268 = vpow2.f32 %v1876_v15 }
 0x4e3   : > { %v2098_v49 = vpop.permute.xlu0 %2097  ;;  %7270 = vpow2.f32 %v1874_v20 }
 0x4e4   : > { %6936 = vmatprep.subr.msk.bf16.mxu1 %vm1652_vm0, %v2098_v49  ;;  %v2139_v55 = vsel %vm1652_vm0, %v2098_v49, 0  ;;  %v2082_v62 = vpop.permute.xlu1 %2081 }
 0x4e7   : > { %v2096_v18 = vpop.permute.xlu0 %2095 }
 0x4e8   : > { %v2136_v5 = vsel %vm1652_vm0, %v2096_v18, 0  ;;  %v2086_v45 = vpop.permute.xlu1 %2085 }
 0x4e9   : > { %v9235_v59 = vpop.eup %7258  ;;  %6675 = vmatpush3.bf16.xpose.msra.mxu1 %v2139_v55 }
 0x4ea   : > { %11713 = vst [vmem:[#allocation48_spill] sm:$0xff] %v9235_v59  ;;  %6937 = vmatprep.subr.msk.bf16.mxu1 %vm1652_vm0, %v2096_v18  ;;  %v1914_v27 = vpack.c.bf16 %v9232_v23, %v9235_v59  ;;  %v9240_v60 = vpop.eup %7260 }
 0x4eb   : > { %11714 = vst [vmem:[#allocation49_spill] sm:$0xff] %v9240_v60  ;;  %v2072_v26 = vpop.permute.xlu0 %2071  ;;  %v9242_v0 = vpop.eup %7262 }
 0x4ec   : > { %11715 = vst [vmem:[#allocation50_spill] sm:$0xff] %v9242_v0  ;;  %6654 = vmatprep.mubr.bf16.mxu1 %v1914_v27  ;;  %v2397_v21 = vpop.permute.xlu1 %2396 }
 0x4ed   : > { %v9244_v19 = vpop.eup %7264 }
 0x4ee   : > { %11716 = vst [vmem:[#allocation51_spill] sm:$0xff] %v9244_v19  ;;  %v9246_v31 = vpop.eup %7266  ;;  %v1915_v13 = vpack.c.bf16 %v9244_v19, %v9242_v0 }
 0x4ef   : > { %11717 = vst [vmem:[#allocation52_spill] sm:$0xff] %v9246_v31  ;;  %v2076_v9 = vpop.permute.xlu0 %2075  ;;  %v1916_v38 = vpack.c.bf16 %v9240_v60, %v9246_v31  ;;  %v9253_v43 = vpop.eup %7268 }
 0x4f0   : > { %6655 = vmatmul.mubr.bf16.gmra.mxu1 %v1915_v13  ;;  %11718 = vst [vmem:[#allocation53_spill] sm:$0xff] %v9253_v43  ;;  %v9255_v29 = vpop.eup %7270  ;;  %v2389_v18 = vpop.permute.xlu1 %2388 }
 0x4f1   : > { %6658 = vmatprep.mubr.bf16.mxu1 %v1916_v38  ;;  %6677 = vmatpush3.bf16.xpose.msra.mxu1 %v2136_v5  ;;  %11719 = vst [vmem:[#allocation54_spill] sm:$0xff] %v9255_v29  ;;  %v1917_v10 = vpack.c.bf16 %v9253_v43, %v9255_v29 }
 0x4f3   : > { %v2080_v14 = vpop.permute.xlu0 %2079 }
 0x4f4   : > { %v2385_v55 = vpop.permute.xlu1 %2384 }
 0x4f7   : > { %v2084_v50 = vpop.permute.xlu0 %2083 }
 0x4f8   : > { %6659 = vmatmul.mubr.bf16.gmra.mxu1 %v1917_v10  ;;  %v2647_v31 = vpop.permute.xlu1 %2646 }
 0x4f9   : > { %6678 = vmatprep.mubr.msk.bf16.mxu1 %vm1652_vm0, %v2072_v26 }
 0x4fb   : > { %v2399_v47 = vpop.permute.xlu0 %2398 }
 0x4fc   : > { %6694 = vmatprep.subr.bf16.mxu0 %v2399_v47 }
 0x4fd   : > { %6695 = vmatpush3.bf16.msra.mxu0 %v2399_v47 }
 0x4fe   : > { %6696 = vmatprep.subr.bf16.mxu0 %v2397_v21 }
 0x4ff   : > { %v2395_v15 = vpop.permute.xlu0 %2394 }
 0x500   : > { %6679 = vmatmul.mubr.msk.bf16.vlgmr.msra.gmra.mxu1 %vm1652_vm0, %v2074_v63 }
 0x501   : > { %6682 = vmatprep.mubr.msk.bf16.mxu1 %vm1652_vm0, %v2076_v9  ;;  %6697 = vmatpush3.bf16.msra.mxu0 %v2397_v21 }
 0x502   : > { %6698 = vmatprep.subr.bf16.mxu0 %v2395_v15 }
 0x503   : > { %v2393_v49 = vpop.permute.xlu0 %2392 }
 0x505   : > { %6699 = vmatpush3.bf16.msra.mxu0 %v2395_v15 }
 0x506   : > { %6700 = vmatprep.subr.bf16.mxu0 %v2393_v49 }
 0x507   : > { %v2391_v20 = vpop.permute.xlu0 %2390 }
 0x508   : > { %6683 = vmatmul.mubr.msk.bf16.gmra.mxu1 %vm1652_vm0, %v2078_v22 }
 0x509   : > { %6686 = vmatprep.mubr.msk.bf16.mxu1 %vm1652_vm0, %v2080_v14  ;;  %6701 = vmatpush3.bf16.msra.mxu0 %v2393_v49 }
 0x50a   : > { %6702 = vmatprep.subr.bf16.mxu0 %v2391_v20 }
 0x50b   : > { %v2387_v63 = vpop.permute.xlu0 %2386 }
 0x50d   : > { %6703 = vmatpush3.bf16.msra.mxu0 %v2391_v20 }
 0x50e   : > { %6704 = vmatprep.subr.bf16.mxu0 %v2389_v18 }
 0x50f   : > { %v9267_v27 = vpop.permute.xlu0 %2648 }
 0x510   : > { %6687 = vmatmul.mubr.msk.bf16.gmra.mxu1 %vm1652_vm0, %v2082_v62 }
 0x511   : > { %6690 = vmatprep.mubr.msk.bf16.mxu1 %vm1652_vm0, %v2084_v50  ;;  %6705 = vmatpush3.bf16.msra.mxu0 %v2389_v18 }
 0x512   : > { %6706 = vmatprep.subr.bf16.mxu0 %v2387_v63 }
 0x515   : > { %6707 = vmatpush3.bf16.msra.mxu0 %v2387_v63 }
 0x516   : > { %6708 = vmatprep.subr.bf16.mxu0 %v2385_v55 }
 0x518   : > { %6691 = vmatmul.mubr.msk.bf16.gmra.mxu1 %vm1652_vm0, %v2086_v45 }
 0x519   : > { %6709 = vmatpush3.bf16.msra.mxu0 %v2385_v55 }
 0x51a   : > { %6938 = vmatprep.subr.msk.bf16.mxu0 %vm1652_vm0, %v9267_v27 }
 0x574   : > { %v9271_v22 = vpop.f32.mrf.mxu1 }
 0x575   : > { %11720 = vst [vmem:[#allocation55_spill] sm:$0xff] %v9271_v22 }
 0x576   : > { %v9273_v26 = vpop.f32.mrf.mxu1 }
 0x577   : > { %11721 = vst [vmem:[#allocation56_spill] sm:$0xff] %v9273_v26 }
 0x578   : > { %v9275_v13 = vpop.f32.mrf.mxu1 }
 0x579   : > { %11722 = vst [vmem:[#allocation57_spill] sm:$0xff] %v9275_v13 }
 0x57a   : > { %v9277_v9 = vpop.f32.mrf.mxu1 }
 0x57b   : > { %11723 = vst [vmem:[#allocation58_spill] sm:$0xff] %v9277_v9 }
 0x582   : > { %v9279_v38 = vpop.f32.mrf.mxu1 }
 0x583   : > { %11724 = vst [vmem:[#allocation59_spill] sm:$0xff] %v9279_v38 }
 0x584   : > { %v9281_v5 = vpop.f32.mrf.mxu1 }
 0x585   : > { %11725 = vst [vmem:[#allocation60_spill] sm:$0xff] %v9281_v5 }
 0x586   : > { %v9283_v62 = vpop.f32.mrf.mxu1 }
 0x587   : > { %11726 = vst [vmem:[#allocation61_spill] sm:$0xff] %v9283_v62 }
 0x588   : > { %v9285_v14 = vpop.f32.mrf.mxu1 }
 0x589   : > { %11727 = vst [vmem:[#allocation62_spill] sm:$0xff] %v9285_v14 }
 0x5b0   : > { %v9287_v10 = vpop.f32.mrf.mxu1 }
 0x5b1   : > { %11728 = vst [vmem:[#allocation63_spill] sm:$0xff] %v9287_v10 }
 0x5b2   : > { %v9289_v45 = vpop.f32.mrf.mxu1 }
 0x5b3   : > { %11729 = vst [vmem:[#allocation64_spill] sm:$0xff] %v9289_v45 }
 0x5b4   : > { %v9291_v50 = vpop.f32.mrf.mxu1 }
 0x5b5   : > { %11730 = vst [vmem:[#allocation65_spill] sm:$0xff] %v9291_v50 }
 0x5b6   : > { %v9293_v47 = vpop.f32.mrf.mxu1 }
 0x5b7   : > { %11731 = vst [vmem:[#allocation66_spill] sm:$0xff] %v9293_v47 }
 0x5b8   : > { %v9295_v21 = vpop.f32.mrf.mxu1 }
 0x5b9   : > { %11732 = vst [vmem:[#allocation67_spill] sm:$0xff] %v9295_v21 }
 0x5ba   : > { %v9297_v15 = vpop.f32.mrf.mxu1 }
 0x5bb   : > { %11733 = vst [vmem:[#allocation68_spill] sm:$0xff] %v9297_v15 }
 0x5bc   : > { %v9299_v49 = vpop.f32.mrf.mxu1 }
 0x5bd   : > { %11734 = vst [vmem:[#allocation69_spill] sm:$0xff] %v9299_v49 }
 0x5be   : > { %v9301_v20 = vpop.f32.mrf.mxu1 }
 0x5bf   : > { %11735 = vst [vmem:[#allocation70_spill] sm:$0xff] %v9301_v20 }
 0x5c0   : > { %v9303_v18 = vpop.f32.mrf.mxu1 }
 0x5c1   : > { %2260 = vmax.xlane.f32.xlu1 %v9303_v18 }
 0x5c2   : > { %v2193_v63 = vpop.f32.mrf.mxu1 }
 0x5c3   : > { %2256 = vmax.xlane.f32.xlu0 %v2193_v63 }
 0x5c4   : > { %v6681_v55 = vpop.f32.mrf.mxu1 }
 0x5c5   : > { %2262 = vmax.xlane.f32.xlu1 %v6681_v55 }
 0x5c6   : > { %v2196_v33 = vpop.f32.mrf.mxu1 }
 0x5c8   : > { %v9306_v12 = vpop.f32.mrf.mxu1 }
 0x5c9   : > { %2258 = vmax.xlane.f32.xlu1 %v2196_v33 }
 0x5ca   : > { %v9308_v42 = vpop.f32.mrf.mxu1 }
 0x5cc   : > { %v9314_v25 = vpop.f32.mrf.mxu1 }
 0x5ce   : > { %v9318_v21 = vpop.f32.mrf.mxu1 }
 0x5d0   : > { %v9320_v15 = vpop.f32.mrf.mxu1 }
 0x5d2   : > { %v9322_v49 = vpop.f32.mrf.mxu1 }
 0x5d4   : > { %v9324_v20 = vpop.f32.mrf.mxu1 }
 0x5d6   : > { %v9326_v10 = vpop.f32.mrf.mxu1 }
 0x5d8   : > { %v9328_v45 = vpop.f32.mrf.mxu1 }
 0x5d9   : > { %2642 = vrot.lane.b32.xlu0 %v9029_v16, %s8119_s29 }
 0x5da   : > { %2644 = vrot.lane.b32.xlu1 %v8945_v6, %s8119_s29  ;;  %v9330_v50 = vpop.f32.mrf.mxu1 }
 0x5dc   : > { %v9333_v47 = vpop.f32.mrf.mxu1 }
 0x5dd   : > { %2640 = vrot.lane.b32.xlu0 %v9039_v48, %s8119_s29 }
 0x5de   : > { %v9337_v29 = vpop.f32.mrf.mxu1 }
 0x5fc   : > { %2268 = vmax.xlane.f32.xlu0 %v9306_v12 }
 0x5fe   : > { %2264 = vmax.xlane.f32.xlu1 %v9308_v42 }
 0x600   : > { %2270 = vmax.xlane.f32.xlu0 %v9314_v25 }
 0x602   : > { %2282 = vmax.xlane.f32.xlu1 %v9337_v29 }
 0x604   : > { %2266 = vmax.xlane.f32.xlu0 %v9318_v21 }
 0x608   : > { %2276 = vmax.xlane.f32.xlu0 %v9320_v15 }
 0x60c   : > { %2272 = vmax.xlane.f32.xlu0 %v9322_v49 }
 0x610   : > { %2278 = vmax.xlane.f32.xlu0 %v9324_v20 }
 0x613   : > { %2638 = vrot.lane.b32.xlu1 %v9049_v58, %s8119_s29 }
 0x614   : > { %2274 = vmax.xlane.f32.xlu0 %v9326_v10 }
 0x617   : > { %2624 = vrot.lane.b32.xlu1 %v8918_v57, %s8119_s29 }
 0x618   : > { %2284 = vmax.xlane.f32.xlu0 %v9328_v45 }
 0x61b   : > { %2628 = vrot.lane.b32.xlu1 %v8939_v37, %s8119_s29 }
 0x61c   : > { %2280 = vmax.xlane.f32.xlu0 %v9330_v50 }
 0x61f   : > { %2632 = vrot.lane.b32.xlu1 %v8988_v35, %s8119_s29 }
 0x620   : > { %2286 = vmax.xlane.f32.xlu0 %v9333_v47 }
 0x623   : > { %2927 = vrot.lane.b32.xlu1 %v8948_v39, %s8119_s29 }
 0x627   : > { %2919 = vrot.lane.b32.xlu1 %v8994_v8, %s8119_s29 }
 0x62b   : > { %2915 = vrot.lane.b32.xlu1 %v9015_v52, %s8119_s29 }
 0x62f   : > { %3175 = vrot.lane.b32.xlu1 %v8945_v6, %s8120_s1 }
 0x636   : > { %2636 = vrot.lane.b32.xlu0 %v9059_v46, %s8119_s29 }
 0x63a   : > { %2634 = vrot.lane.b32.xlu0 %v8880_v41, %s8119_s29 }
 0x63e   : > { %2618 = vrot.lane.b32.xlu0 %v8877_v44, %s8119_s29 }
 0x642   : > { %2620 = vrot.lane.b32.xlu0 %v8890_v53, %s8119_s29 }
 0x646   : > { %2622 = vrot.lane.b32.xlu0 %v8906_v54, %s8119_s29 }
 0x64a   : > { %2626 = vrot.lane.b32.xlu0 %v8927_v11, %s8119_s29  ;;  %v2261_v6 = vpop.xlane.xlu1 %2260 }
 0x64b   : > { %v2290_v19 = vsub.f32 %v9303_v18, %v2261_v6 }
 0x64c   : > { %v2257_v43 = vpop.xlane.xlu0 %2256 }
 0x64d   : > { %v2288_v60 = vsub.f32 %v2193_v63, %v2257_v43  ;;  %v2308_v26 = vmul.f32 1.442695, %v2290_v19  ;;  %v2696_v43 = vsel %vm1652_vm0, %v9267_v27, 0 }
 0x64e   : > { %2630 = vrot.lane.b32.xlu0 %v8964_v24, %s8119_s29  ;;  %v2263_v0 = vpop.xlane.xlu1 %2262 }
 0x64f   : > { %v2291_v59 = vsub.f32 %v6681_v55, %v2263_v0  ;;  %v2304_v23 = vmul.f32 1.442695, %v2288_v60 }
 0x651   : > { %v2310_v38 = vmul.f32 1.442695, %v2291_v59  ;;  %7272 = vpow2.f32 %v2304_v23 }
 0x652   : > { %2929 = vrot.lane.b32.xlu0 %v8942_v4, %s8119_s29  ;;  %v2259_v5 = vpop.xlane.xlu1 %2258 }
 0x653   : > { %v2289_v22 = vsub.f32 %v2196_v33, %v2259_v5  ;;  %7274 = vpow2.f32 %v2310_v38  ;;  %v2643_v38 = vpop.permute.xlu0 %2642 }
 0x654   : > { %v2687_v27 = vsel %vm1652_vm0, %v2643_v38, 0 }
 0x655   : > { %v2306_v62 = vmul.f32 1.442695, %v2289_v22  ;;  %v2693_v22 = vsel %vm1652_vm0, %v2647_v31, 0 }
 0x656   : > { %2925 = vrot.lane.b32.xlu0 %v8955_v3, %s8119_s29 }
 0x657   : > { %7276 = vpow2.f32 %v2306_v62  ;;  %v2641_v5 = vpop.permute.xlu0 %2640 }
 0x658   : > { %7278 = vpow2.f32 %v2308_v26  ;;  %v2684_v62 = vsel %vm1652_vm0, %v2641_v5, 0 }
 0x65a   : > { %2923 = vrot.lane.b32.xlu0 %v8967_v2, %s8119_s29 }
 0x65e   : > { %2921 = vrot.lane.b32.xlu0 %v8976_v1, %s8119_s29  ;;  %v9387_v59 = vpop.eup %7272 }
 0x660   : > { %v9391_v33 = vpop.eup %7274 }
 0x662   : > { %2917 = vrot.lane.b32.xlu0 %v9007_v34, %s8119_s29 }
 0x664   : > { %v9393_v23 = vpop.eup %7276 }
 0x665   : > { %v9395_v60 = vpop.eup %7278  ;;  %v2368_v0 = vpack.c.bf16 %v9393_v23, %v9387_v59 }
 0x666   : > { %3179 = vrot.lane.b32.xlu0 %v8996_v36, %s8120_s1  ;;  %v2369_v19 = vpack.c.bf16 %v9391_v33, %v9395_v60  ;;  %v2645_v36 = vpop.permute.xlu1 %2644 }
 0x667   : > { %6710 = vmatprep.mubr.bf16.mxu0 %v2368_v0  ;;  %v2690_v26 = vsel %vm1652_vm0, %v2645_v36, 0 }
 0x668   : > { %6711 = vmatmul.mubr.bf16.vlgmr.msra.gmra.mxu0 %v2369_v19 }
 0x669   : > { %6727 = vmatpush3.bf16.xpose.msra.mxu0 %v2696_v43 }
 0x66a   : > { %6939 = vmatprep.subr.msk.bf16.mxu0 %vm1652_vm0, %v2647_v31  ;;  %3177 = vrot.lane.b32.xlu0 %v8970_v51, %s8120_s1 }
 0x66e   : > { %3173 = vrot.lane.b32.xlu0 %v9029_v16, %s8120_s1 }
 0x671   : > { %6729 = vmatpush3.bf16.xpose.msra.mxu0 %v2693_v22 }
 0x672   : > { %6940 = vmatprep.subr.msk.bf16.mxu0 %vm1652_vm0, %v2645_v36 }
 0x679   : > { %6731 = vmatpush3.bf16.xpose.msra.mxu0 %v2690_v26 }
 0x67a   : > { %6941 = vmatprep.subr.msk.bf16.mxu0 %vm1652_vm0, %v2643_v38 }
 0x681   : > { %6733 = vmatpush3.bf16.xpose.msra.mxu0 %v2687_v27 }
 0x682   : > { %6942 = vmatprep.subr.msk.bf16.mxu0 %vm1652_vm0, %v2641_v5 }
 0x685   : > { %v2269_v51 = vpop.xlane.xlu0 %2268 }
 0x686   : > { %v2294_v55 = vsub.f32 %v9306_v12, %v2269_v51 }
 0x687   : > { %v2265_v16 = vpop.xlane.xlu1 %2264 }
 0x688   : > { %v2292_v31 = vsub.f32 %v9308_v42, %v2265_v16  ;;  %v2316_v36 = vmul.f32 1.442695, %v2294_v55 }
 0x689   : > { %6735 = vmatpush3.bf16.xpose.msra.mxu0 %v2684_v62  ;;  %v2271_v18 = vpop.xlane.xlu0 %2270 }
 0x68a   : > { %v2295_v63 = vsub.f32 %v9314_v25, %v2271_v18  ;;  %v2312_v0 = vmul.f32 1.442695, %v2292_v31 }
 0x68b   : > { %v2283_v6 = vpop.xlane.xlu1 %2282 }
 0x68c   : > { %v2318_v19 = vmul.f32 1.442695, %v2295_v63  ;;  %7280 = vpow2.f32 %v2312_v0 }
 0x68d   : > { %v2267_v43 = vpop.xlane.xlu0 %2266 }
 0x68e   : > { %v2293_v22 = vsub.f32 %v9318_v21, %v2267_v43  ;;  %7282 = vpow2.f32 %v2318_v19 }
 0x68f   : > { %v2639_v26 = vpop.permute.xlu1 %2638 }
 0x690   : > { %v2314_v38 = vmul.f32 1.442695, %v2293_v22  ;;  %6943 = vmatprep.subr.msk.bf16.mxu0 %vm1652_vm0, %v2639_v26  ;;  %v2681_v42 = vsel %vm1652_vm0, %v2639_v26, 0 }
 0x691   : > { %v2277_v27 = vpop.xlane.xlu0 %2276  ;;  %6737 = vmatpush3.bf16.xpose.msra.mxu0 %v2681_v42 }
 0x692   : > { %7284 = vpow2.f32 %v2314_v38  ;;  %v2298_v21 = vsub.f32 %v9320_v15, %v2277_v27  ;;  %v2301_v15 = vsub.f32 %v9337_v29, %v2283_v6 }
 0x693   : > { %7286 = vpow2.f32 %v2316_v36 }
 0x694   : > { %v2324_v19 = vmul.f32 1.442695, %v2298_v21 }
 0x695   : > { %v2273_v25 = vpop.xlane.xlu0 %2272 }
 0x696   : > { %v2296_v12 = vsub.f32 %v9322_v49, %v2273_v25 }
 0x698   : > { %v2320_v16 = vmul.f32 1.442695, %v2296_v12 }
 0x699   : > { %v2279_v5 = vpop.xlane.xlu0 %2278  ;;  %v9426_v31 = vpop.eup %7280 }
 0x69a   : > { %v2299_v51 = vsub.f32 %v9324_v20, %v2279_v5  ;;  %7288 = vpow2.f32 %v2320_v16 }
 0x69b   : > { %v9428_v63 = vpop.eup %7282 }
 0x69c   : > { %v2326_v62 = vmul.f32 1.442695, %v2299_v51 }
 0x69d   : > { %v2275_v18 = vpop.xlane.xlu0 %2274 }
 0x69e   : > { %v2297_v55 = vsub.f32 %v9326_v10, %v2275_v18  ;;  %7290 = vpow2.f32 %v2326_v62  ;;  %v2330_v10 = vmul.f32 1.442695, %v2301_v15 }
 0x69f   : > { %v9431_v0 = vpop.eup %7284 }
 0x6a0   : > { %v9433_v43 = vpop.eup %7286  ;;  %v2322_v49 = vmul.f32 1.442695, %v2297_v55  ;;  %v2370_v20 = vpack.c.bf16 %v9431_v0, %v9426_v31 }
 0x6a1   : > { %v2285_v22 = vpop.xlane.xlu0 %2284  ;;  %v2371_v36 = vpack.c.bf16 %v9428_v63, %v9433_v43 }
 0x6a2   : > { %7292 = vpow2.f32 %v2322_v49  ;;  %6714 = vmatprep.mubr.bf16.mxu0 %v2370_v20  ;;  %v2302_v26 = vsub.f32 %v9328_v45, %v2285_v22  ;;  %v2625_v22 = vpop.permute.xlu1 %2624 }
 0x6a3   : > { %7294 = vpow2.f32 %v2324_v19  ;;  %6715 = vmatmul.mubr.bf16.gmra.mxu0 %v2371_v36 }
 0x6a4   : > { %7296 = vpow2.f32 %v2330_v10  ;;  %v2332_v25 = vmul.f32 1.442695, %v2302_v26 }
 0x6a5   : > { %v2281_v38 = vpop.xlane.xlu0 %2280 }
 0x6a6   : > { %v2300_v42 = vsub.f32 %v9330_v50, %v2281_v38 }
 0x6a7   : > { %v9443_v5 = vpop.eup %7288 }
 0x6a8   : > { %v2328_v27 = vmul.f32 1.442695, %v2300_v42 }
 0x6a9   : > { %v2287_v12 = vpop.xlane.xlu0 %2286 }
 0x6aa   : > { %7298 = vpow2.f32 %v2328_v27  ;;  %v2303_v29 = vsub.f32 %v9333_v47, %v2287_v12  ;;  %v2629_v27 = vpop.permute.xlu1 %2628 }
 0x6ab   : > { %7300 = vpow2.f32 %v2332_v25  ;;  %v9445_v21 = vpop.eup %7290 }
 0x6ac   : > { %v2334_v6 = vmul.f32 1.442695, %v2303_v29 }
 0x6ad   : > { %v2637_v51 = vpop.permute.xlu0 %2636 }
 0x6ae   : > { %7302 = vpow2.f32 %v2334_v6  ;;  %6944 = vmatprep.subr.msk.bf16.mxu0 %vm1652_vm0, %v2637_v51  ;;  %v2678_v45 = vsel %vm1652_vm0, %v2637_v51, 0  ;;  %v2633_v12 = vpop.permute.xlu1 %2632 }
 0x6af   : > { %v9449_v50 = vpop.eup %7292  ;;  %6739 = vmatpush3.bf16.xpose.msra.mxu0 %v2678_v45 }
 0x6b0   : > { %v9451_v16 = vpop.eup %7294  ;;  %v2372_v47 = vpack.c.bf16 %v9449_v50, %v9443_v5 }
 0x6b1   : > { %v2635_v62 = vpop.permute.xlu0 %2634  ;;  %v2373_v18 = vpack.c.bf16 %v9445_v21, %v9451_v16  ;;  %v9458_v19 = vpop.eup %7296 }
 0x6b2   : > { %6718 = vmatprep.mubr.bf16.mxu0 %v2372_v47  ;;  %6945 = vmatprep.subr.msk.bf16.mxu0 %vm1652_vm0, %v2635_v62  ;;  %v2675_v49 = vsel %vm1652_vm0, %v2635_v62, 0  ;;  %v2928_v51 = vpop.permute.xlu1 %2927 }
 0x6b3   : > { %6719 = vmatmul.mubr.bf16.gmra.mxu0 %v2373_v18 }
 0x6b5   : > { %v2619_v55 = vpop.permute.xlu0 %2618 }
 0x6b6   : > { %v2920_v18 = vpop.permute.xlu1 %2919 }
 0x6b7   : > { %v9461_v20 = vpop.eup %7298  ;;  %6741 = vmatpush3.bf16.xpose.msra.mxu0 %v2675_v49 }
 0x6b8   : > { %v2374_v15 = vpack.c.bf16 %v9458_v19, %v9461_v20  ;;  %v9465_v10 = vpop.eup %7300 }
 0x6b9   : > { %v2621_v36 = vpop.permute.xlu0 %2620 }
 0x6ba   : > { %6722 = vmatprep.mubr.bf16.mxu0 %v2374_v15  ;;  %v2916_v49 = vpop.permute.xlu1 %2915 }
 0x6bb   : > { %v9467_v26 = vpop.eup %7302 }
 0x6bc   : > { %v2375_v38 = vpack.c.bf16 %v9467_v26, %v9465_v10 }
 0x6bd   : > { %v2623_v42 = vpop.permute.xlu0 %2622 }
 0x6be   : > { %6723 = vmatmul.mubr.bf16.gmra.mxu0 %v2375_v38 }
 0x6bf   : > { %6742 = vmatprep.mubr.msk.bf16.mxu0 %vm1652_vm0, %v2619_v55 }
 0x6c1   : > { %v2627_v25 = vpop.permute.xlu0 %2626 }
 0x6c5   : > { %v2631_v29 = vpop.permute.xlu0 %2630 }
 0x6c6   : > { %6743 = vmatmul.mubr.msk.bf16.vlgmr.msra.gmra.mxu0 %vm1652_vm0, %v2621_v36 }
 0x6c7   : > { %6746 = vmatprep.mubr.msk.bf16.mxu0 %vm1652_vm0, %v2623_v42 }
 0x6c9   : > { %v2930_v6 = vpop.permute.xlu0 %2929 }
 0x6ca   : > { %6758 = vmatprep.subr.bf16.mxu1 %v2930_v6 }
 0x6cb   : > { %6759 = vmatpush3.bf16.msra.mxu1 %v2930_v6 }
 0x6cc   : > { %6760 = vmatprep.subr.bf16.mxu1 %v2928_v51 }
 0x6cd   : > { %v2926_v45 = vpop.permute.xlu0 %2925 }
 0x6ce   : > { %6747 = vmatmul.mubr.msk.bf16.gmra.mxu0 %vm1652_vm0, %v2625_v22 }
 0x6cf   : > { %6750 = vmatprep.mubr.msk.bf16.mxu0 %vm1652_vm0, %v2627_v25  ;;  %6761 = vmatpush3.bf16.msra.mxu1 %v2928_v51 }
 0x6d0   : > { %6762 = vmatprep.subr.bf16.mxu1 %v2926_v45 }
 0x6d1   : > { %v2924_v47 = vpop.permute.xlu0 %2923 }
 0x6d3   : > { %6763 = vmatpush3.bf16.msra.mxu1 %v2926_v45 }
 0x6d4   : > { %6764 = vmatprep.subr.bf16.mxu1 %v2924_v47 }
 0x6d5   : > { %v2922_v62 = vpop.permute.xlu0 %2921 }
 0x6d6   : > { %6751 = vmatmul.mubr.msk.bf16.gmra.mxu0 %vm1652_vm0, %v2629_v27 }
 0x6d7   : > { %6754 = vmatprep.mubr.msk.bf16.mxu0 %vm1652_vm0, %v2631_v29  ;;  %6765 = vmatpush3.bf16.msra.mxu1 %v2924_v47 }
 0x6d8   : > { %6766 = vmatprep.subr.bf16.mxu1 %v2922_v62 }
 0x6d9   : > { %v2918_v55 = vpop.permute.xlu0 %2917 }
 0x6db   : > { %6767 = vmatpush3.bf16.msra.mxu1 %v2922_v62 }
 0x6dc   : > { %6768 = vmatprep.subr.bf16.mxu1 %v2920_v18 }
 0x6dd   : > { %v9479_v15 = vpop.permute.xlu0 %3179 }
 0x6de   : > { %6755 = vmatmul.mubr.msk.bf16.gmra.mxu0 %vm1652_vm0, %v2633_v12 }
 0x6df   : > { %6769 = vmatpush3.bf16.msra.mxu1 %v2920_v18 }
 0x6e0   : > { %6770 = vmatprep.subr.bf16.mxu1 %v2918_v55 }
 0x6e3   : > { %6771 = vmatpush3.bf16.msra.mxu1 %v2918_v55 }
 0x6e4   : > { %6772 = vmatprep.subr.bf16.mxu1 %v2916_v49 }
 0x6e7   : > { %6773 = vmatpush3.bf16.msra.mxu1 %v2916_v49 }
 0x6e8   : > { %6946 = vmatprep.subr.msk.bf16.mxu1 %vm1652_vm0, %v9479_v15 }
 0x728   : > { %v9483_v22 = vpop.f32.mrf.mxu0 }
 0x72a   : > { %v9485_v36 = vpop.f32.mrf.mxu0 }
 0x72c   : > { %v9487_v38 = vpop.f32.mrf.mxu0 }
 0x72d   : > { %11736 = vst [vmem:[#allocation71_spill] sm:$0xff] %v9487_v38 }
 0x72e   : > { %v9489_v42 = vpop.f32.mrf.mxu0 }
 0x763   : > { %v9491_v27 = vpop.f32.mrf.mxu0 }
 0x764   : > { %11737 = vst [vmem:[#allocation72_spill] sm:$0xff] %v9491_v27 }
 0x765   : > { %v9493_v25 = vpop.f32.mrf.mxu0 }
 0x766   : > { %11738 = vst [vmem:[#allocation73_spill] sm:$0xff] %v9493_v25 }
 0x767   : > { %v9495_v12 = vpop.f32.mrf.mxu0 }
 0x768   : > { %11739 = vst [vmem:[#allocation74_spill] sm:$0xff] %v9495_v12 }
 0x769   : > { %v9497_v29 = vpop.f32.mrf.mxu0 }
 0x76a   : > { %11740 = vst [vmem:[#allocation75_spill] sm:$0xff] %v9497_v29 }
 0x773   : > { %v9499_v6 = vpop.f32.mrf.mxu0 }
 0x774   : > { %11741 = vst [vmem:[#allocation76_spill] sm:$0xff] %v9499_v6 }
 0x775   : > { %v9501_v51 = vpop.f32.mrf.mxu0 }
 0x776   : > { %11742 = vst [vmem:[#allocation77_spill] sm:$0xff] %v9501_v51 }
 0x777   : > { %v9503_v45 = vpop.f32.mrf.mxu0 }
 0x778   : > { %11743 = vst [vmem:[#allocation78_spill] sm:$0xff] %v9503_v45 }
 0x779   : > { %v9505_v47 = vpop.f32.mrf.mxu0 }
 0x77a   : > { %11744 = vst [vmem:[#allocation79_spill] sm:$0xff] %v9505_v47 }
 0x77e   : > { %v9507_v62 = vpop.f32.mrf.mxu0 }
 0x77f   : > { %11745 = vst [vmem:[#allocation80_spill] sm:$0xff] %v9507_v62 }
 0x780   : > { %v9509_v18 = vpop.f32.mrf.mxu0 }
 0x781   : > { %11746 = vst [vmem:[#allocation81_spill] sm:$0xff] %v9509_v18 }
 0x782   : > { %v9511_v55 = vpop.f32.mrf.mxu0 }
 0x783   : > { %11747 = vst [vmem:[#allocation82_spill] sm:$0xff] %v9511_v55 }
 0x784   : > { %v9513_v49 = vpop.f32.mrf.mxu0 }
 0x785   : > { %11748 = vst [vmem:[#allocation83_spill] sm:$0xff] %v9513_v49 }
 0x786   : > { %v9515_v27 = vpop.f32.mrf.mxu0 }
 0x787   : > { %2799 = vmax.xlane.f32.xlu1 %v9515_v27 }
 0x788   : > { %v2732_v25 = vpop.f32.mrf.mxu0 }
 0x789   : > { %2795 = vmax.xlane.f32.xlu0 %v2732_v25 }
 0x78a   : > { %v6745_v6 = vpop.f32.mrf.mxu0 }
 0x78b   : > { %2801 = vmax.xlane.f32.xlu1 %v6745_v6 }
 0x78c   : > { %v2735_v51 = vpop.f32.mrf.mxu0 }
 0x78e   : > { %v9518_v45 = vpop.f32.mrf.mxu0 }
 0x78f   : > { %2797 = vmax.xlane.f32.xlu1 %v2735_v51  ;;  %2807 = vmax.xlane.f32.xlu0 %v9518_v45 }
 0x790   : > { %v9521_v62 = vpop.f32.mrf.mxu0 }
 0x792   : > { %v9523_v18 = vpop.f32.mrf.mxu0 }
 0x793   : > { %2803 = vmax.xlane.f32.xlu1 %v9521_v62 }
 0x794   : > { %v9526_v55 = vpop.f32.mrf.mxu0 }
 0x795   : > { %2805 = vmax.xlane.f32.xlu0 %v9526_v55 }
 0x796   : > { %v9530_v49 = vpop.f32.mrf.mxu0 }
 0x797   : > { %2809 = vmax.xlane.f32.xlu1 %v9523_v18 }
 0x798   : > { %v9533_v47 = vpop.f32.mrf.mxu0 }
 0x79a   : > { %v9536_v12 = vpop.f32.mrf.mxu0 }
 0x79b   : > { %2815 = vmax.xlane.f32.xlu1 %v9530_v49 }
 0x79c   : > { %v9539_v29 = vpop.f32.mrf.mxu0 }
 0x79e   : > { %v9546_v14 = vpop.f32.mrf.mxu0 }
 0x79f   : > { %2811 = vmax.xlane.f32.xlu1 %v9533_v47 }
 0x7a0   : > { %v9549_v13 = vpop.f32.mrf.mxu0 }
 0x7a2   : > { %v9552_v38 = vpop.f32.mrf.mxu0 }
 0x7a3   : > { %2817 = vmax.xlane.f32.xlu1 %v9536_v12 }
 0x7a4   : > { %v9555_v9 = vpop.f32.mrf.mxu0 }
 0x7a7   : > { %2813 = vmax.xlane.f32.xlu1 %v9539_v29 }
 0x7ab   : > { %3169 = vrot.lane.b32.xlu0 %v9049_v58, %s8120_s1 }
 0x7b8   : > { %3171 = vrot.lane.b32.xlu1 %v9039_v48, %s8120_s1 }
 0x7ca   : > { %2823 = vmax.xlane.f32.xlu0 %v9546_v14 }
 0x7ce   : > { %2819 = vmax.xlane.f32.xlu0 %v9549_v13 }
 0x7d2   : > { %2825 = vmax.xlane.f32.xlu0 %v9552_v38 }
 0x7dc   : > { %2821 = vmax.xlane.f32.xlu1 %v9555_v9 }
 0x7e8   : > { %3167 = vrot.lane.b32.xlu0 %v9059_v46, %s8120_s1 }
 0x7ec   : > { %3149 = vrot.lane.b32.xlu0 %v8877_v44, %s8120_s1  ;;  %v9586_v44 = vpop.permute.xlu0 %3177 }
 0x7ed   : > { %3165 = vrot.lane.b32.xlu1 %v8880_v41, %s8120_s1  ;;  %v9590_v41 = vpop.permute.xlu1 %3175 }
 0x7f0   : > { %3153 = vrot.lane.b32.xlu0 %v8906_v54, %s8120_s1 }
 0x7f1   : > { %3151 = vrot.lane.b32.xlu1 %v8890_v53, %s8120_s1  ;;  %v9594_v53 = vpop.permute.xlu0 %3173 }
 0x7f4   : > { %3157 = vrot.lane.b32.xlu0 %v8927_v11, %s8120_s1 }
 0x7f5   : > { %3155 = vrot.lane.b32.xlu1 %v8918_v57, %s8120_s1 }
 0x7f8   : > { %3161 = vrot.lane.b32.xlu0 %v8964_v24, %s8120_s1 }
 0x7f9   : > { %3159 = vrot.lane.b32.xlu1 %v8939_v37, %s8120_s1 }
 0x7fc   : > { %3458 = vrot.lane.b32.xlu0 %v8948_v39, %s8120_s1 }
 0x7fd   : > { %3163 = vrot.lane.b32.xlu1 %v8988_v35, %s8120_s1 }
 0x800   : > { %3450 = vrot.lane.b32.xlu0 %v8994_v8, %s8120_s1 }
 0x801   : > { %3460 = vrot.lane.b32.xlu1 %v8942_v4, %s8120_s1 }
 0x805   : > { %3456 = vrot.lane.b32.xlu1 %v8955_v3, %s8120_s1 }
 0x809   : > { %3454 = vrot.lane.b32.xlu1 %v8967_v2, %s8120_s1 }
 0x80d   : > { %3452 = vrot.lane.b32.xlu1 %v8976_v1, %s8120_s1 }
 0x810   : > { %v2800_v54 = vpop.xlane.xlu1 %2799 }
 0x811   : > { %3448 = vrot.lane.b32.xlu1 %v9007_v34, %s8120_s1  ;;  %v2829_v39 = vsub.f32 %v9515_v27, %v2800_v54 }
 0x812   : > { %v2796_v57 = vpop.xlane.xlu0 %2795 }
 0x813   : > { %v2827_v11 = vsub.f32 %v2732_v25, %v2796_v57  ;;  %v2847_v8 = vmul.f32 1.442695, %v2829_v39 }
 0x814   : > { %v2802_v37 = vpop.xlane.xlu1 %2801 }
 0x815   : > { %v2830_v4 = vsub.f32 %v6745_v6, %v2802_v37  ;;  %3446 = vrot.lane.b32.xlu1 %v9015_v52, %s8120_s1  ;;  %v2843_v3 = vmul.f32 1.442695, %v2827_v11 }
 0x817   : > { %v2849_v2 = vmul.f32 1.442695, %v2830_v4  ;;  %7304 = vpow2.f32 %v2843_v3 }
 0x818   : > { %v2798_v24 = vpop.xlane.xlu1 %2797  ;;  %v2808_v35 = vpop.xlane.xlu0 %2807 }
 0x819   : > { %v2828_v1 = vsub.f32 %v2735_v51, %v2798_v24  ;;  %v2833_v58 = vsub.f32 %v9518_v45, %v2808_v35  ;;  %7306 = vpow2.f32 %v2849_v2 }
 0x81b   : > { %v2845_v48 = vmul.f32 1.442695, %v2828_v1  ;;  %v2855_v6 = vmul.f32 1.442695, %v2833_v58 }
 0x81c   : > { %v2804_v34 = vpop.xlane.xlu1 %2803 }
 0x81d   : > { %v2831_v46 = vsub.f32 %v9521_v62, %v2804_v34  ;;  %7308 = vpow2.f32 %v2845_v48 }
 0x81e   : > { %v2806_v25 = vpop.xlane.xlu0 %2805  ;;  %7310 = vpow2.f32 %v2847_v8 }
 0x81f   : > { %v2851_v52 = vmul.f32 1.442695, %v2831_v46  ;;  %v2832_v27 = vsub.f32 %v9526_v55, %v2806_v25  ;;  %2338 = vadd.xlane.f32.xlu0 %v9393_v23 }
 0x820   : > { %v2810_v54 = vpop.xlane.xlu1 %2809 }
 0x821   : > { %v2853_v51 = vmul.f32 1.442695, %v2832_v27  ;;  %v2834_v57 = vsub.f32 %v9523_v18, %v2810_v54  ;;  %7312 = vpow2.f32 %v2851_v52 }
 0x823   : > { %7314 = vpow2.f32 %v2853_v51  ;;  %v2857_v45 = vmul.f32 1.442695, %v2834_v57  ;;  %2342 = vadd.xlane.f32.xlu0 %v9391_v33 }
 0x824   : > { %7316 = vpow2.f32 %v2855_v6  ;;  %v2816_v62 = vpop.xlane.xlu1 %2815  ;;  %v9608_v37 = vpop.eup %7304 }
 0x825   : > { %7318 = vpow2.f32 %v2857_v45  ;;  %v2837_v24 = vsub.f32 %v9530_v49, %v2816_v62 }
 0x826   : > { %v9610_v55 = vpop.eup %7306 }
 0x827   : > { %2346 = vadd.xlane.f32.xlu0 %v9431_v0 }
 0x828   : > { %v2812_v11 = vpop.xlane.xlu1 %2811 }
 0x829   : > { %v2835_v4 = vsub.f32 %v9533_v47, %v2812_v11 }
 0x82a   : > { %v9612_v23 = vpop.eup %7308 }
 0x82b   : > { %2350 = vadd.xlane.f32.xlu0 %v9428_v63  ;;  %v9616_v18 = vpop.eup %7310  ;;  %v2907_v33 = vpack.c.bf16 %v9612_v23, %v9608_v37  ;;  %v2859_v35 = vmul.f32 1.442695, %v2835_v4  ;;  %v3227_v63 = vsel %vm1652_vm0, %v9479_v15, 0  ;;  %v2863_v15 = vmul.f32 1.442695, %v2837_v24 }
 0x82c   : > { %v2818_v39 = vpop.xlane.xlu1 %2817  ;;  %v2908_v0 = vpack.c.bf16 %v9610_v55, %v9616_v18 }
 0x82d   : > { %v2838_v3 = vsub.f32 %v9536_v12, %v2818_v39  ;;  %6774 = vmatprep.mubr.bf16.mxu1 %v2907_v33  ;;  %7320 = vpow2.f32 %v2859_v35 }
 0x82e   : > { %v9624_v2 = vpop.eup %7312  ;;  %6775 = vmatmul.mubr.bf16.vlgmr.msra.gmra.mxu1 %v2908_v0 }
 0x82f   : > { %2354 = vadd.xlane.f32.xlu0 %v9449_v50  ;;  %v2865_v1 = vmul.f32 1.442695, %v2838_v3  ;;  %6791 = vmatpush3.bf16.xpose.msra.mxu1 %v3227_v63 }
 0x830   : > { %v9629_v47 = vpop.eup %7314  ;;  %v2814_v12 = vpop.xlane.xlu1 %2813  ;;  %6947 = vmatprep.subr.msk.bf16.mxu1 %vm1652_vm0, %v9586_v44 }
 0x831   : > { %v9631_v8 = vpop.eup %7316  ;;  %v2836_v49 = vsub.f32 %v9539_v29, %v2814_v12  ;;  %v2909_v48 = vpack.c.bf16 %v9629_v47, %v9624_v2  ;;  %7322 = vpow2.f32 %v2865_v1  ;;  %v3224_v29 = vsel %vm1652_vm0, %v9586_v44, 0 }
 0x832   : > { %v9638_v58 = vpop.eup %7318 }
 0x833   : > { %v2861_v50 = vmul.f32 1.442695, %v2836_v49  ;;  %2358 = vadd.xlane.f32.xlu0 %v9445_v21  ;;  %6778 = vmatprep.mubr.bf16.mxu1 %v2909_v48  ;;  %v2910_v34 = vpack.c.bf16 %v9638_v58, %v9631_v8  ;;  %v3221_v21 = vsel %vm1652_vm0, %v9590_v41, 0 }
 0x835   : > { %7324 = vpow2.f32 %v2861_v50  ;;  %v11749_v50 = vmov 0  }
 0x836   : > { %7326 = vpow2.f32 %v2863_v15  ;;  %6779 = vmatmul.mubr.bf16.gmra.mxu1 %v2910_v34 }
 0x837   : > { %2362 = vadd.xlane.f32.xlu0 %v9458_v19  ;;  %6793 = vmatpush3.bf16.xpose.msra.mxu1 %v3224_v29 }
 0x838   : > { %6948 = vmatprep.subr.msk.bf16.mxu1 %vm1652_vm0, %v9590_v41 }
 0x839   : > { %2336 = vadd.xlane.f32.xlu1 %v9387_v59 }
 0x83a   : > { %v9654_v46 = vpop.eup %7320 }
 0x83b   : > { %2366 = vadd.xlane.f32.xlu0 %v9467_v26  ;;  %v3218_v26 = vsel %vm1652_vm0, %v9594_v53, 0 }
 0x83d   : > { %2340 = vadd.xlane.f32.xlu1 %v9395_v60 }
 0x83e   : > { %v9656_v44 = vpop.eup %7322 }
 0x83f   : > { %1880 = vadd.xlane.f32.xlu0 %v9189_v17  ;;  %6795 = vmatpush3.bf16.xpose.msra.mxu1 %v3221_v21 }
 0x840   : > { %6949 = vmatprep.subr.msk.bf16.mxu1 %vm1652_vm0, %v9594_v53 }
 0x841   : > { %2344 = vadd.xlane.f32.xlu1 %v9426_v31  ;;  %v3172_v31 = vpop.permute.xlu1 %3171 }
 0x842   : > { %v9661_v59 = vpop.eup %7324 }
 0x843   : > { %v9663_v19 = vpop.eup %7326  ;;  %1884 = vadd.xlane.f32.xlu0 %v9187_v30  ;;  %v2911_v60 = vpack.c.bf16 %v9661_v59, %v9654_v46  ;;  %v3170_v30 = vpop.permute.xlu0 %3169 }
 0x844   : > { %v2912_v17 = vpack.c.bf16 %v9656_v44, %v9663_v19 }
 0x845   : > { %2348 = vadd.xlane.f32.xlu1 %v9433_v43  ;;  %6782 = vmatprep.mubr.bf16.mxu1 %v2911_v60  ;;  %v3215_v43 = vsel %vm1652_vm0, %v3172_v31, 0 }
 0x846   : > { %6783 = vmatmul.mubr.bf16.gmra.mxu1 %v2912_v17 }
 0x847   : > { %1888 = vadd.xlane.f32.xlu0 %v9205_v28  ;;  %6797 = vmatpush3.bf16.xpose.msra.mxu1 %v3218_v26  ;;  %v3212_v28 = vsel %vm1652_vm0, %v3170_v30, 0 }
 0x848   : > { %6950 = vmatprep.subr.msk.bf16.mxu1 %vm1652_vm0, %v3172_v31 }
 0x849   : > { %2352 = vadd.xlane.f32.xlu1 %v9443_v5 }
 0x84b   : > { %1892 = vadd.xlane.f32.xlu0 %v9203_v56 }
 0x84d   : > { %2356 = vadd.xlane.f32.xlu1 %v9451_v16 }
 0x84f   : > { %6799 = vmatpush3.bf16.xpose.msra.mxu1 %v3215_v43 }
 0x850   : > { %6951 = vmatprep.subr.msk.bf16.mxu1 %vm1652_vm0, %v3170_v30 }
 0x851   : > { %2360 = vadd.xlane.f32.xlu1 %v9461_v20 }
 0x853   : > { %v2824_v41 = vpop.xlane.xlu0 %2823 }
 0x855   : > { %2364 = vadd.xlane.f32.xlu1 %v9465_v10  ;;  %v2841_v10 = vsub.f32 %v9546_v14, %v2824_v41 }
 0x857   : > { %v2820_v53 = vpop.xlane.xlu0 %2819  ;;  %6801 = vmatpush3.bf16.xpose.msra.mxu1 %v3212_v28  ;;  %v2871_v6 = vmul.f32 1.442695, %v2841_v10 }
 0x858   : > { %v2839_v16 = vsub.f32 %v9549_v13, %v2820_v53 }
 0x859   : > { %1878 = vadd.xlane.f32.xlu1 %v9185_v32 }
 0x85a   : > { %v2867_v52 = vmul.f32 1.442695, %v2839_v16 }
 0x85b   : > { %v2826_v56 = vpop.xlane.xlu0 %2825 }
 0x85c   : > { %v2842_v20 = vsub.f32 %v9552_v38, %v2826_v56  ;;  %7328 = vpow2.f32 %v2867_v52 }
 0x85d   : > { %1882 = vadd.xlane.f32.xlu1 %v9191_v7 }
 0x85e   : > { %v2873_v27 = vmul.f32 1.442695, %v2842_v20 }
 0x85f   : > { %v3168_v5 = vpop.permute.xlu0 %3167 }
 0x860   : > { %6952 = vmatprep.subr.msk.bf16.mxu1 %vm1652_vm0, %v3168_v5  ;;  %v3209_v25 = vsel %vm1652_vm0, %v3168_v5, 0  ;;  %7330 = vpow2.f32 %v2873_v27 }
 0x861   : > { %1886 = vadd.xlane.f32.xlu1 %v9200_v40  ;;  %6803 = vmatpush3.bf16.xpose.msra.mxu1 %v3209_v25 }
 0x863   : > { %v3150_v13 = vpop.permute.xlu0 %3149 }
 0x865   : > { %1890 = vadd.xlane.f32.xlu1 %v9209_v61  ;;  %v2822_v32 = vpop.xlane.xlu1 %2821 }
 0x866   : > { %v2840_v7 = vsub.f32 %v9555_v9, %v2822_v32 }
 0x867   : > { %v3154_v14 = vpop.permute.xlu0 %3153 }
 0x868   : > { %v2869_v54 = vmul.f32 1.442695, %v2840_v7 }
 0x869   : > { %v3166_v51 = vpop.permute.xlu1 %3165  ;;  %v9695_v45 = vpop.eup %7328 }
 0x86a   : > { %7332 = vpow2.f32 %v2869_v54  ;;  %6953 = vmatprep.subr.msk.bf16.mxu1 %vm1652_vm0, %v3166_v51  ;;  %v3206_v40 = vsel %vm1652_vm0, %v3166_v51, 0  ;;  %v11750_v51 = vld [vmem:[#allocation58_spill] sm:$0xff] }
 0x86b   : > { %7334 = vpow2.f32 %v2871_v6  ;;  %6805 = vmatpush3.bf16.xpose.msra.mxu1 %v3206_v40  ;;  %v3158_v61 = vpop.permute.xlu0 %3157 }
 0x86d   : > { %v3152_v38 = vpop.permute.xlu1 %3151  ;;  %v9697_v62 = vpop.eup %7330 }
 0x86f   : > { %v3162_v33 = vpop.permute.xlu0 %3161 }
 0x871   : > { %v3156_v57 = vpop.permute.xlu1 %3155 }
 0x873   : > { %v3459_v35 = vpop.permute.xlu0 %3458 }
 0x875   : > { %v3160_v9 = vpop.permute.xlu1 %3159 }
 0x877   : > { %v9699_v11 = vpop.eup %7332  ;;  %v3451_v49 = vpop.permute.xlu0 %3450 }
 0x878   : > { %v9701_v4 = vpop.eup %7334  ;;  %v2913_v39 = vpack.c.bf16 %v9699_v11, %v9695_v45 }
 0x879   : > { %v3164_v3 = vpop.permute.xlu1 %3163  ;;  %v2914_v0 = vpack.c.bf16 %v9697_v62, %v9701_v4 }
 0x87a   : > { %6786 = vmatprep.mubr.bf16.mxu1 %v2913_v39 }
 0x87b   : > { %6787 = vmatmul.mubr.bf16.gmra.mxu1 %v2914_v0 }
 0x87c   : > { %6806 = vmatprep.mubr.msk.bf16.mxu1 %vm1652_vm0, %v3150_v13 }
 0x87d   : > { %v3461_v24 = vpop.permute.xlu1 %3460 }
 0x87e   : > { %6822 = vmatprep.subr.bf16.mxu0 %v3461_v24 }
 0x87f   : > { %6823 = vmatpush3.bf16.msra.mxu0 %v3461_v24  ;;  %v11754_v24 = vld [vmem:[#allocation61_spill] sm:$0xff] }
 0x880   : > { %6824 = vmatprep.subr.bf16.mxu0 %v3459_v35 }
 0x881   : > { %v3457_v63 = vpop.permute.xlu1 %3456 }
 0x883   : > { %6807 = vmatmul.mubr.msk.bf16.vlgmr.msra.gmra.mxu1 %vm1652_vm0, %v3152_v38  ;;  %6825 = vmatpush3.bf16.msra.mxu0 %v3459_v35 }
 0x884   : > { %6810 = vmatprep.mubr.msk.bf16.mxu1 %vm1652_vm0, %v3154_v14  ;;  %6826 = vmatprep.subr.bf16.mxu0 %v3457_v63 }
 0x885   : > { %v3455_v1 = vpop.permute.xlu1 %3454 }
 0x887   : > { %6827 = vmatpush3.bf16.msra.mxu0 %v3457_v63 }
 0x888   : > { %6828 = vmatprep.subr.bf16.mxu0 %v3455_v1 }
 0x889   : > { %v3453_v12 = vpop.permute.xlu1 %3452 }
 0x88b   : > { %6811 = vmatmul.mubr.msk.bf16.gmra.mxu1 %vm1652_vm0, %v3156_v57  ;;  %6829 = vmatpush3.bf16.msra.mxu0 %v3455_v1 }
 0x88c   : > { %6814 = vmatprep.mubr.msk.bf16.mxu1 %vm1652_vm0, %v3158_v61  ;;  %6830 = vmatprep.subr.bf16.mxu0 %v3453_v12  ;;  %v11752_v61 = vld [vmem:[#allocation57_spill] sm:$0xff] }
 0x88d   : > { %v3449_v48 = vpop.permute.xlu1 %3448 }
 0x88f   : > { %6831 = vmatpush3.bf16.msra.mxu0 %v3453_v12  ;;  %v11755_v12 = vld [vmem:[#allocation56_spill] sm:$0xff] }
 0x890   : > { %6832 = vmatprep.subr.bf16.mxu0 %v3451_v49 }
 0x891   : > { %v3447_v15 = vpop.permute.xlu1 %3446 }
 0x893   : > { %6815 = vmatmul.mubr.msk.bf16.gmra.mxu1 %vm1652_vm0, %v3160_v9  ;;  %6833 = vmatpush3.bf16.msra.mxu0 %v3451_v49 }
 0x894   : > { %6818 = vmatprep.mubr.msk.bf16.mxu1 %vm1652_vm0, %v3162_v33  ;;  %6834 = vmatprep.subr.bf16.mxu0 %v3449_v48  ;;  %v11753_v33 = vld [vmem:[#allocation62_spill] sm:$0xff] }
 0x897   : > { %6835 = vmatpush3.bf16.msra.mxu0 %v3449_v48  ;;  %v11756_v48 = vld [vmem:[#allocation55_spill] sm:$0xff] }
 0x898   : > { %6836 = vmatprep.subr.bf16.mxu0 %v3447_v15 }
 0x89b   : > { %6819 = vmatmul.mubr.msk.bf16.gmra.mxu1 %vm1652_vm0, %v3164_v3  ;;  %6837 = vmatpush3.bf16.msra.mxu0 %v3447_v15 }
 0x89c   : > { %4307 = vmatprep.mubr.bf16.mxu1 %v11749_v50 }
 0x8a8   : > { %v2339_v34 = vpop.xlane.xlu0 %2338 }
 0x8a9   : > { %7336 = vrcp.f32 %v2339_v34  ;;  %v11757_v34 = vld [vmem:[#allocation60_spill] sm:$0xff] }
 0x8ac   : > { %v2343_v29 = vpop.xlane.xlu0 %2342 }
 0x8b0   : > { %v9716_v21 = vpop.xlane.xlu0 %2346 }
 0x8b4   : > { %v9718_v60 = vpop.xlane.xlu0 %2350 }
 0x8b6   : > { %v7337_v17 = vpop.eup %7336 }
 0x8b7   : > { %v2522_v26 = vmul.f32 %v7337_v17, %v9489_v42  ;;  %v11758_v17 = vld [vmem:[#allocation59_spill] sm:$0xff] }
 0x8b8   : > { %v9721_v31 = vpop.xlane.xlu0 %2354 }
 0x8b9   : > { %2555 = vrot.lane.b32.xlu0 %v2522_v26, %s8120_s1 }
 0x8bc   : > { %v9724_v30 = vpop.xlane.xlu0 %2358 }
 0x8c0   : > { %v9726_v43 = vpop.xlane.xlu0 %2362 }
 0x8c2   : > { %v2337_v41 = vpop.xlane.xlu1 %2336 }
 0x8c3   : > { %7338 = vrcp.f32 %v2337_v41 }
 0x8c4   : > { %v9728_v28 = vpop.xlane.xlu0 %2366 }
 0x8c6   : > { %v2341_v53 = vpop.xlane.xlu1 %2340 }
 0x8c7   : > { %7340 = vrcp.f32 %v2341_v53 }
 0x8c8   : > { %7342 = vrcp.f32 %v2343_v29  ;;  %v1881_v56 = vpop.xlane.xlu0 %1880 }
 0x8c9   : > { %7344 = vrcp.f32 %v1881_v56 }
 0x8ca   : > { %v9730_v5 = vpop.xlane.xlu1 %2344 }
 0x8cc   : > { %v1885_v42 = vpop.xlane.xlu0 %1884 }
 0x8cd   : > { %7346 = vrcp.f32 %v1885_v42 }
 0x8ce   : > { %v9732_v16 = vpop.xlane.xlu1 %2348 }
 0x8d0   : > { %v7339_v25 = vpop.eup %7338  ;;  %v1889_v20 = vpop.xlane.xlu0 %1888 }
 0x8d1   : > { %7348 = vrcp.f32 %v1889_v20  ;;  %v2521_v10 = vmul.f32 %v7339_v25, %v9485_v36  ;;  %v11751_v36 = vld [vmem:[#allocation71_spill] sm:$0xff] }
 0x8d2   : > { %v9735_v52 = vpop.xlane.xlu1 %2352 }
 0x8d3   : > { %2553 = vrot.lane.b32.xlu1 %v2521_v10, %s8120_s1 }
 0x8d4   : > { %v7341_v27 = vpop.eup %7340  ;;  %v1893_v32 = vpop.xlane.xlu0 %1892 }
 0x8d5   : > { %v7343_v7 = vpop.eup %7342  ;;  %7350 = vrcp.f32 %v1893_v32  ;;  %v2523_v6 = vmul.f32 %v7341_v27, %v9483_v22 }
 0x8d6   : > { %v7345_v13 = vpop.eup %7344  ;;  %v9739_v54 = vpop.xlane.xlu1 %2356  ;;  %v2524_v14 = vmul.f32 %v7343_v7, %v11751_v36 }
 0x8d7   : > { %2557 = vrot.lane.b32.xlu1 %v2523_v6, %s8120_s1  ;;  %v2032_v40 = vmul.f32 %v7345_v13, %v11750_v51 }
 0x8d8   : > { %2881 = vadd.xlane.f32.xlu0 %v9610_v55 }
 0x8d9   : > { %2048 = vst.msk [vmem:[#allocation3 + $0x8] sm:$0xff] %vm1652_vm0, %v2032_v40 }
 0x8da   : > { %v7347_v38 = vpop.eup %7346  ;;  %v9746_v57 = vpop.xlane.xlu1 %2360 }
 0x8db   : > { %2559 = vrot.lane.b32.xlu1 %v2524_v14, %s8120_s1  ;;  %v2034_v22 = vmul.f32 %v7347_v38, %v11752_v61 }
 0x8dc   : > { %2877 = vadd.xlane.f32.xlu0 %v9612_v23 }
 0x8dd   : > { %2050 = vst.msk [vmem:[#allocation3 + $0x18] sm:$0xff] %vm1652_vm0, %v2034_v22 }
 0x8de   : > { %v7349_v9 = vpop.eup %7348  ;;  %v9752_v39 = vpop.xlane.xlu1 %2364 }
 0x8df   : > { %v2036_v55 = vmul.f32 %v7349_v9, %v11753_v33 }
 0x8e0   : > { %2889 = vadd.xlane.f32.xlu0 %v9638_v58 }
 0x8e1   : > { %2052 = vst.msk [vmem:[#allocation3 + $0x28] sm:$0xff] %vm1652_vm0, %v2036_v55 }
 0x8e2   : > { %v7351_v3 = vpop.eup %7350  ;;  %v1879_v0 = vpop.xlane.xlu1 %1878 }
 0x8e3   : > { %7352 = vrcp.f32 %v1879_v0  ;;  %v2038_v35 = vmul.f32 %v7351_v3, %v11754_v24 }
 0x8e4   : > { %2885 = vadd.xlane.f32.xlu0 %v9629_v47 }
 0x8e5   : > { %2054 = vst.msk [vmem:[#allocation3 + $0x38] sm:$0xff] %vm1652_vm0, %v2038_v35 }
 0x8e6   : > { %v1883_v23 = vpop.xlane.xlu1 %1882 }
 0x8e7   : > { %7354 = vrcp.f32 %v1883_v23 }
 0x8e8   : > { %2897 = vadd.xlane.f32.xlu0 %v9656_v44 }
 0x8ea   : > { %v1887_v63 = vpop.xlane.xlu1 %1886 }
 0x8eb   : > { %7356 = vrcp.f32 %v1887_v63 }
 0x8ec   : > { %2893 = vadd.xlane.f32.xlu0 %v9661_v59 }
 0x8ee   : > { %v1891_v58 = vpop.xlane.xlu1 %1890 }
 0x8ef   : > { %7358 = vrcp.f32 %v1891_v58 }
 0x8f0   : > { %v7353_v1 = vpop.eup %7352  ;;  %2905 = vadd.xlane.f32.xlu0 %v9697_v62  ;;  %v9776_v62 = vpop.f32.mrf.mxu1 }
 0x8f1   : > { %v2031_v49 = vmul.f32 %v7353_v1, %v11755_v12 }
 0x8f3   : > { %2047 = vst.msk [vmem:[#allocation3] sm:$0xff] %vm1652_vm0, %v2031_v49 }
 0x8f4   : > { %v7355_v47 = vpop.eup %7354  ;;  %2901 = vadd.xlane.f32.xlu0 %v9699_v11  ;;  %v9779_v11 = vpop.f32.mrf.mxu1 }
 0x8f5   : > { %v2033_v15 = vmul.f32 %v7355_v47, %v11756_v48 }
 0x8f6   : > { %v9782_v41 = vpop.f32.mrf.mxu1 }
 0x8f7   : > { %2049 = vst.msk [vmem:[#allocation3 + $0x10] sm:$0xff] %vm1652_vm0, %v2033_v15 }
 0x8f8   : > { %v7357_v44 = vpop.eup %7356 }
 0x8f9   : > { %v2035_v29 = vmul.f32 %v7357_v44, %v11757_v34 }
 0x8fb   : > { %2051 = vst.msk [vmem:[#allocation3 + $0x20] sm:$0xff] %vm1652_vm0, %v2035_v29 }
 0x8fc   : > { %v7359_v59 = vpop.eup %7358 }
 0x8fd   : > { %v2037_v26 = vmul.f32 %v7359_v59, %v11758_v17 }
 0x8ff   : > { %2879 = vadd.xlane.f32.xlu1 %v9616_v18  ;;  %2053 = vst.msk [vmem:[#allocation3 + $0x30] sm:$0xff] %vm1652_vm0, %v2037_v26  ;;  %v2976_v18 = vpop.f32.mrf.mxu1 }
 0x903   : > { %2875 = vadd.xlane.f32.xlu1 %v9608_v37  ;;  %v9786_v37 = vpop.f32.mrf.mxu1 }
 0x907   : > { %2887 = vadd.xlane.f32.xlu1 %v9631_v8  ;;  %v9788_v8 = vpop.f32.mrf.mxu1 }
 0x90b   : > { %2883 = vadd.xlane.f32.xlu1 %v9624_v2  ;;  %v9790_v2 = vpop.f32.mrf.mxu1 }
 0x90d   : > { %v9792_v53 = vpop.f32.mrf.mxu1 }
 0x90f   : > { %2895 = vadd.xlane.f32.xlu1 %v9663_v19 }
 0x913   : > { %2891 = vadd.xlane.f32.xlu1 %v9654_v46  ;;  %v9795_v46 = vpop.f32.mrf.mxu1 }
 0x915   : > { %v9797_v56 = vpop.f32.mrf.mxu1 }
 0x917   : > { %2903 = vadd.xlane.f32.xlu1 %v9701_v4  ;;  %v9799_v4 = vpop.f32.mrf.mxu1 }
 0x919   : > { %v9801_v42 = vpop.f32.mrf.mxu1 }
 0x91b   : > { %2899 = vadd.xlane.f32.xlu1 %v9695_v45 }
 0x92b   : > { %v2556_v19 = vpop.permute.xlu0 %2555 }
 0x92c   : > { %2603 = vst.msk [vmem:[#allocation3 + $0x8] sm:$0xff] %vm2601_vm1, %v2556_v19 }
 0x93b   : > { %v9803_v45 = vpop.f32.mrf.mxu1 }
 0x93d   : > { %v9805_v25 = vpop.f32.mrf.mxu1 }
 0x93f   : > { %v9807_v20 = vpop.f32.mrf.mxu1 }
 0x940   : > { %11759 = vst [vmem:[#allocation58_spill] sm:$0xff] %v9807_v20 }
 0x941   : > { %v9809_v10 = vpop.f32.mrf.mxu1 }
 0x942   : > { %11760 = vst [vmem:[#allocation71_spill] sm:$0xff] %v9809_v10 }
 0x943   : > { %v9811_v27 = vpop.f32.mrf.mxu1 }
 0x944   : > { %3330 = vmax.xlane.f32.xlu0 %v9811_v27 }
 0x945   : > { %v9814_v32 = vpop.f32.mrf.mxu1  ;;  %v2554_v7 = vpop.permute.xlu1 %2553 }
 0x946   : > { %2602 = vst.msk [vmem:[#allocation3] sm:$0xff] %vm2601_vm1, %v2554_v7 }
 0x947   : > { %v9817_v6 = vpop.f32.mrf.mxu1 }
 0x948   : > { %3326 = vmax.xlane.f32.xlu0 %v9814_v32 }
 0x949   : > { %v9820_v13 = vpop.f32.mrf.mxu1  ;;  %v2558_v51 = vpop.permute.xlu1 %2557 }
 0x94a   : > { %2604 = vst.msk [vmem:[#allocation3 + $0x10] sm:$0xff] %vm2601_vm1, %v2558_v51  ;;  %3328 = vmax.xlane.f32.xlu1 %v9820_v13 }
 0x94b   : > { %v9824_v40 = vpop.f32.mrf.mxu1 }
 0x94c   : > { %3332 = vmax.xlane.f32.xlu0 %v9817_v6 }
 0x94d   : > { %v9827_v36 = vpop.f32.mrf.mxu1  ;;  %v2560_v14 = vpop.permute.xlu1 %2559 }
 0x94e   : > { %2605 = vst.msk [vmem:[#allocation3 + $0x18] sm:$0xff] %vm2601_vm1, %v2560_v14 }
 0x94f   : > { %v9830_v38 = vpop.f32.mrf.mxu1 }
 0x950   : > { %3338 = vmax.xlane.f32.xlu0 %v9824_v40 }
 0x951   : > { %v9833_v61 = vpop.f32.mrf.mxu1 }
 0x952   : > { %3336 = vmax.xlane.f32.xlu1 %v9833_v61 }
 0x953   : > { %v9836_v22 = vpop.f32.mrf.mxu1 }
 0x954   : > { %3334 = vmax.xlane.f32.xlu0 %v9827_v36 }
 0x955   : > { %v9839_v9 = vpop.f32.mrf.mxu1 }
 0x957   : > { %v9841_v33 = vpop.f32.mrf.mxu1 }
 0x958   : > { %3340 = vmax.xlane.f32.xlu0 %v9830_v38 }
 0x959   : > { %v9844_v55 = vpop.f32.mrf.mxu1 }
 0x95a   : > { %3344 = vmax.xlane.f32.xlu1 %v9844_v55 }
 0x95b   : > { %v9851_v58 = vpop.f32.mrf.mxu1 }
 0x95c   : > { %3346 = vmax.xlane.f32.xlu0 %v9836_v22 }
 0x95d   : > { %v9855_v49 = vpop.f32.mrf.mxu1 }
 0x95f   : > { %v9867_v17 = vpop.f32.mrf.mxu1 }
 0x960   : > { %3342 = vmax.xlane.f32.xlu0 %v9839_v9 }
 0x961   : > { %v2882_v3 = vpop.xlane.xlu0 %2881 }
 0x964   : > { %3348 = vmax.xlane.f32.xlu0 %v9841_v33 }
 0x965   : > { %v2878_v0 = vpop.xlane.xlu0 %2877 }
 0x966   : > { %7360 = vrcp.f32 %v2878_v0 }
 0x969   : > { %v2890_v48 = vpop.xlane.xlu0 %2889 }
 0x96d   : > { %v2886_v44 = vpop.xlane.xlu0 %2885 }
 0x971   : > { %v9863_v29 = vpop.xlane.xlu0 %2897 }
 0x973   : > { %v7361_v24 = vpop.eup %7360 }
 0x974   : > { %v3053_v35 = vmul.f32 %v7361_v24, %v2976_v18  ;;  %v9874_v18 = vpop.f32.mrf.mxu1 }
 0x975   : > { %v9870_v26 = vpop.xlane.xlu0 %2893 }
 0x976   : > { %3086 = vrot.lane.b32.xlu1 %v3053_v35, %s8119_s29 }
 0x988   : > { %v2880_v23 = vpop.xlane.xlu1 %2879 }
 0x98c   : > { %v2876_v63 = vpop.xlane.xlu1 %2875 }
 0x98d   : > { %7362 = vrcp.f32 %v2876_v63 }
 0x98e   : > { %7364 = vrcp.f32 %v2882_v3 }
 0x98f   : > { %7366 = vrcp.f32 %v2880_v23 }
 0x990   : > { %v9861_v34 = vpop.xlane.xlu1 %2887  ;;  %7368 = vrcp.f32 %v9716_v21 }
 0x991   : > { %7370 = vrcp.f32 %v9718_v60 }
 0x994   : > { %v9865_v59 = vpop.xlane.xlu1 %2883 }
 0x99a   : > { %v7363_v1 = vpop.eup %7362  ;;  %3354 = vmax.xlane.f32.xlu1 %v9851_v58 }
 0x99b   : > { %v3052_v12 = vmul.f32 %v7363_v1, %v9779_v11  ;;  %v7365_v47 = vpop.eup %7364  ;;  %v9872_v11 = vpop.xlane.xlu1 %2895  ;;  %v11761_v1 = vld [vmem:[#allocation47_spill] sm:$0xff] }
 0x99c   : > { %v3055_v15 = vmul.f32 %v7365_v47, %v9782_v41  ;;  %v9877_v41 = vpop.xlane.xlu0 %2905  ;;  %v7367_v0 = vpop.eup %7366 }
 0x99d   : > { %3084 = vrot.lane.b32.xlu0 %v3052_v12, %s8119_s29  ;;  %v3054_v23 = vmul.f32 %v7367_v0, %v9776_v62 }
 0x99e   : > { %3350 = vmax.xlane.f32.xlu1 %v9855_v49 }
 0x99f   : > { %v9879_v19 = vpop.xlane.xlu1 %2891 }
 0x9a0   : > { %v9881_v7 = vpop.xlane.xlu0 %2901 }
 0x9a3   : > { %v9883_v51 = vpop.xlane.xlu1 %2903 }
 0x9a7   : > { %v9885_v3 = vpop.xlane.xlu1 %2899 }
 0x9af   : > { %3090 = vrot.lane.b32.xlu1 %v3055_v15, %s8119_s29 }
 0x9bc   : > { %3356 = vmax.xlane.f32.xlu0 %v9867_v17 }
 0x9c0   : > { %3352 = vmax.xlane.f32.xlu0 %v9874_v18 }
 0x9cd   : > { %v3331_v14 = vpop.xlane.xlu0 %3330 }
 0x9ce   : > { %v3360_v24 = vsub.f32 %v9811_v27, %v3331_v14 }
 0x9d0   : > { %v3378_v50 = vmul.f32 1.442695, %v3360_v24 }
 0x9d1   : > { %v3327_v35 = vpop.xlane.xlu0 %3326 }
 0x9d2   : > { %v3358_v63 = vsub.f32 %v9814_v32, %v3327_v35  ;;  %v11762_v32 = vld [vmem:[#allocation51_spill] sm:$0xff] }
 0x9d3   : > { %1896 = vadd.xlane.f32.xlu1 %v11761_v1  ;;  %v3329_v12 = vpop.xlane.xlu1 %3328 }
 0x9d4   : > { %v3374_v47 = vmul.f32 1.442695, %v3358_v63  ;;  %v3359_v15 = vsub.f32 %v9820_v13, %v3329_v12 }
 0x9d5   : > { %v3333_v20 = vpop.xlane.xlu0 %3332 }
 0x9d6   : > { %v3376_v10 = vmul.f32 1.442695, %v3359_v15  ;;  %v3361_v27 = vsub.f32 %v9817_v6, %v3333_v20  ;;  %3088 = vrot.lane.b32.xlu0 %v3054_v23, %s8119_s29  ;;  %7372 = vpow2.f32 %v3374_v47  ;;  %v11763_v15 = vld [vmem:[#allocation75_spill] sm:$0xff] }
 0x9d7   : > { %1900 = vadd.xlane.f32.xlu1 %v11762_v32 }
 0x9d8   : > { %7374 = vpow2.f32 %v3376_v10  ;;  %v3380_v14 = vmul.f32 1.442695, %v3361_v27  ;;  %v7369_v10 = vpop.eup %7368 }
 0x9d9   : > { %7376 = vpow2.f32 %v3378_v50  ;;  %v3339_v13 = vpop.xlane.xlu0 %3338  ;;  %v7371_v1 = vpop.eup %7370  ;;  %v2526_v23 = vmul.f32 %v7369_v10, %v11763_v15 }
 0x9da   : > { %7378 = vpow2.f32 %v3380_v14  ;;  %v3364_v0 = vsub.f32 %v9824_v40, %v3339_v13 }
 0x9db   : > { %v3337_v62 = vpop.xlane.xlu1 %3336  ;;  %7380 = vrcp.f32 %v2886_v44 }
 0x9dc   : > { %v3363_v21 = vsub.f32 %v9833_v61, %v3337_v62  ;;  %7382 = vrcp.f32 %v2890_v48  ;;  %v3386_v35 = vmul.f32 1.442695, %v3364_v0  ;;  %v11764_v0 = vld [vmem:[#allocation74_spill] sm:$0xff] }
 0x9dd   : > { %v3335_v24 = vpop.xlane.xlu0 %3334 }
 0x9de   : > { %v3384_v60 = vmul.f32 1.442695, %v3363_v21  ;;  %v3362_v20 = vsub.f32 %v9827_v36, %v3335_v24  ;;  %v2528_v24 = vmul.f32 %v7371_v1, %v11764_v0 }
 0x9e0   : > { %v3382_v6 = vmul.f32 1.442695, %v3362_v20  ;;  %7384 = vpow2.f32 %v3384_v60 }
 0x9e1   : > { %v3341_v63 = vpop.xlane.xlu0 %3340 }
 0x9e2   : > { %7386 = vpow2.f32 %v3382_v6  ;;  %v3365_v50 = vsub.f32 %v9830_v38, %v3341_v63 }
 0x9e3   : > { %v3345_v12 = vpop.xlane.xlu1 %3344  ;;  %v9901_v47 = vpop.eup %7372  ;;  %7388 = vpow2.f32 %v3386_v35 }
 0x9e4   : > { %v3388_v61 = vmul.f32 1.442695, %v3365_v50  ;;  %v3367_v44 = vsub.f32 %v9844_v55, %v3345_v12 }
 0x9e5   : > { %v9903_v40 = vpop.eup %7374  ;;  %v3347_v36 = vpop.xlane.xlu0 %3346 }
 0x9e6   : > { %v9906_v48 = vpop.eup %7376  ;;  %7390 = vpow2.f32 %v3388_v61  ;;  %v3438_v27 = vpack.c.bf16 %v9903_v40, %v9901_v47  ;;  %v3392_v55 = vmul.f32 1.442695, %v3367_v44  ;;  %v3368_v13 = vsub.f32 %v9836_v22, %v3347_v36 }
 0x9e7   : > { %v9911_v38 = vpop.eup %7378 }
 0x9e8   : > { %2563 = vrot.lane.b32.xlu1 %v2526_v23, %s8120_s1  ;;  %6838 = vmatprep.mubr.bf16.mxu0 %v3438_v27  ;;  %v3087_v32 = vpop.permute.xlu1 %3086  ;;  %v3439_v14 = vpack.c.bf16 %v9911_v38, %v9906_v48  ;;  %v7381_v60 = vpop.eup %7380  ;;  %7392 = vpow2.f32 %v3392_v55  ;;  %v3394_v35 = vmul.f32 1.442695, %v3368_v13  ;;  %v11765_v23 = vld [vmem:[#allocation48_spill] sm:$0xff] }
 0x9e9   : > { %3134 = vst.msk [vmem:[#allocation3 + $0x8] sm:$0xff] %vm3132_vm2, %v3087_v32  ;;  %v3343_v62 = vpop.xlane.xlu0 %3342  ;;  %v7383_v6 = vpop.eup %7382  ;;  %v3057_v50 = vmul.f32 %v7381_v60, %v9792_v53  ;;  %v11766_v53 = vld [vmem:[#allocation50_spill] sm:$0xff] }
 0x9ea   : > { %v3366_v21 = vsub.f32 %v9839_v9, %v3343_v62  ;;  %6839 = vmatmul.mubr.bf16.vlgmr.msra.gmra.mxu0 %v3439_v14  ;;  %v3059_v44 = vmul.f32 %v7383_v6, %v9790_v2  ;;  %v11767_v62 = vld [vmem:[#allocation73_spill] sm:$0xff] }
 0x9ec   : > { %v3390_v20 = vmul.f32 1.442695, %v3366_v21  ;;  %2567 = vrot.lane.b32.xlu1 %v2528_v24, %s8120_s1 }
 0x9ed   : > { %v3349_v63 = vpop.xlane.xlu0 %3348  ;;  %v9921_v10 = vpop.eup %7384 }
 0x9ee   : > { %7394 = vpow2.f32 %v3390_v20  ;;  %v3369_v22 = vsub.f32 %v9841_v33, %v3349_v63 }
 0x9ef   : > { %v7387_v12 = vpop.eup %7386  ;;  %7396 = vpow2.f32 %v3394_v35  ;;  %v11770_v35 = vld [vmem:[#allocation53_spill] sm:$0xff] }
 0x9f0   : > { %v3396_v9 = vmul.f32 1.442695, %v3369_v22  ;;  %3094 = vrot.lane.b32.xlu1 %v3057_v50, %s8119_s29  ;;  %v3440_v1 = vpack.c.bf16 %v9921_v10, %v7387_v12  ;;  %v7389_v61 = vpop.eup %7388 }
 0x9f2   : > { %7398 = vpow2.f32 %v3396_v9  ;;  %6842 = vmatprep.mubr.bf16.mxu0 %v3440_v1 }
 0x9f3   : > { %v7391_v36 = vpop.eup %7390  ;;  %7400 = vrcp.f32 %v9730_v5  ;;  %v11768_v5 = vld [vmem:[#allocation72_spill] sm:$0xff] }
 0x9f4   : > { %3098 = vrot.lane.b32.xlu1 %v3059_v44, %s8119_s29  ;;  %v3441_v15 = vpack.c.bf16 %v7391_v36, %v7389_v61  ;;  %7402 = vrcp.f32 %v9732_v16 }
 0x9f5   : > { %1894 = vadd.xlane.f32.xlu0 %v11765_v23  ;;  %v9931_v33 = vpop.eup %7392  ;;  %7404 = vrcp.f32 %v9865_v59 }
 0x9f6   : > { %6843 = vmatmul.mubr.bf16.gmra.mxu0 %v3441_v15  ;;  %7406 = vrcp.f32 %v9861_v34  ;;  %v11769_v34 = vld [vmem:[#allocation49_spill] sm:$0xff] }
 0x9f7   : > { %7408 = vrcp.f32 %v9721_v31 }
 0x9f9   : > { %1898 = vadd.xlane.f32.xlu0 %v11766_v53 }
 0x9fb   : > { %v7395_v27 = vpop.eup %7394 }
 0x9fc   : > { %v3442_v32 = vpack.c.bf16 %v9931_v33, %v7395_v27  ;;  %v7397_v14 = vpop.eup %7396 }
 0x9fe   : > { %6846 = vmatprep.mubr.bf16.mxu0 %v3442_v32 }
 0x9ff   : > { %v7399_v55 = vpop.eup %7398 }
 0xa00   : > { %v3443_v2 = vpack.c.bf16 %v7399_v55, %v7397_v14  ;;  %v7401_v13 = vpop.eup %7400 }
 0xa01   : > { %v2525_v21 = vmul.f32 %v7401_v13, %v11767_v62  ;;  %v7403_v0 = vpop.eup %7402 }
 0xa02   : > { %6847 = vmatmul.mubr.bf16.gmra.mxu0 %v3443_v2  ;;  %v2527_v60 = vmul.f32 %v7403_v0, %v11768_v5  ;;  %v7405_v20 = vpop.eup %7404 }
 0xa03   : > { %v3056_v16 = vmul.f32 %v7405_v20, %v9788_v8  ;;  %v7407_v6 = vpop.eup %7406  ;;  %v11772_v8 = vld [vmem:[#allocation54_spill] sm:$0xff] }
 0xa04   : > { %v3058_v59 = vmul.f32 %v7407_v6, %v9786_v37  ;;  %v11771_v37 = vld [vmem:[#allocation52_spill] sm:$0xff]  ;;  %v7409_v9 = vpop.eup %7408 }
 0xa0f   : > { %2561 = vrot.lane.b32.xlu0 %v2525_v21, %s8120_s1  ;;  %v3085_v24 = vpop.permute.xlu0 %3084  ;;  %v11775_v21 = vld [vmem:[#allocation66_spill] sm:$0xff] }
 0xa10   : > { %3133 = vst.msk [vmem:[#allocation3] sm:$0xff] %vm3132_vm2, %v3085_v24 }
 0xa13   : > { %2565 = vrot.lane.b32.xlu0 %v2527_v60, %s8120_s1  ;;  %v11776_v60 = vld [vmem:[#allocation65_spill] sm:$0xff] }
 0xa17   : > { %3092 = vrot.lane.b32.xlu0 %v3056_v16, %s8119_s29 }
 0xa18   : > { %1904 = vadd.xlane.f32.xlu1 %v11769_v34 }
 0xa1b   : > { %3096 = vrot.lane.b32.xlu0 %v3058_v59, %s8119_s29 }
 0xa1c   : > { %1908 = vadd.xlane.f32.xlu1 %v11770_v35 }
 0xa20   : > { %3410 = vadd.xlane.f32.xlu1 %v9906_v48  ;;  %v11773_v48 = vld [vmem:[#allocation79_spill] sm:$0xff] }
 0xa21   : > { %v2530_v1 = vmul.f32 %v7409_v9, %v11773_v48  ;;  %v11778_v9 = vld [vmem:[#allocation63_spill] sm:$0xff] }
 0xa23   : > { %v3355_v63 = vpop.xlane.xlu1 %3354 }
 0xa24   : > { %3406 = vadd.xlane.f32.xlu1 %v9901_v47  ;;  %v3372_v31 = vsub.f32 %v9851_v58, %v3355_v63 }
 0xa27   : > { %v3351_v22 = vpop.xlane.xlu1 %3350 }
 0xa28   : > { %3418 = vadd.xlane.f32.xlu1 %v7389_v61  ;;  %v3370_v47 = vsub.f32 %v9855_v49, %v3351_v22  ;;  %v11777_v22 = vld [vmem:[#allocation64_spill] sm:$0xff] }
 0xa2a   : > { %v3398_v44 = vmul.f32 1.442695, %v3370_v47 }
 0xa2b   : > { %v3091_v50 = vpop.permute.xlu1 %3090 }
 0xa2c   : > { %3136 = vst.msk [vmem:[#allocation3 + $0x18] sm:$0xff] %vm3132_vm2, %v3091_v50  ;;  %3414 = vadd.xlane.f32.xlu1 %v7387_v12  ;;  %7410 = vpow2.f32 %v3398_v44 }
 0xa30   : > { %3426 = vadd.xlane.f32.xlu1 %v7397_v14 }
 0xa34   : > { %3422 = vadd.xlane.f32.xlu1 %v7395_v27 }
 0xa39   : > { %v7411_v58 = vpop.eup %7410 }
 0xa3a   : > { %1902 = vadd.xlane.f32.xlu0 %v11771_v37 }
 0xa3e   : > { %1906 = vadd.xlane.f32.xlu0 %v11772_v8 }
 0xa42   : > { %3412 = vadd.xlane.f32.xlu0 %v9911_v38  ;;  %v3402_v38 = vmul.f32 1.442695, %v3372_v31 }
 0xa45   : > { %2571 = vrot.lane.b32.xlu1 %v2530_v1, %s8120_s1  ;;  %v3357_v61 = vpop.xlane.xlu0 %3356 }
 0xa46   : > { %v3373_v12 = vsub.f32 %v9867_v17, %v3357_v61  ;;  %3408 = vadd.xlane.f32.xlu0 %v9903_v40 }
 0xa48   : > { %v3404_v15 = vmul.f32 1.442695, %v3373_v12 }
 0xa49   : > { %v3353_v23 = vpop.xlane.xlu0 %3352 }
 0xa4a   : > { %v3371_v53 = vsub.f32 %v9874_v18, %v3353_v23  ;;  %3420 = vadd.xlane.f32.xlu0 %v7391_v36  ;;  %7412 = vpow2.f32 %v3404_v15  ;;  %v11779_v15 = vld [vmem:[#allocation70_spill] sm:$0xff] }
 0xa4c   : > { %v3400_v27 = vmul.f32 1.442695, %v3371_v53 }
 0xa4d   : > { %v3089_v49 = vpop.permute.xlu0 %3088 }
 0xa4e   : > { %7414 = vpow2.f32 %v3400_v27  ;;  %3135 = vst.msk [vmem:[#allocation3 + $0x10] sm:$0xff] %vm3132_vm2, %v3089_v49  ;;  %3416 = vadd.xlane.f32.xlu0 %v9921_v10  ;;  %v11780_v27 = vld [vmem:[#allocation69_spill] sm:$0xff] }
 0xa4f   : > { %7416 = vpow2.f32 %v3402_v38 }
 0xa50   : > { %7418 = vrcp.f32 %v9735_v52  ;;  %v11774_v52 = vld [vmem:[#allocation77_spill] sm:$0xff] }
 0xa52   : > { %3428 = vadd.xlane.f32.xlu0 %v7399_v55 }
 0xa56   : > { %3424 = vadd.xlane.f32.xlu0 %v9931_v33 }
 0xa57   : > { %v7413_v17 = vpop.eup %7412 }
 0xa5b   : > { %v7415_v18 = vpop.eup %7414 }
 0xa5c   : > { %v7417_v40 = vpop.eup %7416  ;;  %v1897_v36 = vpop.xlane.xlu1 %1896  ;;  %v3444_v32 = vpack.c.bf16 %v7415_v18, %v7411_v58 }
 0xa5d   : > { %7420 = vrcp.f32 %v1897_v36  ;;  %v3445_v14 = vpack.c.bf16 %v7413_v17, %v7417_v40  ;;  %v7419_v10 = vpop.eup %7418 }
 0xa5e   : > { %6850 = vmatprep.mubr.bf16.mxu0 %v3444_v32  ;;  %v2529_v62 = vmul.f32 %v7419_v10, %v11774_v52  ;;  %v11781_v10 = vld [vmem:[#allocation76_spill] sm:$0xff] }
 0xa5f   : > { %6851 = vmatmul.mubr.bf16.gmra.mxu0 %v3445_v14 }
 0xa60   : > { %v1901_v2 = vpop.xlane.xlu1 %1900 }
 0xa61   : > { %7422 = vrcp.f32 %v1901_v2 }
 0xa64   : > { %v2564_v13 = vpop.permute.xlu1 %2563 }
 0xa65   : > { %2607 = vst.msk [vmem:[#allocation3 + $0x28] sm:$0xff] %vm2601_vm1, %v2564_v13  ;;  %v7192_v13 = vld [vmem:[%s8510_s13 + $0x38] sm:$0xff]  }
 0xa66   : > { %6854 = vmatprep.subr.bf16.mxu0 %v7192_v13 }
 0xa67   : > { %6855 = vmatpush3.bf16.msra.mxu0 %v7192_v13 }
 0xa68   : > { %v2568_v55 = vpop.permute.xlu1 %2567 }
 0xa69   : > { %2609 = vst.msk [vmem:[#allocation3 + $0x38] sm:$0xff] %vm2601_vm1, %v2568_v55  ;;  %3434 = vadd.xlane.f32.xlu1 %v7417_v40 }
 0xa6a   : > { %v7421_v33 = vpop.eup %7420 }
 0xa6b   : > { %v2040_v0 = vmul.f32 %v7421_v33, %v11775_v21  ;;  %v7193_v21 = vld [vmem:[%s8510_s13 + $0x30] sm:$0xff]  }
 0xa6c   : > { %2569 = vrot.lane.b32.xlu0 %v2529_v62, %s8120_s1  ;;  %v3095_v24 = vpop.permute.xlu1 %3094  ;;  %6856 = vmatprep.subr.bf16.mxu0 %v7193_v21 }
 0xa6d   : > { %3138 = vst.msk [vmem:[#allocation3 + $0x28] sm:$0xff] %vm3132_vm2, %v3095_v24  ;;  %3430 = vadd.xlane.f32.xlu1 %v7411_v58  ;;  %6857 = vmatpush3.bf16.msra.mxu0 %v7193_v21 }
 0xa6e   : > { %2056 = vst.msk [vmem:[#allocation3 + $0x48] sm:$0xff] %vm1652_vm0, %v2040_v0  ;;  %v7423_v5 = vpop.eup %7422 }
 0xa6f   : > { %v2042_v20 = vmul.f32 %v7423_v5, %v11776_v60  ;;  %v7194_v60 = vld [vmem:[%s8510_s13 + $0x28] sm:$0xff]  }
 0xa70   : > { %v3099_v16 = vpop.permute.xlu1 %3098  ;;  %6858 = vmatprep.subr.bf16.mxu0 %v7194_v60 }
 0xa71   : > { %3140 = vst.msk [vmem:[#allocation3 + $0x38] sm:$0xff] %vm3132_vm2, %v3099_v16  ;;  %6859 = vmatpush3.bf16.msra.mxu0 %v7194_v60 }
 0xa72   : > { %2058 = vst.msk [vmem:[#allocation3 + $0x58] sm:$0xff] %vm1652_vm0, %v2042_v20 }
 0xa7e   : > { %v1895_v6 = vpop.xlane.xlu0 %1894 }
 0xa7f   : > { %7424 = vrcp.f32 %v1895_v6 }
 0xa82   : > { %v1899_v34 = vpop.xlane.xlu0 %1898 }
 0xa83   : > { %7426 = vrcp.f32 %v1899_v34  ;;  %v7195_v34 = vld [vmem:[%s8510_s13 + $0x20] sm:$0xff]  }
 0xa84   : > { %6860 = vmatprep.subr.bf16.mxu0 %v7195_v34 }
 0xa85   : > { %6861 = vmatpush3.bf16.msra.mxu0 %v7195_v34 }
 0xa86   : > { %v2562_v59 = vpop.permute.xlu0 %2561 }
 0xa87   : > { %2606 = vst.msk [vmem:[#allocation3 + $0x20] sm:$0xff] %vm2601_vm1, %v2562_v59 }
 0xa8a   : > { %v2566_v35 = vpop.permute.xlu0 %2565 }
 0xa8b   : > { %2608 = vst.msk [vmem:[#allocation3 + $0x30] sm:$0xff] %vm2601_vm1, %v2566_v35  ;;  %3436 = vadd.xlane.f32.xlu0 %v7413_v17 }
 0xa8c   : > { %v7425_v63 = vpop.eup %7424 }
 0xa8d   : > { %v2039_v50 = vmul.f32 %v7425_v63, %v11777_v22  ;;  %v7196_v22 = vld [vmem:[%s8510_s13 + $0x18] sm:$0xff]  }
 0xa8e   : > { %v3093_v37 = vpop.permute.xlu0 %3092  ;;  %6862 = vmatprep.subr.bf16.mxu0 %v7196_v22 }
 0xa8f   : > { %3137 = vst.msk [vmem:[#allocation3 + $0x20] sm:$0xff] %vm3132_vm2, %v3093_v37  ;;  %3432 = vadd.xlane.f32.xlu0 %v7415_v18  ;;  %6863 = vmatpush3.bf16.msra.mxu0 %v7196_v22  ;;  %v11789_v22 = vld [vmem:[#allocation71_spill] sm:$0xff] }
 0xa90   : > { %2055 = vst.msk [vmem:[#allocation3 + $0x40] sm:$0xff] %vm1652_vm0, %v2039_v50  ;;  %v7427_v8 = vpop.eup %7426 }
 0xa91   : > { %v2041_v48 = vmul.f32 %v7427_v8, %v11778_v9 }
 0xa92   : > { %v3097_v1 = vpop.permute.xlu0 %3096 }
 0xa93   : > { %3139 = vst.msk [vmem:[#allocation3 + $0x30] sm:$0xff] %vm3132_vm2, %v3097_v1  ;;  %v7197_v1 = vld [vmem:[%s8510_s13 + $0x10] sm:$0xff]  }
 0xa94   : > { %2057 = vst.msk [vmem:[#allocation3 + $0x50] sm:$0xff] %vm1652_vm0, %v2041_v48  ;;  %6864 = vmatprep.subr.bf16.mxu0 %v7197_v1 }
 0xa95   : > { %6865 = vmatpush3.bf16.msra.mxu0 %v7197_v1 }
 0xaa1   : > { %v1905_v47 = vpop.xlane.xlu1 %1904 }
 0xaa2   : > { %7428 = vrcp.f32 %v1905_v47  ;;  %v11782_v47 = vld [vmem:[#allocation68_spill] sm:$0xff] }
 0xaa5   : > { %v1909_v61 = vpop.xlane.xlu1 %1908 }
 0xaa6   : > { %7430 = vrcp.f32 %v1909_v61 }
 0xaa9   : > { %v3411_v12 = vpop.xlane.xlu1 %3410 }
 0xaaa   : > { %7432 = vrcp.f32 %v3411_v12  ;;  %v6840_v18 = vpop.f32.mrf.mxu0 }
 0xaac   : > { %v3504_v32 = vpop.f32.mrf.mxu0 }
 0xaad   : > { %v3407_v31 = vpop.xlane.xlu1 %3406 }
 0xaae   : > { %7434 = vrcp.f32 %v3407_v31  ;;  %v9996_v52 = vpop.f32.mrf.mxu0  ;;  %v11783_v31 = vld [vmem:[#allocation81_spill] sm:$0xff] }
 0xaaf   : > { %v7429_v44 = vpop.eup %7428  ;;  %7436 = vrcp.f32 %v9739_v54 }
 0xab0   : > { %v2044_v23 = vmul.f32 %v7429_v44, %v11779_v15  ;;  %7438 = vrcp.f32 %v9879_v19  ;;  %v10003_v5 = vpop.f32.mrf.mxu0 }
 0xab1   : > { %v3419_v53 = vpop.xlane.xlu1 %3418 }
 0xab2   : > { %2060 = vst.msk [vmem:[#allocation3 + $0x68] sm:$0xff] %vm1652_vm0, %v2044_v23  ;;  %7440 = vrcp.f32 %v3419_v53  ;;  %v7198_v23 = vld [vmem:[%s8510_s13 + $0x8] sm:$0xff]  }
 0xab3   : > { %v7431_v38 = vpop.eup %7430  ;;  %6866 = vmatprep.subr.bf16.mxu0 %v7198_v23 }
 0xab4   : > { %v2046_v49 = vmul.f32 %v7431_v38, %v11780_v27  ;;  %6867 = vmatpush3.bf16.msra.mxu0 %v7198_v23 }
 0xab5   : > { %v3415_v58 = vpop.xlane.xlu1 %3414 }
 0xab6   : > { %2062 = vst.msk [vmem:[#allocation3 + $0x78] sm:$0xff] %vm1652_vm0, %v2046_v49  ;;  %7442 = vrcp.f32 %v3415_v58  ;;  %v6844_v20 = vpop.f32.mrf.mxu0 }
 0xab7   : > { %v7433_v17 = vpop.eup %7432  ;;  %7444 = vrcp.f32 %v9872_v11 }
 0xab8   : > { %v3585_v40 = vmul.f32 %v7433_v17, %v6840_v18  ;;  %7446 = vrcp.f32 %v9746_v57  ;;  %v7199_v17 = vld [vmem:[%s8510_s13] sm:$0xff]   ;;  %s11793_s13 = scalar_lea.vmem %s11792_s14, %s8532_s4 }
 0xab9   : > { %v3427_v36 = vpop.xlane.xlu1 %3426  ;;  %6868 = vmatprep.subr.bf16.mxu0 %v7199_v17 }
 0xaba   : > { %3619 = vrot.lane.b32.xlu0 %v3585_v40, %s8118_s26  ;;  %6869 = vmatpush3.bf16.msra.mxu0 %v7199_v17 }
 0xabb   : > { %v7435_v54 = vpop.eup %7434 }
 0xabc   : > { %v3583_v14 = vmul.f32 %v7435_v54, %v3504_v32  ;;  %v7437_v2 = vpop.eup %7436 }
 0xabd   : > { %v3423_v19 = vpop.xlane.xlu1 %3422  ;;  %v2531_v55 = vmul.f32 %v7437_v2, %v11781_v10  ;;  %v7439_v33 = vpop.eup %7438 }
 0xabe   : > { %3615 = vrot.lane.b32.xlu0 %v3583_v14, %s8118_s26  ;;  %v3060_v11 = vmul.f32 %v7439_v33, %v9797_v56  ;;  %v3520_v56 = vpop.f32.mrf.mxu0 }
 0xabf   : > { %v7441_v24 = vpop.eup %7440 }
 0xac0   : > { %v3589_v6 = vmul.f32 %v7441_v24, %v6844_v20  ;;  %v10013_v48 = vpop.f32.mrf.mxu0 }
 0xac1   : > { %v2572_v62 = vpop.permute.xlu1 %2571 }
 0xac2   : > { %2611 = vst.msk [vmem:[#allocation3 + $0x48] sm:$0xff] %vm2601_vm1, %v2572_v62  ;;  %2573 = vrot.lane.b32.xlu0 %v2531_v55, %s8120_s1  ;;  %v3523_v15 = vpop.f32.mrf.mxu0  ;;  %v11786_v55 = vld [vmem:[#allocation78_spill] sm:$0xff] }
 0xac3   : > { %v1903_v0 = vpop.xlane.xlu0 %1902  ;;  %v7443_v57 = vpop.eup %7442 }
 0xac4   : > { %7448 = vrcp.f32 %v1903_v0  ;;  %v3587_v35 = vmul.f32 %v7443_v57, %v3520_v56  ;;  %v7445_v63 = vpop.eup %7444  ;;  %v6848_v38 = vpop.f32.mrf.mxu0 }
 0xac5   : > { %7450 = vrcp.f32 %v3427_v36  ;;  %v7447_v37 = vpop.eup %7446  ;;  %v3062_v8 = vmul.f32 %v7445_v63, %v9795_v46 }
 0xac6   : > { %3100 = vrot.lane.b32.xlu0 %v3060_v11, %s8119_s29  ;;  %v2533_v44 = vmul.f32 %v7447_v37, %v11783_v31  ;;  %v3536_v18 = vpop.f32.mrf.mxu0 }
 0xac7   : > { %v1907_v16 = vpop.xlane.xlu0 %1906 }
 0xac8   : > { %7452 = vrcp.f32 %v1907_v16  ;;  %v6849_v57 = vpop.f32.mrf.mxu0 }
 0xac9   : > { %7454 = vrcp.f32 %v3423_v19  ;;  %v11785_v19 = vld [vmem:[#allocation80_spill] sm:$0xff] }
 0xaca   : > { %3627 = vrot.lane.b32.xlu0 %v3589_v6, %s8118_s26 }
 0xacb   : > { %v3413_v59 = vpop.xlane.xlu0 %3412 }
 0xacc   : > { %7456 = vrcp.f32 %v3413_v59 }
 0xacd   : > { %7458 = vrcp.f32 %v9752_v39 }
 0xace   : > { %3623 = vrot.lane.b32.xlu0 %v3587_v35, %s8118_s26  ;;  %v11788_v35 = vld [vmem:[#allocation82_spill] sm:$0xff] }
 0xacf   : > { %v3409_v50 = vpop.xlane.xlu0 %3408 }
 0xad0   : > { %7460 = vrcp.f32 %v3409_v50 }
 0xad1   : > { %v7449_v9 = vpop.eup %7448  ;;  %7462 = vrcp.f32 %v9724_v30  ;;  %v11784_v30 = vld [vmem:[#allocation67_spill] sm:$0xff] }
 0xad2   : > { %3104 = vrot.lane.b32.xlu0 %v3062_v8, %s8119_s29  ;;  %v2043_v61 = vmul.f32 %v7449_v9, %v11782_v47  ;;  %v7451_v39 = vpop.eup %7450  ;;  %7464 = vrcp.f32 %v9885_v3 }
 0xad3   : > { %v3421_v12 = vpop.xlane.xlu0 %3420  ;;  %7466 = vrcp.f32 %v9870_v26  ;;  %v3593_v3 = vmul.f32 %v7451_v39, %v6848_v38 }
 0xad4   : > { %2059 = vst.msk [vmem:[#allocation3 + $0x60] sm:$0xff] %vm1652_vm0, %v2043_v61  ;;  %7468 = vrcp.f32 %v9883_v51 }
 0xad5   : > { %v7453_v46 = vpop.eup %7452  ;;  %7470 = vrcp.f32 %v3421_v12 }
 0xad6   : > { %2577 = vrot.lane.b32.xlu0 %v2533_v44, %s8120_s1  ;;  %v2045_v53 = vmul.f32 %v7453_v46, %v11784_v30  ;;  %v7455_v49 = vpop.eup %7454 }
 0xad7   : > { %v3417_v27 = vpop.xlane.xlu0 %3416  ;;  %v3591_v54 = vmul.f32 %v7455_v49, %v3536_v18 }
 0xad8   : > { %2061 = vst.msk [vmem:[#allocation3 + $0x70] sm:$0xff] %vm1652_vm0, %v2045_v53  ;;  %7472 = vrcp.f32 %v3417_v27 }
 0xad9   : > { %v7457_v58 = vpop.eup %7456  ;;  %7474 = vrcp.f32 %v9863_v29 }
 0xada   : > { %3635 = vrot.lane.b32.xlu0 %v3593_v3, %s8118_s26  ;;  %v3586_v26 = vmul.f32 %v7457_v58, %v9996_v52  ;;  %v7459_v36 = vpop.eup %7458  ;;  %7476 = vrcp.f32 %v9726_v43 }
 0xadb   : > { %v3429_v40 = vpop.xlane.xlu0 %3428  ;;  %v2535_v13 = vmul.f32 %v7459_v36, %v11785_v19 }
 0xadc   : > { %3621 = vrot.lane.b32.xlu1 %v3586_v26, %s8118_s26  ;;  %7478 = vrcp.f32 %v3429_v40 }
 0xadd   : > { %v7461_v51 = vpop.eup %7460 }
 0xade   : > { %3631 = vrot.lane.b32.xlu0 %v3591_v54, %s8118_s26  ;;  %v3584_v32 = vmul.f32 %v7461_v51, %v10003_v5  ;;  %v7463_v14 = vpop.eup %7462 }
 0xadf   : > { %v3425_v2 = vpop.xlane.xlu0 %3424  ;;  %v7465_v10 = vpop.eup %7464  ;;  %v2532_v33 = vmul.f32 %v7463_v14, %v11786_v55 }
 0xae0   : > { %3617 = vrot.lane.b32.xlu1 %v3584_v32, %s8118_s26  ;;  %v7467_v52 = vpop.eup %7466  ;;  %v3064_v21 = vmul.f32 %v7465_v10, %v9805_v25  ;;  %7480 = vrcp.f32 %v3425_v2 }
 0xae1   : > { %v7469_v0 = vpop.eup %7468  ;;  %v3061_v11 = vmul.f32 %v7467_v52, %v9801_v42  ;;  %7482 = vrcp.f32 %v9728_v28  ;;  %v3539_v28 = vpop.f32.mrf.mxu0 }
 0xae2   : > { %2581 = vrot.lane.b32.xlu0 %v2535_v13, %s8120_s1  ;;  %v7471_v29 = vpop.eup %7470  ;;  %v3066_v24 = vmul.f32 %v7469_v0, %v9803_v45  ;;  %7484 = vrcp.f32 %v9881_v7  ;;  %v11787_v45 = vld [vmem:[#allocation83_spill] sm:$0xff] }
 0xae3   : > { %v2570_v62 = vpop.permute.xlu0 %2569  ;;  %v3590_v5 = vmul.f32 %v7471_v29, %v10013_v48  ;;  %7486 = vrcp.f32 %v9877_v41  ;;  %v11790_v41 = vld [vmem:[#allocation58_spill] sm:$0xff] }
 0xae4   : > { %2610 = vst.msk [vmem:[#allocation3 + $0x40] sm:$0xff] %vm2601_vm1, %v2570_v62  ;;  %2575 = vrot.lane.b32.xlu1 %v2532_v33, %s8120_s1 }
 0xae5   : > { %v7473_v60 = vpop.eup %7472 }
 0xae6   : > { %3108 = vrot.lane.b32.xlu0 %v3064_v21, %s8119_s29  ;;  %v3588_v25 = vmul.f32 %v7473_v60, %v3523_v15  ;;  %v7475_v43 = vpop.eup %7474 }
 0xae7   : > { %v3063_v42 = vmul.f32 %v7475_v43, %v9799_v4  ;;  %v7477_v20 = vpop.eup %7476 }
 0xae8   : > { %3102 = vrot.lane.b32.xlu1 %v3061_v11, %s8119_s29  ;;  %v2534_v16 = vmul.f32 %v7477_v20, %v11787_v45 }
 0xae9   : > { %v7479_v6 = vpop.eup %7478 }
 0xaea   : > { %3112 = vrot.lane.b32.xlu0 %v3066_v24, %s8119_s29  ;;  %v3594_v34 = vmul.f32 %v7479_v6, %v6849_v57 }
 0xaec   : > { %3629 = vrot.lane.b32.xlu1 %v3590_v5, %s8118_s26 }
 0xaed   : > { %v7481_v56 = vpop.eup %7480 }
 0xaee   : > { %v3592_v59 = vmul.f32 %v7481_v56, %v3539_v28  ;;  %v7483_v4 = vpop.eup %7482 }
 0xaef   : > { %v2536_v63 = vmul.f32 %v7483_v4, %v11788_v35  ;;  %v7485_v7 = vpop.eup %7484 }
 0xaf0   : > { %3625 = vrot.lane.b32.xlu1 %v3588_v25, %s8118_s26  ;;  %v3065_v50 = vmul.f32 %v7485_v7, %v11789_v22  ;;  %v7487_v37 = vpop.eup %7486 }
 0xaf1   : > { %v3067_v8 = vmul.f32 %v7487_v37, %v11790_v41 }
 0xaf2   : > { %v3435_v9 = vpop.xlane.xlu1 %3434 }
 0xaf4   : > { %3106 = vrot.lane.b32.xlu1 %v3063_v42, %s8119_s29 }
 0xaf6   : > { %v3431_v48 = vpop.xlane.xlu1 %3430 }
 0xaf7   : > { %7488 = vrcp.f32 %v3431_v48 }
 0xaf8   : > { %2579 = vrot.lane.b32.xlu1 %v2534_v16, %s8120_s1  ;;  %7490 = vrcp.f32 %v3435_v9 }
 0xafc   : > { %3637 = vrot.lane.b32.xlu1 %v3594_v34, %s8118_s26 }
 0xb00   : > { %3633 = vrot.lane.b32.xlu1 %v3592_v59, %s8118_s26 }
 0xb04   : > { %2583 = vrot.lane.b32.xlu1 %v2536_v63, %s8120_s1  ;;  %v7489_v12 = vpop.eup %7488 }
 0xb05   : > { %v7491_v46 = vpop.eup %7490 }
 0xb08   : > { %3110 = vrot.lane.b32.xlu1 %v3065_v50, %s8119_s29 }
 0xb0c   : > { %3114 = vrot.lane.b32.xlu1 %v3067_v8, %s8119_s29 }
 0xb14   : > { %v3437_v1 = vpop.xlane.xlu0 %3436 }
 0xb18   : > { %v3433_v47 = vpop.xlane.xlu0 %3432 }
 0xb19   : > { %7492 = vrcp.f32 %v3433_v47 }
 0xb1a   : > { %7494 = vrcp.f32 %v3437_v1 }
 0xb1f   : > { %v6852_v61 = vpop.f32.mrf.mxu0 }
 0xb20   : > { %v3597_v30 = vmul.f32 %v7491_v46, %v6852_v61 }
 0xb21   : > { %v3552_v39 = vpop.f32.mrf.mxu0 }
 0xb22   : > { %v3595_v31 = vmul.f32 %v7489_v12, %v3552_v39 }
 0xb23   : > { %v6853_v44 = vpop.f32.mrf.mxu0 }
 0xb24   : > { %3639 = vrot.lane.b32.xlu0 %v3595_v31, %s8118_s26  ;;  %v10102_v31 = vld [vmem:[%s11791_s0] ss:$0 sm:$0xff] }
 0xb25   : > { %v3555_v15 = vpop.f32.mrf.mxu0 }
 0xb26   : > { %v7493_v23 = vpop.eup %7492 }
 0xb27   : > { %v3596_v53 = vmul.f32 %v7493_v23, %v3555_v15  ;;  %v7495_v38 = vpop.eup %7494  ;;  %v7688_v23 = vld [vmem:[#allocation2 + $0x30] sm:$0xff] }
 0xb28   : > { %3643 = vrot.lane.b32.xlu0 %v3597_v30, %s8118_s26  ;;  %v3598_v27 = vmul.f32 %v7495_v38, %v6853_v44 }
 0xb29   : > { %3641 = vrot.lane.b32.xlu1 %v3596_v53, %s8118_s26 }
 0xb2c   : > { %v3620_v49 = vpop.permute.xlu0 %3619 }
 0xb2d   : > { %3666 = vst.msk [vmem:[#allocation3 + $0x10] sm:$0xff] %vm3663_vm3, %v3620_v49  ;;  %3645 = vrot.lane.b32.xlu1 %v3598_v27, %s8118_s26  ;;  %v7689_v49 = vld [vmem:[#allocation2] sm:$0xff] }
 0xb30   : > { %v3616_v3 = vpop.permute.xlu0 %3615 }
 0xb31   : > { %3664 = vst.msk [vmem:[#allocation3] sm:$0xff] %vm3663_vm3, %v3616_v3 }
 0xb34   : > { %v2574_v58 = vpop.permute.xlu0 %2573  ;;  %v3682_v21 = vld [vmem:[#allocation3 + $0x10] sm:$0xff] }
 0xb35   : > { %2612 = vst.msk [vmem:[#allocation3 + $0x50] sm:$0xff] %vm2601_vm1, %v2574_v58 }
 0xb38   : > { %v3101_v17 = vpop.permute.xlu0 %3100  ;;  %v3680_v33 = vld [vmem:[#allocation3] sm:$0xff] }
 0xb39   : > { %3141 = vst.msk [vmem:[#allocation3 + $0x40] sm:$0xff] %vm3132_vm2, %v3101_v17  ;;  %v7690_v17 = vld [vmem:[#allocation2 + $0x58] sm:$0xff] }
 0xb3c   : > { %v3628_v26 = vpop.permute.xlu0 %3627 }
 0xb3d   : > { %3670 = vst.msk [vmem:[#allocation3 + $0x30] sm:$0xff] %vm3663_vm3, %v3628_v26 }
 0xb40   : > { %v3624_v18 = vpop.permute.xlu0 %3623 }
 0xb41   : > { %3668 = vst.msk [vmem:[#allocation3 + $0x20] sm:$0xff] %vm3663_vm3, %v3624_v18 }
 0xb44   : > { %v3105_v40 = vpop.permute.xlu0 %3104  ;;  %v3686_v45 = vld [vmem:[#allocation3 + $0x30] sm:$0xff] }
 0xb45   : > { %3143 = vst.msk [vmem:[#allocation3 + $0x50] sm:$0xff] %vm3132_vm2, %v3105_v40 }
 0xb48   : > { %v2578_v36 = vpop.permute.xlu0 %2577  ;;  %v3684_v43 = vld [vmem:[#allocation3 + $0x20] sm:$0xff] }
 0xb49   : > { %2614 = vst.msk [vmem:[#allocation3 + $0x60] sm:$0xff] %vm2601_vm1, %v2578_v36 }
 0xb4c   : > { %v3636_v54 = vpop.permute.xlu0 %3635 }
 0xb4d   : > { %3674 = vst.msk [vmem:[#allocation3 + $0x50] sm:$0xff] %vm3663_vm3, %v3636_v54  ;;  %v7691_v54 = vld [vmem:[#allocation2 + $0x18] sm:$0xff] }
 0xb4e   : > { %v3622_v51 = vpop.permute.xlu1 %3621 }
 0xb4f   : > { %3667 = vst.msk [vmem:[#allocation3 + $0x18] sm:$0xff] %vm3663_vm3, %v3622_v51 }
 0xb50   : > { %v3632_v32 = vpop.permute.xlu0 %3631 }
 0xb51   : > { %3672 = vst.msk [vmem:[#allocation3 + $0x40] sm:$0xff] %vm3663_vm3, %v3632_v32 }
 0xb52   : > { %v3618_v14 = vpop.permute.xlu1 %3617 }
 0xb53   : > { %3665 = vst.msk [vmem:[#allocation3 + $0x8] sm:$0xff] %vm3663_vm3, %v3618_v14 }
 0xb54   : > { %v2582_v2 = vpop.permute.xlu0 %2581  ;;  %v3690_v63 = vld [vmem:[#allocation3 + $0x50] sm:$0xff] }
 0xb55   : > { %2616 = vst.msk [vmem:[#allocation3 + $0x70] sm:$0xff] %vm2601_vm1, %v2582_v2 }
 0xb56   : > { %v2576_v19 = vpop.permute.xlu1 %2575  ;;  %v3683_v10 = vld [vmem:[#allocation3 + $0x18] sm:$0xff] }
 0xb57   : > { %2613 = vst.msk [vmem:[#allocation3 + $0x58] sm:$0xff] %vm2601_vm1, %v2576_v19  ;;  %v3697_v11 = vpack.c.bf16 %v3683_v10, %v3682_v21  ;;  %v7200_v21 = vld [vmem:[%s8518_s22 + $0x70] ss:$8 sps:$4 sm:$0xff]  }
 0xb58   : > { %v3109_v13 = vpop.permute.xlu0 %3108  ;;  %v3688_v59 = vld [vmem:[#allocation3 + $0x40] sm:$0xff] }
 0xb59   : > { %3145 = vst.msk [vmem:[#allocation3 + $0x60] sm:$0xff] %vm3132_vm2, %v3109_v13  ;;  %v7692_v13 = vld [vmem:[#allocation2 + $0x50] sm:$0xff] }
 0xb5a   : > { %v3103_v55 = vpop.permute.xlu1 %3102  ;;  %v3681_v52 = vld [vmem:[#allocation3 + $0x8] sm:$0xff] }
 0xb5b   : > { %3142 = vst.msk [vmem:[#allocation3 + $0x48] sm:$0xff] %vm3132_vm2, %v3103_v55  ;;  %v3696_v62 = vpack.c.bf16 %v3681_v52, %v3680_v33 }
 0xb5c   : > { %v3113_v0 = vpop.permute.xlu0 %3112 }
 0xb5d   : > { %3147 = vst.msk [vmem:[#allocation3 + $0x70] sm:$0xff] %vm3132_vm2, %v3113_v0  ;;  %6870 = vmatprep.mubr.bf16.mxu0 %v3696_v62  ;;  %v7202_v62 = vld [vmem:[%s8518_s22 + $0x74] ss:$8 sps:$4 sm:$0xff]  }
 0xb5e   : > { %6871 = vmatmul.mubr.bf16.vlgmr.msra.gmra.mxu0 %v3697_v11  ;;  %v3630_v29 = vpop.permute.xlu1 %3629  ;;  %v7693_v11 = vld [vmem:[#allocation2 + $0x68] sm:$0xff]  ;;  %4275 = vmatprep.subr.bf16.mxu1 %v7202_v62 }
 0xb5f   : > { %3671 = vst.msk [vmem:[#allocation3 + $0x38] sm:$0xff] %vm3663_vm3, %v3630_v29  ;;  %4276 = vmatpush1.bf16.msra.mxu1 %v7200_v21 }
 0xb62   : > { %v3626_v24 = vpop.permute.xlu1 %3625 }
 0xb63   : > { %3669 = vst.msk [vmem:[#allocation3 + $0x28] sm:$0xff] %vm3663_vm3, %v3626_v24 }
 0xb66   : > { %v3107_v5 = vpop.permute.xlu1 %3106  ;;  %v3687_v60 = vld [vmem:[#allocation3 + $0x38] sm:$0xff] }
 0xb67   : > { %3144 = vst.msk [vmem:[#allocation3 + $0x58] sm:$0xff] %vm3132_vm2, %v3107_v5  ;;  %v3699_v16 = vpack.c.bf16 %v3687_v60, %v3686_v45  ;;  %v7205_v5 = vld [vmem:[%s8518_s22 + $0x64] ss:$8 sps:$4 sm:$0xff]   ;;  %v7203_v60 = vld [vmem:[%s8518_s22 + $0x60] ss:$8 sps:$4 sm:$0xff]  }
 0xb68   : > { %4277 = vmatprep.subr.bf16.mxu1 %v7205_v5  ;;  %v7208_v45 = vld [vmem:[%s8518_s22 + $0x54] ss:$8 sps:$4 sm:$0xff]  }
 0xb69   : > { %4278 = vmatpush1.bf16.msra.mxu1 %v7203_v60  ;;  %v7703_v60 = vld [vmem:[#allocation2 + $0x28] sm:$0xff] }
 0xb6a   : > { %v2580_v25 = vpop.permute.xlu1 %2579  ;;  %v3685_v42 = vld [vmem:[#allocation3 + $0x28] sm:$0xff]  ;;  %4279 = vmatprep.subr.bf16.mxu1 %v7208_v45 }
 0xb6b   : > { %2615 = vst.msk [vmem:[#allocation3 + $0x68] sm:$0xff] %vm2601_vm1, %v2580_v25  ;;  %v3698_v20 = vpack.c.bf16 %v3685_v42, %v3684_v43  ;;  %v7694_v25 = vld [vmem:[#allocation2 + $0x8] sm:$0xff] }
 0xb6d   : > { %6874 = vmatprep.mubr.bf16.mxu0 %v3698_v20 }
 0xb6e   : > { %6875 = vmatmul.mubr.bf16.gmra.mxu0 %v3699_v16  ;;  %v3638_v6 = vpop.permute.xlu1 %3637 }
 0xb6f   : > { %3675 = vst.msk [vmem:[#allocation3 + $0x58] sm:$0xff] %vm3663_vm3, %v3638_v6  ;;  %v7206_v6 = vld [vmem:[%s8518_s22 + $0x50] ss:$8 sps:$4 sm:$0xff]  }
 0xb70   : > { %4280 = vmatpush1.bf16.msra.mxu1 %v7206_v6 }
 0xb72   : > { %v3634_v57 = vpop.permute.xlu1 %3633 }
 0xb73   : > { %3673 = vst.msk [vmem:[#allocation3 + $0x48] sm:$0xff] %vm3663_vm3, %v3634_v57  ;;  %v7695_v57 = vld [vmem:[#allocation2 + $0x48] sm:$0xff] }
 0xb76   : > { %v2584_v34 = vpop.permute.xlu1 %2583  ;;  %v3691_v56 = vld [vmem:[#allocation3 + $0x58] sm:$0xff] }
 0xb77   : > { %2617 = vst.msk [vmem:[#allocation3 + $0x78] sm:$0xff] %vm2601_vm1, %v2584_v34  ;;  %v3701_v7 = vpack.c.bf16 %v3691_v56, %v3690_v63  ;;  %v7209_v63 = vld [vmem:[%s8518_s22 + $0x40] ss:$8 sps:$4 sm:$0xff]  }
 0xb7a   : > { %v3111_v28 = vpop.permute.xlu1 %3110  ;;  %v3689_v4 = vld [vmem:[#allocation3 + $0x48] sm:$0xff] }
 0xb7b   : > { %3146 = vst.msk [vmem:[#allocation3 + $0x68] sm:$0xff] %vm3132_vm2, %v3111_v28  ;;  %v3700_v35 = vpack.c.bf16 %v3689_v4, %v3688_v59  ;;  %v7211_v4 = vld [vmem:[%s8518_s22 + $0x44] ss:$8 sps:$4 sm:$0xff]  }
 0xb7c   : > { %4281 = vmatprep.subr.bf16.mxu1 %v7211_v4 }
 0xb7d   : > { %6878 = vmatprep.mubr.bf16.mxu0 %v3700_v35  ;;  %4282 = vmatpush1.bf16.msra.mxu1 %v7209_v63 }
 0xb7e   : > { %6879 = vmatmul.mubr.bf16.gmra.mxu0 %v3701_v7  ;;  %v3115_v22 = vpop.permute.xlu1 %3114  ;;  %v7696_v7 = vld [vmem:[#allocation2 + $0x40] sm:$0xff] }
 0xb7f   : > { %3148 = vst.msk [vmem:[#allocation3 + $0x78] sm:$0xff] %vm3132_vm2, %v3115_v22 }
 0xb96   : > { %v3640_v50 = vpop.permute.xlu0 %3639 }
 0xb97   : > { %3676 = vst.msk [vmem:[#allocation3 + $0x60] sm:$0xff] %vm3663_vm3, %v3640_v50 }
 0xb9a   : > { %v3644_v37 = vpop.permute.xlu0 %3643 }
 0xb9b   : > { %3678 = vst.msk [vmem:[#allocation3 + $0x70] sm:$0xff] %vm3663_vm3, %v3644_v37  ;;  %v3642_v41 = vpop.permute.xlu1 %3641 }
 0xb9c   : > { %3677 = vst.msk [vmem:[#allocation3 + $0x68] sm:$0xff] %vm3663_vm3, %v3642_v41 }
 0xb9e   : > { %v3692_v9 = vld [vmem:[#allocation3 + $0x60] sm:$0xff] }
 0xb9f   : > { %v3646_v8 = vpop.permute.xlu1 %3645 }
 0xba0   : > { %3679 = vst.msk [vmem:[#allocation3 + $0x78] sm:$0xff] %vm3663_vm3, %v3646_v8  ;;  %v7214_v8 = vld [vmem:[%s8518_s22 + $0x34] ss:$8 sps:$4 sm:$0xff]  }
 0xba1   : > { %4283 = vmatprep.subr.bf16.mxu1 %v7214_v8 }
 0xba2   : > { %v3694_v47 = vld [vmem:[#allocation3 + $0x70] sm:$0xff] }
 0xba3   : > { %v3693_v48 = vld [vmem:[#allocation3 + $0x68] sm:$0xff] }
 0xba4   : > { %v3702_v1 = vpack.c.bf16 %v3693_v48, %v3692_v9  ;;  %v7212_v9 = vld [vmem:[%s8518_s22 + $0x30] ss:$8 sps:$4 sm:$0xff]  }
 0xba5   : > { %4284 = vmatpush1.bf16.msra.mxu1 %v7212_v9 }
 0xba6   : > { %6882 = vmatprep.mubr.bf16.mxu0 %v3702_v1  ;;  %v7697_v1 = vld [vmem:[#allocation2 + $0x20] sm:$0xff] }
 0xba7   : > { %v3695_v61 = vld [vmem:[#allocation3 + $0x78] sm:$0xff] }
 0xba8   : > { %v3703_v12 = vpack.c.bf16 %v3695_v61, %v3694_v47 }
 0xbaa   : > { %6883 = vmatmul.mubr.bf16.gmra.mxu0 %v3703_v12  ;;  %v7217_v12 = vld [vmem:[%s8518_s22 + $0x24] ss:$8 sps:$4 sm:$0xff]  }
 0xbab   : > { %4285 = vmatprep.subr.bf16.mxu1 %v7217_v12 }
 0xc1e   : > { %v6872_v39 = vpop.f32.mrf.mxu0 }
 0xc1f   : > { %v3818_v27 = vadd.f32 %v6872_v39, %v10102_v31  ;;  %v7215_v39 = vld [vmem:[%s8518_s22 + $0x20] ss:$8 sps:$4 sm:$0xff]  }
 0xc20   : > { %v3809_v44 = vpop.f32.mrf.mxu0  ;;  %4286 = vmatpush1.bf16.msra.mxu1 %v7215_v39 }
 0xc21   : > { %v3810_v46 = vadd.f32 %v10102_v31, %v3809_v44  ;;  %v10115_v26 = vadd.f32 %v7690_v17, %v3818_v27  ;;  %v7698_v44 = vld [vmem:[#allocation2 + $0x10] sm:$0xff]  ;;  %v7699_v27 = vld [vmem:[#allocation2 + $0x38] sm:$0xff] }
 0xc22   : > { %v6873_v15 = vpop.f32.mrf.mxu0  ;;  %v7223_v17 = vld [vmem:[%s8518_s22 + $0x4] ss:$8 sps:$4 sm:$0xff]  }
 0xc23   : > { %v10105_v30 = vadd.f32 %v7688_v23, %v3810_v46  ;;  %v3821_v18 = vadd.f32 %v6873_v15, %v10102_v31  ;;  %v3941_v32 = vmul.f32 %v10115_v26, %v10115_v26 }
 0xc24   : > { %v3812_v53 = vpop.f32.mrf.mxu0 }
 0xc25   : > { %v3813_v38 = vadd.f32 %v10102_v31, %v3812_v53  ;;  %3890 = vadd.xlane.f32.xlu0 %v10105_v30  ;;  %v3939_v58 = vmul.f32 %v10105_v30, %v10105_v30  ;;  %v10121_v51 = vadd.f32 %v7691_v54, %v3821_v18  ;;  %v7220_v53 = vld [vmem:[%s8518_s22 + $0x14] ss:$8 sps:$4 sm:$0xff]   ;;  %v7221_v18 = vld [vmem:[%s8518_s22] ss:$8 sps:$4 sm:$0xff]  }
 0xc26   : > { %4287 = vmatprep.subr.bf16.mxu1 %v7220_v53 }
 0xc27   : > { %v10110_v3 = vadd.f32 %v7689_v49, %v3813_v38  ;;  %v3942_v55 = vmul.f32 %v10121_v51, %v10121_v51  ;;  %v7218_v38 = vld [vmem:[%s8518_s22 + $0x10] ss:$8 sps:$4 sm:$0xff]  }
 0xc28   : > { %4288 = vmatpush1.bf16.msra.mxu1 %v7218_v38 }
 0xc29   : > { %3892 = vadd.xlane.f32.xlu1 %v10110_v3  ;;  %3955 = vadd.xlane.f32.xlu0 %v3939_v58  ;;  %v3940_v40 = vmul.f32 %v10110_v3, %v10110_v3 }
 0xc2a   : > { %4289 = vmatprep.subr.bf16.mxu1 %v7223_v17 }
 0xc2c   : > { %4290 = vmatpush1.bf16.msra.mxu1 %v7221_v18 }
 0xc2d   : > { %3894 = vadd.xlane.f32.xlu1 %v10115_v26  ;;  %3957 = vadd.xlane.f32.xlu0 %v3940_v40 }
 0xc2e   : > { %v6876_v36 = vpop.f32.mrf.mxu0 }
 0xc2f   : > { %v3834_v0 = vadd.f32 %v6876_v36, %v10102_v31 }
 0xc30   : > { %v3825_v14 = vpop.f32.mrf.mxu0 }
 0xc31   : > { %v3826_v2 = vadd.f32 %v10102_v31, %v3825_v14  ;;  %3959 = vadd.xlane.f32.xlu1 %v3941_v32  ;;  %3896 = vadd.xlane.f32.xlu0 %v10121_v51  ;;  %v10143_v43 = vadd.f32 %v7694_v25, %v3834_v0  ;;  %v7702_v0 = vld [vmem:[#allocation2 + $0x78] sm:$0xff] }
 0xc32   : > { %v6877_v19 = vpop.f32.mrf.mxu0 }
 0xc33   : > { %v10127_v10 = vadd.f32 %v7692_v13, %v3826_v2  ;;  %v3837_v42 = vadd.f32 %v6877_v19, %v10102_v31  ;;  %v3945_v56 = vmul.f32 %v10143_v43, %v10143_v43  ;;  %v7700_v2 = vld [vmem:[#allocation2 + $0x60] sm:$0xff] }
 0xc34   : > { %v3828_v33 = vpop.f32.mrf.mxu0 }
 0xc35   : > { %v3829_v52 = vadd.f32 %v10102_v31, %v3828_v33  ;;  %3961 = vadd.xlane.f32.xlu0 %v3942_v55  ;;  %3898 = vadd.xlane.f32.xlu1 %v10127_v10  ;;  %v3943_v24 = vmul.f32 %v10127_v10, %v10127_v10  ;;  %v10151_v34 = vadd.f32 %v7695_v57, %v3837_v42 }
 0xc37   : > { %v10136_v29 = vadd.f32 %v7693_v11, %v3829_v52  ;;  %v3946_v50 = vmul.f32 %v10151_v34, %v10151_v34  ;;  %v7701_v52 = vld [vmem:[#allocation2 + $0x70] sm:$0xff] }
 0xc39   : > { %3900 = vadd.xlane.f32.xlu0 %v10136_v29  ;;  %3963 = vadd.xlane.f32.xlu1 %v3943_v24  ;;  %v3944_v20 = vmul.f32 %v10136_v29, %v10136_v29 }
 0xc3d   : > { %3965 = vadd.xlane.f32.xlu0 %v3944_v20  ;;  %3902 = vadd.xlane.f32.xlu1 %v10143_v43 }
 0xc3e   : > { %v6880_v16 = vpop.f32.mrf.mxu0 }
 0xc3f   : > { %v3850_v48 = vadd.f32 %v6880_v16, %v10102_v31 }
 0xc40   : > { %v3841_v28 = vpop.f32.mrf.mxu0 }
 0xc41   : > { %v3842_v59 = vadd.f32 %v10102_v31, %v3841_v28  ;;  %3904 = vadd.xlane.f32.xlu0 %v10151_v34  ;;  %3967 = vadd.xlane.f32.xlu1 %v3945_v56  ;;  %v10175_v46 = vadd.f32 %v7698_v44, %v3850_v48 }
 0xc42   : > { %v6881_v35 = vpop.f32.mrf.mxu0 }
 0xc43   : > { %v10159_v22 = vadd.f32 %v7696_v7, %v3842_v59  ;;  %v3853_v15 = vadd.f32 %v6881_v35, %v10102_v31  ;;  %v3949_v58 = vmul.f32 %v10175_v46, %v10175_v46 }
 0xc44   : > { %v3844_v37 = vpop.f32.mrf.mxu0 }
 0xc45   : > { %v3845_v41 = vadd.f32 %v10102_v31, %v3844_v37  ;;  %3969 = vadd.xlane.f32.xlu0 %v3946_v50  ;;  %3906 = vadd.xlane.f32.xlu1 %v10159_v22  ;;  %v3947_v61 = vmul.f32 %v10159_v22, %v10159_v22  ;;  %v10183_v49 = vadd.f32 %v7699_v27, %v3853_v15 }
 0xc47   : > { %v10168_v47 = vadd.f32 %v7697_v1, %v3845_v41  ;;  %v3950_v40 = vmul.f32 %v10183_v49, %v10183_v49 }
 0xc49   : > { %3908 = vadd.xlane.f32.xlu0 %v10168_v47  ;;  %3971 = vadd.xlane.f32.xlu1 %v3947_v61  ;;  %v3948_v23 = vmul.f32 %v10168_v47, %v10168_v47 }
 0xc4d   : > { %3973 = vadd.xlane.f32.xlu0 %v3948_v23  ;;  %3910 = vadd.xlane.f32.xlu1 %v10175_v46 }
 0xc51   : > { %3912 = vadd.xlane.f32.xlu0 %v10183_v49  ;;  %3975 = vadd.xlane.f32.xlu1 %v3949_v58 }
 0xc55   : > { %3977 = vadd.xlane.f32.xlu0 %v3950_v40 }
 0xc6a   : > { %v6884_v36 = vpop.f32.mrf.mxu0 }
 0xc6b   : > { %v3866_v33 = vadd.f32 %v6884_v36, %v10102_v31 }
 0xc6c   : > { %v3857_v54 = vpop.f32.mrf.mxu0 }
 0xc6d   : > { %v3858_v32 = vadd.f32 %v10102_v31, %v3857_v54  ;;  %v10203_v11 = vadd.f32 %v7702_v0, %v3866_v33 }
 0xc6e   : > { %v6885_v14 = vpop.f32.mrf.mxu0 }
 0xc6f   : > { %v10193_v19 = vadd.f32 %v7700_v2, %v3858_v32  ;;  %v3869_v24 = vadd.f32 %v6885_v14, %v10102_v31  ;;  %v3953_v42 = vmul.f32 %v10203_v11, %v10203_v11 }
 0xc70   : > { %v3860_v13 = vpop.f32.mrf.mxu0 }
 0xc71   : > { %v3861_v55 = vadd.f32 %v10102_v31, %v3860_v13  ;;  %3914 = vadd.xlane.f32.xlu1 %v10193_v19  ;;  %v3951_v21 = vmul.f32 %v10193_v19, %v10193_v19  ;;  %v10209_v25 = vadd.f32 %v7703_v60, %v3869_v24 }
 0xc73   : > { %v10198_v62 = vadd.f32 %v7701_v52, %v3861_v55  ;;  %v3954_v20 = vmul.f32 %v10209_v25, %v10209_v25 }
 0xc75   : > { %3916 = vadd.xlane.f32.xlu0 %v10198_v62  ;;  %3979 = vadd.xlane.f32.xlu1 %v3951_v21  ;;  %v3952_v5 = vmul.f32 %v10198_v62, %v10198_v62 }
 0xc79   : > { %3981 = vadd.xlane.f32.xlu0 %v3952_v5  ;;  %3918 = vadd.xlane.f32.xlu1 %v10203_v11 }
 0xc7d   : > { %3920 = vadd.xlane.f32.xlu0 %v10209_v25  ;;  %3983 = vadd.xlane.f32.xlu1 %v3953_v42 }
 0xc81   : > { %3985 = vadd.xlane.f32.xlu0 %v3954_v20 }
 0xcae   : > { %v3891_v31 = vpop.xlane.xlu0 %3890 }
 0xcaf   : > { %v3923_v45 = vmul.f32 0.0078125, %v3891_v31 }
 0xcb1   : > { %v4003_v57 = vmul.f32 %v3923_v45, %v3923_v45  ;;  %v4051_v20 = vsub.f32 %v10105_v30, %v3923_v45 }
 0xcb2   : > { %v3956_v16 = vpop.xlane.xlu0 %3955  ;;  %v3893_v6 = vpop.xlane.xlu1 %3892 }
 0xcb3   : > { %v3987_v56 = vmul.f32 0.0078125, %v3956_v16  ;;  %v10216_v28 = vmul.f32 0.0078125, %v3893_v6 }
 0xcb5   : > { %v4019_v59 = vsub.f32 %v3987_v56, %v4003_v57  ;;  %v4004_v7 = vmul.f32 %v10216_v28, %v10216_v28  ;;  %v4052_v45 = vsub.f32 %v10110_v3, %v10216_v28  ;;  %v10262_v3 = vld [vmem:[%s11795_s6] ss:$0 sm:$0xff] }
 0xcb6   : > { %v3958_v4 = vpop.xlane.xlu0 %3957  ;;  %v3895_v35 = vpop.xlane.xlu1 %3894 }
 0xcb7   : > { %v4035_v63 = vmax.f32 %v4019_v59, 0.0  ;;  %v3988_v50 = vmul.f32 0.0078125, %v3958_v4  ;;  %v10220_v37 = vmul.f32 0.0078125, %v3895_v35 }
 0xcb9   : > { %v4067_v41 = vadd.f32 1e-12, %v4035_v63  ;;  %v4020_v8 = vsub.f32 %v3988_v50, %v4004_v7  ;;  %v4005_v9 = vmul.f32 %v10220_v37, %v10220_v37  ;;  %v10248_v7 = vld [vmem:[%s11793_s13] ss:$0 sm:$0xff] }
 0xcba   : > { %v3897_v48 = vpop.xlane.xlu0 %3896  ;;  %v3960_v1 = vpop.xlane.xlu1 %3959 }
 0xcbb   : > { %7496 = vrsqrt.f32 %v4067_v41  ;;  %v4036_v61 = vmax.f32 %v4020_v8, 0.0  ;;  %v10224_v12 = vmul.f32 0.0078125, %v3897_v48  ;;  %v3989_v39 = vmul.f32 0.0078125, %v3960_v1 }
 0xcbd   : > { %v4068_v44 = vadd.f32 1e-12, %v4036_v61  ;;  %v4021_v15 = vsub.f32 %v3989_v39, %v4005_v9  ;;  %v4006_v23 = vmul.f32 %v10224_v12, %v10224_v12 }
 0xcbe   : > { %v3962_v53 = vpop.xlane.xlu0 %3961  ;;  %v3899_v38 = vpop.xlane.xlu1 %3898 }
 0xcbf   : > { %7498 = vrsqrt.f32 %v4068_v44  ;;  %v4037_v27 = vmax.f32 %v4021_v15, 0.0  ;;  %v3990_v58 = vmul.f32 0.0078125, %v3962_v53  ;;  %v10228_v17 = vmul.f32 0.0078125, %v3899_v38 }
 0xcc1   : > { %v4069_v18 = vadd.f32 1e-12, %v4037_v27  ;;  %v4022_v40 = vsub.f32 %v3990_v58, %v4006_v23  ;;  %v4007_v36 = vmul.f32 %v10228_v17, %v10228_v17  ;;  %v4053_v23 = vsub.f32 %v10115_v26, %v10220_v37 }
 0xcc2   : > { %v3901_v54 = vpop.xlane.xlu0 %3900  ;;  %v3964_v32 = vpop.xlane.xlu1 %3963 }
 0xcc3   : > { %7500 = vrsqrt.f32 %v4069_v18  ;;  %v4038_v14 = vmax.f32 %v4022_v40, 0.0  ;;  %v10232_v2 = vmul.f32 0.0078125, %v3901_v54  ;;  %v3991_v13 = vmul.f32 0.0078125, %v3964_v32 }
 0xcc5   : > { %v4070_v55 = vadd.f32 1e-12, %v4038_v14  ;;  %v4023_v33 = vsub.f32 %v3991_v13, %v4007_v36  ;;  %v4008_v52 = vmul.f32 %v10232_v2, %v10232_v2 }
 0xcc6   : > { %v3966_v21 = vpop.xlane.xlu0 %3965  ;;  %v3903_v0 = vpop.xlane.xlu1 %3902 }
 0xcc7   : > { %7502 = vrsqrt.f32 %v4070_v55  ;;  %v4039_v24 = vmax.f32 %v4023_v33, 0.0  ;;  %v3992_v5 = vmul.f32 0.0078125, %v3966_v21  ;;  %v10236_v60 = vmul.f32 0.0078125, %v3903_v0 }
 0xcc8   : > { %v7497_v42 = vpop.eup %7496  ;;  %v4054_v55 = vsub.f32 %v10121_v51, %v10224_v12  ;;  %v11798_v51 = vmov 0  }
 0xcc9   : > { %v4071_v31 = vadd.f32 1e-12, %v4039_v24  ;;  %v4024_v16 = vsub.f32 %v3992_v5, %v4008_v52  ;;  %v4009_v6 = vmul.f32 %v10236_v60, %v10236_v60  ;;  %v4099_v59 = vmul.f32 %v7497_v42, %v4051_v20 }
 0xcca   : > { %v3905_v57 = vpop.xlane.xlu0 %3904  ;;  %v3968_v56 = vpop.xlane.xlu1 %3967 }
 0xccb   : > { %7504 = vrsqrt.f32 %v4071_v31  ;;  %v4040_v4 = vmax.f32 %v4024_v16, 0.0  ;;  %v10241_v35 = vmul.f32 0.0078125, %v3905_v57  ;;  %v3993_v63 = vmul.f32 0.0078125, %v3968_v56 }
 0xccc   : > { %v7499_v30 = vpop.eup %7498  ;;  %v4121_v61 = vmul.f32 %v10248_v7, %v4099_v59  ;;  %v4055_v57 = vsub.f32 %v10127_v10, %v10228_v17 }
 0xccd   : > { %v4072_v50 = vadd.f32 1e-12, %v4040_v4  ;;  %v4025_v41 = vsub.f32 %v3993_v63, %v4009_v6  ;;  %v4010_v8 = vmul.f32 %v10241_v35, %v10241_v35  ;;  %v4100_v1 = vmul.f32 %v7499_v30, %v4052_v45 }
 0xcce   : > { %v3970_v9 = vpop.xlane.xlu0 %3969  ;;  %v3907_v48 = vpop.xlane.xlu1 %3906  ;;  %v10270_v36 = vadd.f32 %v10262_v3, %v4121_v61 }
 0xccf   : > { %7506 = vrsqrt.f32 %v4072_v50  ;;  %v4041_v39 = vmax.f32 %v4025_v41, 0.0  ;;  %v3994_v44 = vmul.f32 0.0078125, %v3970_v9  ;;  %v10255_v15 = vmul.f32 0.0078125, %v3907_v48 }
 0xcd0   : > { %v7501_v28 = vpop.eup %7500  ;;  %v4122_v53 = vmul.f32 %v10248_v7, %v4100_v1  ;;  %11796 = vst [vmem:[#allocation57_spill] sm:$0xff] %v10270_v36  ;;  %v4056_v1 = vsub.f32 %v10136_v29, %v10232_v2 }
 0xcd1   : > { %v4073_v38 = vadd.f32 1e-12, %v4041_v39  ;;  %v4026_v27 = vsub.f32 %v3994_v44, %v4010_v8  ;;  %v4011_v58 = vmul.f32 %v10255_v15, %v10255_v15  ;;  %v4101_v32 = vmul.f32 %v7501_v28, %v4053_v23 }
 0xcd2   : > { %v3909_v18 = vpop.xlane.xlu0 %3908  ;;  %v3972_v40 = vpop.xlane.xlu1 %3971  ;;  %v10273_v54 = vadd.f32 %v10262_v3, %v4122_v53  ;;  %v4057_v28 = vsub.f32 %v10143_v43, %v10236_v60  ;;  %v4058_v60 = vsub.f32 %v10151_v34, %v10241_v35 }
 0xcd3   : > { %7508 = vrsqrt.f32 %v4073_v38  ;;  %v4042_v14 = vmax.f32 %v4026_v27, 0.0  ;;  %v10275_v13 = vmul.f32 0.0078125, %v3909_v18  ;;  %v3995_v26 = vmul.f32 0.0078125, %v3972_v40 }
 0xcd4   : > { %11797 = vst [vmem:[#allocation62_spill] sm:$0xff] %v10273_v54  ;;  %v7503_v37 = vpop.eup %7502  ;;  %v4159_v33 = vpack.c.bf16 %v10273_v54, %v10270_v36  ;;  %v4123_v20 = vmul.f32 %v10248_v7, %v4101_v32 }
 0xcd5   : > { %v4074_v52 = vadd.f32 1e-12, %v4042_v14  ;;  %v4027_v21 = vsub.f32 %v3995_v26, %v4011_v58  ;;  %v4012_v0 = vmul.f32 %v10275_v13, %v10275_v13  ;;  %v4102_v42 = vmul.f32 %v7503_v37, %v4054_v55 }
 0xcd6   : > { %4308 = vmatmul.mubr.bf16.vlgmr.msra.gmra.mxu1 %v4159_v33  ;;  %v3974_v24 = vpop.xlane.xlu0 %3973  ;;  %v3911_v5 = vpop.xlane.xlu1 %3910  ;;  %v10293_v50 = vadd.f32 %v10262_v3, %v4123_v20 }
 0xcd7   : > { %7510 = vrsqrt.f32 %v4074_v52  ;;  %v4043_v31 = vmax.f32 %v4027_v21, 0.0  ;;  %v3996_v16 = vmul.f32 0.0078125, %v3974_v24  ;;  %v10284_v6 = vmul.f32 0.0078125, %v3911_v5  ;;  %4317 = vmatprep.mubr.bf16.mxu1 %v11798_v51 }
 0xcd8   : > { %v7505_v12 = vpop.eup %7504  ;;  %v4124_v56 = vmul.f32 %v10248_v7, %v4102_v42  ;;  %11799 = vst [vmem:[#allocation61_spill] sm:$0xff] %v10293_v50  ;;  %v4059_v24 = vsub.f32 %v10159_v22, %v10255_v15 }
 0xcd9   : > { %v4075_v59 = vadd.f32 1e-12, %v4043_v31  ;;  %v4028_v4 = vsub.f32 %v3996_v16, %v4012_v0  ;;  %v4013_v63 = vmul.f32 %v10284_v6, %v10284_v6  ;;  %v4103_v8 = vmul.f32 %v7505_v12, %v4055_v57 }
 0xcda   : > { %v3913_v30 = vpop.xlane.xlu0 %3912  ;;  %v3976_v45 = vpop.xlane.xlu1 %3975  ;;  %v10296_v41 = vadd.f32 %v10262_v3, %v4124_v56  ;;  %v4060_v31 = vsub.f32 %v10168_v47, %v10275_v13  ;;  %v4061_v57 = vsub.f32 %v10175_v46, %v10284_v6 }
 0xcdb   : > { %7512 = vrsqrt.f32 %v4075_v59  ;;  %v4044_v9 = vmax.f32 %v4028_v4, 0.0  ;;  %v3934_v48 = vmul.f32 0.0078125, %v3913_v30  ;;  %v3997_v10 = vmul.f32 0.0078125, %v3976_v45 }
 0xcdc   : > { %11800 = vst [vmem:[#allocation56_spill] sm:$0xff] %v10296_v41  ;;  %v7507_v17 = vpop.eup %7506  ;;  %v4160_v61 = vpack.c.bf16 %v10296_v41, %v10293_v50  ;;  %v4125_v38 = vmul.f32 %v10248_v7, %v4103_v8 }
 0xcdd   : > { %v4076_v39 = vadd.f32 1e-12, %v4044_v9  ;;  %v4029_v44 = vsub.f32 %v3997_v10, %v4013_v63  ;;  %v4104_v53 = vmul.f32 %v7507_v17, %v4056_v1  ;;  %v4014_v27 = vmul.f32 %v3934_v48, %v3934_v48 }
 0xcde   : > { %4318 = vmatmul.mubr.bf16.gmra.mxu1 %v4160_v61  ;;  %v3978_v23 = vpop.xlane.xlu0 %3977  ;;  %v10308_v26 = vadd.f32 %v10262_v3, %v4125_v38  ;;  %v4062_v63 = vsub.f32 %v10183_v49, %v3934_v48 }
 0xcdf   : > { %7514 = vrsqrt.f32 %v4076_v39  ;;  %v4045_v58 = vmax.f32 %v4029_v44, 0.0  ;;  %v3998_v18 = vmul.f32 0.0078125, %v3978_v23  ;;  %4327 = vmatprep.mubr.bf16.mxu1 %v11798_v51  ;;  %v4126_v2 = vmul.f32 %v10248_v7, %v4104_v53 }
 0xce0   : > { %v7509_v29 = vpop.eup %7508  ;;  %11801 = vst [vmem:[#allocation55_spill] sm:$0xff] %v10308_v26 }
 0xce1   : > { %v4077_v40 = vadd.f32 1e-12, %v4045_v58  ;;  %v4030_v32 = vsub.f32 %v3998_v18, %v4014_v27  ;;  %v4105_v14 = vmul.f32 %v7509_v29, %v4057_v28  ;;  %v10311_v43 = vadd.f32 %v10262_v3, %v4126_v2 }
 0xce3   : > { %11802 = vst [vmem:[#allocation60_spill] sm:$0xff] %v10311_v43  ;;  %7516 = vrsqrt.f32 %v4077_v40  ;;  %v4046_v37 = vmax.f32 %v4030_v32, 0.0  ;;  %v4161_v33 = vpack.c.bf16 %v10311_v43, %v10308_v26  ;;  %v4127_v0 = vmul.f32 %v10248_v7, %v4105_v14 }
 0xce4   : > { %v7511_v55 = vpop.eup %7510 }
 0xce5   : > { %v4078_v52 = vadd.f32 1e-12, %v4046_v37  ;;  %v4106_v21 = vmul.f32 %v7511_v55, %v4058_v60  ;;  %v10323_v35 = vadd.f32 %v10262_v3, %v4127_v0 }
 0xce6   : > { %4328 = vmatmul.mubr.bf16.gmra.mxu1 %v4161_v33 }
 0xce7   : > { %7518 = vrsqrt.f32 %v4078_v52  ;;  %4337 = vmatprep.mubr.bf16.mxu1 %v11798_v51  ;;  %v4128_v5 = vmul.f32 %v10248_v7, %v4106_v21  ;;  %11803 = vst [vmem:[#allocation59_spill] sm:$0xff] %v10323_v35 }
 0xce8   : > { %v7513_v34 = vpop.eup %7512 }
 0xce9   : > { %v10326_v42 = vadd.f32 %v10262_v3, %v4128_v5  ;;  %v4107_v20 = vmul.f32 %v7513_v34, %v4059_v24 }
 0xceb   : > { %11804 = vst [vmem:[#allocation47_spill] sm:$0xff] %v10326_v42  ;;  %v4162_v16 = vpack.c.bf16 %v10326_v42, %v10323_v35  ;;  %v4129_v12 = vmul.f32 %v10248_v7, %v4107_v20 }
 0xcec   : > { %v7515_v22 = vpop.eup %7514 }
 0xced   : > { %v4108_v15 = vmul.f32 %v7515_v22, %v4060_v31  ;;  %v10338_v4 = vadd.f32 %v10262_v3, %v4129_v12 }
 0xcee   : > { %4338 = vmatmul.mubr.bf16.gmra.mxu1 %v4162_v16 }
 0xcef   : > { %4347 = vmatprep.mubr.bf16.mxu1 %v11798_v51  ;;  %v4130_v56 = vmul.f32 %v10248_v7, %v4108_v15  ;;  %11805 = vst [vmem:[#allocation51_spill] sm:$0xff] %v10338_v4 }
 0xcf0   : > { %v7517_v59 = vpop.eup %7516 }
 0xcf1   : > { %v10341_v47 = vadd.f32 %v10262_v3, %v4130_v56  ;;  %v4109_v13 = vmul.f32 %v7517_v59, %v4061_v57 }
 0xcf3   : > { %11806 = vst [vmem:[#allocation75_spill] sm:$0xff] %v10341_v47  ;;  %v4163_v30 = vpack.c.bf16 %v10341_v47, %v10338_v4  ;;  %v4131_v46 = vmul.f32 %v10248_v7, %v4109_v13 }
 0xcf4   : > { %v7519_v45 = vpop.eup %7518 }
 0xcf5   : > { %v4110_v8 = vmul.f32 %v7519_v45, %v4062_v63  ;;  %v10350_v9 = vadd.f32 %v10262_v3, %v4131_v46 }
 0xcf6   : > { %4348 = vmatmul.mubr.bf16.gmra.mxu1 %v4163_v30 }
 0xcf7   : > { %4357 = vmatprep.mubr.bf16.mxu1 %v11798_v51  ;;  %v4132_v6 = vmul.f32 %v10248_v7, %v4110_v8  ;;  %11807 = vst [vmem:[#allocation74_spill] sm:$0xff] %v10350_v9 }
 0xcf9   : > { %v10353_v10 = vadd.f32 %v10262_v3, %v4132_v6 }
 0xcfa   : > { %v3915_v17 = vpop.xlane.xlu1 %3914 }
 0xcfb   : > { %11808 = vst [vmem:[#allocation48_spill] sm:$0xff] %v10353_v10  ;;  %v3935_v49 = vmul.f32 0.0078125, %v3915_v17  ;;  %v4164_v48 = vpack.c.bf16 %v10353_v10, %v10350_v9 }
 0xcfd   : > { %v4015_v39 = vmul.f32 %v3935_v49, %v3935_v49  ;;  %v4063_v15 = vsub.f32 %v10193_v19, %v3935_v49 }
 0xcfe   : > { %4358 = vmatmul.mubr.bf16.gmra.mxu1 %v4164_v48  ;;  %v3917_v1 = vpop.xlane.xlu0 %3916  ;;  %v3980_v61 = vpop.xlane.xlu1 %3979 }
 0xcff   : > { %v3936_v44 = vmul.f32 0.0078125, %v3917_v1  ;;  %v3999_v28 = vmul.f32 0.0078125, %v3980_v61  ;;  %4367 = vmatprep.mubr.bf16.mxu1 %v11798_v51 }
 0xd01   : > { %v4031_v23 = vsub.f32 %v3999_v28, %v4015_v39  ;;  %v4016_v27 = vmul.f32 %v3936_v44, %v3936_v44  ;;  %v4064_v56 = vsub.f32 %v10198_v62, %v3936_v44  ;;  %v7224_v44 = vld [vmem:[%s8520_s8 + $0x78] sm:$0xff]  }
 0xd02   : > { %v3982_v53 = vpop.xlane.xlu0 %3981  ;;  %v3919_v38 = vpop.xlane.xlu1 %3918  ;;  %6493 = vmatprep.subr.bf16.mxu0 %v7224_v44  ;;  %v7225_v28 = vld [vmem:[%s8520_s8 + $0x38] sm:$0xff]   ;;  %6906 = vmatprep.subr.bf16.mxu1 %v7224_v44  ;;  %v7235_v44 = vld [vmem:[%s8520_s8 + $0x10] sm:$0xff]  }
 0xd03   : > { %v4047_v58 = vmax.f32 %v4031_v23, 0.0  ;;  %v4000_v18 = vmul.f32 0.0078125, %v3982_v53  ;;  %v3937_v29 = vmul.f32 0.0078125, %v3919_v38  ;;  %6494 = vmatpush3.bf16.msra.mxu0 %v7225_v28  ;;  %6914 = vmatpush3.bf16.msra.mxu1 %v7225_v28  ;;  %v4183_v23 = vld [vmem:[%s8552_s28] sm:$0x3]  ;;  %v11813_v53 = vld [vmem:[#allocation46_spill] sm:$0xff] }
 0xd04   : > { %v11814_v38 = vsub.s32 0, %v11813_v53 }
 0xd05   : > { %v4079_v2 = vadd.f32 1e-12, %v4047_v58  ;;  %v4032_v40 = vsub.f32 %v4000_v18, %v4016_v27  ;;  %v4017_v32 = vmul.f32 %v3937_v29, %v3937_v29  ;;  %v4065_v30 = vsub.f32 %v10203_v11, %v3937_v29 }
 0xd06   : > { %v3921_v14 = vpop.xlane.xlu0 %3920  ;;  %v3984_v60 = vpop.xlane.xlu1 %3983  ;;  %v10391_v27 = vrot.slane %v4183_v23, %v11814_v38  ;;  %v11815_v58 = vsub.s32 1, %v11813_v53  ;;  %v7236_v53 = vld [vmem:[%s8520_s8 + $0x48] sm:$0xff]  }
 0xd07   : > { %7520 = vrsqrt.f32 %v4079_v2  ;;  %v4048_v37 = vmax.f32 %v4032_v40, 0.0  ;;  %v3938_v55 = vmul.f32 0.0078125, %v3921_v14  ;;  %v4001_v33 = vmul.f32 0.0078125, %v3984_v60  ;;  %v7229_v2 = vld [vmem:[%s8520_s8 + $0x28] sm:$0xff]  }
 0xd08   : > { %v10395_v18 = vrot.slane %v4183_v23, %v11815_v58 }
 0xd09   : > { %v4080_v52 = vadd.f32 1e-12, %v4048_v37  ;;  %v4033_v21 = vsub.f32 %v4001_v33, %v4017_v32  ;;  %v4018_v24 = vmul.f32 %v3938_v55, %v3938_v55  ;;  %v4066_v62 = vsub.f32 %v10209_v25, %v3938_v55  ;;  %v7230_v55 = vld [vmem:[%s8520_s8 + $0x60] sm:$0xff]  }
 0xd0a   : > { %v3986_v0 = vpop.xlane.xlu0 %3985 }
 0xd0b   : > { %7522 = vrsqrt.f32 %v4080_v52  ;;  %v4049_v5 = vmax.f32 %v4033_v21, 0.0  ;;  %v4002_v34 = vmul.f32 0.0078125, %v3986_v0 }
 0xd0d   : > { %v4081_v20 = vadd.f32 1e-12, %v4049_v5  ;;  %v4034_v31 = vsub.f32 %v4002_v34, %v4018_v24 }
 0xd0f   : > { %7524 = vrsqrt.f32 %v4081_v20  ;;  %v4050_v16 = vmax.f32 %v4034_v31, 0.0 }
 0xd11   : > { %v4082_v22 = vadd.f32 1e-12, %v4050_v16  ;;  %v7231_v16 = vld [vmem:[%s8520_s8 + $0x20] sm:$0xff]  }
 0xd13   : > { %7526 = vrsqrt.f32 %v4082_v22 }
 0xd14   : > { %v7521_v12 = vpop.eup %7520 }
 0xd15   : > { %v4111_v57 = vmul.f32 %v7521_v12, %v4063_v15 }
 0xd17   : > { %v4133_v63 = vmul.f32 %v10248_v7, %v4111_v57 }
 0xd18   : > { %v7523_v59 = vpop.eup %7522 }
 0xd19   : > { %v4112_v13 = vmul.f32 %v7523_v59, %v4064_v56  ;;  %v10364_v46 = vadd.f32 %v10262_v3, %v4133_v63 }
 0xd1b   : > { %v4134_v45 = vmul.f32 %v10248_v7, %v4112_v13  ;;  %11809 = vst [vmem:[#allocation50_spill] sm:$0xff] %v10364_v46  ;;  %v7232_v13 = vld [vmem:[%s8520_s8 + $0x58] sm:$0xff]  }
 0xd1c   : > { %v7525_v8 = vpop.eup %7524 }
 0xd1d   : > { %v10367_v19 = vadd.f32 %v10262_v3, %v4134_v45  ;;  %v4113_v6 = vmul.f32 %v7525_v8, %v4065_v30 }
 0xd1f   : > { %11810 = vst [vmem:[#allocation73_spill] sm:$0xff] %v10367_v19  ;;  %v4165_v17 = vpack.c.bf16 %v10367_v19, %v10364_v46  ;;  %v4135_v48 = vmul.f32 %v10248_v7, %v4113_v6 }
 0xd20   : > { %v7527_v49 = vpop.eup %7526 }
 0xd21   : > { %4368 = vmatmul.mubr.bf16.gmra.mxu1 %v4165_v17  ;;  %v4114_v11 = vmul.f32 %v7527_v49, %v4066_v62  ;;  %v10376_v61 = vadd.f32 %v10262_v3, %v4135_v48  ;;  %v7233_v62 = vld [vmem:[%s8520_s8 + $0x18] sm:$0xff]   ;;  %v7234_v48 = vld [vmem:[%s8520_s8 + $0x50] sm:$0xff]  }
 0xd22   : > { %4377 = vmatprep.mubr.bf16.mxu1 %v11798_v51  ;;  %v7227_v51 = vld [vmem:[%s8520_s8 + $0x30] sm:$0xff]  }
 0xd23   : > { %v4136_v1 = vmul.f32 %v10248_v7, %v4114_v11  ;;  %11811 = vst [vmem:[#allocation72_spill] sm:$0xff] %v10376_v61  ;;  %v7226_v7 = vld [vmem:[%s8520_s8 + $0x70] sm:$0xff]  }
 0xd24   : > { %6495 = vmatprep.subr.bf16.mxu0 %v7226_v7  ;;  %6907 = vmatprep.subr.bf16.mxu1 %v7226_v7 }
 0xd25   : > { %v10379_v25 = vadd.f32 %v10262_v3, %v4136_v1  ;;  %6496 = vmatpush3.bf16.msra.mxu0 %v7227_v51  ;;  %6915 = vmatpush3.bf16.msra.mxu1 %v7227_v51  ;;  %v7228_v3 = vld [vmem:[%s8520_s8 + $0x68] sm:$0xff]  }
 0xd26   : > { %6497 = vmatprep.subr.bf16.mxu0 %v7228_v3  ;;  %6908 = vmatprep.subr.bf16.mxu1 %v7228_v3 }
 0xd27   : > { %11812 = vst [vmem:[#allocation49_spill] sm:$0xff] %v10379_v25  ;;  %v4166_v39 = vpack.c.bf16 %v10379_v25, %v10376_v61 }
 0xd29   : > { %4378 = vmatmul.mubr.bf16.gmra.mxu1 %v4166_v39  ;;  %6498 = vmatpush3.bf16.msra.mxu0 %v7229_v2 }
 0xd2a   : > { %6916 = vmatpush3.bf16.msra.mxu1 %v7229_v2  ;;  %6499 = vmatprep.subr.bf16.mxu0 %v7230_v55 }
 0xd2b   : > { %6909 = vmatprep.subr.bf16.mxu1 %v7230_v55 }
 0xd2d   : > { %6500 = vmatpush3.bf16.msra.mxu0 %v7231_v16 }
 0xd2e   : > { %6917 = vmatpush3.bf16.msra.mxu1 %v7231_v16  ;;  %6501 = vmatprep.subr.bf16.mxu0 %v7232_v13 }
 0xd2f   : > { %6910 = vmatprep.subr.bf16.mxu1 %v7232_v13 }
 0xd31   : > { %6502 = vmatpush3.bf16.msra.mxu0 %v7233_v62 }
 0xd32   : > { %6918 = vmatpush3.bf16.msra.mxu1 %v7233_v62  ;;  %6503 = vmatprep.subr.bf16.mxu0 %v7234_v48 }
 0xd33   : > { %6911 = vmatprep.subr.bf16.mxu1 %v7234_v48 }
 0xd35   : > { %6504 = vmatpush3.bf16.msra.mxu0 %v7235_v44 }
 0xd36   : > { %6919 = vmatpush3.bf16.msra.mxu1 %v7235_v44  ;;  %6505 = vmatprep.subr.bf16.mxu0 %v7236_v53 }
 0xd37   : > { %6912 = vmatprep.subr.bf16.mxu1 %v7236_v53 }
 0xd96   : > { %v4309_v29 = vpop.f32.mrf.mxu1 }
 0xd97   : > { %v10399_v40 = vadd.f32 %v4309_v29, %v10391_v27 }
 0xd98   : > { %v4311_v32 = vpop.f32.mrf.mxu1 }
 0xd99   : > { %v10402_v14 = vmul.f32 0.70710677, %v10399_v40  ;;  %v10405_v60 = vadd.f32 %v4311_v32, %v10395_v18  ;;  %v7237_v32 = vld [vmem:[%s8520_s8 + $0x8] sm:$0xff]  }
 0xd9a   : > { %v4313_v37 = vpop.f32.mrf.mxu1  ;;  %6506 = vmatpush3.bf16.msra.mxu0 %v7237_v32  ;;  %6920 = vmatpush3.bf16.msra.mxu1 %v7237_v32 }
 0xd9b   : > { %v10409_v33 = vand.u32 2147483647, %v10402_v14  ;;  %v10412_v52 = vmul.f32 0.70710677, %v10405_v60  ;;  %v10415_v21 = vadd.f32 %v4313_v37, %v10391_v27  ;;  %vm5060_vm4 = vcmp.ge.f32.partialorder %v10402_v14, 0.0 }
 0xd9c   : > { %v4315_v0 = vpop.f32.mrf.mxu1 }
 0xd9d   : > { %v4484_v24 = vmul.f32 0.3275911, %v10409_v33  ;;  %v10419_v5 = vand.u32 2147483647, %v10412_v52  ;;  %v10422_v34 = vmul.f32 0.70710677, %v10415_v21  ;;  %v10425_v20 = vadd.f32 %v4315_v0, %v10395_v18 }
 0xd9e   : > { %v4319_v31 = vpop.f32.mrf.mxu1  ;;  %v4868_v16 = vsub.f32 0.0, %v10409_v33  ;;  %vm5061_vm6 = vcmp.ge.f32.partialorder %v10412_v52, 0.0 }
 0xd9f   : > { %v4516_v22 = vadd.f32 1.0, %v4484_v24  ;;  %v4485_v15 = vmul.f32 0.3275911, %v10419_v5  ;;  %v10430_v12 = vand.u32 2147483647, %v10422_v34  ;;  %v10441_v8 = vadd.f32 %v4319_v31, %v10391_v27  ;;  %v7238_v24 = vld [vmem:[%s8520_s8 + $0x40] sm:$0xff]  }
 0xda0   : > { %v10433_v57 = vmul.f32 0.70710677, %v10425_v20  ;;  %v4321_v56 = vpop.f32.mrf.mxu1  ;;  %6507 = vmatprep.subr.bf16.mxu0 %v7238_v24  ;;  %6913 = vmatprep.subr.bf16.mxu1 %v7238_v24  ;;  %v4900_v48 = vmul.f32 %v4868_v16, %v10409_v33  ;;  %vm5062_vm5 = vcmp.ge.f32.partialorder %v10422_v34, 0.0 }
 0xda1   : > { %7528 = vrcp.f32 %v4516_v22  ;;  %v4517_v59 = vadd.f32 1.0, %v4485_v15  ;;  %v4486_v63 = vmul.f32 0.3275911, %v10430_v12  ;;  %v10444_v6 = vadd.f32 %v4321_v56, %v10395_v18 }
 0xda2   : > { %v10438_v30 = vand.u32 2147483647, %v10433_v57  ;;  %v4323_v45 = vpop.f32.mrf.mxu1  ;;  %v10449_v11 = vmul.f32 0.70710677, %v10441_v8  ;;  %v4870_v16 = vsub.f32 0.0, %v10430_v12  ;;  %vm5063_vm7 = vcmp.ge.f32.partialorder %v10433_v57, 0.0 }
 0xda3   : > { %7530 = vrcp.f32 %v4517_v59  ;;  %v4518_v17 = vadd.f32 1.0, %v4486_v63  ;;  %v10457_v7 = vmul.f32 0.70710677, %v10444_v6  ;;  %v10460_v51 = vadd.f32 %v4323_v45, %v10391_v27  ;;  %v7239_v59 = vld [vmem:[%s8520_s8] sm:$0xff]  }
 0xda4   : > { %v4487_v49 = vmul.f32 0.3275911, %v10438_v30  ;;  %v4325_v39 = vpop.f32.mrf.mxu1  ;;  %v10454_v28 = vand.u32 2147483647, %v10449_v11  ;;  %6508 = vmatpush3.bf16.msra.mxu0 %v7239_v59  ;;  %6921 = vmatpush3.bf16.msra.mxu1 %v7239_v59  ;;  %vm5064_vm8 = vcmp.ge.f32.partialorder %v10449_v11, 0.0 }
 0xda5   : > { %7532 = vrcp.f32 %v4518_v17  ;;  %v10464_v23 = vadd.f32 %v4325_v39, %v10395_v18  ;;  %v10468_v38 = vand.u32 2147483647, %v10457_v7  ;;  %v10471_v58 = vmul.f32 0.70710677, %v10460_v51 }
 0xda6   : > { %v4519_v1 = vadd.f32 1.0, %v4487_v49  ;;  %v4488_v3 = vmul.f32 0.3275911, %v10454_v28  ;;  %v4329_v2 = vpop.f32.mrf.mxu1  ;;  %vm5065_vm9 = vcmp.ge.f32.partialorder %v10457_v7, 0.0 }
 0xda7   : > { %v4489_v37 = vmul.f32 0.3275911, %v10468_v38  ;;  %v10476_v55 = vand.u32 2147483647, %v10471_v58  ;;  %v10479_v0 = vmul.f32 0.70710677, %v10464_v23  ;;  %v10487_v56 = vadd.f32 %v4329_v2, %v10391_v27 }
 0xda8   : > { %7534 = vrcp.f32 %v4519_v1  ;;  %v4520_v29 = vadd.f32 1.0, %v4488_v3  ;;  %v4331_v44 = vpop.f32.mrf.mxu1  ;;  %v4873_v43 = vsub.f32 0.0, %v10468_v38  ;;  %vm5066_vm10 = vcmp.ge.f32.partialorder %v10471_v58, 0.0 }
 0xda9   : > { %v4521_v22 = vadd.f32 1.0, %v4489_v37  ;;  %v4490_v15 = vmul.f32 0.3275911, %v10476_v55  ;;  %v10492_v63 = vand.u32 2147483647, %v10479_v0  ;;  %vm5067_vm11 = vcmp.ge.f32.partialorder %v10479_v0, 0.0 }
 0xdaa   : > { %7536 = vrcp.f32 %v4520_v29  ;;  %v10500_v39 = vmul.f32 0.70710677, %v10487_v56  ;;  %v4869_v29 = vsub.f32 0.0, %v10419_v5 }
 0xdab   : > { %7538 = vrcp.f32 %v4521_v22  ;;  %v4522_v45 = vadd.f32 1.0, %v4490_v15  ;;  %v4491_v49 = vmul.f32 0.3275911, %v10492_v63  ;;  %v10512_v22 = vadd.f32 %v4331_v44, %v10395_v18 }
 0xdac   : > { %v10508_v24 = vand.u32 2147483647, %v10500_v39  ;;  %v4902_v44 = vmul.f32 %v4870_v16, %v10430_v12  ;;  %vm5068_vm12 = vcmp.ge.f32.partialorder %v10500_v39, 0.0 }
 0xdad   : > { %7540 = vrcp.f32 %v4522_v45  ;;  %v4523_v2 = vadd.f32 1.0, %v4491_v49  ;;  %v4932_v45 = vmul.f32 1.442695, %v4900_v48  ;;  %v10524_v19 = vmul.f32 0.70710677, %v10512_v22 }
 0xdae   : > { %v10482_v31 = vpop.eup %7528 }
 0xdaf   : > { %v4580_v13 = vmul.f32 1.0614054, %v10482_v31  ;;  %7542 = vrcp.f32 %v4523_v2  ;;  %v4901_v2 = vmul.f32 %v4869_v29, %v10419_v5  ;;  %vm5069_vm13 = vcmp.ge.f32.partialorder %v10524_v19, 0.0 }
 0xdb0   : > { %v10494_v62 = vpop.eup %7530  ;;  %7544 = vpow2.f32 %v4932_v45  ;;  %v4872_v45 = vsub.f32 0.0, %v10454_v28 }
 0xdb1   : > { %v4612_v17 = vadd.f32 -1.4531521, %v4580_v13  ;;  %v4581_v1 = vmul.f32 1.0614054, %v10494_v62  ;;  %v4492_v13 = vmul.f32 0.3275911, %v10508_v24 }
 0xdb2   : > { %v10502_v3 = vpop.eup %7532  ;;  %v4934_v29 = vmul.f32 1.442695, %v4901_v2 }
 0xdb3   : > { %v4644_v53 = vmul.f32 %v10482_v31, %v4612_v17  ;;  %v4613_v32 = vadd.f32 -1.4531521, %v4581_v1  ;;  %v4582_v37 = vmul.f32 1.0614054, %v10502_v3  ;;  %v4524_v25 = vadd.f32 1.0, %v4492_v13 }
 0xdb5   : > { %v4676_v33 = vadd.f32 1.4214138, %v4644_v53  ;;  %v10514_v15 = vpop.eup %7534  ;;  %v4614_v59 = vadd.f32 -1.4531521, %v4582_v37  ;;  %v4645_v17 = vmul.f32 %v10494_v62, %v4613_v32  ;;  %v4871_v32 = vsub.f32 0.0, %v10438_v30 }
 0xdb6   : > { %v4583_v49 = vmul.f32 1.0614054, %v10514_v15  ;;  %7546 = vrcp.f32 %v4524_v25 }
 0xdb7   : > { %v4708_v1 = vmul.f32 %v10482_v31, %v4676_v33  ;;  %v4646_v53 = vmul.f32 %v10502_v3, %v4614_v59  ;;  %v10526_v37 = vpop.eup %7536  ;;  %v4677_v46 = vadd.f32 1.4214138, %v4645_v17  ;;  %v10531_v59 = vand.u32 2147483647, %v10524_v19 }
 0xdb8   : > { %v4615_v61 = vadd.f32 -1.4531521, %v4583_v49  ;;  %v4584_v33 = vmul.f32 1.0614054, %v10526_v37  ;;  %v10534_v12 = vpop.eup %7538  ;;  %v4936_v49 = vmul.f32 1.442695, %v4902_v44  ;;  %v4903_v10 = vmul.f32 %v4871_v32, %v10438_v30 }
 0xdb9   : > { %v4678_v48 = vadd.f32 1.4214138, %v4646_v53  ;;  %v4740_v13 = vadd.f32 -0.28449672, %v4708_v1  ;;  %v4585_v17 = vmul.f32 1.0614054, %v10534_v12  ;;  %v4709_v1 = vmul.f32 %v10494_v62, %v4677_v46 }
 0xdba   : > { %v4647_v5 = vmul.f32 %v10514_v15, %v4615_v61  ;;  %v4616_v53 = vadd.f32 -1.4531521, %v4584_v33  ;;  %v4493_v9 = vmul.f32 0.3275911, %v10531_v59  ;;  %v10543_v25 = vpop.eup %7540  ;;  %7548 = vpow2.f32 %v4934_v29 }
 0xdbb   : > { %v4710_v16 = vmul.f32 %v10502_v3, %v4678_v48  ;;  %v4772_v2 = vmul.f32 %v10482_v31, %v4740_v13  ;;  %v4617_v48 = vadd.f32 -1.4531521, %v4585_v17  ;;  %v4586_v32 = vmul.f32 1.0614054, %v10543_v25 }
 0xdbc   : > { %v4648_v61 = vmul.f32 %v10526_v37, %v4616_v53  ;;  %v4679_v47 = vadd.f32 1.4214138, %v4647_v5  ;;  %v4525_v44 = vadd.f32 1.0, %v4493_v9  ;;  %v10547_v4 = vpop.eup %7542  ;;  %7550 = vpow2.f32 %v4936_v49 }
 0xdbd   : > { %v4742_v33 = vadd.f32 -0.28449672, %v4710_v16  ;;  %v4938_v42 = vmul.f32 1.442695, %v4903_v10  ;;  %v4904_v46 = vmul.f32 %v4872_v45, %v10454_v28  ;;  %v4649_v53 = vmul.f32 %v10534_v12, %v4617_v48 }
 0xdbe   : > { %v4680_v30 = vadd.f32 1.4214138, %v4648_v61  ;;  %v4741_v35 = vadd.f32 -0.28449672, %v4709_v1  ;;  %v4618_v13 = vadd.f32 -1.4531521, %v4586_v32  ;;  %7552 = vrcp.f32 %v4525_v44  ;;  %v7545_v44 = vpop.eup %7544 }
 0xdbf   : > { %v4804_v5 = vadd.f32 0.2548296, %v4772_v2  ;;  %v4711_v9 = vmul.f32 %v10514_v15, %v4679_v47  ;;  %v4874_v29 = vsub.f32 0.0, %v10476_v55  ;;  %v4587_v16 = vmul.f32 1.0614054, %v10547_v4 }
 0xdc0   : > { %v4774_v17 = vmul.f32 %v10502_v3, %v4742_v33  ;;  %v4712_v10 = vmul.f32 %v10526_v37, %v4680_v30  ;;  %v4681_v49 = vadd.f32 1.4214138, %v4649_v53  ;;  %v4650_v28 = vmul.f32 %v10543_v25, %v4618_v13 }
 0xdc1   : > { %v4940_v45 = vmul.f32 1.442695, %v4904_v46  ;;  %v4773_v1 = vmul.f32 %v10494_v62, %v4741_v35  ;;  %v4905_v61 = vmul.f32 %v4873_v43, %v10468_v38  ;;  %v4619_v2 = vadd.f32 -1.4531521, %v4587_v16 }
 0xdc2   : > { %v4682_v48 = vadd.f32 1.4214138, %v4650_v28  ;;  %v10561_v47 = vmul.f32 0.5, %v10399_v40  ;;  %v4836_v32 = vmul.f32 %v10482_v31, %v4804_v5  ;;  %v4743_v26 = vadd.f32 -0.28449672, %v4711_v9 }
 0xdc3   : > { %v4906_v33 = vmul.f32 %v4874_v29, %v10476_v55  ;;  %v10565_v30 = vpop.eup %7546  ;;  %v4806_v53 = vadd.f32 0.2548296, %v4774_v17  ;;  %7554 = vpow2.f32 %v4938_v42  ;;  %v4744_v46 = vadd.f32 -0.28449672, %v4712_v10 }
 0xdc4   : > { %v4713_v35 = vmul.f32 %v10534_v12, %v4681_v49  ;;  %v10569_v43 = vmul.f32 0.5, %v10405_v60  ;;  %v10572_v38 = vmul.f32 0.5, %v10415_v21  ;;  %7556 = vpow2.f32 %v4940_v45  ;;  %v4333_v49 = vpop.f32.mrf.mxu1 }
 0xdc5   : > { %v4714_v40 = vmul.f32 %v10543_v25, %v4682_v48  ;;  %v4805_v31 = vadd.f32 0.2548296, %v4773_v1  ;;  %v4942_v13 = vmul.f32 1.442695, %v4905_v61  ;;  %v4651_v55 = vmul.f32 %v10547_v4, %v4619_v2 }
 0xdc6   : > { %v4875_v5 = vsub.f32 0.0, %v10492_v63  ;;  %v4996_v9 = vmul.f32 %v7545_v44, %v4836_v32  ;;  %v4775_v42 = vmul.f32 %v10514_v15, %v4743_v26  ;;  %v4944_v29 = vmul.f32 1.442695, %v4906_v33 }
 0xdc7   : > { %v4588_v16 = vmul.f32 1.0614054, %v10565_v30  ;;  %v4838_v60 = vmul.f32 %v10502_v3, %v4806_v53  ;;  %v10581_v21 = vmul.f32 0.5, %v10425_v20  ;;  %v4776_v17 = vmul.f32 %v10526_v37, %v4744_v46  ;;  %v7549_v28 = vpop.eup %7548 }
 0xdc8   : > { %v4745_v10 = vadd.f32 -0.28449672, %v4713_v35  ;;  %v10585_v45 = vmul.f32 0.5, %v10441_v8  ;;  %v4746_v1 = vadd.f32 -0.28449672, %v4714_v40  ;;  %v4876_v26 = vsub.f32 0.0, %v10508_v24 }
 0xdc9   : > { %v4620_v61 = vadd.f32 -1.4531521, %v4588_v16  ;;  %v7551_v48 = vpop.eup %7550  ;;  %v4837_v3 = vmul.f32 %v10494_v62, %v4805_v31  ;;  %7558 = vpow2.f32 %v4942_v13  ;;  %v4683_v20 = vadd.f32 1.4214138, %v4651_v55  ;;  %v4335_v62 = vpop.f32.mrf.mxu1 }
 0xdca   : > { %v4907_v2 = vmul.f32 %v4875_v5, %v10492_v63  ;;  %v5028_v32 = vsub.f32 1.0, %v4996_v9  ;;  %v4807_v33 = vadd.f32 0.2548296, %v4775_v42  ;;  %v10594_v8 = vmul.f32 0.5, %v10444_v6 }
 0xdcb   : > { %v10591_v44 = vpop.eup %7552  ;;  %7560 = vpow2.f32 %v4944_v29  ;;  %v4998_v53 = vmul.f32 %v7551_v48, %v4838_v60  ;;  %v4808_v46 = vadd.f32 0.2548296, %v4776_v17  ;;  %v4777_v35 = vmul.f32 %v10534_v12, %v4745_v10 }
 0xdcc   : > { %v10598_v40 = vmul.f32 0.5, %v10460_v51  ;;  %v4778_v31 = vmul.f32 %v10543_v25, %v4746_v1  ;;  %v10602_v63 = vmul.f32 0.5, %v10464_v23  ;;  %v4652_v13 = vmul.f32 %v10565_v30, %v4620_v61 }
 0xdcd   : > { %v4908_v55 = vmul.f32 %v4876_v26, %v10508_v24  ;;  %v4997_v6 = vmul.f32 %v7549_v28, %v4837_v3  ;;  %v4715_v5 = vmul.f32 %v10547_v4, %v4683_v20  ;;  %v4946_v9 = vmul.f32 1.442695, %v4907_v2  ;;  %v4339_v20 = vpop.f32.mrf.mxu1 }
 0xdce   : > { %v4589_v42 = vmul.f32 1.0614054, %v10591_v44  ;;  %v5092_v29 = vsub.f32 0.0, %v5028_v32  ;;  %v4839_v51 = vmul.f32 %v10514_v15, %v4807_v33  ;;  %v10611_v16 = vadd.f32 %v4333_v49, %v10391_v27 }
 0xdcf   : > { %v10614_v23 = vadd.f32 %v4335_v62, %v10395_v18  ;;  %v5030_v60 = vsub.f32 1.0, %v4998_v53  ;;  %v4840_v24 = vmul.f32 %v10526_v37, %v4808_v46  ;;  %v4809_v17 = vadd.f32 0.2548296, %v4777_v35 }
 0xdd0   : > { %v10618_v10 = vmul.f32 0.5, %v10487_v56  ;;  %v7555_v28 = vpop.eup %7554  ;;  %v4810_v1 = vadd.f32 0.2548296, %v4778_v31  ;;  %v4684_v61 = vadd.f32 1.4214138, %v4652_v13  ;;  %v5029_v48 = vsub.f32 1.0, %v4997_v6 }
 0xdd1   : > { %v4948_v26 = vmul.f32 1.442695, %v4908_v55  ;;  %v7557_v15 = vpop.eup %7556  ;;  %v4747_v49 = vadd.f32 -0.28449672, %v4715_v5  ;;  %7562 = vpow2.f32 %v4946_v9  ;;  %v4621_v3 = vadd.f32 -1.4531521, %v4589_v42 }
 0xdd2   : > { %v5124_v2 = vsel %vm5060_vm4, %v5028_v32, %v5092_v29  ;;  %v4999_v37 = vmul.f32 %v7555_v28, %v4839_v51  ;;  %v10624_v33 = vmul.f32 0.70710677, %v10611_v16  ;;  %v10627_v56 = vmul.f32 0.70710677, %v10614_v23 }
 0xdd3   : > { %v5094_v53 = vsub.f32 0.0, %v5030_v60  ;;  %v5000_v46 = vmul.f32 %v7557_v15, %v4840_v24  ;;  %v4841_v35 = vmul.f32 %v10534_v12, %v4809_v17  ;;  %v10631_v62 = vmul.f32 0.5, %v10512_v22  ;;  %v4341_v12 = vpop.f32.mrf.mxu1 }
 0xdd4   : > { %v4842_v31 = vmul.f32 %v10543_v25, %v4810_v1  ;;  %v4716_v13 = vmul.f32 %v10565_v30, %v4684_v61  ;;  %7564 = vpow2.f32 %v4948_v26  ;;  %v10636_v14 = vand.u32 2147483647, %v10624_v33 }
 0xdd5   : > { %v5156_v32 = vadd.f32 1.0, %v5124_v2  ;;  %v5093_v55 = vsub.f32 0.0, %v5029_v48  ;;  %v4779_v6 = vmul.f32 %v10547_v4, %v4747_v49  ;;  %v4653_v5 = vmul.f32 %v10591_v44, %v4621_v3  ;;  %v4343_v34 = vpop.f32.mrf.mxu1 }
 0xdd6   : > { %v7559_v9 = vpop.eup %7558  ;;  %v5031_v22 = vsub.f32 1.0, %v4999_v37  ;;  %v4877_v25 = vsub.f32 0.0, %v10531_v59  ;;  %v4494_v42 = vmul.f32 0.3275911, %v10636_v14  ;;  %v10645_v29 = vand.u32 2147483647, %v10627_v56 }
 0xdd7   : > { %v5126_v24 = vsel %vm5062_vm5, %v5030_v60, %v5094_v53  ;;  %v5032_v17 = vsub.f32 1.0, %v5000_v46  ;;  %v5001_v28 = vmul.f32 %v7559_v9, %v4841_v35  ;;  %v10650_v1 = vadd.f32 %v4339_v20, %v10391_v27 }
 0xdd8   : > { %v7561_v51 = vpop.eup %7560  ;;  %v4748_v26 = vadd.f32 -0.28449672, %v4716_v13  ;;  %v4526_v15 = vadd.f32 1.0, %v4494_v42  ;;  %v4495_v49 = vmul.f32 0.3275911, %v10645_v29  ;;  %v10654_v3 = vmul.f32 %v5156_v32, %v10561_v47 }
 0xdd9   : > { %v5002_v61 = vmul.f32 %v7561_v51, %v4842_v31  ;;  %v5125_v2 = vsel %vm5061_vm6, %v5029_v48, %v5093_v55  ;;  %v4811_v37 = vadd.f32 0.2548296, %v4779_v6  ;;  %v4685_v41 = vadd.f32 1.4214138, %v4653_v5  ;;  %v4345_v5 = vpop.f32.mrf.mxu1 }
 0xdda   : > { %v5095_v60 = vsub.f32 0.0, %v5031_v22  ;;  %v4909_v20 = vmul.f32 %v4877_v25, %v10531_v59  ;;  %7566 = vrcp.f32 %v4526_v15  ;;  %v4527_v53 = vadd.f32 1.0, %v4495_v49 }
 0xddb   : > { %v5158_v46 = vadd.f32 1.0, %v5126_v24  ;;  %v5096_v35 = vsub.f32 0.0, %v5032_v17  ;;  %v5033_v31 = vsub.f32 1.0, %v5001_v28  ;;  %v10662_v47 = vmul.f32 0.70710677, %v10650_v1 }
 0xddc   : > { %v5157_v52 = vadd.f32 1.0, %v5125_v2  ;;  %v5034_v48 = vsub.f32 1.0, %v5002_v61  ;;  %v4780_v13 = vmul.f32 %v10565_v30, %v4748_v26  ;;  %v10666_v32 = vadd.f32 %v4341_v12, %v10395_v18 }
 0xddd   : > { %v4843_v55 = vmul.f32 %v10547_v4, %v4811_v37  ;;  %v4717_v59 = vmul.f32 %v10591_v44, %v4685_v41  ;;  %7568 = vrcp.f32 %v4527_v53  ;;  %v10671_v6 = vand.u32 2147483647, %v10662_v47 }
 0xdde   : > { %v7563_v9 = vpop.eup %7562  ;;  %v5127_v25 = vsel %vm5063_vm7, %v5031_v22, %v5095_v60  ;;  %v4950_v42 = vmul.f32 1.442695, %v4909_v20  ;;  %v10676_v51 = vmul.f32 0.70710677, %v10666_v32  ;;  %v10679_v12 = vadd.f32 %v4343_v34, %v10391_v27  ;;  %v4349_v34 = vpop.f32.mrf.mxu1 }
 0xddf   : > { %v10682_v4 = vmul.f32 %v5158_v46, %v10572_v38  ;;  %v5128_v41 = vsel %vm5064_vm8, %v5032_v17, %v5096_v35  ;;  %v5097_v24 = vsub.f32 0.0, %v5033_v31  ;;  %v4496_v28 = vmul.f32 0.3275911, %v10671_v6 }
 0xde0   : > { %v10688_v61 = vmul.f32 %v5157_v52, %v10569_v43  ;;  %v5098_v57 = vsub.f32 0.0, %v5034_v48  ;;  %v4812_v22 = vadd.f32 0.2548296, %v4780_v13  ;;  %v10691_v26 = vand.u32 2147483647, %v10676_v51 }
 0xde1   : > { %v7565_v15 = vpop.eup %7564  ;;  %v5159_v49 = vadd.f32 1.0, %v5127_v25  ;;  %v5003_v2 = vmul.f32 %v7563_v9, %v4843_v55  ;;  %v4749_v37 = vadd.f32 -0.28449672, %v4717_v59  ;;  %v4528_v38 = vadd.f32 1.0, %v4496_v28 }
 0xde2   : > { %v5160_v60 = vadd.f32 1.0, %v5128_v41  ;;  %7570 = vpow2.f32 %v4950_v42  ;;  %v4497_v11 = vmul.f32 0.3275911, %v10691_v26  ;;  %v10695_v17 = vmul.f32 0.70710677, %v10679_v12 }
 0xde3   : > { %v5129_v20 = vsel %vm5065_vm9, %v5033_v31, %v5097_v24  ;;  %7572 = vrcp.f32 %v4528_v38  ;;  %v10702_v53 = vadd.f32 %v4345_v5, %v10395_v18  ;;  %v5130_v46 = vsel %vm5066_vm10, %v5034_v48, %v5098_v57  ;;  %v4351_v5 = vpop.f32.mrf.mxu1 }
 0xde4   : > { %v4844_v35 = vmul.f32 %v10565_v30, %v4812_v22  ;;  %v4529_v52 = vadd.f32 1.0, %v4497_v11  ;;  %v10709_v13 = vand.u32 2147483647, %v10695_v17  ;;  %v10712_v55 = vmul.f32 %v5159_v49, %v10581_v21 }
 0xde5   : > { %v5035_v7 = vsub.f32 1.0, %v5003_v2  ;;  %v4781_v31 = vmul.f32 %v10591_v44, %v4749_v37  ;;  %v10716_v59 = vmul.f32 0.70710677, %v10702_v53  ;;  %v10719_v58 = vmul.f32 %v5160_v60, %v10585_v45 }
 0xde6   : > { %v10722_v48 = vmul.f32 0.5, %v10611_v16  ;;  %7574 = vrcp.f32 %v4529_v52  ;;  %v4498_v30 = vmul.f32 0.3275911, %v10709_v13  ;;  %v5161_v21 = vadd.f32 1.0, %v5129_v20 }
 0xde7   : > { %11816 = vst [vmem:[#allocation53_spill] sm:$0xff] %v10719_v58  ;;  %v10725_v9 = vpop.eup %7566  ;;  %v5162_v25 = vadd.f32 1.0, %v5130_v46  ;;  %v10728_v42 = vand.u32 2147483647, %v10716_v59  ;;  %v10731_v41 = vadd.f32 %v4349_v34, %v10391_v27  ;;  %v5004_v24 = vmul.f32 %v7565_v15, %v4844_v35 }
 0xde8   : > { %v4590_v45 = vmul.f32 1.0614054, %v10725_v9  ;;  %v4530_v28 = vadd.f32 1.0, %v4498_v30  ;;  %v10735_v16 = vadd.f32 %v4351_v5, %v10395_v18  ;;  %v5099_v57 = vsub.f32 0.0, %v5035_v7  ;;  %v4353_v30 = vpop.f32.mrf.mxu1 }
 0xde9   : > { %v4813_v22 = vadd.f32 0.2548296, %v4781_v31  ;;  %v4878_v49 = vsub.f32 0.0, %v10636_v14  ;;  %v4499_v2 = vmul.f32 0.3275911, %v10728_v42  ;;  %v4879_v60 = vsub.f32 0.0, %v10645_v29 }
 0xdea   : > { %v10739_v37 = vpop.eup %7568  ;;  %v4622_v38 = vadd.f32 -1.4531521, %v4590_v45  ;;  %7576 = vrcp.f32 %v4530_v28  ;;  %v10743_v15 = vmul.f32 0.70710677, %v10731_v41  ;;  %v10746_v34 = vmul.f32 %v5162_v25, %v10598_v40 }
 0xdeb   : > { %v10750_v11 = vmul.f32 0.5, %v10614_v23  ;;  %v4591_v20 = vmul.f32 1.0614054, %v10739_v37  ;;  %v4531_v46 = vadd.f32 1.0, %v4499_v2  ;;  %v5036_v35 = vsub.f32 1.0, %v5004_v24 }
 0xdec   : > { %11817 = vst [vmem:[#allocation52_spill] sm:$0xff] %v10746_v34  ;;  %v4654_v52 = vmul.f32 %v10725_v9, %v4622_v38  ;;  %v10755_v31 = vand.u32 2147483647, %v10743_v15  ;;  %v10758_v5 = vmul.f32 0.70710677, %v10735_v16  ;;  %v5131_v40 = vsel %vm5067_vm11, %v5035_v7, %v5099_v57 }
 0xded   : > { %v4845_v25 = vmul.f32 %v10591_v44, %v4813_v22  ;;  %v4910_v23 = vmul.f32 %v4878_v49, %v10636_v14  ;;  %v4623_v45 = vadd.f32 -1.4531521, %v4591_v20  ;;  %v4911_v24 = vmul.f32 %v4879_v60, %v10645_v29 }
 0xdee   : > { %v4686_v28 = vadd.f32 1.4214138, %v4654_v52  ;;  %7578 = vrcp.f32 %v4531_v46  ;;  %v4500_v2 = vmul.f32 0.3275911, %v10755_v31  ;;  %v10767_v43 = vmul.f32 %v5161_v21, %v10594_v8 }
 0xdef   : > { %v7571_v38 = vpop.eup %7570  ;;  %v10770_v50 = vmul.f32 0.5, %v10650_v1  ;;  %v10773_v0 = vand.u32 2147483647, %v10758_v5  ;;  %v10776_v44 = vadd.f32 %v4353_v30, %v10391_v27  ;;  %v5100_v7 = vsub.f32 0.0, %v5036_v35 }
 0xdf0   : > { %v10778_v14 = vpop.eup %7572  ;;  %v4718_v29 = vmul.f32 %v10725_v9, %v4686_v28  ;;  %v4655_v57 = vmul.f32 %v10739_v37, %v4623_v45  ;;  %v4532_v22 = vadd.f32 1.0, %v4500_v2  ;;  %v5163_v21 = vadd.f32 1.0, %v5131_v40 }
 0xdf1   : > { %v4592_v1 = vmul.f32 1.0614054, %v10778_v14  ;;  %v4501_v49 = vmul.f32 0.3275911, %v10773_v0  ;;  %v5005_v60 = vmul.f32 %v7571_v38, %v4845_v25  ;;  %v4952_v20 = vmul.f32 1.442695, %v4910_v23 }
 0xdf2   : > { %v4954_v46 = vmul.f32 1.442695, %v4911_v24  ;;  %7580 = vrcp.f32 %v4532_v22  ;;  %v4880_v28 = vsub.f32 0.0, %v10671_v6  ;;  %v10790_v45 = vmul.f32 0.70710677, %v10776_v44 }
 0xdf3   : > { %v10786_v52 = vpop.eup %7574  ;;  %v4624_v30 = vadd.f32 -1.4531521, %v4592_v1  ;;  %v4533_v54 = vadd.f32 1.0, %v4501_v49  ;;  %v5132_v40 = vsel %vm5068_vm12, %v5036_v35, %v5100_v7  ;;  %v4750_v2 = vadd.f32 -0.28449672, %v4718_v29 }
 0xdf4   : > { %11818 = vst [vmem:[#allocation54_spill] sm:$0xff] %v10790_v45  ;;  %v4687_v8 = vadd.f32 1.4214138, %v4655_v57  ;;  %v4593_v36 = vmul.f32 1.0614054, %v10786_v52  ;;  %v4882_v23 = vsub.f32 0.0, %v10709_v13  ;;  %v10805_v7 = vmul.f32 %v5163_v21, %v10602_v63 }
 0xdf5   : > { %v4656_v25 = vmul.f32 %v10778_v14, %v4624_v30  ;;  %7582 = vrcp.f32 %v4533_v54  ;;  %v10799_v24 = vand.u32 2147483647, %v10790_v45  ;;  %v5037_v38 = vsub.f32 1.0, %v5005_v60 }
 0xdf6   : > { %7584 = vpow2.f32 %v4952_v20  ;;  %v4625_v22 = vadd.f32 -1.4531521, %v4593_v36  ;;  %v4881_v39 = vsub.f32 0.0, %v10691_v26  ;;  %v5164_v29 = vadd.f32 1.0, %v5132_v40 }
 0xdf7   : > { %v10802_v35 = vpop.eup %7576  ;;  %v4912_v57 = vmul.f32 %v4880_v28, %v10671_v6  ;;  %v4502_v1 = vmul.f32 0.3275911, %v10799_v24  ;;  %v4782_v54 = vmul.f32 %v10725_v9, %v4750_v2  ;;  %v4719_v49 = vmul.f32 %v10739_v37, %v4687_v8 }
 0xdf8   : > { %v4657_v60 = vmul.f32 %v10786_v52, %v4625_v22  ;;  %v4594_v36 = vmul.f32 1.0614054, %v10802_v35  ;;  %7586 = vpow2.f32 %v4954_v46  ;;  %v4688_v20 = vadd.f32 1.4214138, %v4656_v25 }
 0xdf9   : > { %v4914_v30 = vmul.f32 %v4882_v23, %v10709_v13  ;;  %v4534_v45 = vadd.f32 1.0, %v4502_v1  ;;  %v5101_v63 = vsub.f32 0.0, %v5037_v38  ;;  %v4913_v40 = vmul.f32 %v4881_v39, %v10691_v26 }
 0xdfa   : > { %v4689_v21 = vadd.f32 1.4214138, %v4657_v60  ;;  %v4626_v6 = vadd.f32 -1.4531521, %v4594_v36  ;;  %v4956_v58 = vmul.f32 1.442695, %v4912_v57  ;;  %v4720_v23 = vmul.f32 %v10778_v14, %v4688_v20 }
 0xdfb   : > { %v10815_v28 = vpop.eup %7578  ;;  %v10818_v2 = vmul.f32 0.5, %v10666_v32  ;;  %v4883_v8 = vsub.f32 0.0, %v10728_v42  ;;  %7588 = vrcp.f32 %v4534_v45  ;;  %v4814_v22 = vadd.f32 0.2548296, %v4782_v54 }
 0xdfc   : > { %v4751_v46 = vadd.f32 -0.28449672, %v4719_v49  ;;  %v4658_v25 = vmul.f32 %v10802_v35, %v4626_v6  ;;  %v4595_v13 = vmul.f32 1.0614054, %v10815_v28  ;;  %v4721_v26 = vmul.f32 %v10786_v52, %v4689_v21 }
 0xdfd   : > { %v10826_v39 = vmul.f32 0.5, %v10679_v12  ;;  %v4960_v57 = vmul.f32 1.442695, %v4914_v30  ;;  %v10829_v32 = vmul.f32 %v5164_v29, %v10618_v10  ;;  %v5133_v45 = vsel %vm5069_vm13, %v5037_v38, %v5101_v63 }
 0xdfe   : > { %v4958_v1 = vmul.f32 1.442695, %v4913_v40  ;;  %v4690_v54 = vadd.f32 1.4214138, %v4658_v25  ;;  %7590 = vpow2.f32 %v4956_v58  ;;  %v4627_v60 = vadd.f32 -1.4531521, %v4595_v13  ;;  %v4355_v25 = vpop.f32.mrf.mxu1 }
 0xdff   : > { %v10833_v49 = vpop.eup %7580  ;;  %v4915_v36 = vmul.f32 %v4883_v8, %v10728_v42  ;;  %v4884_v20 = vsub.f32 0.0, %v10755_v31  ;;  %v4846_v12 = vmul.f32 %v10725_v9, %v4814_v22  ;;  %v4783_v30 = vmul.f32 %v10739_v37, %v4751_v46 }
 0xe00   : > { %v4722_v10 = vmul.f32 %v10802_v35, %v4690_v54  ;;  %v4596_v29 = vmul.f32 1.0614054, %v10833_v49  ;;  %v4752_v19 = vadd.f32 -0.28449672, %v4720_v23  ;;  %v4753_v38 = vadd.f32 -0.28449672, %v4721_v26 }
 0xe01   : > { %7592 = vpow2.f32 %v4960_v57  ;;  %v4659_v63 = vmul.f32 %v10815_v28, %v4627_v60  ;;  %v5165_v58 = vadd.f32 1.0, %v5133_v45  ;;  %v4962_v9 = vmul.f32 1.442695, %v4915_v36 }
 0xe02   : > { %v10842_v21 = vpop.eup %7582  ;;  %7594 = vpow2.f32 %v4958_v1  ;;  %v4754_v42 = vadd.f32 -0.28449672, %v4722_v10  ;;  %v4628_v40 = vadd.f32 -1.4531521, %v4596_v29  ;;  %v4916_v22 = vmul.f32 %v4884_v20, %v10755_v31 }
 0xe03   : > { %v7585_v6 = vpop.eup %7584  ;;  %v4691_v8 = vadd.f32 1.4214138, %v4659_v63  ;;  %v4885_v46 = vsub.f32 0.0, %v10773_v0  ;;  %v4815_v23 = vadd.f32 0.2548296, %v4783_v30  ;;  %v4784_v54 = vmul.f32 %v10778_v14, %v4752_v19 }
 0xe04   : > { %v5006_v13 = vmul.f32 %v7585_v6, %v4846_v12  ;;  %v4786_v26 = vmul.f32 %v10802_v35, %v4754_v42  ;;  %v4660_v57 = vmul.f32 %v10833_v49, %v4628_v40  ;;  %v4785_v45 = vmul.f32 %v10786_v52, %v4753_v38 }
 0xe05   : > { %v4723_v1 = vmul.f32 %v10815_v28, %v4691_v8  ;;  %v4597_v60 = vmul.f32 1.0614054, %v10842_v21  ;;  %v7587_v36 = vpop.eup %7586  ;;  %v10853_v31 = vmul.f32 0.5, %v10702_v53  ;;  %v10856_v12 = vadd.f32 %v4355_v25, %v10395_v18 }
 0xe06   : > { %v4818_v10 = vadd.f32 0.2548296, %v4786_v26  ;;  %v4692_v20 = vadd.f32 1.4214138, %v4660_v57  ;;  %vm5070_vm14 = vcmp.ge.f32.partialorder %v10624_v33, 0.0  ;;  %7596 = vpow2.f32 %v4962_v9 }
 0xe07   : > { %v4755_v30 = vadd.f32 -0.28449672, %v4723_v1  ;;  %v4964_v29 = vmul.f32 1.442695, %v4916_v22  ;;  %v4629_v19 = vadd.f32 -1.4531521, %v4597_v60  ;;  %v4847_v42 = vmul.f32 %v10739_v37, %v4815_v23  ;;  %v4359_v37 = vpop.f32.mrf.mxu1 }
 0xe08   : > { %v10859_v38 = vpop.eup %7588  ;;  %v5038_v63 = vsub.f32 1.0, %v5006_v13  ;;  %v4724_v40 = vmul.f32 %v10833_v49, %v4692_v20  ;;  %v4917_v53 = vmul.f32 %v4885_v46, %v10773_v0  ;;  %v4816_v6 = vadd.f32 0.2548296, %v4784_v54 }
 0xe09   : > { %v4817_v8 = vadd.f32 0.2548296, %v4785_v45  ;;  %v4661_v25 = vmul.f32 %v10842_v21, %v4629_v19  ;;  %v4598_v26 = vmul.f32 1.0614054, %v10859_v38  ;;  %v10867_v57 = vmul.f32 %v5165_v58, %v10631_v62 }
 0xe0a   : > { %v4850_v9 = vmul.f32 %v10802_v35, %v4818_v10  ;;  %v4886_v22 = vsub.f32 0.0, %v10799_v24  ;;  %v10872_v13 = vmul.f32 0.70710677, %v10856_v12  ;;  %v4787_v23 = vmul.f32 %v10815_v28, %v4755_v30 }
 0xe0b   : > { %v4756_v0 = vadd.f32 -0.28449672, %v4724_v40  ;;  %v4693_v46 = vadd.f32 1.4214138, %v4661_v25  ;;  %v4630_v54 = vadd.f32 -1.4531521, %v4598_v26  ;;  %v7591_v45 = vpop.eup %7590  ;;  %v5007_v60 = vmul.f32 %v7587_v36, %v4847_v42 }
 0xe0c   : > { %v5102_v1 = vsub.f32 0.0, %v5038_v63  ;;  %7598 = vpow2.f32 %v4964_v29  ;;  %v4966_v20 = vmul.f32 1.442695, %v4917_v53  ;;  %v4848_v62 = vmul.f32 %v10778_v14, %v4816_v6  ;;  %v4361_v29 = vpop.f32.mrf.mxu1 }
 0xe0d   : > { %v4849_v35 = vmul.f32 %v10786_v52, %v4817_v8  ;;  %v4725_v58 = vmul.f32 %v10842_v21, %v4693_v46  ;;  %v4662_v10 = vmul.f32 %v10859_v38, %v4630_v54  ;;  %v10880_v34 = vmul.f32 0.5, %v10731_v41 }
 0xe0e   : > { %v7593_v19 = vpop.eup %7592  ;;  %v4918_v30 = vmul.f32 %v4886_v22, %v10799_v24  ;;  %v10884_v40 = vand.u32 2147483647, %v10872_v13  ;;  %v4360_v36 = vadd.f32 %v4359_v37, %v10391_v27  ;;  %vm5071_vm15 = vcmp.ge.f32.partialorder %v10627_v56, 0.0 }
 0xe0f   : > { %v7595_v42 = vpop.eup %7594  ;;  %v5010_v14 = vmul.f32 %v7593_v19, %v4850_v9  ;;  %v4819_v52 = vadd.f32 0.2548296, %v4787_v23  ;;  %v4788_v53 = vmul.f32 %v10833_v49, %v4756_v0  ;;  %v10890_v6 = vmul.f32 0.5, %v10735_v16  ;;  %v4363_v0 = vpop.f32.mrf.mxu1 }
 0xe10   : > { %v5134_v41 = vsel %vm5070_vm14, %v5038_v63, %v5102_v1  ;;  %v5039_v24 = vsub.f32 1.0, %v5007_v60  ;;  %v4757_v8 = vadd.f32 -0.28449672, %v4725_v58  ;;  %v4503_v25 = vmul.f32 0.3275911, %v10884_v40 }
 0xe11   : > { %v5008_v26 = vmul.f32 %v7591_v45, %v4848_v62  ;;  %v5009_v22 = vmul.f32 %v7595_v42, %v4849_v35  ;;  %7600 = vpow2.f32 %v4966_v20  ;;  %v4694_v37 = vadd.f32 1.4214138, %v4662_v10  ;;  %v4365_v42 = vpop.f32.mrf.mxu1 }
 0xe12   : > { %vm5074_vm0 = vcmp.ge.f32.partialorder %v10695_v17, 0.0  ;;  %v4968_v9 = vmul.f32 1.442695, %v4918_v30  ;;  %v4535_v23 = vadd.f32 1.0, %v4503_v25  ;;  %v10896_v46 = vmul.f32 0.70710677, %v4360_v36 }
 0xe13   : > { %v10899_v16 = vadd.f32 %v4361_v29, %v10395_v18  ;;  %v5166_v33 = vadd.f32 1.0, %v5134_v41  ;;  %v5042_v63 = vsub.f32 1.0, %v5010_v14  ;;  %v4851_v54 = vmul.f32 %v10815_v28, %v4819_v52  ;;  %v7597_v60 = vpop.eup %7596 }
 0xe14   : > { %v4820_v1 = vadd.f32 0.2548296, %v4788_v53  ;;  %v5103_v45 = vsub.f32 0.0, %v5039_v24  ;;  %vm5072_vm1 = vcmp.ge.f32.partialorder %v10662_v47, 0.0  ;;  %vm5073_vm2 = vcmp.ge.f32.partialorder %v10676_v51, 0.0 }
 0xe15   : > { %v4789_v20 = vmul.f32 %v10842_v21, %v4757_v8  ;;  %7602 = vrcp.f32 %v4535_v23  ;;  %v10906_v62 = vand.u32 2147483647, %v10896_v46  ;;  %v5040_v35 = vsub.f32 1.0, %v5008_v26 }
 0xe16   : > { %v5041_v58 = vsub.f32 1.0, %v5009_v22  ;;  %v10909_v10 = vmul.f32 0.5, %v10776_v44  ;;  %v4726_v28 = vmul.f32 %v10859_v38, %v4694_v37  ;;  %7604 = vpow2.f32 %v4968_v9 }
 0xe17   : > { %v10913_v19 = vmul.f32 0.5, %v10856_v12  ;;  %v4504_v30 = vmul.f32 0.3275911, %v10906_v62  ;;  %v10917_v29 = vadd.f32 %v4363_v0, %v10391_v27  ;;  %v10920_v14 = vmul.f32 %v5166_v33, %v10722_v48 }
 0xe18   : > { %v5106_v52 = vsub.f32 0.0, %v5042_v63  ;;  %v5011_v53 = vmul.f32 %v7597_v60, %v4851_v54  ;;  %v4852_v44 = vmul.f32 %v10833_v49, %v4820_v1  ;;  %v5135_v41 = vsel %vm5071_vm15, %v5039_v24, %v5103_v45 }
 0xe19   : > { %v4821_v8 = vadd.f32 0.2548296, %v4789_v20  ;;  %v4536_v25 = vadd.f32 1.0, %v4504_v30  ;;  %v10926_v12 = vmul.f32 0.70710677, %v10899_v16  ;;  %v7599_v26 = vpop.eup %7598  ;;  %v5104_v22 = vsub.f32 0.0, %v5040_v35  ;;  %v4369_v20 = vpop.f32.mrf.mxu1 }
 0xe1a   : > { %v5105_v37 = vsub.f32 0.0, %v5041_v58  ;;  %v4758_v9 = vadd.f32 -0.28449672, %v4726_v28  ;;  %v10929_v23 = vadd.f32 %v4365_v42, %v10395_v18  ;;  %vm5075_vm3 = vcmp.ge.f32.partialorder %v10716_v59, 0.0 }
 0xe1b   : > { %v4887_v48 = vsub.f32 0.0, %v10884_v40  ;;  %v10933_v49 = vmul.f32 0.5, %v4360_v36  ;;  %7606 = vrcp.f32 %v4536_v25  ;;  %v10936_v56 = vand.u32 2147483647, %v10926_v12  ;;  %v4371_v25 = vpop.f32.mrf.mxu1 }
 0xe1c   : > { %v5167_v24 = vadd.f32 1.0, %v5135_v41  ;;  %v5138_v0 = vsel %vm5074_vm0, %v5042_v63, %v5106_v52  ;;  %v5043_v33 = vsub.f32 1.0, %v5011_v53  ;;  %v10940_v54 = vmul.f32 %v7599_v26, %v4852_v44 }
 0xe1d   : > { %v5224_v1 = vpack.c.bf16 %v10920_v14, %v10829_v32  ;;  %v4853_v60 = vmul.f32 %v10842_v21, %v4821_v8  ;;  %v4505_v45 = vmul.f32 0.3275911, %v10936_v56  ;;  %v10947_v36 = vmul.f32 0.70710677, %v10917_v29 }
 0xe1e   : > { %v5136_v28 = vsel %vm5072_vm1, %v5040_v35, %v5104_v22  ;;  %v5137_v17 = vsel %vm5073_vm2, %v5041_v58, %v5105_v37  ;;  %v4790_v63 = vmul.f32 %v10859_v38, %v4758_v9  ;;  %v10955_v30 = vmul.f32 0.70710677, %v10929_v23  ;;  %v7601_v42 = vpop.eup %7600 }
 0xe1f   : > { %v5170_v52 = vadd.f32 1.0, %v5138_v0  ;;  %v4919_v21 = vmul.f32 %v4887_v48, %v10884_v40  ;;  %v4537_v53 = vadd.f32 1.0, %v4505_v45  ;;  %v10959_v44 = vand.u32 2147483647, %v10947_v36 }
 0xe20   : > { %v10962_v41 = vmul.f32 %v5167_v24, %v10750_v11  ;;  %v5107_v47 = vsub.f32 0.0, %v5043_v33  ;;  %v5044_v51 = vsub.f32 1.0, %v10940_v54  ;;  %vm5076_vm4 = vcmp.ge.f32.partialorder %v10743_v15, 0.0 }
 0xe21   : > { %v10967_v35 = vand.u32 2147483647, %v10955_v30  ;;  %v10969_v58 = vmul.f32 %v7601_v42, %v4853_v60  ;;  %v10972_v8 = vmul.f32 0.5, %v10899_v16  ;;  %7608 = vrcp.f32 %v4537_v53 }
 0xe22   : > { %v4506_v40 = vmul.f32 0.3275911, %v10959_v44  ;;  %v10975_v26 = vpop.eup %7602  ;;  %v5168_v11 = vadd.f32 1.0, %v5136_v28  ;;  %v5169_v22 = vadd.f32 1.0, %v5137_v17  ;;  %v4822_v37 = vadd.f32 0.2548296, %v4790_v63 }
 0xe23   : > { %v4507_v9 = vmul.f32 0.3275911, %v10967_v35  ;;  %v10979_v48 = vmul.f32 %v5170_v52, %v10826_v39  ;;  %v4599_v24 = vmul.f32 1.0614054, %v10975_v26  ;;  %v4970_v0 = vmul.f32 1.442695, %v4919_v21  ;;  %v7605_v16 = vpop.eup %7604  ;;  %v4373_v52 = vpop.f32.mrf.mxu1 }
 0xe24   : > { %v4538_v54 = vadd.f32 1.0, %v4506_v40  ;;  %v5139_v60 = vsel %vm5075_vm3, %v5043_v33, %v5107_v47  ;;  %v5108_v45 = vsub.f32 0.0, %v5044_v51  ;;  %v5221_v28 = vpack.c.bf16 %v10712_v55, %v10688_v61 }
 0xe25   : > { %v4539_v42 = vadd.f32 1.0, %v4507_v9  ;;  %v5045_v17 = vsub.f32 1.0, %v10969_v58  ;;  %v4631_v63 = vadd.f32 -1.4531521, %v4599_v24  ;;  %v5223_v39 = vpack.c.bf16 %v10805_v7, %v10767_v43 }
 0xe26   : > { %7610 = vrcp.f32 %v4538_v54  ;;  %v10990_v21 = vmul.f32 %v5168_v11, %v10770_v50  ;;  %vm5077_vm5 = vcmp.ge.f32.partialorder %v10758_v5, 0.0  ;;  %v4854_v59 = vmul.f32 %v10859_v38, %v4822_v37  ;;  %5403 = vmatprep.mubr.bf16.mxu0 %v5221_v28  ;;  %v4375_v28 = vpop.f32.mrf.mxu1 }
 0xe27   : > { %7612 = vrcp.f32 %v4539_v42  ;;  %v10995_v33 = vadd.f32 %v4369_v20, %v10391_v27  ;;  %v10998_v61 = vmul.f32 %v5169_v22, %v10818_v2  ;;  %v5171_v55 = vadd.f32 1.0, %v5139_v60 }
 0xe28   : > { %v4663_v53 = vmul.f32 %v10975_v26, %v4631_v63  ;;  %v11819_v43 = vpack.c.bf16 %v10682_v4, %v10654_v3  ;;  %v11005_v50 = vadd.f32 %v4371_v25, %v10395_v18  ;;  %v11007_v7 = vpop.eup %7606  ;;  %7614 = vpow2.f32 %v4970_v0 }
 0xe29   : > { %v11012_v2 = vmul.f32 0.70710677, %v10995_v33  ;;  %v11015_v20 = vadd.f32 %v4373_v52, %v10391_v27  ;;  %v5140_v3 = vsel %vm5076_vm4, %v5044_v51, %v5108_v45  ;;  %v5109_v4 = vsub.f32 0.0, %v5045_v17 }
 0xe2a   : > { %5404 = vmatmul.mubr.bf16.vlgmr.msra.gmra.mxu0 %v11819_v43  ;;  %v4600_v47 = vmul.f32 1.0614054, %v11007_v7  ;;  %v4888_v58 = vsub.f32 0.0, %v10906_v62  ;;  %v11021_v40 = vmul.f32 %v7605_v16, %v4854_v59  ;;  %v4889_v25 = vsub.f32 0.0, %v10936_v56  ;;  %v11821_v43 = vld [vmem:[#allocation53_spill] sm:$0xff] }
 0xe2b   : > { %5411 = vmatprep.mubr.bf16.mxu0 %v5223_v39  ;;  %v11025_v11 = vand.u32 2147483647, %v11012_v2  ;;  %v11028_v22 = vmul.f32 0.70710677, %v11005_v50  ;;  %v11031_v37 = vmul.f32 %v5171_v55, %v10853_v31  ;;  %v4695_v15 = vadd.f32 1.4214138, %v4663_v53 }
 0xe2c   : > { %v4632_v51 = vadd.f32 -1.4531521, %v4600_v47  ;;  %v11034_v9 = vmul.f32 0.70710677, %v11015_v20  ;;  %v5172_v24 = vadd.f32 1.0, %v5140_v3  ;;  %v5225_v16 = vpack.c.bf16 %v10962_v41, %v10867_v57  ;;  %v11820_v53 = vld [vmem:[#allocation52_spill] sm:$0xff] }
 0xe2d   : > { %v4508_v0 = vmul.f32 0.3275911, %v11025_v11  ;;  %v11038_v54 = vand.u32 2147483647, %v11028_v22  ;;  %v4920_v60 = vmul.f32 %v4888_v58, %v10906_v62  ;;  %v11044_v45 = vmul.f32 0.5, %v10917_v29 }
 0xe2e   : > { %v4891_v31 = vsub.f32 0.0, %v10967_v35  ;;  %v11048_v42 = vand.u32 2147483647, %v11034_v9  ;;  %v11050_v63 = vpop.eup %7608  ;;  %v11626_v39 = vsub.f32 1.0, %v11021_v40  ;;  %v4921_v52 = vmul.f32 %v4889_v25, %v10936_v56 }
 0xe2f   : > { %v4540_v59 = vadd.f32 1.0, %v4508_v0  ;;  %v4509_v57 = vmul.f32 0.3275911, %v11038_v54  ;;  %v5141_v62 = vsel %vm5077_vm5, %v5045_v17, %v5109_v4  ;;  %v4727_v29 = vmul.f32 %v10975_v26, %v4695_v15 }
 0xe30   : > { %v4664_v41 = vmul.f32 %v11007_v7, %v4632_v51  ;;  %v4601_v55 = vmul.f32 1.0614054, %v11050_v63  ;;  %v11822_v3 = vpack.c.bf16 %v11820_v53, %v11821_v43  ;;  %v4510_v56 = vmul.f32 0.3275911, %v11048_v42 }
 0xe31   : > { %7616 = vrcp.f32 %v4540_v59  ;;  %v4541_v47 = vadd.f32 1.0, %v4509_v57  ;;  %v11065_v58 = vadd.f32 %v4375_v28, %v10395_v18  ;;  %v11068_v5 = vmul.f32 %v5172_v24, %v10880_v34 }
 0xe32   : > { %5412 = vmatmul.mubr.bf16.gmra.mxu0 %v11822_v3  ;;  %v4972_v17 = vmul.f32 1.442695, %v4920_v60  ;;  %v4633_v4 = vadd.f32 -1.4531521, %v4601_v55  ;;  %v4923_v25 = vmul.f32 %v4891_v31, %v10967_v35  ;;  %v5173_v51 = vadd.f32 1.0, %v5141_v62  ;;  %v11823_v60 = vld [vmem:[#allocation54_spill] sm:$0xff] }
 0xe33   : > { %5419 = vmatprep.mubr.bf16.mxu0 %v5225_v16  ;;  %v11071_v15 = vpop.eup %7610  ;;  %v5110_v0 = vsub.f32 0.0, %v11626_v39  ;;  %v4974_v59 = vmul.f32 1.442695, %v4921_v52  ;;  %v4890_v16 = vsub.f32 0.0, %v10959_v44  ;;  %v4759_v28 = vadd.f32 -0.28449672, %v4727_v29 }
 0xe34   : > { %v11076_v57 = vpop.eup %7612  ;;  %v4696_v53 = vadd.f32 1.4214138, %v4664_v41  ;;  %v4665_v34 = vmul.f32 %v11050_v63, %v4633_v4  ;;  %v4602_v24 = vmul.f32 1.0614054, %v11071_v15  ;;  %vm5078_vm6 = vcmp.ge.f32.partialorder %v11823_v60, 0.0 }
 0xe35   : > { %v4603_v35 = vmul.f32 1.0614054, %v11076_v57  ;;  %7618 = vrcp.f32 %v4541_v47  ;;  %v4542_v31 = vadd.f32 1.0, %v4510_v56  ;;  %v11083_v62 = vmul.f32 0.70710677, %v11065_v58  ;;  %v11085_v52 = vpop.eup %7614 }
 0xe36   : > { %7620 = vpow2.f32 %v4972_v17  ;;  %v4697_v55 = vadd.f32 1.4214138, %v4665_v34  ;;  %v4634_v43 = vadd.f32 -1.4531521, %v4602_v24  ;;  %v4978_v29 = vmul.f32 1.442695, %v4923_v25 }
 0xe37   : > { %v4922_v41 = vmul.f32 %v4890_v16, %v10959_v44  ;;  %v4635_v3 = vadd.f32 -1.4531521, %v4603_v35  ;;  %v4892_v4 = vsub.f32 0.0, %v11025_v11  ;;  %v11090_v38 = vand.u32 2147483647, %v11083_v62 }
 0xe38   : > { %v4791_v47 = vmul.f32 %v10975_v26, %v4759_v28  ;;  %v4729_v56 = vmul.f32 %v11050_v63, %v4697_v55  ;;  %7622 = vpow2.f32 %v4974_v59  ;;  %v4666_v39 = vmul.f32 %v11071_v15, %v4634_v43 }
 0xe39   : > { %v4728_v17 = vmul.f32 %v11007_v7, %v4696_v53  ;;  %v4667_v44 = vmul.f32 %v11076_v57, %v4635_v3  ;;  %7624 = vrcp.f32 %v4542_v31  ;;  %v4511_v25 = vmul.f32 0.3275911, %v11090_v38 }
 0xe3a   : > { %5420 = vmatmul.mubr.bf16.gmra.mxu0 %v5224_v1  ;;  %v4761_v16 = vadd.f32 -0.28449672, %v4729_v56  ;;  %v4698_v34 = vadd.f32 1.4214138, %v4666_v39  ;;  %7626 = vpow2.f32 %v4978_v29  ;;  %v4893_v28 = vsub.f32 0.0, %v11038_v54  ;;  %v4379_v29 = vpop.f32.mrf.mxu1 }
 0xe3b   : > { %v4976_v24 = vmul.f32 1.442695, %v4922_v41  ;;  %v4699_v59 = vadd.f32 1.4214138, %v4667_v44  ;;  %v4924_v35 = vmul.f32 %v4892_v4, %v11025_v11  ;;  %v4543_v55 = vadd.f32 1.0, %v4511_v25 }
 0xe3c   : > { %v4823_v43 = vadd.f32 0.2548296, %v4791_v47  ;;  %v4793_v32 = vmul.f32 %v11050_v63, %v4761_v16  ;;  %v4730_v14 = vmul.f32 %v11071_v15, %v4698_v34  ;;  %v4894_v1 = vsub.f32 0.0, %v11048_v42 }
 0xe3d   : > { %v4760_v53 = vadd.f32 -0.28449672, %v4728_v17  ;;  %v11107_v31 = vmul.f32 0.5, %v10929_v23  ;;  %v4731_v39 = vmul.f32 %v11076_v57, %v4699_v59  ;;  %7628 = vrcp.f32 %v4543_v55 }
 0xe3e   : > { %v11110_v41 = vpop.eup %7616  ;;  %v11113_v11 = vmul.f32 %v5173_v51, %v10890_v6  ;;  %v11824_v3 = vsub.f32 1.0, %v11021_v40  ;;  %v4825_v47 = vadd.f32 0.2548296, %v4793_v32  ;;  %v4925_v56 = vmul.f32 %v4893_v28, %v11038_v54 }
 0xe3f   : > { %v4762_v17 = vadd.f32 -0.28449672, %v4730_v14  ;;  %7630 = vpow2.f32 %v4976_v24  ;;  %v4763_v23 = vadd.f32 -0.28449672, %v4731_v39  ;;  %v4604_v44 = vmul.f32 1.0614054, %v11110_v41 }
 0xe40   : > { %v5142_v4 = vsel %vm5078_vm6, %v11824_v3, %v5110_v0  ;;  %v4855_v25 = vmul.f32 %v10975_v26, %v4823_v43  ;;  %v4980_v16 = vmul.f32 1.442695, %v4924_v35  ;;  %v4926_v34 = vmul.f32 %v4894_v1, %v11048_v42 }
 0xe41   : > { %v11124_v6 = vadd.f32 %v4379_v29, %v10391_v27  ;;  %v4792_v40 = vmul.f32 %v11007_v7, %v4760_v53  ;;  %v4795_v51 = vmul.f32 %v11076_v57, %v4763_v23  ;;  %v4636_v0 = vadd.f32 -1.4531521, %v4604_v44  ;;  %v4381_v44 = vpop.f32.mrf.mxu1 }
 0xe42   : > { %v5227_v54 = vpack.c.bf16 %v11031_v37, %v10998_v61  ;;  %v11130_v60 = vpop.eup %7618  ;;  %v5174_v28 = vadd.f32 1.0, %v5142_v4  ;;  %v4857_v24 = vmul.f32 %v11050_v63, %v4825_v47  ;;  %v4982_v26 = vmul.f32 1.442695, %v4925_v56 }
 0xe43   : > { %v4895_v59 = vsub.f32 0.0, %v11090_v38  ;;  %v7621_v42 = vpop.eup %7620  ;;  %v4794_v35 = vmul.f32 %v11071_v15, %v4762_v17  ;;  %v4827_v55 = vadd.f32 0.2548296, %v4795_v51  ;;  %v4668_v43 = vmul.f32 %v11110_v41, %v4636_v0 }
 0xe44   : > { %v4605_v32 = vmul.f32 1.0614054, %v11130_v60  ;;  %5427 = vmatprep.mubr.bf16.mxu0 %v5227_v54  ;;  %v11138_v14 = vmul.f32 %v11085_v52, %v4855_v25  ;;  %7632 = vpow2.f32 %v4980_v16  ;;  %v4984_v61 = vmul.f32 1.442695, %v4926_v34 }
 0xe45   : > { %v11141_v37 = vmul.f32 0.70710677, %v11124_v6  ;;  %v11825_v63 = vpack.c.bf16 %v10979_v48, %v10990_v21  ;;  %v7623_v1 = vpop.eup %7622  ;;  %v4824_v53 = vadd.f32 0.2548296, %v4792_v40  ;;  %v4859_v39 = vmul.f32 %v11076_v57, %v4827_v55 }
 0xe46   : > { %v4700_v29 = vadd.f32 1.4214138, %v4668_v43  ;;  %v4637_v3 = vadd.f32 -1.4531521, %v4605_v32  ;;  %v11147_v4 = vpop.eup %7624  ;;  %v11149_v47 = vmul.f32 %v7623_v1, %v4857_v24  ;;  %7634 = vpow2.f32 %v4982_v26 }
 0xe47   : > { %5428 = vmatmul.mubr.bf16.gmra.mxu0 %v11825_v63  ;;  %v4927_v52 = vmul.f32 %v4895_v59, %v11090_v38  ;;  %v11153_v56 = vand.u32 2147483647, %v11141_v37  ;;  %v7627_v17 = vpop.eup %7626  ;;  %v4826_v23 = vadd.f32 0.2548296, %v4794_v35  ;;  %v4606_v57 = vmul.f32 1.0614054, %v11147_v4 }
 0xe48   : > { %v4732_v48 = vmul.f32 %v11110_v41, %v4700_v29  ;;  %v4669_v21 = vmul.f32 %v11130_v60, %v4637_v3  ;;  %v11159_v25 = vmul.f32 %v5174_v28, %v10909_v10  ;;  %v5047_v16 = vsub.f32 1.0, %v11138_v14 }
 0xe49   : > { %v5019_v34 = vmul.f32 %v7627_v17, %v4859_v39  ;;  %v4512_v38 = vmul.f32 0.3275911, %v11153_v56  ;;  %vm5079_vm7 = vcmp.ge.f32.partialorder %v10872_v13, 0.0  ;;  %v4856_v40 = vmul.f32 %v11007_v7, %v4824_v53 }
 0xe4a   : > { %v4764_v51 = vadd.f32 -0.28449672, %v4732_v48  ;;  %v4701_v0 = vadd.f32 1.4214138, %v4669_v21  ;;  %7636 = vpow2.f32 %v4984_v61  ;;  %v11165_v54 = vpop.eup %7628  ;;  %vm5081_vm8 = vcmp.ge.f32.partialorder %v10926_v12, 0.0 }
 0xe4b   : > { %v4638_v24 = vadd.f32 -1.4531521, %v4606_v57  ;;  %v4986_v26 = vmul.f32 1.442695, %v4927_v52  ;;  %v4544_v10 = vadd.f32 1.0, %v4512_v38  ;;  %v11169_v28 = vadd.f32 %v4381_v44, %v10395_v18  ;;  %v4383_v52 = vpop.f32.mrf.mxu1 }
 0xe4c   : > { %v5049_v59 = vsub.f32 1.0, %v11149_v47  ;;  %v4858_v35 = vmul.f32 %v11071_v15, %v4826_v23  ;;  %vm5083_vm9 = vcmp.ge.f32.partialorder %v10955_v30, 0.0  ;;  %v4796_v7 = vmul.f32 %v11110_v41, %v4764_v51  ;;  %v7631_v43 = vpop.eup %7630 }
 0xe4d   : > { %v4733_v55 = vmul.f32 %v11130_v60, %v4701_v0  ;;  %v5051_v32 = vsub.f32 1.0, %v5019_v34  ;;  %v4670_v14 = vmul.f32 %v11147_v4, %v4638_v24  ;;  %v4607_v61 = vmul.f32 1.0614054, %v11165_v54 }
 0xe4e   : > { %7638 = vrcp.f32 %v4544_v10  ;;  %v5228_v63 = vpack.c.bf16 %v11159_v25, %v11068_v5  ;;  %v5016_v1 = vmul.f32 %v7621_v42, %v4856_v40  ;;  %v4828_v53 = vadd.f32 0.2548296, %v4796_v7 }
 0xe4f   : > { %v4765_v39 = vadd.f32 -0.28449672, %v4733_v55  ;;  %v5111_v15 = vsub.f32 0.0, %v5047_v16  ;;  %v11181_v29 = vmul.f32 0.5, %v10995_v33  ;;  %v4702_v3 = vadd.f32 1.4214138, %v4670_v14 }
 0xe50   : > { %v4639_v47 = vadd.f32 -1.4531521, %v4607_v61  ;;  %v5113_v17 = vsub.f32 0.0, %v5049_v59  ;;  %v5018_v23 = vmul.f32 %v7631_v43, %v4858_v35  ;;  %7640 = vpow2.f32 %v4986_v26 }
 0xe51   : > { %v4797_v48 = vmul.f32 %v11130_v60, %v4765_v39  ;;  %v5115_v21 = vsub.f32 0.0, %v5051_v32  ;;  %v4734_v57 = vmul.f32 %v11147_v4, %v4702_v3  ;;  %v11187_v42 = vmul.f32 0.70710677, %v11169_v28  ;;  %v7633_v34 = vpop.eup %7632  ;;  %v4385_v3 = vpop.f32.mrf.mxu1 }
 0xe52   : > { %v4671_v44 = vmul.f32 %v11165_v54, %v4639_v47  ;;  %v5048_v38 = vsub.f32 1.0, %v5016_v1  ;;  %vm5080_vm10 = vcmp.ge.f32.partialorder %v10896_v46, 0.0  ;;  %v4860_v33 = vmul.f32 %v11110_v41, %v4828_v53 }
 0xe53   : > { %v4829_v40 = vadd.f32 0.2548296, %v4797_v48  ;;  %v11192_v51 = vadd.f32 %v4383_v52, %v10391_v27  ;;  %v5143_v0 = vsel %vm5079_vm7, %v5047_v16, %v5111_v15  ;;  %vm5082_vm11 = vcmp.ge.f32.partialorder %v10947_v36, 0.0  ;;  %v7635_v35 = vpop.eup %7634 }
 0xe54   : > { %v4766_v24 = vadd.f32 -0.28449672, %v4734_v57  ;;  %v4703_v26 = vadd.f32 1.4214138, %v4671_v44  ;;  %v11198_v10 = vand.u32 2147483647, %v11187_v42  ;;  %v5145_v7 = vsel %vm5081_vm8, %v5049_v59, %v5113_v17 }
 0xe55   : > { %v5050_v55 = vsub.f32 1.0, %v5018_v23  ;;  %v11203_v41 = vmul.f32 0.5, %v11005_v50  ;;  %v4861_v27 = vmul.f32 %v11130_v60, %v4829_v40  ;;  %v5147_v13 = vsel %vm5083_vm9, %v5051_v32, %v5115_v21 }
 0xe56   : > { %v4798_v16 = vmul.f32 %v11147_v4, %v4766_v24  ;;  %v4735_v43 = vmul.f32 %v11165_v54, %v4703_v26  ;;  %v4513_v14 = vmul.f32 0.3275911, %v11198_v10  ;;  %v5175_v61 = vadd.f32 1.0, %v5143_v0 }
 0xe57   : > { %v5020_v1 = vmul.f32 %v7633_v34, %v4860_v33  ;;  %v5021_v53 = vmul.f32 %v7635_v35, %v4861_v27  ;;  %v11212_v12 = vmul.f32 0.70710677, %v11192_v51  ;;  %v7637_v59 = vpop.eup %7636  ;;  %v5112_v50 = vsub.f32 0.0, %v5048_v38 }
 0xe58   : > { %v4830_v39 = vadd.f32 0.2548296, %v4798_v16  ;;  %v4767_v15 = vadd.f32 -0.28449672, %v4735_v43  ;;  %v4545_v60 = vadd.f32 1.0, %v4513_v14  ;;  %v5177_v30 = vadd.f32 1.0, %v5145_v7 }
 0xe59   : > { %v5114_v32 = vsub.f32 0.0, %v5050_v55  ;;  %v5179_v47 = vadd.f32 1.0, %v5147_v13  ;;  %v11215_v52 = vand.u32 2147483647, %v11212_v12  ;;  %vm5084_vm12 = vcmp.ge.f32.partialorder %v11012_v2, 0.0 }
 0xe5a   : > { %v5053_v17 = vsub.f32 1.0, %v5021_v53  ;;  %v4862_v23 = vmul.f32 %v11147_v4, %v4830_v39  ;;  %v4799_v48 = vmul.f32 %v11165_v54, %v4767_v15  ;;  %7642 = vrcp.f32 %v4545_v60 }
 0xe5b   : > { %v11220_v21 = vpop.eup %7638  ;;  %v5207_v57 = vmul.f32 %v5175_v61, %v10913_v19  ;;  %v5052_v44 = vsub.f32 1.0, %v5020_v1  ;;  %v4514_v34 = vmul.f32 0.3275911, %v11215_v52  ;;  %v11225_v33 = vadd.f32 %v4385_v3, %v10395_v18 }
 0xe5c   : > { %v5144_v40 = vsel %vm5080_vm10, %v5048_v38, %v5112_v50  ;;  %v5022_v0 = vmul.f32 %v7637_v59, %v4862_v23  ;;  %v4831_v24 = vadd.f32 0.2548296, %v4799_v48  ;;  %v4608_v4 = vmul.f32 1.0614054, %v11220_v21 }
 0xe5d   : > { %v5209_v26 = vmul.f32 %v5177_v30, %v10972_v8  ;;  %v5146_v35 = vsel %vm5082_vm11, %v5050_v55, %v5114_v32  ;;  %v5211_v19 = vmul.f32 %v5179_v47, %v11107_v31  ;;  %v4546_v7 = vadd.f32 1.0, %v4514_v34  ;;  %v7641_v27 = vpop.eup %7640 }
 0xe5e   : > { %v5117_v13 = vsub.f32 0.0, %v5053_v17  ;;  %v5054_v16 = vsub.f32 1.0, %v5022_v0  ;;  %v4863_v18 = vmul.f32 %v11165_v54, %v4831_v24  ;;  %v4640_v43 = vadd.f32 -1.4531521, %v4608_v4 }
 0xe5f   : > { %v5116_v46 = vsub.f32 0.0, %v5052_v44  ;;  %7644 = vrcp.f32 %v4546_v7  ;;  %v11236_v38 = vmul.f32 0.70710677, %v11225_v33  ;;  %v5229_v14 = vpack.c.bf16 %v5207_v57, %v11113_v11 }
 0xe60   : > { %v5178_v8 = vadd.f32 1.0, %v5146_v35  ;;  %vm5085_vm13 = vcmp.ge.f32.partialorder %v11028_v22, 0.0  ;;  %v5118_v36 = vsub.f32 0.0, %v5054_v16  ;;  %v5023_v55 = vmul.f32 %v7641_v27, %v4863_v18 }
 0xe61   : > { %v5176_v31 = vadd.f32 1.0, %v5144_v40  ;;  %vm5086_vm14 = vcmp.ge.f32.partialorder %v11034_v9, 0.0  ;;  %v4483_v61 = vand.u32 2147483647, %v11236_v38  ;;  %5435 = vmatprep.mubr.bf16.mxu0 %v5229_v14  ;;  %v5231_v54 = vpack.c.bf16 %v5211_v19, %v5209_v26 }
 0xe62   : > { %v5149_v1 = vsel %vm5085_vm13, %v5053_v17, %v5117_v13  ;;  %v5150_v53 = vsel %vm5086_vm14, %v5054_v16, %v5118_v36  ;;  %v5055_v59 = vsub.f32 1.0, %v5023_v55  ;;  %v4672_v50 = vmul.f32 %v11220_v21, %v4640_v43  ;;  %5436 = vmatmul.mubr.bf16.gmra.mxu0 %v5228_v63 }
 0xe63   : > { %v5148_v22 = vsel %vm5084_vm12, %v5052_v44, %v5116_v46  ;;  %v4414_v11 = vmul.f32 0.5, %v11015_v20  ;;  %v4897_v9 = vsub.f32 0.0, %v11198_v10  ;;  %v4515_v39 = vmul.f32 0.3275911, %v4483_v61  ;;  %5443 = vmatprep.mubr.bf16.mxu0 %v5231_v54 }
 0xe64   : > { %v5210_v15 = vmul.f32 %v5178_v8, %v11044_v45  ;;  %v5182_v60 = vadd.f32 1.0, %v5150_v53  ;;  %v5119_v3 = vsub.f32 0.0, %v5055_v59  ;;  %v4896_v30 = vsub.f32 0.0, %v11153_v56 }
 0xe65   : > { %v5181_v32 = vadd.f32 1.0, %v5149_v1  ;;  %vm5087_vm15 = vcmp.ge.f32.partialorder %v11083_v62, 0.0  ;;  %v4898_v5 = vsub.f32 0.0, %v11215_v52  ;;  %v4547_v25 = vadd.f32 1.0, %v4515_v39 }
 0xe66   : > { %v5208_v2 = vmul.f32 %v5176_v31, %v10933_v49  ;;  %v5180_v63 = vadd.f32 1.0, %v5148_v22  ;;  %v5151_v20 = vsel %vm5087_vm15, %v5055_v59, %v5119_v3  ;;  %v4704_v47 = vadd.f32 1.4214138, %v4672_v50 }
 0xe67   : > { %v7643_v17 = vpop.eup %7642  ;;  %v4415_v23 = vmul.f32 0.5, %v11065_v58  ;;  %v5183_v48 = vadd.f32 1.0, %v5151_v20  ;;  %v4929_v45 = vmul.f32 %v4897_v9, %v11198_v10  ;;  %7646 = vrcp.f32 %v4547_v25 }
 0xe68   : > { %v5230_v57 = vpack.c.bf16 %v5210_v15, %v5208_v2  ;;  %v5214_v44 = vmul.f32 %v5182_v60, %v4414_v11  ;;  %v4928_v34 = vmul.f32 %v4896_v30, %v11153_v56  ;;  %v4609_v62 = vmul.f32 1.0614054, %v7643_v17 }
 0xe69   : > { %v5213_v40 = vmul.f32 %v5181_v32, %v11203_v41  ;;  %v5215_v0 = vmul.f32 %v5183_v48, %v4415_v23  ;;  %v4930_v49 = vmul.f32 %v4898_v5, %v11215_v52  ;;  %v5212_v24 = vmul.f32 %v5180_v63, %v11181_v29 }
 0xe6a   : > { %v4736_v4 = vmul.f32 %v11220_v21, %v4704_v47  ;;  %v4641_v26 = vadd.f32 -1.4531521, %v4609_v62  ;;  %5444 = vmatmul.mubr.bf16.gmra.mxu0 %v5230_v57  ;;  %v4990_v58 = vmul.f32 1.442695, %v4929_v45  ;;  %v4988_v7 = vmul.f32 1.442695, %v4928_v34 }
 0xe6b   : > { %v5233_v35 = vpack.c.bf16 %v5215_v0, %v5213_v40  ;;  %v5232_v19 = vpack.c.bf16 %v5214_v44, %v5212_v24  ;;  %v4992_v56 = vmul.f32 1.442695, %v4930_v49  ;;  %v4899_v16 = vsub.f32 0.0, %v4483_v61 }
 0xe6c   : > { %v7645_v10 = vpop.eup %7644  ;;  %v4673_v27 = vmul.f32 %v7643_v17, %v4641_v26  ;;  %v4768_v41 = vadd.f32 -0.28449672, %v4736_v4  ;;  %7648 = vpow2.f32 %v4990_v58  ;;  %vm5090_vm0 = vcmp.ge.f32.partialorder %v11212_v12, 0.0 }
 0xe6d   : > { %v4610_v13 = vmul.f32 1.0614054, %v7645_v10  ;;  %5451 = vmatprep.mubr.bf16.mxu1 %v5233_v35  ;;  %7650 = vpow2.f32 %v4988_v7  ;;  %v4931_v46 = vmul.f32 %v4899_v16, %v4483_v61  ;;  %vm5089_vm1 = vcmp.ge.f32.partialorder %v11187_v42, 0.0 }
 0xe6e   : > { %v4705_v18 = vadd.f32 1.4214138, %v4673_v27  ;;  %5452 = vmatmul.mubr.bf16.vlgmr.msra.gmra.mxu1 %v5232_v19  ;;  %7652 = vpow2.f32 %v4992_v56  ;;  %v4800_v14 = vmul.f32 %v11220_v21, %v4768_v41  ;;  %vm5088_vm2 = vcmp.ge.f32.partialorder %v11141_v37, 0.0 }
 0xe6f   : > { %v4642_v52 = vadd.f32 -1.4531521, %v4610_v13  ;;  %v4994_v53 = vmul.f32 1.442695, %v4931_v46  ;;  %vm5091_vm3 = vcmp.ge.f32.partialorder %v11236_v38, 0.0  ;;  %v4418_v27 = vmul.f32 0.5, %v11192_v51 }
 0xe70   : > { %v4737_v29 = vmul.f32 %v7643_v17, %v4705_v18  ;;  %v4832_v59 = vadd.f32 0.2548296, %v4800_v14  ;;  %v4417_v12 = vmul.f32 0.5, %v11169_v28  ;;  %v4419_v42 = vmul.f32 0.5, %v11225_v33  ;;  %v11277_v51 = vld [vmem:[%s902_s27] ss:$0 sm:$0xff] }
 0xe71   : > { %v4674_v43 = vmul.f32 %v7645_v10, %v4642_v52  ;;  %7654 = vpow2.f32 %v4994_v53  ;;  %v4416_v37 = vmul.f32 0.5, %v11124_v6 }
 0xe72   : > { %v4769_v8 = vadd.f32 -0.28449672, %v4737_v29  ;;  %v4864_v60 = vmul.f32 %v11220_v21, %v4832_v59  ;;  %v11828_v59 = vld [vmem:[#allocation62_spill] sm:$0xff] }
 0xe73   : > { %v4706_v36 = vadd.f32 1.4214138, %v4674_v43 }
 0xe74   : > { %v7647_v55 = vpop.eup %7646  ;;  %v4801_v31 = vmul.f32 %v7643_v17, %v4769_v8 }
 0xe75   : > { %v4738_v54 = vmul.f32 %v7645_v10, %v4706_v36  ;;  %v4611_v1 = vmul.f32 1.0614054, %v7647_v55  ;;  %v11827_v36 = vld [vmem:[#allocation57_spill] sm:$0xff] }
 0xe76   : > { %v4833_v50 = vadd.f32 0.2548296, %v4801_v31 }
 0xe77   : > { %v4770_v22 = vadd.f32 -0.28449672, %v4738_v54  ;;  %v4643_v11 = vadd.f32 -1.4531521, %v4611_v1 }
 0xe78   : > { %v4865_v9 = vmul.f32 %v7643_v17, %v4833_v50 }
 0xe79   : > { %v4802_v39 = vmul.f32 %v7645_v10, %v4770_v22  ;;  %v4675_v15 = vmul.f32 %v7647_v55, %v4643_v11  ;;  %v7649_v30 = vpop.eup %7648 }
 0xe7a   : > { %v7651_v32 = vpop.eup %7650  ;;  %v5025_v5 = vmul.f32 %v7649_v30, %v4865_v9 }
 0xe7b   : > { %v4834_v61 = vadd.f32 0.2548296, %v4802_v39  ;;  %v4707_v3 = vadd.f32 1.4214138, %v4675_v15  ;;  %v7653_v63 = vpop.eup %7652  ;;  %v5024_v20 = vmul.f32 %v7651_v32, %v4864_v60 }
 0xe7c   : > { %v5057_v48 = vsub.f32 1.0, %v5025_v5 }
 0xe7d   : > { %v4866_v25 = vmul.f32 %v7645_v10, %v4834_v61  ;;  %v4739_v2 = vmul.f32 %v7647_v55, %v4707_v3  ;;  %v5056_v17 = vsub.f32 1.0, %v5024_v20  ;;  %v11829_v61 = vld [vmem:[#allocation61_spill] sm:$0xff] }
 0xe7e   : > { %v5121_v62 = vsub.f32 0.0, %v5057_v48  ;;  %v7655_v21 = vpop.eup %7654 }
 0xe7f   : > { %v5026_v47 = vmul.f32 %v7653_v63, %v4866_v25  ;;  %v4771_v23 = vadd.f32 -0.28449672, %v4739_v2  ;;  %v5120_v0 = vsub.f32 0.0, %v5056_v17  ;;  %v11830_v2 = vld [vmem:[#allocation56_spill] sm:$0xff] }
 0xe80   : > { %v5153_v4 = vsel %vm5089_vm1, %v5057_v48, %v5121_v62  ;;  %v11832_v62 = vld [vmem:[#allocation60_spill] sm:$0xff] }
 0xe81   : > { %v5058_v45 = vsub.f32 1.0, %v5026_v47  ;;  %v4803_v57 = vmul.f32 %v7647_v55, %v4771_v23  ;;  %v5152_v58 = vsel %vm5088_vm2, %v5056_v17, %v5120_v0  ;;  %v5185_v19 = vadd.f32 1.0, %v5153_v4  ;;  %v11831_v17 = vld [vmem:[#allocation55_spill] sm:$0xff] }
 0xe82   : > { %v5184_v7 = vadd.f32 1.0, %v5152_v58 }
 0xe83   : > { %v4835_v44 = vadd.f32 0.2548296, %v4803_v57  ;;  %v5122_v34 = vsub.f32 0.0, %v5058_v45  ;;  %v5217_v41 = vmul.f32 %v5185_v19, %v4417_v12  ;;  %v11833_v19 = vld [vmem:[#allocation59_spill] sm:$0xff] }
 0xe84   : > { %v5216_v52 = vmul.f32 %v5184_v7, %v4416_v37 }
 0xe85   : > { %v4867_v40 = vmul.f32 %v7647_v55, %v4835_v44  ;;  %v5154_v24 = vsel %vm5090_vm0, %v5058_v45, %v5122_v34 }
 0xe86   : > { %v5186_v35 = vadd.f32 1.0, %v5154_v24 }
 0xe87   : > { %v5027_v49 = vmul.f32 %v7655_v21, %v4867_v40 }
 0xe88   : > { %v5218_v16 = vmul.f32 %v5186_v35, %v4418_v27 }
 0xe89   : > { %v5059_v26 = vsub.f32 1.0, %v5027_v49 }
 0xe8a   : > { %v5234_v43 = vpack.c.bf16 %v5218_v16, %v5216_v52 }
 0xe8b   : > { %v5123_v10 = vsub.f32 0.0, %v5059_v26 }
 0xe8d   : > { %v5155_v13 = vsel %vm5091_vm3, %v5059_v26, %v5123_v10 }
 0xe8e   : > { %v5187_v56 = vadd.f32 1.0, %v5155_v13  ;;  %v11834_v13 = vld [vmem:[#allocation47_spill] sm:$0xff] }
 0xe90   : > { %v5219_v18 = vmul.f32 %v5187_v56, %v4419_v42 }
 0xe92   : > { %v5235_v29 = vpack.c.bf16 %v5219_v18, %v5217_v41 }
 0xe94   : > { %5459 = vmatprep.mubr.bf16.mxu1 %v5235_v29 }
 0xe95   : > { %5460 = vmatmul.mubr.bf16.gmra.mxu1 %v5234_v43 }
 0xeea   : > { %v6509_v38 = vpop.f32.mrf.mxu0 }
 0xeec   : > { %v6510_v28 = vpop.f32.mrf.mxu0 }
 0xeed   : > { %v6511_v33 = vadd.f32 %v6510_v28, %v6509_v38  ;;  %v11835_v38 = vld [vmem:[#allocation51_spill] sm:$0xff] }
 0xeee   : > { %v6512_v46 = vpop.f32.mrf.mxu0 }
 0xeef   : > { %v5406_v6 = vadd.f32 %v6511_v33, %v11277_v51 }
 0xef0   : > { %v6513_v14 = vpop.f32.mrf.mxu0 }
 0xef1   : > { %v6514_v8 = vadd.f32 %v6513_v14, %v6512_v46  ;;  %v11281_v55 = vadd.f32 %v5406_v6, %v11827_v36 }
 0xef2   : > { %v6515_v31 = vpop.f32.mrf.mxu0 }
 0xef3   : > { %v5409_v54 = vadd.f32 %v6514_v8, %v11277_v51  ;;  %5486 = vadd.xlane.f32.xlu1 %v11281_v55  ;;  %v5534_v22 = vmul.f32 %v11281_v55, %v11281_v55  ;;  %v11836_v8 = vld [vmem:[#allocation75_spill] sm:$0xff] }
 0xef4   : > { %v6516_v1 = vpop.f32.mrf.mxu0 }
 0xef5   : > { %v6517_v53 = vadd.f32 %v6516_v1, %v6515_v31  ;;  %v11286_v50 = vadd.f32 %v5409_v54, %v11828_v59 }
 0xef6   : > { %v6518_v11 = vpop.f32.mrf.mxu0 }
 0xef7   : > { %v5414_v9 = vadd.f32 %v6517_v53, %v11277_v51  ;;  %5488 = vadd.xlane.f32.xlu0 %v11286_v50  ;;  %5550 = vadd.xlane.f32.xlu1 %v5534_v22  ;;  %v5535_v60 = vmul.f32 %v11286_v50, %v11286_v50 }
 0xef8   : > { %v6519_v39 = vpop.f32.mrf.mxu0 }
 0xef9   : > { %v6520_v15 = vadd.f32 %v6519_v39, %v6518_v11  ;;  %v11295_v3 = vadd.f32 %v5414_v9, %v11829_v61  ;;  %v11837_v39 = vld [vmem:[#allocation74_spill] sm:$0xff] }
 0xefa   : > { %v6521_v30 = vpop.f32.mrf.mxu0 }
 0xefb   : > { %v5417_v32 = vadd.f32 %v6520_v15, %v11277_v51  ;;  %5552 = vadd.xlane.f32.xlu0 %v5535_v60  ;;  %5490 = vadd.xlane.f32.xlu1 %v11295_v3  ;;  %v5536_v20 = vmul.f32 %v11295_v3, %v11295_v3 }
 0xefc   : > { %v6522_v5 = vpop.f32.mrf.mxu0 }
 0xefd   : > { %v6523_v25 = vadd.f32 %v6522_v5, %v6521_v30  ;;  %v11300_v63 = vadd.f32 %v5417_v32, %v11830_v2 }
 0xefe   : > { %v6524_v47 = vpop.f32.mrf.mxu0 }
 0xeff   : > { %v5422_v23 = vadd.f32 %v6523_v25, %v11277_v51  ;;  %5492 = vadd.xlane.f32.xlu0 %v11300_v63  ;;  %5554 = vadd.xlane.f32.xlu1 %v5536_v20  ;;  %v5537_v57 = vmul.f32 %v11300_v63, %v11300_v63  ;;  %v11838_v25 = vld [vmem:[#allocation48_spill] sm:$0xff] }
 0xf00   : > { %v6525_v48 = vpop.f32.mrf.mxu0 }
 0xf01   : > { %v6526_v45 = vadd.f32 %v6525_v48, %v6524_v47  ;;  %v11309_v44 = vadd.f32 %v5422_v23, %v11831_v17  ;;  %v11839_v48 = vld [vmem:[#allocation50_spill] sm:$0xff]  ;;  %v11840_v17 = vld [vmem:[#allocation73_spill] sm:$0xff] }
 0xf03   : > { %v5425_v34 = vadd.f32 %v6526_v45, %v11277_v51  ;;  %5556 = vadd.xlane.f32.xlu0 %v5537_v57  ;;  %5494 = vadd.xlane.f32.xlu1 %v11309_v44  ;;  %v5538_v21 = vmul.f32 %v11309_v44, %v11309_v44 }
 0xf05   : > { %v11314_v40 = vadd.f32 %v5425_v34, %v11832_v62 }
 0xf07   : > { %v6527_v0 = vpop.f32.mrf.mxu0  ;;  %5496 = vadd.xlane.f32.xlu0 %v11314_v40  ;;  %5558 = vadd.xlane.f32.xlu1 %v5538_v21  ;;  %v5539_v4 = vmul.f32 %v11314_v40, %v11314_v40 }
 0xf09   : > { %v6528_v49 = vpop.f32.mrf.mxu0 }
 0xf0a   : > { %v6529_v24 = vadd.f32 %v6528_v49, %v6527_v0 }
 0xf0b   : > { %v6530_v26 = vpop.f32.mrf.mxu0  ;;  %5560 = vadd.xlane.f32.xlu0 %v5539_v4 }
 0xf0c   : > { %v5430_v58 = vadd.f32 %v6529_v24, %v11277_v51 }
 0xf0d   : > { %v6531_v35 = vpop.f32.mrf.mxu0 }
 0xf0e   : > { %v6532_v10 = vadd.f32 %v6531_v35, %v6530_v26  ;;  %v11323_v7 = vadd.f32 %v5430_v58, %v11833_v19 }
 0xf10   : > { %v5433_v27 = vadd.f32 %v6532_v10, %v11277_v51  ;;  %5498 = vadd.xlane.f32.xlu1 %v11323_v7  ;;  %v5540_v42 = vmul.f32 %v11323_v7, %v11323_v7  ;;  %v11841_v10 = vld [vmem:[#allocation72_spill] sm:$0xff] }
 0xf12   : > { %v11328_v12 = vadd.f32 %v5433_v27, %v11834_v13  ;;  %v11842_v13 = vld [vmem:[#allocation49_spill] sm:$0xff] }
 0xf14   : > { %5500 = vadd.xlane.f32.xlu0 %v11328_v12  ;;  %5562 = vadd.xlane.f32.xlu1 %v5540_v42  ;;  %v5541_v56 = vmul.f32 %v11328_v12, %v11328_v12 }
 0xf18   : > { %5564 = vadd.xlane.f32.xlu0 %v5541_v56 }
 0xf22   : > { %v6533_v37 = vpop.f32.mrf.mxu0 }
 0xf24   : > { %v6534_v16 = vpop.f32.mrf.mxu0 }
 0xf25   : > { %v6535_v41 = vadd.f32 %v6534_v16, %v6533_v37 }
 0xf26   : > { %v6536_v18 = vpop.f32.mrf.mxu0 }
 0xf27   : > { %v5438_v52 = vadd.f32 %v6535_v41, %v11277_v51 }
 0xf28   : > { %v6537_v29 = vpop.f32.mrf.mxu0 }
 0xf29   : > { %v6538_v43 = vadd.f32 %v6537_v29, %v6536_v18  ;;  %v11337_v28 = vadd.f32 %v5438_v52, %v11835_v38 }
 0xf2a   : > { %v6539_v33 = vpop.f32.mrf.mxu0 }
 0xf2b   : > { %v5441_v46 = vadd.f32 %v6538_v43, %v11277_v51  ;;  %5502 = vadd.xlane.f32.xlu1 %v11337_v28  ;;  %v5542_v31 = vmul.f32 %v11337_v28, %v11337_v28 }
 0xf2c   : > { %v6540_v6 = vpop.f32.mrf.mxu0 }
 0xf2d   : > { %v6541_v14 = vadd.f32 %v6540_v6, %v6539_v33  ;;  %v11342_v36 = vadd.f32 %v5441_v46, %v11836_v8 }
 0xf2e   : > { %v6542_v54 = vpop.f32.mrf.mxu0  ;;  %v6545_v1 = vpop.f32.mrf.mxu1 }
 0xf2f   : > { %v5446_v53 = vadd.f32 %v6541_v14, %v11277_v51  ;;  %5504 = vadd.xlane.f32.xlu0 %v11342_v36  ;;  %5566 = vadd.xlane.f32.xlu1 %v5542_v31  ;;  %v5543_v9 = vmul.f32 %v11342_v36, %v11342_v36 }
 0xf30   : > { %v6543_v59 = vpop.f32.mrf.mxu0  ;;  %v6546_v22 = vpop.f32.mrf.mxu1 }
 0xf31   : > { %v6544_v11 = vadd.f32 %v6543_v59, %v6542_v54  ;;  %v11351_v15 = vadd.f32 %v5446_v53, %v11837_v39  ;;  %v6547_v60 = vadd.f32 %v6546_v22, %v6545_v1 }
 0xf32   : > { %v6548_v61 = vpop.f32.mrf.mxu1 }
 0xf33   : > { %v5449_v30 = vadd.f32 %v6544_v11, %v11277_v51  ;;  %5568 = vadd.xlane.f32.xlu0 %v5543_v9  ;;  %5506 = vadd.xlane.f32.xlu1 %v11351_v15  ;;  %v5454_v32 = vadd.f32 %v6547_v60, %v11277_v51  ;;  %v5544_v20 = vmul.f32 %v11351_v15, %v11351_v15 }
 0xf34   : > { %v6549_v5 = vpop.f32.mrf.mxu1 }
 0xf35   : > { %v11357_v2 = vadd.f32 %v5449_v30, %v11838_v25  ;;  %v6550_v47 = vadd.f32 %v6549_v5, %v6548_v61  ;;  %v11364_v45 = vadd.f32 %v5454_v32, %v11839_v48 }
 0xf37   : > { %5508 = vadd.xlane.f32.xlu0 %v11357_v2  ;;  %5570 = vadd.xlane.f32.xlu1 %v5544_v20  ;;  %v5457_v23 = vadd.f32 %v6550_v47, %v11277_v51  ;;  %v5545_v57 = vmul.f32 %v11357_v2, %v11357_v2  ;;  %v5546_v62 = vmul.f32 %v11364_v45, %v11364_v45 }
 0xf39   : > { %v11370_v34 = vadd.f32 %v5457_v23, %v11840_v17 }
 0xf3b   : > { %5572 = vadd.xlane.f32.xlu0 %v5545_v57  ;;  %5510 = vadd.xlane.f32.xlu1 %v11364_v45  ;;  %v5547_v21 = vmul.f32 %v11370_v34, %v11370_v34 }
 0xf3f   : > { %5512 = vadd.xlane.f32.xlu0 %v11370_v34  ;;  %5574 = vadd.xlane.f32.xlu1 %v5546_v62 }
 0xf43   : > { %5576 = vadd.xlane.f32.xlu0 %v5547_v21 }
 0xf55   : > { %v6551_v0 = vpop.f32.mrf.mxu1 }
 0xf57   : > { %v6552_v49 = vpop.f32.mrf.mxu1 }
 0xf58   : > { %v6553_v24 = vadd.f32 %v6552_v49, %v6551_v0 }
 0xf59   : > { %v6554_v4 = vpop.f32.mrf.mxu1 }
 0xf5a   : > { %v5462_v26 = vadd.f32 %v6553_v24, %v11277_v51 }
 0xf5b   : > { %v6555_v58 = vpop.f32.mrf.mxu1 }
 0xf5c   : > { %v6556_v35 = vadd.f32 %v6555_v58, %v6554_v4  ;;  %v11379_v19 = vadd.f32 %v5462_v26, %v11841_v10 }
 0xf5e   : > { %v5465_v27 = vadd.f32 %v6556_v35, %v11277_v51  ;;  %5514 = vadd.xlane.f32.xlu1 %v11379_v19  ;;  %v5548_v56 = vmul.f32 %v11379_v19, %v11379_v19 }
 0xf60   : > { %v11384_v42 = vadd.f32 %v5465_v27, %v11842_v13 }
 0xf62   : > { %5516 = vadd.xlane.f32.xlu0 %v11384_v42  ;;  %5578 = vadd.xlane.f32.xlu1 %v5548_v56  ;;  %v5549_v37 = vmul.f32 %v11384_v42, %v11384_v42  ;;  %v11413_v56 = vld [vmem:[%s905_s20] ss:$0 sm:$0xff] }
 0xf66   : > { %5580 = vadd.xlane.f32.xlu0 %v5549_v37 }
 0xf7c   : > { %v5487_v16 = vpop.xlane.xlu1 %5486 }
 0xf7d   : > { %v5518_v41 = vmul.f32 0.0078125, %v5487_v16 }
 0xf7f   : > { %v5598_v51 = vmul.f32 %v5518_v41, %v5518_v41  ;;  %v5646_v26 = vsub.f32 %v11281_v55, %v5518_v41  ;;  %v11420_v55 = vld [vmem:[%s908_s23] ss:$0 sm:$0xff]  ;;  %s11845_s23 = sld [smem:[#allocation32_spill]] }
 0xf80   : > { %v5489_v18 = vpop.xlane.xlu0 %5488  ;;  %v5551_v52 = vpop.xlane.xlu1 %5550 }
 0xf81   : > { %v5519_v29 = vmul.f32 0.0078125, %v5489_v18  ;;  %v5582_v43 = vmul.f32 0.0078125, %v5551_v52 }
 0xf83   : > { %v5614_v38 = vsub.f32 %v5582_v43, %v5598_v51  ;;  %v5599_v6 = vmul.f32 %v5519_v29, %v5519_v29  ;;  %v5647_v52 = vsub.f32 %v11286_v50, %v5519_v29 }
 0xf84   : > { %v5553_v33 = vpop.xlane.xlu0 %5552  ;;  %v5491_v46 = vpop.xlane.xlu1 %5490 }
 0xf85   : > { %v5630_v14 = vmax.f32 %v5614_v38, 0.0  ;;  %v5583_v8 = vmul.f32 0.0078125, %v5553_v33  ;;  %v11391_v31 = vmul.f32 0.0078125, %v5491_v46  ;;  %p6317_p4 = scmp.ne.s32.totalorder %s11845_s23, 1 }
 0xf86   : > { %s11846_s15 = sld [smem:[#allocation100_spill]] (!%p6317_p4) }
 0xf87   : > { %v5662_v54 = vadd.f32 1e-12, %v5630_v14  ;;  %v5615_v1 = vsub.f32 %v5583_v8, %v5599_v6  ;;  %v5600_v53 = vmul.f32 %v11391_v31, %v11391_v31  ;;  %v5648_v8 = vsub.f32 %v11295_v3, %v11391_v31 }
 0xf88   : > { %v5493_v59 = vpop.xlane.xlu0 %5492  ;;  %v5555_v22 = vpop.xlane.xlu1 %5554 }
 0xf89   : > { %7656 = vrsqrt.f32 %v5662_v54  ;;  %v5631_v11 = vmax.f32 %v5615_v1, 0.0  ;;  %v11395_v9 = vmul.f32 0.0078125, %v5493_v59  ;;  %v5584_v39 = vmul.f32 0.0078125, %v5555_v22 }
 0xf8b   : > { %v5663_v60 = vadd.f32 1e-12, %v5631_v11  ;;  %v5616_v61 = vsub.f32 %v5584_v39, %v5600_v53  ;;  %v5601_v30 = vmul.f32 %v11395_v9, %v11395_v9  ;;  %v5649_v3 = vsub.f32 %v11300_v63, %v11395_v9 }
 0xf8c   : > { %v5557_v32 = vpop.xlane.xlu0 %5556  ;;  %v5495_v5 = vpop.xlane.xlu1 %5494 }
 0xf8d   : > { %7658 = vrsqrt.f32 %v5663_v60  ;;  %v5632_v25 = vmax.f32 %v5616_v61, 0.0  ;;  %v5585_v20 = vmul.f32 0.0078125, %v5557_v32  ;;  %v11399_v47 = vmul.f32 0.0078125, %v5495_v5 }
 0xf8f   : > { %v5664_v23 = vadd.f32 1e-12, %v5632_v25  ;;  %v5617_v48 = vsub.f32 %v5585_v20, %v5601_v30  ;;  %v5602_v57 = vmul.f32 %v11399_v47, %v11399_v47 }
 0xf90   : > { %v5497_v17 = vpop.xlane.xlu0 %5496  ;;  %v5559_v62 = vpop.xlane.xlu1 %5558 }
 0xf91   : > { %7660 = vrsqrt.f32 %v5664_v23  ;;  %v5633_v21 = vmax.f32 %v5617_v48, 0.0  ;;  %v11403_v0 = vmul.f32 0.0078125, %v5497_v17  ;;  %v5586_v49 = vmul.f32 0.0078125, %v5559_v62 }
 0xf92   : > { %v5650_v62 = vsub.f32 %v11309_v44, %v11399_v47 }
 0xf93   : > { %v5665_v24 = vadd.f32 1e-12, %v5633_v21  ;;  %v5618_v4 = vsub.f32 %v5586_v49, %v5602_v57  ;;  %v5603_v35 = vmul.f32 %v11403_v0, %v11403_v0 }
 0xf94   : > { %v5561_v58 = vpop.xlane.xlu0 %5560 }
 0xf95   : > { %7662 = vrsqrt.f32 %v5665_v24  ;;  %v5634_v10 = vmax.f32 %v5618_v4, 0.0  ;;  %v5587_v27 = vmul.f32 0.0078125, %v5561_v58  ;;  %v5651_v4 = vsub.f32 %v11314_v40, %v11403_v0 }
 0xf96   : > { %v7657_v13 = vpop.eup %7656 }
 0xf97   : > { %v5694_v37 = vmul.f32 %v7657_v13, %v5646_v26  ;;  %v5666_v16 = vadd.f32 1e-12, %v5634_v10  ;;  %v5619_v18 = vsub.f32 %v5587_v27, %v5603_v35 }
 0xf99   : > { %v5499_v41 = vpop.xlane.xlu1 %5498  ;;  %v5716_v51 = vmul.f32 %v11413_v56, %v5694_v37  ;;  %7664 = vrsqrt.f32 %v5666_v16  ;;  %v5635_v43 = vmax.f32 %v5619_v18, 0.0 }
 0xf9a   : > { %v7659_v38 = vpop.eup %7658  ;;  %v5524_v33 = vmul.f32 0.0078125, %v5499_v41 }
 0xf9b   : > { %v11425_v46 = vadd.f32 %v11420_v55, %v5716_v51  ;;  %v5695_v6 = vmul.f32 %v7659_v38, %v5647_v52  ;;  %v5667_v14 = vadd.f32 1e-12, %v5635_v43 }
 0xf9c   : > { %v5604_v22 = vmul.f32 %v5524_v33, %v5524_v33  ;;  %v5652_v27 = vsub.f32 %v11323_v7, %v5524_v33 }
 0xf9d   : > { %v5501_v54 = vpop.xlane.xlu0 %5500  ;;  %v5563_v1 = vpop.xlane.xlu1 %5562  ;;  %5754 = vst [vmem:[#allocation2 + $0x30] sm:$0xff] %v11425_v46  ;;  %v5717_v50 = vmul.f32 %v11413_v56, %v5695_v6  ;;  %7666 = vrsqrt.f32 %v5667_v14 }
 0xf9e   : > { %v5525_v29 = vmul.f32 0.0078125, %v5501_v54  ;;  %v5588_v53 = vmul.f32 0.0078125, %v5563_v1  ;;  %v7661_v59 = vpop.eup %7660 }
 0xf9f   : > { %v5739_v11 = vadd.f32 %v11420_v55, %v5717_v50  ;;  %v5696_v39 = vmul.f32 %v7661_v59, %v5648_v8 }
 0xfa0   : > { %v5620_v60 = vsub.f32 %v5588_v53, %v5604_v22  ;;  %v5605_v30 = vmul.f32 %v5525_v29, %v5525_v29  ;;  %v5653_v40 = vsub.f32 %v11328_v12, %v5525_v29 }
 0xfa1   : > { %v5565_v61 = vpop.xlane.xlu0 %5564  ;;  %5755 = vst [vmem:[#allocation2] sm:$0xff] %v5739_v11  ;;  %v5718_v31 = vmul.f32 %v11413_v56, %v5696_v39 }
 0xfa2   : > { %v5589_v32 = vmul.f32 0.0078125, %v5565_v61  ;;  %v7663_v5 = vpop.eup %7662  ;;  %v5636_v25 = vmax.f32 %v5620_v60, 0.0 }
 0xfa3   : > { %v5740_v20 = vadd.f32 %v11420_v55, %v5718_v31  ;;  %v5697_v23 = vmul.f32 %v7663_v5, %v5649_v3 }
 0xfa4   : > { %v5621_v48 = vsub.f32 %v5589_v32, %v5605_v30  ;;  %v5668_v57 = vadd.f32 1e-12, %v5636_v25 }
 0xfa5   : > { %5756 = vst [vmem:[#allocation2 + $0x58] sm:$0xff] %v5740_v20  ;;  %v5719_v17 = vmul.f32 %v11413_v56, %v5697_v23 }
 0xfa6   : > { %v5637_v21 = vmax.f32 %v5621_v48, 0.0  ;;  %v7665_v49 = vpop.eup %7664  ;;  %7668 = vrsqrt.f32 %v5668_v57 }
 0xfa7   : > { %v5741_v63 = vadd.f32 %v11420_v55, %v5719_v17  ;;  %v5698_v9 = vmul.f32 %v7665_v49, %v5650_v62 }
 0xfa8   : > { %v5669_v24 = vadd.f32 1e-12, %v5637_v21 }
 0xfa9   : > { %5757 = vst [vmem:[#allocation2 + $0x18] sm:$0xff] %v5741_v63  ;;  %v5720_v26 = vmul.f32 %v11413_v56, %v5698_v9 }
 0xfaa   : > { %7670 = vrsqrt.f32 %v5669_v24  ;;  %v7667_v58 = vpop.eup %7666 }
 0xfab   : > { %v5742_v35 = vadd.f32 %v11420_v55, %v5720_v26  ;;  %v5699_v10 = vmul.f32 %v7667_v58, %v5651_v4 }
 0xfad   : > { %5758 = vst [vmem:[#allocation2 + $0x50] sm:$0xff] %v5742_v35  ;;  %v5721_v44 = vmul.f32 %v11413_v56, %v5699_v10 }
 0xfaf   : > { %v5743_v47 = vadd.f32 %v11420_v55, %v5721_v44 }
 0xfb1   : > { %5759 = vst [vmem:[#allocation2 + $0x68] sm:$0xff] %v5743_v47 }
 0xfb3   : > { %v7669_v13 = vpop.eup %7668 }
 0xfb4   : > { %v5700_v37 = vmul.f32 %v7669_v13, %v5652_v27  ;;  %v5503_v16 = vpop.xlane.xlu1 %5502 }
 0xfb5   : > { %v5526_v0 = vmul.f32 0.0078125, %v5503_v16 }
 0xfb6   : > { %v5722_v41 = vmul.f32 %v11413_v56, %v5700_v37 }
 0xfb7   : > { %v7671_v18 = vpop.eup %7670  ;;  %v5606_v14 = vmul.f32 %v5526_v0, %v5526_v0  ;;  %v5654_v10 = vsub.f32 %v11337_v28, %v5526_v0 }
 0xfb8   : > { %v5701_v52 = vmul.f32 %v7671_v18, %v5653_v40  ;;  %v5744_v51 = vadd.f32 %v11420_v55, %v5722_v41  ;;  %v5505_v43 = vpop.xlane.xlu0 %5504  ;;  %v5567_v38 = vpop.xlane.xlu1 %5566 }
 0xfb9   : > { %v5527_v8 = vmul.f32 0.0078125, %v5505_v43  ;;  %v5590_v54 = vmul.f32 0.0078125, %v5567_v38 }
 0xfba   : > { %v5723_v6 = vmul.f32 %v11413_v56, %v5701_v52  ;;  %5760 = vst [vmem:[#allocation2 + $0x8] sm:$0xff] %v5744_v51 }
 0xfbb   : > { %v5622_v33 = vsub.f32 %v5590_v54, %v5606_v14  ;;  %v5607_v50 = vmul.f32 %v5527_v8, %v5527_v8  ;;  %v5655_v41 = vsub.f32 %v11342_v36, %v5527_v8 }
 0xfbc   : > { %v5745_v7 = vadd.f32 %v11420_v55, %v5723_v6  ;;  %v5569_v1 = vpop.xlane.xlu0 %5568  ;;  %v5507_v12 = vpop.xlane.xlu1 %5506 }
 0xfbd   : > { %v5638_v29 = vmax.f32 %v5622_v33, 0.0  ;;  %v5591_v53 = vmul.f32 0.0078125, %v5569_v1  ;;  %v5528_v59 = vmul.f32 0.0078125, %v5507_v12 }
 0xfbe   : > { %5761 = vst [vmem:[#allocation2 + $0x48] sm:$0xff] %v5745_v7 }
 0xfbf   : > { %v5670_v22 = vadd.f32 1e-12, %v5638_v29  ;;  %v5623_v11 = vsub.f32 %v5591_v53, %v5607_v50  ;;  %v5608_v39 = vmul.f32 %v5528_v59, %v5528_v59  ;;  %v5656_v14 = vsub.f32 %v11351_v15, %v5528_v59 }
 0xfc0   : > { %v5509_v60 = vpop.xlane.xlu0 %5508  ;;  %v5571_v61 = vpop.xlane.xlu1 %5570 }
 0xfc1   : > { %7672 = vrsqrt.f32 %v5670_v22  ;;  %v5639_v3 = vmax.f32 %v5623_v11, 0.0  ;;  %v5529_v31 = vmul.f32 0.0078125, %v5509_v60  ;;  %v5592_v30 = vmul.f32 0.0078125, %v5571_v61 }
 0xfc3   : > { %v5671_v32 = vadd.f32 1e-12, %v5639_v3  ;;  %v5624_v5 = vsub.f32 %v5592_v30, %v5608_v39  ;;  %v5609_v25 = vmul.f32 %v5529_v31, %v5529_v31  ;;  %v5657_v36 = vsub.f32 %v11357_v2, %v5529_v31 }
 0xfc4   : > { %v5573_v20 = vpop.xlane.xlu0 %5572  ;;  %v5511_v23 = vpop.xlane.xlu1 %5510 }
 0xfc5   : > { %7674 = vrsqrt.f32 %v5671_v32  ;;  %v5640_v48 = vmax.f32 %v5624_v5, 0.0  ;;  %v5593_v57 = vmul.f32 0.0078125, %v5573_v20  ;;  %v5530_v17 = vmul.f32 0.0078125, %v5511_v23 }
 0xfc7   : > { %v5672_v62 = vadd.f32 1e-12, %v5640_v48  ;;  %v5625_v21 = vsub.f32 %v5593_v57, %v5609_v25  ;;  %v5610_v49 = vmul.f32 %v5530_v17, %v5530_v17  ;;  %v5658_v53 = vsub.f32 %v11364_v45, %v5530_v17 }
 0xfc8   : > { %v5513_v63 = vpop.xlane.xlu0 %5512  ;;  %v5575_v9 = vpop.xlane.xlu1 %5574 }
 0xfc9   : > { %7676 = vrsqrt.f32 %v5672_v62  ;;  %v5641_v24 = vmax.f32 %v5625_v21, 0.0  ;;  %v5531_v4 = vmul.f32 0.0078125, %v5513_v63  ;;  %v5594_v26 = vmul.f32 0.0078125, %v5575_v9 }
 0xfcb   : > { %v5673_v58 = vadd.f32 1e-12, %v5641_v24  ;;  %v5626_v35 = vsub.f32 %v5594_v26, %v5610_v49  ;;  %v5611_v47 = vmul.f32 %v5531_v4, %v5531_v4  ;;  %v5659_v11 = vsub.f32 %v11370_v34, %v5531_v4 }
 0xfcc   : > { %v5577_v44 = vpop.xlane.xlu0 %5576 }
 0xfcd   : > { %7678 = vrsqrt.f32 %v5673_v58  ;;  %v5642_v27 = vmax.f32 %v5626_v35, 0.0  ;;  %v5595_v13 = vmul.f32 0.0078125, %v5577_v44 }
 0xfce   : > { %v7673_v37 = vpop.eup %7672 }
 0xfcf   : > { %v5702_v16 = vmul.f32 %v7673_v37, %v5654_v10  ;;  %v5674_v40 = vadd.f32 1e-12, %v5642_v27  ;;  %v5627_v18 = vsub.f32 %v5595_v13, %v5611_v47 }
 0xfd1   : > { %v5724_v52 = vmul.f32 %v11413_v56, %v5702_v16  ;;  %7680 = vrsqrt.f32 %v5674_v40  ;;  %v5643_v51 = vmax.f32 %v5627_v18, 0.0 }
 0xfd2   : > { %v7675_v43 = vpop.eup %7674 }
 0xfd3   : > { %v5746_v38 = vadd.f32 %v11420_v55, %v5724_v52  ;;  %v5703_v6 = vmul.f32 %v7675_v43, %v5655_v41  ;;  %v5675_v28 = vadd.f32 1e-12, %v5643_v51 }
 0xfd5   : > { %5762 = vst [vmem:[#allocation2 + $0x40] sm:$0xff] %v5746_v38  ;;  %v5725_v0 = vmul.f32 %v11413_v56, %v5703_v6  ;;  %7682 = vrsqrt.f32 %v5675_v28 }
 0xfd6   : > { %v7677_v54 = vpop.eup %7676 }
 0xfd7   : > { %v5747_v7 = vadd.f32 %v11420_v55, %v5725_v0  ;;  %v5704_v33 = vmul.f32 %v7677_v54, %v5656_v14 }
 0xfd9   : > { %5763 = vst [vmem:[#allocation2 + $0x20] sm:$0xff] %v5747_v7  ;;  %v5726_v8 = vmul.f32 %v11413_v56, %v5704_v33 }
 0xfda   : > { %v7679_v1 = vpop.eup %7678 }
 0xfdb   : > { %v5748_v12 = vadd.f32 %v11420_v55, %v5726_v8  ;;  %v5705_v50 = vmul.f32 %v7679_v1, %v5657_v36 }
 0xfdd   : > { %5764 = vst [vmem:[#allocation2 + $0x10] sm:$0xff] %v5748_v12  ;;  %v5727_v29 = vmul.f32 %v11413_v56, %v5705_v50 }
 0xfde   : > { %v7681_v15 = vpop.eup %7680 }
 0xfdf   : > { %v5749_v59 = vadd.f32 %v11420_v55, %v5727_v29  ;;  %v5706_v22 = vmul.f32 %v7681_v15, %v5658_v53 }
 0xfe1   : > { %5765 = vst [vmem:[#allocation2 + $0x38] sm:$0xff] %v5749_v59  ;;  %v5728_v2 = vmul.f32 %v11413_v56, %v5706_v22 }
 0xfe2   : > { %v7683_v39 = vpop.eup %7682 }
 0xfe3   : > { %v5750_v60 = vadd.f32 %v11420_v55, %v5728_v2  ;;  %v5707_v61 = vmul.f32 %v7683_v39, %v5659_v11 }
 0xfe5   : > { %5766 = vst [vmem:[#allocation2 + $0x60] sm:$0xff] %v5750_v60  ;;  %v5729_v3 = vmul.f32 %v11413_v56, %v5707_v61 }
 0xfe7   : > { %v5751_v31 = vadd.f32 %v11420_v55, %v5729_v3  ;;  %v5515_v30 = vpop.xlane.xlu1 %5514 }
 0xfe8   : > { %v5532_v45 = vmul.f32 0.0078125, %v5515_v30 }
 0xfe9   : > { %5767 = vst [vmem:[#allocation2 + $0x70] sm:$0xff] %v5751_v31 }
 0xfea   : > { %v5612_v25 = vmul.f32 %v5532_v45, %v5532_v45  ;;  %v5660_v24 = vsub.f32 %v11379_v19, %v5532_v45 }
 0xfeb   : > { %v5517_v32 = vpop.xlane.xlu0 %5516  ;;  %v5579_v5 = vpop.xlane.xlu1 %5578 }
 0xfec   : > { %v5533_v20 = vmul.f32 0.0078125, %v5517_v32  ;;  %v5596_v23 = vmul.f32 0.0078125, %v5579_v5 }
 0xfee   : > { %v5628_v34 = vsub.f32 %v5596_v23, %v5612_v25  ;;  %v5613_v57 = vmul.f32 %v5533_v20, %v5533_v20  ;;  %v5661_v58 = vsub.f32 %v11384_v42, %v5533_v20 }
 0xfef   : > { %v5581_v48 = vpop.xlane.xlu0 %5580 }
 0xff0   : > { %v5644_v17 = vmax.f32 %v5628_v34, 0.0  ;;  %v5597_v62 = vmul.f32 0.0078125, %v5581_v48 }
 0xff2   : > { %v5676_v21 = vadd.f32 1e-12, %v5644_v17  ;;  %v5629_v49 = vsub.f32 %v5597_v62, %v5613_v57 }
 0xff4   : > { %7684 = vrsqrt.f32 %v5676_v21  ;;  %v5645_v63 = vmax.f32 %v5629_v49, 0.0 }
 0xff6   : > { %v5677_v9 = vadd.f32 1e-12, %v5645_v63 }
 0xff8   : > { %7686 = vrsqrt.f32 %v5677_v9 }
0x1001   : > { %v7685_v4 = vpop.eup %7684 }
0x1002   : > { %v5708_v26 = vmul.f32 %v7685_v4, %v5660_v24 }
0x1004   : > { %v5730_v35 = vmul.f32 %v11413_v56, %v5708_v26 }
0x1005   : > { %v7687_v10 = vpop.eup %7686 }
0x1006   : > { %v5752_v44 = vadd.f32 %v11420_v55, %v5730_v35  ;;  %v5709_v47 = vmul.f32 %v7687_v10, %v5661_v58 }
0x1008   : > { %5768 = vst [vmem:[#allocation2 + $0x78] sm:$0xff] %v5752_v44  ;;  %v5731_v27 = vmul.f32 %v11413_v56, %v5709_v47  ;;  %5773 = sbr.rel (%p6317_p4) target bundleno = 4497 (0x1191), region = 132 }
0x100a   : > { %v5753_v13 = vadd.f32 %v11420_v55, %v5731_v27 }
0x100c   : > { %5769 = vst [vmem:[#allocation2 + $0x28] sm:$0xff] %v5753_v13 }
0x100d   : > { %v7704_v19 = vld [vmem:[#allocation18 + $0x38] sm:$0xff]   ;;  %v8121_v37 = vmov 0.0   ;;  %v7705_v42 = vld [vmem:[#allocation18 + $0x30] sm:$0xff]   ;;  %vm8122_vm4 = vmmov 0   ;;  %v7706_v16 = vld [vmem:[#allocation18 + $0x28] sm:$0xff]   ;;  %v5774_v52 = vpack.c.bf16 %v11425_v46, %v11425_v46  ;;  %vm5881_vm5 = vcmask 1040384  }
0x100e   : > { %6886 = vmatprep.subr.bf16.mxu0 %v8121_v37  ;;  %6902 = vmatprep.mubr.msk.bf16.mxu0 %vm8122_vm4, %v8121_v37  ;;  %v7707_v40 = vld [vmem:[#allocation18 + $0x20] sm:$0xff]   ;;  %v7708_v56 = vld [vmem:[#allocation18 + $0x18] sm:$0xff]   ;;  %v7709_v55 = vld [vmem:[#allocation18 + $0x10] sm:$0xff]  }
0x100f   : > { %6887 = vmatpush3.bf16.msra.mxu0 %v7704_v19  ;;  %v7710_v18 = vld [vmem:[#allocation18 + $0x8] sm:$0xff]   ;;  %v7711_v41 = vld [vmem:[#allocation18] sm:$0xff]   ;;  %v5791_v51 = vld [vmem:[%s11846_s15] sm:$0x1] }
0x1010   : > { %6888 = vmatprep.subr.bf16.mxu0 %v8121_v37 }
0x1013   : > { %6889 = vmatpush3.bf16.msra.mxu0 %v7705_v42 }
0x1014   : > { %6890 = vmatprep.subr.bf16.mxu0 %v8121_v37 }
0x1017   : > { %6891 = vmatpush3.bf16.msra.mxu0 %v7706_v16 }
0x1018   : > { %6892 = vmatprep.subr.bf16.mxu0 %v8121_v37 }
0x101b   : > { %6893 = vmatpush3.bf16.msra.mxu0 %v7707_v40 }
0x101c   : > { %6894 = vmatprep.subr.bf16.mxu0 %v8121_v37 }
0x101f   : > { %6895 = vmatpush3.bf16.msra.mxu0 %v7708_v56 }
0x1020   : > { %6896 = vmatprep.subr.bf16.mxu0 %v8121_v37 }
0x1023   : > { %6897 = vmatpush3.bf16.msra.mxu0 %v7709_v55 }
0x1024   : > { %6898 = vmatprep.subr.bf16.mxu0 %v8121_v37 }
0x1027   : > { %6899 = vmatpush3.bf16.msra.mxu0 %v7710_v18 }
0x1028   : > { %6900 = vmatprep.subr.bf16.mxu0 %v8121_v37 }
0x102b   : > { %6901 = vmatpush3.bf16.msra.mxu0 %v7711_v41 }
0x102e   : > { %6903 = vmatmul.mubr.bf16.vlgmr.msra.gmra.mxu0 %v5774_v52 }
0x10ee   : > { %v5874_v43 = vpop.f32.mrf.mxu0 }
0x10ef   : > { %v5875_v38 = vadd.f32 %v5874_v43, %v5791_v51 }
0x10f0   : > { %v6904_v6 = vpop.f32.mrf.mxu0 }
0x10f1   : > { %v5880_v28 = vmul.f32 %v5875_v38, %v5875_v38 }
0x10f2   : > { %v5877_v0 = vpop.f32.mrf.mxu0 }
0x10f3   : > { %v5882_v14 = vsel %vm5881_vm5, %v5880_v28, 0.0 }
0x10f4   : > { %v6905_v54 = vpop.f32.mrf.mxu0  ;;  %5883 = vadd.xlane.f32.xlu0 %v5882_v14 }
0x117d   : > { %v5884_v7 = vpop.xlane.xlu0 %5883 }
0x117e   : > { %v5885_v33 = vmax.f32 %v5884_v7, 1e-24 }
0x1180   : > { %7712 = vrsqrt.f32 %v5885_v33 }
0x118d   : > { %v7713_v46 = vpop.eup %7712 }
0x118e   : > { %v5887_v36 = vmul.f32 %v7713_v46, %v5875_v38 }
0x1190   : > { %5888 = vst [vmem:[%s885_s17] sm:$0x1] %v5887_v36 }
0x1191 PF: > { %s11847_s5 = sld [smem:[#allocation33_spill]]  ;;  %s5902_s0 = sshll.u32 %s885_s17, 4  ;;  %s5903_s0 = int_to_ptr.vmem [resolvable:$true] %s5902_s0 }
0x1192   : > { %s11849_s29 = sld [smem:[#allocation101_spill]]  ;;  %s5890_s16 = scalar_lea.sflag [#allocation6], %s8484_s21 }
0x1193   : > { %s7960_s14 = scalar_lea.vmem %s5903_s0, 16  ;;  %s8123_s13 = smov [#allocation19]  }
0x1194   : > { %p7961_p12 = scmp.ne.s32.totalorder %s5903_s0, %s7960_s14  ;;  %s7964_s24 = sshll.u32 %s8123_s13, 4  ;;  %s7965_s24 = int_to_ptr.vmem [resolvable:$false] %s7964_s24 }
0x1195   : > { %s7966_s22 = scalar_lea.vmem %s7965_s24, 32  ;;  %p7967_p0 = scmp.lt.s32.totalorder %s5903_s0, %s7965_s24 }
0x1196   : > { %p7962_p2 = pnand %p7961_p12, %p8402_p6  ;;  %p7968_p10 = scmp.lt.s32.totalorder %s7966_s22, %s7960_s14 }
0x1197   : > { %s6326_s7 = sshll.u32 %s11847_s5, 4 }
0x1198   : > { %s11850_s11 = smov %s11849_s29  ;;  %s5900_s1 = scalar_lea.hbm %s11849_s29, %s6326_s7 }
0x1199   : > { %p7963_p3 = pneg %p7962_p2  ;;  %p7969_p8 = por %p7968_p10, %p7967_p0 }
0x119b   : > { %p7970_p1 = pnand %p7969_p8, %p7963_p3 }
0x119d   : > { %7973 = shalt.err (!%p7970_p1)
}
0x119e   : > { %s7974_s10 = scalar_lea.hbm %s5900_s1, 16  ;;  %s7978_s6 = scalar_lea.hbm %s11850_s11, 32 }
0x119f   : > { %p7975_p5 = scmp.ne.s32.totalorder %s5900_s1, %s7974_s10  ;;  %p7979_p9 = scmp.lt.s32.totalorder %s5900_s1, %s11850_s11 }
0x11a0   : > { %p7980_p13 = scmp.lt.s32.totalorder %s7978_s6, %s7974_s10 }
0x11a1   : > { %p7976_p7 = pnand %p7975_p5, %p8402_p6 }
0x11a2   : > { %p7981_p4 = por %p7980_p13, %p7979_p9 }
0x11a3   : > { %p7977_p11 = pneg %p7976_p7 }
0x11a5   : > { %p7982_p12 = pnand %p7981_p4, %p7977_p11 }
0x11a7   : > { %7985 = shalt.err (!%p7982_p12)
}
0x11a8   : > { %6982 = dma.vmem_to_hbm [thread:$0]  (%p8402_p6), %s5903_s0, 16, %s5900_s1, %s5890_s16  }
0x11a9 PF: > { %s11851_s18 = sld [smem:[#allocation36_spill]] }
0x11aa   : > { %s11852_s2 = sld [smem:[#allocation29_spill]] }
0x11ab   : > { %s11853_s3 = sld [smem:[#allocation39_spill]] }
0x11af   : > { %p7024_p2 = scmp.ge.s32.totalorder %s11851_s18, 2 }
0x11b0   : > { %s5914_s9 = sand.u32 1, %s11852_s2  }
0x11b1   : > { %p11854_p3 = scmp.ne.s32.totalorder %s11853_s3, 0  ;;  %s5915_s25 = scalar_lea.sflag [#allocation6], %s5914_s9 }
0x11b3   : > { %p7014_p0 = pnand %p7024_p2, %p11854_p3 }
0x11b5   : > { %p7015_p10 = pneg %p7014_p0 }
0x11b7   : > { %8055 = dma.done.wait (%p7015_p10), %s5915_s25, 16  }
0x11b8   : > { %8057 = vsyncadd (%p7015_p10), %s5915_s25, 4294967280  ;;  %s43_s1 = sadd.s32 1, %s11851_s18   ;;  %s11855_s24 = sld [smem:[#allocation27_spill]] }
0x11b9   : > { %p40_p8 = scmp.ge.s32.totalorder %s43_s1, 6   ;;  %s11856_s25 = sld [smem:[#allocation28_spill]] }
0x11ba   : > { %s11857_s26 = sld [smem:[#allocation44_spill]] }
0x11bb   : > { %s11858_s27 = sld [smem:[#allocation30_spill]] }
0x11bc   : > { %s11859_s28 = sld [smem:[#allocation31_spill]] }
0x11bd   : > { %s11860_s29 = sld [smem:[#allocation45_spill]]  ;;  %42 = sbr.rel (!%p40_p8) target bundleno = 35 (0x23), region = 235 }
0x11be   : > { %s11861_s0 = sld [smem:[#allocation34_spill]] }
0x11bf   : > { %s11862_s30 = sld [smem:[#allocation35_spill]] }
0x11c0   : > { %s11863_s18 = sld [smem:[#allocation41_spill]] }
0x11c1   : > { %s11864_s19 = sld [smem:[#allocation43_spill]] }
0x11c2   :  { %5919 = vsyncpa [#allocation5], 1 }
0x11c3   :  { %5921 = vsyncpa [#allocation5 + $0x1], 1 }
0x11c4   :  { %5922 = vsyncpa [#allocation8], 1 }
0x11c5   :  { %5923 = vsyncpa [#allocation11], 1 }
0x11c6   :  { %5925 = vsyncpa [#allocation11 + $0x1], 1 }
0x11c7   :  { %5926 = vsyncpa [#allocation14], 1 }
0x11c8   :  { %5928 = vsyncpa [#allocation14 + $0x1], 1 }
0x11c9   :  { %5929 = vsyncpa [#allocation17], 1 }
0x11ca   :  { %5931 = vsyncpa [#allocation17 + $0x1], 1 }
0x11cb   :  { %5932 = vsyncpa [#allocation6], 1 }
0x11cc   :  { %5934 = vsyncpa [#allocation6 + $0x1], 1 }

</bundles_post_ra>
